<compile_context>
chip_gen: v7x
topology: tpu7x:2x2x1
jax: 0.10.0
libtpu: 0.0.40
codegen_flags: <defaults>
</compile_context>

<pallas_src>
import functools

import jax
import jax.numpy as jnp
import numpy as np
from jax import lax
from jax.experimental import pallas as pl
from jax.experimental.pallas import tpu as pltpu


# ----------------------------------------------------------------------------
# in-kernel conv helper: 3x3 / stride 1 / pad 1 on a zero-padded NHWC VMEM tile
# with the batch folded into the matmul M dimension.
# ----------------------------------------------------------------------------
def _conv3x3(pad_ref, w_ref, b_ref, M, H, W, cin, cout):
    """pad_ref: (B, H+2, W+2, cin) f32 scratch (border zero, interior = input)
       w_ref  : (3, 3, cin, cout) bf16
       b_ref  : (1, cout) f32
       returns (M, cout) f32, M = B*H*W."""
    acc = jnp.zeros((M, cout), jnp.float32)
    for dy in range(3):
        for dx in range(3):
            patch = pad_ref[:, dy:dy + H, dx:dx + W, :].reshape(M, cin)
            acc += jnp.dot(patch.astype(jnp.bfloat16), w_ref[dy, dx],
                           preferred_element_type=jnp.float32)
    return acc + b_ref[...].astype(jnp.float32)


# ----------------------------------------------------------------------------
# fused Branch2 kernel
# ----------------------------------------------------------------------------
def branch2_kernel(x_ref, h_ref, c_ref,
                   sw1_ref, sb1_ref, sw2_ref, sb2_ref, sw3_ref, sb3_ref,
                   w1_ref, b1_ref, w2_ref, b2_ref, w3_ref, b3_ref, w4_ref, b4_ref,
                   wg_ref, bg_ref,
                   xo_ref, ho_ref, co_ref,
                   pad1_ref, pad2_ref,
                   *, H, W):
    B = x_ref.shape[0]
    C = x_ref.shape[-1]
    M = B * H * W

    # ---- SELayer: global avg-pool + 3-layer MLP + sigmoid channel scale -----
    x = x_ref[...].astype(jnp.float32)
    y = jnp.mean(x.reshape(B, H * W, C), axis=1)                       # (B, C)
    y = jnp.maximum(jnp.dot(y, sw1_ref[...],
                            preferred_element_type=jnp.float32) + sb1_ref[...], 0.0)
    y = jnp.maximum(jnp.dot(y, sw2_ref[...],
                            preferred_element_type=jnp.float32) + sb2_ref[...], 0.0)
    y = jax.nn.sigmoid(jnp.dot(y, sw3_ref[...],
                               preferred_element_type=jnp.float32) + sb3_ref[...])
    x = x * y[:, None, None, :]                                        # (B,H,W,C)

    # zero the halos once; only the interiors are rewritten below.
    pad1_ref[...] = jnp.zeros_like(pad1_ref)
    pad2_ref[...] = jnp.zeros_like(pad2_ref)

    # ---- conv1 + ReLU  (-> res1) --------------------------------------------
    pad1_ref[:, 1:H + 1, 1:W + 1, :] = x
    a1 = jnp.maximum(_conv3x3(pad1_ref, w1_ref, b1_ref, M, H, W, C, C), 0.0)

    # ---- conv2 + ReLU  (-> res2) --------------------------------------------
    pad1_ref[:, 1:H + 1, 1:W + 1, :] = a1.reshape(B, H, W, C)
    a2 = jnp.maximum(_conv3x3(pad1_ref, w2_ref, b2_ref, M, H, W, C, C), 0.0)

    # ---- LSTM128: single fused gate conv on cat(x, h) (i|f|g|o along Cout) --
    pad2_ref[:, 1:H + 1, 1:W + 1, 0:C] = a2.reshape(B, H, W, C)
    pad2_ref[:, 1:H + 1, 1:W + 1, C:2 * C] = h_ref[...].astype(jnp.float32)
    gates = _conv3x3(pad2_ref, wg_ref, bg_ref, M, H, W, 2 * C, 4 * C)  # (M, 4C)
    gi = jax.nn.sigmoid(gates[:, 0 * C:1 * C])
    gf = jax.nn.sigmoid(gates[:, 1 * C:2 * C])
    gg = jnp.tanh(gates[:, 2 * C:3 * C])
    go = jax.nn.sigmoid(gates[:, 3 * C:4 * C])

    c_prev = c_ref[...].astype(jnp.float32).reshape(M, C)
    c_new = gf * c_prev + gi * gg
    h_new = go * jnp.tanh(c_new) + a2            # h = o*tanh(c) + res2

    # ---- conv3 + ReLU, then + res1 ------------------------------------------
    pad1_ref[:, 1:H + 1, 1:W + 1, :] = h_new.reshape(B, H, W, C)
    a3 = jnp.maximum(_conv3x3(pad1_ref, w3_ref, b3_ref, M, H, W, C, C), 0.0) + a1

    # ---- conv4 + ReLU --------------------------------------------------------
    pad1_ref[:, 1:H + 1, 1:W + 1, :] = a3.reshape(B, H, W, C)
    a4 = jnp.maximum(_conv3x3(pad1_ref, w4_ref, b4_ref, M, H, W, C, C), 0.0)

    xo_ref[...] = a4.reshape(B, H, W, C).astype(xo_ref.dtype)
    ho_ref[...] = h_new.reshape(B, H, W, C).astype(ho_ref.dtype)
    co_ref[...] = c_new.reshape(B, H, W, C).astype(co_ref.dtype)


# ----------------------------------------------------------------------------
# wrapper: one pallas_call, everything VMEM-resident
# ----------------------------------------------------------------------------
def branch2_pallas(x, h, c, DP):
    B, H, W, C = x.shape
    kernel = functools.partial(branch2_kernel, H=H, W=W)
    out_shape = tuple(jax.ShapeDtypeStruct((B, H, W, C), x.dtype) for _ in range(3))
    return pl.pallas_call(
        kernel,
        out_shape=out_shape,
        scratch_shapes=[
            pltpu.VMEM((B, H + 2, W + 2, C), jnp.float32),       # conv halo buffer
            pltpu.VMEM((B, H + 2, W + 2, 2 * C), jnp.float32),   # cat(x, h) halo buffer
        ],
        compiler_params=pltpu.CompilerParams(vmem_limit_bytes=32 * 1024 * 1024),
    )(x, h, c,
      DP["se_w1"], DP["se_b1"], DP["se_w2"], DP["se_b2"], DP["se_w3"], DP["se_b3"],
      DP["w1"], DP["b1"], DP["w2"], DP["b2"], DP["w3"], DP["b3"], DP["w4"], DP["b4"],
      DP["w_gates"], DP["b_gates"])


def prepare_params(P):
    """One-time host-side packing: bf16 conv weights, fused i|f|g|o gate weights,
    (1, Cout) biases."""
    DP = {
        "se_w1": P["se_w1"], "se_b1": P["se_b1"].reshape(1, -1),
        "se_w2": P["se_w2"], "se_b2": P["se_b2"].reshape(1, -1),
        "se_w3": P["se_w3"], "se_b3": P["se_b3"].reshape(1, -1),
    }
    for n in ("1", "2", "3", "4"):
        DP["w" + n] = P["w" + n].astype(jnp.bfloat16)
        DP["b" + n] = P["b" + n].reshape(1, -1)
    DP["w_gates"] = jnp.concatenate(
        [P["w_i"], P["w_f"], P["w_g"], P["w_o"]], axis=-1).astype(jnp.bfloat16)
    DP["b_gates"] = jnp.concatenate(
        [P["b_i"], P["b_f"], P["b_g"], P["b_o"]]).reshape(1, -1)
    return DP


# ----------------------------------------------------------------------------
# pure-JAX reference (f32 params, default precision) for correctness check
# ----------------------------------------------------------------------------
def _conv_ref(x, w, b):
    y = lax.conv_general_dilated(
        x, w, (1, 1), "SAME", dimension_numbers=("NHWC", "HWIO", "NHWC"))
    return y + b.reshape(1, 1, 1, -1)


def branch2_ref(x, h, c, P):
    y = jnp.mean(x, axis=(1, 2))
    y = jnp.maximum(jnp.dot(y, P["se_w1"]) + P["se_b1"], 0.0)
    y = jnp.maximum(jnp.dot(y, P["se_w2"]) + P["se_b2"], 0.0)
    y = jax.nn.sigmoid(jnp.dot(y, P["se_w3"]) + P["se_b3"])
    x = x * y[:, None, None, :]
    x = jnp.maximum(_conv_ref(x, P["w1"], P["b1"]), 0.0); res1 = x
    x = jnp.maximum(_conv_ref(x, P["w2"], P["b2"]), 0.0); res2 = x
    xh = jnp.concatenate([x, h], axis=-1)
    i = jax.nn.sigmoid(_conv_ref(xh, P["w_i"], P["b_i"]))
    f = jax.nn.sigmoid(_conv_ref(xh, P["w_f"], P["b_f"]))
    g = jnp.tanh(_conv_ref(xh, P["w_g"], P["b_g"]))
    o = jax.nn.sigmoid(_conv_ref(xh, P["w_o"], P["b_o"]))
    c = f * c + i * g
    h = o * jnp.tanh(c) + res2
    x = jnp.maximum(_conv_ref(h, P["w3"], P["b3"]), 0.0) + res1
    x = jnp.maximum(_conv_ref(x, P["w4"], P["b4"]), 0.0)
    return x, h, c


# ----------------------------------------------------------------------------
# deterministic synthetic parameters (shapes from the module's __init__)
# ----------------------------------------------------------------------------
def init_params(key, C=128, reduction=8):
    ks = jax.random.split(key, 24)
    cr = C // reduction

    def rnd(k, shape, scale):
        return jax.random.normal(k, shape, jnp.float32) * scale

    P = {
        "se_w1": rnd(ks[0], (C, cr), 0.05), "se_b1": jnp.zeros((cr,), jnp.float32),
        "se_w2": rnd(ks[1], (cr, cr), 0.05), "se_b2": jnp.zeros((cr,), jnp.float32),
        "se_w3": rnd(ks[2], (cr, C), 0.05), "se_b3": jnp.zeros((C,), jnp.float32),
    }
    for idx, name in enumerate(("1", "2", "3", "4")):
        P["w" + name] = rnd(ks[3 + idx], (3, 3, C, C), 0.02)
        P["b" + name] = rnd(ks[7 + idx], (C,), 0.01)
    for idx, gate in enumerate(("i", "f", "g", "o")):
        P[f"w_{gate}"] = rnd(ks[11 + idx], (3, 3, 2 * C, C), 0.02)
        P[f"b_{gate}"] = rnd(ks[15 + idx], (C,), 0.01)
    return P


if __name__ == "__main__":
    key = jax.random.PRNGKey(0)
    kx, kh, kc, kp = jax.random.split(key, 4)

    B, C, H, W = 2, 128, 8, 8                      # n_feats = 64 -> channels = 128
    x_nchw = jax.random.normal(kx, (B, C, H, W), jnp.float32)
    h_nchw = jax.random.normal(kh, (B, C, H, W), jnp.float32)
    c_nchw = jax.random.normal(kc, (B, C, H, W), jnp.float32)

    # NCHW (PyTorch) -> NHWC (kernel layout)
    x = jnp.transpose(x_nchw, (0, 2, 3, 1))
    h = jnp.transpose(h_nchw, (0, 2, 3, 1))
    c = jnp.transpose(c_nchw, (0, 2, 3, 1))

    P = init_params(kp, C=C, reduction=8)
    DP = prepare_params(P)

    fwd = jax.jit(branch2_pallas)
    out_x, out_h, out_c = fwd(x, h, c, DP)
    jax.block_until_ready((out_x, out_h, out_c))

    # Tolerance reflects bf16 MXU arithmetic across 5 stacked convs vs. the f32
    # reference; structural errors (wrong gate order / residual / padding) would
    # be O(0.1-1) and still fail this check.
    ref_x, ref_h, ref_c = branch2_ref(x, h, c, P)
    np.testing.assert_allclose(np.asarray(out_x), np.asarray(ref_x), atol=3e-2, rtol=3e-2)
    np.testing.assert_allclose(np.asarray(out_h), np.asarray(ref_h), atol=3e-2, rtol=3e-2)
    np.testing.assert_allclose(np.asarray(out_c), np.asarray(ref_c), atol=3e-2, rtol=3e-2)

    print("KERNEL_OK")
</pallas_src>

<mosaic_0001>
module attributes {stable_mosaic.version = 11 : i64} {
  func.func @branch2_kernel(%arg0: memref<2x8x8x128xf32, #tpu.memory_space<vmem>>, %arg1: memref<2x8x8x128xf32, #tpu.memory_space<vmem>>, %arg2: memref<2x8x8x128xf32, #tpu.memory_space<vmem>>, %arg3: memref<128x16xf32, #tpu.memory_space<vmem>>, %arg4: memref<1x16xf32, #tpu.memory_space<vmem>>, %arg5: memref<16x16xf32, #tpu.memory_space<vmem>>, %arg6: memref<1x16xf32, #tpu.memory_space<vmem>>, %arg7: memref<16x128xf32, #tpu.memory_space<vmem>>, %arg8: memref<1x128xf32, #tpu.memory_space<vmem>>, %arg9: memref<3x3x128x128xbf16, #tpu.memory_space<vmem>>, %arg10: memref<1x128xf32, #tpu.memory_space<vmem>>, %arg11: memref<3x3x128x128xbf16, #tpu.memory_space<vmem>>, %arg12: memref<1x128xf32, #tpu.memory_space<vmem>>, %arg13: memref<3x3x128x128xbf16, #tpu.memory_space<vmem>>, %arg14: memref<1x128xf32, #tpu.memory_space<vmem>>, %arg15: memref<3x3x128x128xbf16, #tpu.memory_space<vmem>>, %arg16: memref<1x128xf32, #tpu.memory_space<vmem>>, %arg17: memref<3x3x256x512xbf16, #tpu.memory_space<vmem>>, %arg18: memref<1x512xf32, #tpu.memory_space<vmem>>, %arg19: memref<2x8x8x128xf32, #tpu.memory_space<vmem>>, %arg20: memref<2x8x8x128xf32, #tpu.memory_space<vmem>>, %arg21: memref<2x8x8x128xf32, #tpu.memory_space<vmem>>, %arg22: memref<2x10x10x128xf32, #tpu.memory_space<vmem>>, %arg23: memref<2x10x10x256xf32, #tpu.memory_space<vmem>>) attributes {dimension_semantics = [], scalar_prefetch = 0 : i64, scratch_operands = 2 : i64, tpu.core_type = #tpu.core_type<tc>} {
    %c0 = arith.constant 0 : index
    %c0_0 = arith.constant 0 : index
    %c0_1 = arith.constant 0 : index
    %c0_2 = arith.constant 0 : index
    %0 = vector.load %arg0[%c0, %c0_0, %c0_1, %c0_2] : memref<2x8x8x128xf32, #tpu.memory_space<vmem>>, vector<2x8x8x128xf32>
    %1 = vector.shape_cast %0 : vector<2x8x8x128xf32> to vector<2x64x128xf32>
    %cst = arith.constant dense<0.000000e+00> : vector<2x128xf32>
    %2 = vector.multi_reduction <add>, %1, %cst [1] : vector<2x64x128xf32> to vector<2x128xf32>
    %cst_3 = arith.constant 6.400000e+01 : f32
    %3 = vector.broadcast %cst_3 : f32 to vector<2x128xf32>
    %4 = arith.divf %2, %3 : vector<2x128xf32>
    %c0_4 = arith.constant 0 : index
    %c0_5 = arith.constant 0 : index
    %5 = vector.load %arg3[%c0_4, %c0_5] : memref<128x16xf32, #tpu.memory_space<vmem>>, vector<128x16xf32>
    %cst_6 = arith.constant dense<0.000000e+00> : vector<2x16xf32>
    %6 = tpu.matmul %4, %5, %cst_6 {dimension_numbers = #tpu.dot_dimension_numbers<[1], [0], [0], [1], [0, 0, 1, 1], [], []>} : vector<2x128xf32>, vector<128x16xf32>, vector<2x16xf32> -> vector<2x16xf32>
    %c0_7 = arith.constant 0 : index
    %c0_8 = arith.constant 0 : index
    %7 = vector.load %arg4[%c0_7, %c0_8] : memref<1x16xf32, #tpu.memory_space<vmem>>, vector<1x16xf32>
    %8 = vector.broadcast %7 : vector<1x16xf32> to vector<2x16xf32>
    %9 = arith.addf %6, %8 : vector<2x16xf32>
    %cst_9 = arith.constant 0.000000e+00 : f32
    %10 = vector.broadcast %cst_9 : f32 to vector<2x16xf32>
    %11 = arith.maximumf %9, %10 : vector<2x16xf32>
    %c0_10 = arith.constant 0 : index
    %c0_11 = arith.constant 0 : index
    %12 = vector.load %arg5[%c0_10, %c0_11] : memref<16x16xf32, #tpu.memory_space<vmem>>, vector<16x16xf32>
    %cst_12 = arith.constant dense<0.000000e+00> : vector<2x16xf32>
    %13 = tpu.matmul %11, %12, %cst_12 {dimension_numbers = #tpu.dot_dimension_numbers<[1], [0], [0], [1], [0, 0, 1, 1], [], []>} : vector<2x16xf32>, vector<16x16xf32>, vector<2x16xf32> -> vector<2x16xf32>
    %c0_13 = arith.constant 0 : index
    %c0_14 = arith.constant 0 : index
    %14 = vector.load %arg6[%c0_13, %c0_14] : memref<1x16xf32, #tpu.memory_space<vmem>>, vector<1x16xf32>
    %15 = vector.broadcast %14 : vector<1x16xf32> to vector<2x16xf32>
    %16 = arith.addf %13, %15 : vector<2x16xf32>
    %cst_15 = arith.constant 0.000000e+00 : f32
    %17 = vector.broadcast %cst_15 : f32 to vector<2x16xf32>
    %18 = arith.maximumf %16, %17 : vector<2x16xf32>
    %c0_16 = arith.constant 0 : index
    %c0_17 = arith.constant 0 : index
    %19 = vector.load %arg7[%c0_16, %c0_17] : memref<16x128xf32, #tpu.memory_space<vmem>>, vector<16x128xf32>
    %cst_18 = arith.constant dense<0.000000e+00> : vector<2x128xf32>
    %20 = tpu.matmul %18, %19, %cst_18 {dimension_numbers = #tpu.dot_dimension_numbers<[1], [0], [0], [1], [0, 0, 1, 1], [], []>} : vector<2x16xf32>, vector<16x128xf32>, vector<2x128xf32> -> vector<2x128xf32>
    %c0_19 = arith.constant 0 : index
    %c0_20 = arith.constant 0 : index
    %21 = vector.load %arg8[%c0_19, %c0_20] : memref<1x128xf32, #tpu.memory_space<vmem>>, vector<1x128xf32>
    %22 = vector.broadcast %21 : vector<1x128xf32> to vector<2x128xf32>
    %23 = arith.addf %20, %22 : vector<2x128xf32>
    %24 = arith.negf %23 : vector<2x128xf32>
    %25 = math.exp %24 : vector<2x128xf32>
    %cst_21 = arith.constant 1.000000e+00 : f32
    %26 = vector.broadcast %cst_21 : f32 to vector<2x128xf32>
    %27 = arith.addf %26, %25 : vector<2x128xf32>
    %28 = arith.divf %26, %27 : vector<2x128xf32>
    %29 = vector.shape_cast %28 : vector<2x128xf32> to vector<2x1x1x128xf32>
    %30 = vector.broadcast %29 : vector<2x1x1x128xf32> to vector<2x8x8x128xf32>
    %31 = arith.mulf %0, %30 : vector<2x8x8x128xf32>
    %cst_22 = arith.constant 0.000000e+00 : f32
    %32 = vector.broadcast %cst_22 : f32 to vector<2x10x10x128xf32>
    %c0_23 = arith.constant 0 : index
    %c0_24 = arith.constant 0 : index
    %c0_25 = arith.constant 0 : index
    %c0_26 = arith.constant 0 : index
    %33 = vector.load %arg22[%c0_23, %c0_24, %c0_25, %c0_26] : memref<2x10x10x128xf32, #tpu.memory_space<vmem>>, vector<2x10x10x128xf32>
    tpu.vector_store %arg22[%c0_23, %c0_24, %c0_25, %c0_26], %32 {strides = array<i32>} : memref<2x10x10x128xf32, #tpu.memory_space<vmem>>, vector<2x10x10x128xf32>,
    %cst_27 = arith.constant 0.000000e+00 : f32
    %34 = vector.broadcast %cst_27 : f32 to vector<2x10x10x256xf32>
    %c0_28 = arith.constant 0 : index
    %c0_29 = arith.constant 0 : index
    %c0_30 = arith.constant 0 : index
    %c0_31 = arith.constant 0 : index
    %35 = vector.load %arg23[%c0_28, %c0_29, %c0_30, %c0_31] : memref<2x10x10x256xf32, #tpu.memory_space<vmem>>, vector<2x10x10x256xf32>
    tpu.vector_store %arg23[%c0_28, %c0_29, %c0_30, %c0_31], %34 {strides = array<i32>} : memref<2x10x10x256xf32, #tpu.memory_space<vmem>>, vector<2x10x10x256xf32>,
    %c0_32 = arith.constant 0 : index
    %c1 = arith.constant 1 : index
    %c1_33 = arith.constant 1 : index
    %c0_34 = arith.constant 0 : index
    %36 = vector.load %arg22[%c0_32, %c1, %c1_33, %c0_34] : memref<2x10x10x128xf32, #tpu.memory_space<vmem>>, vector<2x8x8x128xf32>
    tpu.vector_store %arg22[%c0_32, %c1, %c1_33, %c0_34], %31 {strides = array<i32>} : memref<2x10x10x128xf32, #tpu.memory_space<vmem>>, vector<2x8x8x128xf32>,
    %cst_35 = arith.constant 0.000000e+00 : f32
    %37 = vector.broadcast %cst_35 : f32 to vector<128x128xf32>
    %c0_36 = arith.constant 0 : index
    %c0_37 = arith.constant 0 : index
    %c0_38 = arith.constant 0 : index
    %c0_39 = arith.constant 0 : index
    %38 = vector.load %arg22[%c0_36, %c0_37, %c0_38, %c0_39] : memref<2x10x10x128xf32, #tpu.memory_space<vmem>>, vector<2x8x8x128xf32>
    %39 = vector.shape_cast %38 : vector<2x8x8x128xf32> to vector<128x128xf32>
    %40 = arith.truncf %39 : vector<128x128xf32> to vector<128x128xbf16>
    %c0_40 = arith.constant 0 : index
    %c0_41 = arith.constant 0 : index
    %c0_42 = arith.constant 0 : index
    %c0_43 = arith.constant 0 : index
    %41 = vector.load %arg9[%c0_40, %c0_41, %c0_42, %c0_43] : memref<3x3x128x128xbf16, #tpu.memory_space<vmem>>, vector<1x1x128x128xbf16>
    %42 = vector.shape_cast %41 : vector<1x1x128x128xbf16> to vector<128x128xbf16>
    %cst_44 = arith.constant dense<0.000000e+00> : vector<128x128xf32>
    %43 = tpu.matmul %40, %42, %cst_44 {dimension_numbers = #tpu.dot_dimension_numbers<[1], [0], [0], [1], [0, 0, 1, 1], [], []>} : vector<128x128xbf16>, vector<128x128xbf16>, vector<128x128xf32> -> vector<128x128xf32>
    %44 = arith.addf %37, %43 : vector<128x128xf32>
    %c0_45 = arith.constant 0 : index
    %c0_46 = arith.constant 0 : index
    %c1_47 = arith.constant 1 : index
    %c0_48 = arith.constant 0 : index
    %45 = vector.load %arg22[%c0_45, %c0_46, %c1_47, %c0_48] : memref<2x10x10x128xf32, #tpu.memory_space<vmem>>, vector<2x8x8x128xf32>
    %46 = vector.shape_cast %45 : vector<2x8x8x128xf32> to vector<128x128xf32>
    %47 = arith.truncf %46 : vector<128x128xf32> to vector<128x128xbf16>
    %c0_49 = arith.constant 0 : index
    %c1_50 = arith.constant 1 : index
    %c0_51 = arith.constant 0 : index
    %c0_52 = arith.constant 0 : index
    %48 = vector.load %arg9[%c0_49, %c1_50, %c0_51, %c0_52] : memref<3x3x128x128xbf16, #tpu.memory_space<vmem>>, vector<1x1x128x128xbf16>
    %49 = vector.shape_cast %48 : vector<1x1x128x128xbf16> to vector<128x128xbf16>
    %cst_53 = arith.constant dense<0.000000e+00> : vector<128x128xf32>
    %50 = tpu.matmul %47, %49, %cst_53 {dimension_numbers = #tpu.dot_dimension_numbers<[1], [0], [0], [1], [0, 0, 1, 1], [], []>} : vector<128x128xbf16>, vector<128x128xbf16>, vector<128x128xf32> -> vector<128x128xf32>
    %51 = arith.addf %44, %50 : vector<128x128xf32>
    %c0_54 = arith.constant 0 : index
    %c0_55 = arith.constant 0 : index
    %c2 = arith.constant 2 : index
    %c0_56 = arith.constant 0 : index
    %52 = vector.load %arg22[%c0_54, %c0_55, %c2, %c0_56] : memref<2x10x10x128xf32, #tpu.memory_space<vmem>>, vector<2x8x8x128xf32>
    %53 = vector.shape_cast %52 : vector<2x8x8x128xf32> to vector<128x128xf32>
    %54 = arith.truncf %53 : vector<128x128xf32> to vector<128x128xbf16>
    %c0_57 = arith.constant 0 : index
    %c2_58 = arith.constant 2 : index
    %c0_59 = arith.constant 0 : index
    %c0_60 = arith.constant 0 : index
    %55 = vector.load %arg9[%c0_57, %c2_58, %c0_59, %c0_60] : memref<3x3x128x128xbf16, #tpu.memory_space<vmem>>, vector<1x1x128x128xbf16>
    %56 = vector.shape_cast %55 : vector<1x1x128x128xbf16> to vector<128x128xbf16>
    %cst_61 = arith.constant dense<0.000000e+00> : vector<128x128xf32>
    %57 = tpu.matmul %54, %56, %cst_61 {dimension_numbers = #tpu.dot_dimension_numbers<[1], [0], [0], [1], [0, 0, 1, 1], [], []>} : vector<128x128xbf16>, vector<128x128xbf16>, vector<128x128xf32> -> vector<128x128xf32>
    %58 = arith.addf %51, %57 : vector<128x128xf32>
    %c0_62 = arith.constant 0 : index
    %c1_63 = arith.constant 1 : index
    %c0_64 = arith.constant 0 : index
    %c0_65 = arith.constant 0 : index
    %59 = vector.load %arg22[%c0_62, %c1_63, %c0_64, %c0_65] : memref<2x10x10x128xf32, #tpu.memory_space<vmem>>, vector<2x8x8x128xf32>
    %60 = vector.shape_cast %59 : vector<2x8x8x128xf32> to vector<128x128xf32>
    %61 = arith.truncf %60 : vector<128x128xf32> to vector<128x128xbf16>
    %c1_66 = arith.constant 1 : index
    %c0_67 = arith.constant 0 : index
    %c0_68 = arith.constant 0 : index
    %c0_69 = arith.constant 0 : index
    %62 = vector.load %arg9[%c1_66, %c0_67, %c0_68, %c0_69] : memref<3x3x128x128xbf16, #tpu.memory_space<vmem>>, vector<1x1x128x128xbf16>
    %63 = vector.shape_cast %62 : vector<1x1x128x128xbf16> to vector<128x128xbf16>
    %cst_70 = arith.constant dense<0.000000e+00> : vector<128x128xf32>
    %64 = tpu.matmul %61, %63, %cst_70 {dimension_numbers = #tpu.dot_dimension_numbers<[1], [0], [0], [1], [0, 0, 1, 1], [], []>} : vector<128x128xbf16>, vector<128x128xbf16>, vector<128x128xf32> -> vector<128x128xf32>
    %65 = arith.addf %58, %64 : vector<128x128xf32>
    %c0_71 = arith.constant 0 : index
    %c1_72 = arith.constant 1 : index
    %c1_73 = arith.constant 1 : index
    %c0_74 = arith.constant 0 : index
    %66 = vector.load %arg22[%c0_71, %c1_72, %c1_73, %c0_74] : memref<2x10x10x128xf32, #tpu.memory_space<vmem>>, vector<2x8x8x128xf32>
    %67 = vector.shape_cast %66 : vector<2x8x8x128xf32> to vector<128x128xf32>
    %68 = arith.truncf %67 : vector<128x128xf32> to vector<128x128xbf16>
    %c1_75 = arith.constant 1 : index
    %c1_76 = arith.constant 1 : index
    %c0_77 = arith.constant 0 : index
    %c0_78 = arith.constant 0 : index
    %69 = vector.load %arg9[%c1_75, %c1_76, %c0_77, %c0_78] : memref<3x3x128x128xbf16, #tpu.memory_space<vmem>>, vector<1x1x128x128xbf16>
    %70 = vector.shape_cast %69 : vector<1x1x128x128xbf16> to vector<128x128xbf16>
    %cst_79 = arith.constant dense<0.000000e+00> : vector<128x128xf32>
    %71 = tpu.matmul %68, %70, %cst_79 {dimension_numbers = #tpu.dot_dimension_numbers<[1], [0], [0], [1], [0, 0, 1, 1], [], []>} : vector<128x128xbf16>, vector<128x128xbf16>, vector<128x128xf32> -> vector<128x128xf32>
    %72 = arith.addf %65, %71 : vector<128x128xf32>
    %c0_80 = arith.constant 0 : index
    %c1_81 = arith.constant 1 : index
    %c2_82 = arith.constant 2 : index
    %c0_83 = arith.constant 0 : index
    %73 = vector.load %arg22[%c0_80, %c1_81, %c2_82, %c0_83] : memref<2x10x10x128xf32, #tpu.memory_space<vmem>>, vector<2x8x8x128xf32>
    %74 = vector.shape_cast %73 : vector<2x8x8x128xf32> to vector<128x128xf32>
    %75 = arith.truncf %74 : vector<128x128xf32> to vector<128x128xbf16>
    %c1_84 = arith.constant 1 : index
    %c2_85 = arith.constant 2 : index
    %c0_86 = arith.constant 0 : index
    %c0_87 = arith.constant 0 : index
    %76 = vector.load %arg9[%c1_84, %c2_85, %c0_86, %c0_87] : memref<3x3x128x128xbf16, #tpu.memory_space<vmem>>, vector<1x1x128x128xbf16>
    %77 = vector.shape_cast %76 : vector<1x1x128x128xbf16> to vector<128x128xbf16>
    %cst_88 = arith.constant dense<0.000000e+00> : vector<128x128xf32>
    %78 = tpu.matmul %75, %77, %cst_88 {dimension_numbers = #tpu.dot_dimension_numbers<[1], [0], [0], [1], [0, 0, 1, 1], [], []>} : vector<128x128xbf16>, vector<128x128xbf16>, vector<128x128xf32> -> vector<128x128xf32>
    %79 = arith.addf %72, %78 : vector<128x128xf32>
    %c0_89 = arith.constant 0 : index
    %c2_90 = arith.constant 2 : index
    %c0_91 = arith.constant 0 : index
    %c0_92 = arith.constant 0 : index
    %80 = vector.load %arg22[%c0_89, %c2_90, %c0_91, %c0_92] : memref<2x10x10x128xf32, #tpu.memory_space<vmem>>, vector<2x8x8x128xf32>
    %81 = vector.shape_cast %80 : vector<2x8x8x128xf32> to vector<128x128xf32>
    %82 = arith.truncf %81 : vector<128x128xf32> to vector<128x128xbf16>
    %c2_93 = arith.constant 2 : index
    %c0_94 = arith.constant 0 : index
    %c0_95 = arith.constant 0 : index
    %c0_96 = arith.constant 0 : index
    %83 = vector.load %arg9[%c2_93, %c0_94, %c0_95, %c0_96] : memref<3x3x128x128xbf16, #tpu.memory_space<vmem>>, vector<1x1x128x128xbf16>
    %84 = vector.shape_cast %83 : vector<1x1x128x128xbf16> to vector<128x128xbf16>
    %cst_97 = arith.constant dense<0.000000e+00> : vector<128x128xf32>
    %85 = tpu.matmul %82, %84, %cst_97 {dimension_numbers = #tpu.dot_dimension_numbers<[1], [0], [0], [1], [0, 0, 1, 1], [], []>} : vector<128x128xbf16>, vector<128x128xbf16>, vector<128x128xf32> -> vector<128x128xf32>
    %86 = arith.addf %79, %85 : vector<128x128xf32>
    %c0_98 = arith.constant 0 : index
    %c2_99 = arith.constant 2 : index
    %c1_100 = arith.constant 1 : index
    %c0_101 = arith.constant 0 : index
    %87 = vector.load %arg22[%c0_98, %c2_99, %c1_100, %c0_101] : memref<2x10x10x128xf32, #tpu.memory_space<vmem>>, vector<2x8x8x128xf32>
    %88 = vector.shape_cast %87 : vector<2x8x8x128xf32> to vector<128x128xf32>
    %89 = arith.truncf %88 : vector<128x128xf32> to vector<128x128xbf16>
    %c2_102 = arith.constant 2 : index
    %c1_103 = arith.constant 1 : index
    %c0_104 = arith.constant 0 : index
    %c0_105 = arith.constant 0 : index
    %90 = vector.load %arg9[%c2_102, %c1_103, %c0_104, %c0_105] : memref<3x3x128x128xbf16, #tpu.memory_space<vmem>>, vector<1x1x128x128xbf16>
    %91 = vector.shape_cast %90 : vector<1x1x128x128xbf16> to vector<128x128xbf16>
    %cst_106 = arith.constant dense<0.000000e+00> : vector<128x128xf32>
    %92 = tpu.matmul %89, %91, %cst_106 {dimension_numbers = #tpu.dot_dimension_numbers<[1], [0], [0], [1], [0, 0, 1, 1], [], []>} : vector<128x128xbf16>, vector<128x128xbf16>, vector<128x128xf32> -> vector<128x128xf32>
    %93 = arith.addf %86, %92 : vector<128x128xf32>
    %c0_107 = arith.constant 0 : index
    %c2_108 = arith.constant 2 : index
    %c2_109 = arith.constant 2 : index
    %c0_110 = arith.constant 0 : index
    %94 = vector.load %arg22[%c0_107, %c2_108, %c2_109, %c0_110] : memref<2x10x10x128xf32, #tpu.memory_space<vmem>>, vector<2x8x8x128xf32>
    %95 = vector.shape_cast %94 : vector<2x8x8x128xf32> to vector<128x128xf32>
    %96 = arith.truncf %95 : vector<128x128xf32> to vector<128x128xbf16>
    %c2_111 = arith.constant 2 : index
    %c2_112 = arith.constant 2 : index
    %c0_113 = arith.constant 0 : index
    %c0_114 = arith.constant 0 : index
    %97 = vector.load %arg9[%c2_111, %c2_112, %c0_113, %c0_114] : memref<3x3x128x128xbf16, #tpu.memory_space<vmem>>, vector<1x1x128x128xbf16>
    %98 = vector.shape_cast %97 : vector<1x1x128x128xbf16> to vector<128x128xbf16>
    %cst_115 = arith.constant dense<0.000000e+00> : vector<128x128xf32>
    %99 = tpu.matmul %96, %98, %cst_115 {dimension_numbers = #tpu.dot_dimension_numbers<[1], [0], [0], [1], [0, 0, 1, 1], [], []>} : vector<128x128xbf16>, vector<128x128xbf16>, vector<128x128xf32> -> vector<128x128xf32>
    %100 = arith.addf %93, %99 : vector<128x128xf32>
    %c0_116 = arith.constant 0 : index
    %c0_117 = arith.constant 0 : index
    %101 = vector.load %arg10[%c0_116, %c0_117] : memref<1x128xf32, #tpu.memory_space<vmem>>, vector<1x128xf32>
    %102 = vector.broadcast %101 : vector<1x128xf32> to vector<128x128xf32>
    %103 = arith.addf %100, %102 : vector<128x128xf32>
    %cst_118 = arith.constant 0.000000e+00 : f32
    %104 = vector.broadcast %cst_118 : f32 to vector<128x128xf32>
    %105 = arith.maximumf %103, %104 : vector<128x128xf32>
    %106 = vector.shape_cast %105 : vector<128x128xf32> to vector<2x8x8x128xf32>
    %c0_119 = arith.constant 0 : index
    %c1_120 = arith.constant 1 : index
    %c1_121 = arith.constant 1 : index
    %c0_122 = arith.constant 0 : index
    %107 = vector.load %arg22[%c0_119, %c1_120, %c1_121, %c0_122] : memref<2x10x10x128xf32, #tpu.memory_space<vmem>>, vector<2x8x8x128xf32>
    tpu.vector_store %arg22[%c0_119, %c1_120, %c1_121, %c0_122], %106 {strides = array<i32>} : memref<2x10x10x128xf32, #tpu.memory_space<vmem>>, vector<2x8x8x128xf32>,
    %cst_123 = arith.constant 0.000000e+00 : f32
    %108 = vector.broadcast %cst_123 : f32 to vector<128x128xf32>
    %c0_124 = arith.constant 0 : index
    %c0_125 = arith.constant 0 : index
    %c0_126 = arith.constant 0 : index
    %c0_127 = arith.constant 0 : index
    %109 = vector.load %arg22[%c0_124, %c0_125, %c0_126, %c0_127] : memref<2x10x10x128xf32, #tpu.memory_space<vmem>>, vector<2x8x8x128xf32>
    %110 = vector.shape_cast %109 : vector<2x8x8x128xf32> to vector<128x128xf32>
    %111 = arith.truncf %110 : vector<128x128xf32> to vector<128x128xbf16>
    %c0_128 = arith.constant 0 : index
    %c0_129 = arith.constant 0 : index
    %c0_130 = arith.constant 0 : index
    %c0_131 = arith.constant 0 : index
    %112 = vector.load %arg11[%c0_128, %c0_129, %c0_130, %c0_131] : memref<3x3x128x128xbf16, #tpu.memory_space<vmem>>, vector<1x1x128x128xbf16>
    %113 = vector.shape_cast %112 : vector<1x1x128x128xbf16> to vector<128x128xbf16>
    %cst_132 = arith.constant dense<0.000000e+00> : vector<128x128xf32>
    %114 = tpu.matmul %111, %113, %cst_132 {dimension_numbers = #tpu.dot_dimension_numbers<[1], [0], [0], [1], [0, 0, 1, 1], [], []>} : vector<128x128xbf16>, vector<128x128xbf16>, vector<128x128xf32> -> vector<128x128xf32>
    %115 = arith.addf %108, %114 : vector<128x128xf32>
    %c0_133 = arith.constant 0 : index
    %c0_134 = arith.constant 0 : index
    %c1_135 = arith.constant 1 : index
    %c0_136 = arith.constant 0 : index
    %116 = vector.load %arg22[%c0_133, %c0_134, %c1_135, %c0_136] : memref<2x10x10x128xf32, #tpu.memory_space<vmem>>, vector<2x8x8x128xf32>
    %117 = vector.shape_cast %116 : vector<2x8x8x128xf32> to vector<128x128xf32>
    %118 = arith.truncf %117 : vector<128x128xf32> to vector<128x128xbf16>
    %c0_137 = arith.constant 0 : index
    %c1_138 = arith.constant 1 : index
    %c0_139 = arith.constant 0 : index
    %c0_140 = arith.constant 0 : index
    %119 = vector.load %arg11[%c0_137, %c1_138, %c0_139, %c0_140] : memref<3x3x128x128xbf16, #tpu.memory_space<vmem>>, vector<1x1x128x128xbf16>
    %120 = vector.shape_cast %119 : vector<1x1x128x128xbf16> to vector<128x128xbf16>
    %cst_141 = arith.constant dense<0.000000e+00> : vector<128x128xf32>
    %121 = tpu.matmul %118, %120, %cst_141 {dimension_numbers = #tpu.dot_dimension_numbers<[1], [0], [0], [1], [0, 0, 1, 1], [], []>} : vector<128x128xbf16>, vector<128x128xbf16>, vector<128x128xf32> -> vector<128x128xf32>
    %122 = arith.addf %115, %121 : vector<128x128xf32>
    %c0_142 = arith.constant 0 : index
    %c0_143 = arith.constant 0 : index
    %c2_144 = arith.constant 2 : index
    %c0_145 = arith.constant 0 : index
    %123 = vector.load %arg22[%c0_142, %c0_143, %c2_144, %c0_145] : memref<2x10x10x128xf32, #tpu.memory_space<vmem>>, vector<2x8x8x128xf32>
    %124 = vector.shape_cast %123 : vector<2x8x8x128xf32> to vector<128x128xf32>
    %125 = arith.truncf %124 : vector<128x128xf32> to vector<128x128xbf16>
    %c0_146 = arith.constant 0 : index
    %c2_147 = arith.constant 2 : index
    %c0_148 = arith.constant 0 : index
    %c0_149 = arith.constant 0 : index
    %126 = vector.load %arg11[%c0_146, %c2_147, %c0_148, %c0_149] : memref<3x3x128x128xbf16, #tpu.memory_space<vmem>>, vector<1x1x128x128xbf16>
    %127 = vector.shape_cast %126 : vector<1x1x128x128xbf16> to vector<128x128xbf16>
    %cst_150 = arith.constant dense<0.000000e+00> : vector<128x128xf32>
    %128 = tpu.matmul %125, %127, %cst_150 {dimension_numbers = #tpu.dot_dimension_numbers<[1], [0], [0], [1], [0, 0, 1, 1], [], []>} : vector<128x128xbf16>, vector<128x128xbf16>, vector<128x128xf32> -> vector<128x128xf32>
    %129 = arith.addf %122, %128 : vector<128x128xf32>
    %c0_151 = arith.constant 0 : index
    %c1_152 = arith.constant 1 : index
    %c0_153 = arith.constant 0 : index
    %c0_154 = arith.constant 0 : index
    %130 = vector.load %arg22[%c0_151, %c1_152, %c0_153, %c0_154] : memref<2x10x10x128xf32, #tpu.memory_space<vmem>>, vector<2x8x8x128xf32>
    %131 = vector.shape_cast %130 : vector<2x8x8x128xf32> to vector<128x128xf32>
    %132 = arith.truncf %131 : vector<128x128xf32> to vector<128x128xbf16>
    %c1_155 = arith.constant 1 : index
    %c0_156 = arith.constant 0 : index
    %c0_157 = arith.constant 0 : index
    %c0_158 = arith.constant 0 : index
    %133 = vector.load %arg11[%c1_155, %c0_156, %c0_157, %c0_158] : memref<3x3x128x128xbf16, #tpu.memory_space<vmem>>, vector<1x1x128x128xbf16>
    %134 = vector.shape_cast %133 : vector<1x1x128x128xbf16> to vector<128x128xbf16>
    %cst_159 = arith.constant dense<0.000000e+00> : vector<128x128xf32>
    %135 = tpu.matmul %132, %134, %cst_159 {dimension_numbers = #tpu.dot_dimension_numbers<[1], [0], [0], [1], [0, 0, 1, 1], [], []>} : vector<128x128xbf16>, vector<128x128xbf16>, vector<128x128xf32> -> vector<128x128xf32>
    %136 = arith.addf %129, %135 : vector<128x128xf32>
    %c0_160 = arith.constant 0 : index
    %c1_161 = arith.constant 1 : index
    %c1_162 = arith.constant 1 : index
    %c0_163 = arith.constant 0 : index
    %137 = vector.load %arg22[%c0_160, %c1_161, %c1_162, %c0_163] : memref<2x10x10x128xf32, #tpu.memory_space<vmem>>, vector<2x8x8x128xf32>
    %138 = vector.shape_cast %137 : vector<2x8x8x128xf32> to vector<128x128xf32>
    %139 = arith.truncf %138 : vector<128x128xf32> to vector<128x128xbf16>
    %c1_164 = arith.constant 1 : index
    %c1_165 = arith.constant 1 : index
    %c0_166 = arith.constant 0 : index
    %c0_167 = arith.constant 0 : index
    %140 = vector.load %arg11[%c1_164, %c1_165, %c0_166, %c0_167] : memref<3x3x128x128xbf16, #tpu.memory_space<vmem>>, vector<1x1x128x128xbf16>
    %141 = vector.shape_cast %140 : vector<1x1x128x128xbf16> to vector<128x128xbf16>
    %cst_168 = arith.constant dense<0.000000e+00> : vector<128x128xf32>
    %142 = tpu.matmul %139, %141, %cst_168 {dimension_numbers = #tpu.dot_dimension_numbers<[1], [0], [0], [1], [0, 0, 1, 1], [], []>} : vector<128x128xbf16>, vector<128x128xbf16>, vector<128x128xf32> -> vector<128x128xf32>
    %143 = arith.addf %136, %142 : vector<128x128xf32>
    %c0_169 = arith.constant 0 : index
    %c1_170 = arith.constant 1 : index
    %c2_171 = arith.constant 2 : index
    %c0_172 = arith.constant 0 : index
    %144 = vector.load %arg22[%c0_169, %c1_170, %c2_171, %c0_172] : memref<2x10x10x128xf32, #tpu.memory_space<vmem>>, vector<2x8x8x128xf32>
    %145 = vector.shape_cast %144 : vector<2x8x8x128xf32> to vector<128x128xf32>
    %146 = arith.truncf %145 : vector<128x128xf32> to vector<128x128xbf16>
    %c1_173 = arith.constant 1 : index
    %c2_174 = arith.constant 2 : index
    %c0_175 = arith.constant 0 : index
    %c0_176 = arith.constant 0 : index
    %147 = vector.load %arg11[%c1_173, %c2_174, %c0_175, %c0_176] : memref<3x3x128x128xbf16, #tpu.memory_space<vmem>>, vector<1x1x128x128xbf16>
    %148 = vector.shape_cast %147 : vector<1x1x128x128xbf16> to vector<128x128xbf16>
    %cst_177 = arith.constant dense<0.000000e+00> : vector<128x128xf32>
    %149 = tpu.matmul %146, %148, %cst_177 {dimension_numbers = #tpu.dot_dimension_numbers<[1], [0], [0], [1], [0, 0, 1, 1], [], []>} : vector<128x128xbf16>, vector<128x128xbf16>, vector<128x128xf32> -> vector<128x128xf32>
    %150 = arith.addf %143, %149 : vector<128x128xf32>
    %c0_178 = arith.constant 0 : index
    %c2_179 = arith.constant 2 : index
    %c0_180 = arith.constant 0 : index
    %c0_181 = arith.constant 0 : index
    %151 = vector.load %arg22[%c0_178, %c2_179, %c0_180, %c0_181] : memref<2x10x10x128xf32, #tpu.memory_space<vmem>>, vector<2x8x8x128xf32>
    %152 = vector.shape_cast %151 : vector<2x8x8x128xf32> to vector<128x128xf32>
    %153 = arith.truncf %152 : vector<128x128xf32> to vector<128x128xbf16>
    %c2_182 = arith.constant 2 : index
    %c0_183 = arith.constant 0 : index
    %c0_184 = arith.constant 0 : index
    %c0_185 = arith.constant 0 : index
    %154 = vector.load %arg11[%c2_182, %c0_183, %c0_184, %c0_185] : memref<3x3x128x128xbf16, #tpu.memory_space<vmem>>, vector<1x1x128x128xbf16>
    %155 = vector.shape_cast %154 : vector<1x1x128x128xbf16> to vector<128x128xbf16>
    %cst_186 = arith.constant dense<0.000000e+00> : vector<128x128xf32>
    %156 = tpu.matmul %153, %155, %cst_186 {dimension_numbers = #tpu.dot_dimension_numbers<[1], [0], [0], [1], [0, 0, 1, 1], [], []>} : vector<128x128xbf16>, vector<128x128xbf16>, vector<128x128xf32> -> vector<128x128xf32>
    %157 = arith.addf %150, %156 : vector<128x128xf32>
    %c0_187 = arith.constant 0 : index
    %c2_188 = arith.constant 2 : index
    %c1_189 = arith.constant 1 : index
    %c0_190 = arith.constant 0 : index
    %158 = vector.load %arg22[%c0_187, %c2_188, %c1_189, %c0_190] : memref<2x10x10x128xf32, #tpu.memory_space<vmem>>, vector<2x8x8x128xf32>
    %159 = vector.shape_cast %158 : vector<2x8x8x128xf32> to vector<128x128xf32>
    %160 = arith.truncf %159 : vector<128x128xf32> to vector<128x128xbf16>
    %c2_191 = arith.constant 2 : index
    %c1_192 = arith.constant 1 : index
    %c0_193 = arith.constant 0 : index
    %c0_194 = arith.constant 0 : index
    %161 = vector.load %arg11[%c2_191, %c1_192, %c0_193, %c0_194] : memref<3x3x128x128xbf16, #tpu.memory_space<vmem>>, vector<1x1x128x128xbf16>
    %162 = vector.shape_cast %161 : vector<1x1x128x128xbf16> to vector<128x128xbf16>
    %cst_195 = arith.constant dense<0.000000e+00> : vector<128x128xf32>
    %163 = tpu.matmul %160, %162, %cst_195 {dimension_numbers = #tpu.dot_dimension_numbers<[1], [0], [0], [1], [0, 0, 1, 1], [], []>} : vector<128x128xbf16>, vector<128x128xbf16>, vector<128x128xf32> -> vector<128x128xf32>
    %164 = arith.addf %157, %163 : vector<128x128xf32>
    %c0_196 = arith.constant 0 : index
    %c2_197 = arith.constant 2 : index
    %c2_198 = arith.constant 2 : index
    %c0_199 = arith.constant 0 : index
    %165 = vector.load %arg22[%c0_196, %c2_197, %c2_198, %c0_199] : memref<2x10x10x128xf32, #tpu.memory_space<vmem>>, vector<2x8x8x128xf32>
    %166 = vector.shape_cast %165 : vector<2x8x8x128xf32> to vector<128x128xf32>
    %167 = arith.truncf %166 : vector<128x128xf32> to vector<128x128xbf16>
    %c2_200 = arith.constant 2 : index
    %c2_201 = arith.constant 2 : index
    %c0_202 = arith.constant 0 : index
    %c0_203 = arith.constant 0 : index
    %168 = vector.load %arg11[%c2_200, %c2_201, %c0_202, %c0_203] : memref<3x3x128x128xbf16, #tpu.memory_space<vmem>>, vector<1x1x128x128xbf16>
    %169 = vector.shape_cast %168 : vector<1x1x128x128xbf16> to vector<128x128xbf16>
    %cst_204 = arith.constant dense<0.000000e+00> : vector<128x128xf32>
    %170 = tpu.matmul %167, %169, %cst_204 {dimension_numbers = #tpu.dot_dimension_numbers<[1], [0], [0], [1], [0, 0, 1, 1], [], []>} : vector<128x128xbf16>, vector<128x128xbf16>, vector<128x128xf32> -> vector<128x128xf32>
    %171 = arith.addf %164, %170 : vector<128x128xf32>
    %c0_205 = arith.constant 0 : index
    %c0_206 = arith.constant 0 : index
    %172 = vector.load %arg12[%c0_205, %c0_206] : memref<1x128xf32, #tpu.memory_space<vmem>>, vector<1x128xf32>
    %173 = vector.broadcast %172 : vector<1x128xf32> to vector<128x128xf32>
    %174 = arith.addf %171, %173 : vector<128x128xf32>
    %cst_207 = arith.constant 0.000000e+00 : f32
    %175 = vector.broadcast %cst_207 : f32 to vector<128x128xf32>
    %176 = arith.maximumf %174, %175 : vector<128x128xf32>
    %177 = vector.shape_cast %176 : vector<128x128xf32> to vector<2x8x8x128xf32>
    %c0_208 = arith.constant 0 : index
    %c1_209 = arith.constant 1 : index
    %c1_210 = arith.constant 1 : index
    %c0_211 = arith.constant 0 : index
    %178 = vector.load %arg23[%c0_208, %c1_209, %c1_210, %c0_211] : memref<2x10x10x256xf32, #tpu.memory_space<vmem>>, vector<2x8x8x128xf32>
    tpu.vector_store %arg23[%c0_208, %c1_209, %c1_210, %c0_211], %177 {strides = array<i32>} : memref<2x10x10x256xf32, #tpu.memory_space<vmem>>, vector<2x8x8x128xf32>,
    %c0_212 = arith.constant 0 : index
    %c0_213 = arith.constant 0 : index
    %c0_214 = arith.constant 0 : index
    %c0_215 = arith.constant 0 : index
    %179 = vector.load %arg1[%c0_212, %c0_213, %c0_214, %c0_215] : memref<2x8x8x128xf32, #tpu.memory_space<vmem>>, vector<2x8x8x128xf32>
    %c0_216 = arith.constant 0 : index
    %c1_217 = arith.constant 1 : index
    %c1_218 = arith.constant 1 : index
    %c128 = arith.constant 128 : index
    %180 = vector.load %arg23[%c0_216, %c1_217, %c1_218, %c128] : memref<2x10x10x256xf32, #tpu.memory_space<vmem>>, vector<2x8x8x128xf32>
    tpu.vector_store %arg23[%c0_216, %c1_217, %c1_218, %c128], %179 {strides = array<i32>} : memref<2x10x10x256xf32, #tpu.memory_space<vmem>>, vector<2x8x8x128xf32>,
    %cst_219 = arith.constant 0.000000e+00 : f32
    %181 = vector.broadcast %cst_219 : f32 to vector<128x512xf32>
    %c0_220 = arith.constant 0 : index
    %c0_221 = arith.constant 0 : index
    %c0_222 = arith.constant 0 : index
    %c0_223 = arith.constant 0 : index
    %182 = vector.load %arg23[%c0_220, %c0_221, %c0_222, %c0_223] : memref<2x10x10x256xf32, #tpu.memory_space<vmem>>, vector<2x8x8x256xf32>
    %183 = vector.shape_cast %182 : vector<2x8x8x256xf32> to vector<128x256xf32>
    %184 = arith.truncf %183 : vector<128x256xf32> to vector<128x256xbf16>
    %c0_224 = arith.constant 0 : index
    %c0_225 = arith.constant 0 : index
    %c0_226 = arith.constant 0 : index
    %c0_227 = arith.constant 0 : index
    %185 = vector.load %arg17[%c0_224, %c0_225, %c0_226, %c0_227] : memref<3x3x256x512xbf16, #tpu.memory_space<vmem>>, vector<1x1x256x512xbf16>
    %186 = vector.shape_cast %185 : vector<1x1x256x512xbf16> to vector<256x512xbf16>
    %cst_228 = arith.constant dense<0.000000e+00> : vector<128x512xf32>
    %187 = tpu.matmul %184, %186, %cst_228 {dimension_numbers = #tpu.dot_dimension_numbers<[1], [0], [0], [1], [0, 0, 1, 1], [], []>} : vector<128x256xbf16>, vector<256x512xbf16>, vector<128x512xf32> -> vector<128x512xf32>
    %188 = arith.addf %181, %187 : vector<128x512xf32>
    %c0_229 = arith.constant 0 : index
    %c0_230 = arith.constant 0 : index
    %c1_231 = arith.constant 1 : index
    %c0_232 = arith.constant 0 : index
    %189 = vector.load %arg23[%c0_229, %c0_230, %c1_231, %c0_232] : memref<2x10x10x256xf32, #tpu.memory_space<vmem>>, vector<2x8x8x256xf32>
    %190 = vector.shape_cast %189 : vector<2x8x8x256xf32> to vector<128x256xf32>
    %191 = arith.truncf %190 : vector<128x256xf32> to vector<128x256xbf16>
    %c0_233 = arith.constant 0 : index
    %c1_234 = arith.constant 1 : index
    %c0_235 = arith.constant 0 : index
    %c0_236 = arith.constant 0 : index
    %192 = vector.load %arg17[%c0_233, %c1_234, %c0_235, %c0_236] : memref<3x3x256x512xbf16, #tpu.memory_space<vmem>>, vector<1x1x256x512xbf16>
    %193 = vector.shape_cast %192 : vector<1x1x256x512xbf16> to vector<256x512xbf16>
    %cst_237 = arith.constant dense<0.000000e+00> : vector<128x512xf32>
    %194 = tpu.matmul %191, %193, %cst_237 {dimension_numbers = #tpu.dot_dimension_numbers<[1], [0], [0], [1], [0, 0, 1, 1], [], []>} : vector<128x256xbf16>, vector<256x512xbf16>, vector<128x512xf32> -> vector<128x512xf32>
    %195 = arith.addf %188, %194 : vector<128x512xf32>
    %c0_238 = arith.constant 0 : index
    %c0_239 = arith.constant 0 : index
    %c2_240 = arith.constant 2 : index
    %c0_241 = arith.constant 0 : index
    %196 = vector.load %arg23[%c0_238, %c0_239, %c2_240, %c0_241] : memref<2x10x10x256xf32, #tpu.memory_space<vmem>>, vector<2x8x8x256xf32>
    %197 = vector.shape_cast %196 : vector<2x8x8x256xf32> to vector<128x256xf32>
    %198 = arith.truncf %197 : vector<128x256xf32> to vector<128x256xbf16>
    %c0_242 = arith.constant 0 : index
    %c2_243 = arith.constant 2 : index
    %c0_244 = arith.constant 0 : index
    %c0_245 = arith.constant 0 : index
    %199 = vector.load %arg17[%c0_242, %c2_243, %c0_244, %c0_245] : memref<3x3x256x512xbf16, #tpu.memory_space<vmem>>, vector<1x1x256x512xbf16>
    %200 = vector.shape_cast %199 : vector<1x1x256x512xbf16> to vector<256x512xbf16>
    %cst_246 = arith.constant dense<0.000000e+00> : vector<128x512xf32>
    %201 = tpu.matmul %198, %200, %cst_246 {dimension_numbers = #tpu.dot_dimension_numbers<[1], [0], [0], [1], [0, 0, 1, 1], [], []>} : vector<128x256xbf16>, vector<256x512xbf16>, vector<128x512xf32> -> vector<128x512xf32>
    %202 = arith.addf %195, %201 : vector<128x512xf32>
    %c0_247 = arith.constant 0 : index
    %c1_248 = arith.constant 1 : index
    %c0_249 = arith.constant 0 : index
    %c0_250 = arith.constant 0 : index
    %203 = vector.load %arg23[%c0_247, %c1_248, %c0_249, %c0_250] : memref<2x10x10x256xf32, #tpu.memory_space<vmem>>, vector<2x8x8x256xf32>
    %204 = vector.shape_cast %203 : vector<2x8x8x256xf32> to vector<128x256xf32>
    %205 = arith.truncf %204 : vector<128x256xf32> to vector<128x256xbf16>
    %c1_251 = arith.constant 1 : index
    %c0_252 = arith.constant 0 : index
    %c0_253 = arith.constant 0 : index
    %c0_254 = arith.constant 0 : index
    %206 = vector.load %arg17[%c1_251, %c0_252, %c0_253, %c0_254] : memref<3x3x256x512xbf16, #tpu.memory_space<vmem>>, vector<1x1x256x512xbf16>
    %207 = vector.shape_cast %206 : vector<1x1x256x512xbf16> to vector<256x512xbf16>
    %cst_255 = arith.constant dense<0.000000e+00> : vector<128x512xf32>
    %208 = tpu.matmul %205, %207, %cst_255 {dimension_numbers = #tpu.dot_dimension_numbers<[1], [0], [0], [1], [0, 0, 1, 1], [], []>} : vector<128x256xbf16>, vector<256x512xbf16>, vector<128x512xf32> -> vector<128x512xf32>
    %209 = arith.addf %202, %208 : vector<128x512xf32>
    %c0_256 = arith.constant 0 : index
    %c1_257 = arith.constant 1 : index
    %c1_258 = arith.constant 1 : index
    %c0_259 = arith.constant 0 : index
    %210 = vector.load %arg23[%c0_256, %c1_257, %c1_258, %c0_259] : memref<2x10x10x256xf32, #tpu.memory_space<vmem>>, vector<2x8x8x256xf32>
    %211 = vector.shape_cast %210 : vector<2x8x8x256xf32> to vector<128x256xf32>
    %212 = arith.truncf %211 : vector<128x256xf32> to vector<128x256xbf16>
    %c1_260 = arith.constant 1 : index
    %c1_261 = arith.constant 1 : index
    %c0_262 = arith.constant 0 : index
    %c0_263 = arith.constant 0 : index
    %213 = vector.load %arg17[%c1_260, %c1_261, %c0_262, %c0_263] : memref<3x3x256x512xbf16, #tpu.memory_space<vmem>>, vector<1x1x256x512xbf16>
    %214 = vector.shape_cast %213 : vector<1x1x256x512xbf16> to vector<256x512xbf16>
    %cst_264 = arith.constant dense<0.000000e+00> : vector<128x512xf32>
    %215 = tpu.matmul %212, %214, %cst_264 {dimension_numbers = #tpu.dot_dimension_numbers<[1], [0], [0], [1], [0, 0, 1, 1], [], []>} : vector<128x256xbf16>, vector<256x512xbf16>, vector<128x512xf32> -> vector<128x512xf32>
    %216 = arith.addf %209, %215 : vector<128x512xf32>
    %c0_265 = arith.constant 0 : index
    %c1_266 = arith.constant 1 : index
    %c2_267 = arith.constant 2 : index
    %c0_268 = arith.constant 0 : index
    %217 = vector.load %arg23[%c0_265, %c1_266, %c2_267, %c0_268] : memref<2x10x10x256xf32, #tpu.memory_space<vmem>>, vector<2x8x8x256xf32>
    %218 = vector.shape_cast %217 : vector<2x8x8x256xf32> to vector<128x256xf32>
    %219 = arith.truncf %218 : vector<128x256xf32> to vector<128x256xbf16>
    %c1_269 = arith.constant 1 : index
    %c2_270 = arith.constant 2 : index
    %c0_271 = arith.constant 0 : index
    %c0_272 = arith.constant 0 : index
    %220 = vector.load %arg17[%c1_269, %c2_270, %c0_271, %c0_272] : memref<3x3x256x512xbf16, #tpu.memory_space<vmem>>, vector<1x1x256x512xbf16>
    %221 = vector.shape_cast %220 : vector<1x1x256x512xbf16> to vector<256x512xbf16>
    %cst_273 = arith.constant dense<0.000000e+00> : vector<128x512xf32>
    %222 = tpu.matmul %219, %221, %cst_273 {dimension_numbers = #tpu.dot_dimension_numbers<[1], [0], [0], [1], [0, 0, 1, 1], [], []>} : vector<128x256xbf16>, vector<256x512xbf16>, vector<128x512xf32> -> vector<128x512xf32>
    %223 = arith.addf %216, %222 : vector<128x512xf32>
    %c0_274 = arith.constant 0 : index
    %c2_275 = arith.constant 2 : index
    %c0_276 = arith.constant 0 : index
    %c0_277 = arith.constant 0 : index
    %224 = vector.load %arg23[%c0_274, %c2_275, %c0_276, %c0_277] : memref<2x10x10x256xf32, #tpu.memory_space<vmem>>, vector<2x8x8x256xf32>
    %225 = vector.shape_cast %224 : vector<2x8x8x256xf32> to vector<128x256xf32>
    %226 = arith.truncf %225 : vector<128x256xf32> to vector<128x256xbf16>
    %c2_278 = arith.constant 2 : index
    %c0_279 = arith.constant 0 : index
    %c0_280 = arith.constant 0 : index
    %c0_281 = arith.constant 0 : index
    %227 = vector.load %arg17[%c2_278, %c0_279, %c0_280, %c0_281] : memref<3x3x256x512xbf16, #tpu.memory_space<vmem>>, vector<1x1x256x512xbf16>
    %228 = vector.shape_cast %227 : vector<1x1x256x512xbf16> to vector<256x512xbf16>
    %cst_282 = arith.constant dense<0.000000e+00> : vector<128x512xf32>
    %229 = tpu.matmul %226, %228, %cst_282 {dimension_numbers = #tpu.dot_dimension_numbers<[1], [0], [0], [1], [0, 0, 1, 1], [], []>} : vector<128x256xbf16>, vector<256x512xbf16>, vector<128x512xf32> -> vector<128x512xf32>
    %230 = arith.addf %223, %229 : vector<128x512xf32>
    %c0_283 = arith.constant 0 : index
    %c2_284 = arith.constant 2 : index
    %c1_285 = arith.constant 1 : index
    %c0_286 = arith.constant 0 : index
    %231 = vector.load %arg23[%c0_283, %c2_284, %c1_285, %c0_286] : memref<2x10x10x256xf32, #tpu.memory_space<vmem>>, vector<2x8x8x256xf32>
    %232 = vector.shape_cast %231 : vector<2x8x8x256xf32> to vector<128x256xf32>
    %233 = arith.truncf %232 : vector<128x256xf32> to vector<128x256xbf16>
    %c2_287 = arith.constant 2 : index
    %c1_288 = arith.constant 1 : index
    %c0_289 = arith.constant 0 : index
    %c0_290 = arith.constant 0 : index
    %234 = vector.load %arg17[%c2_287, %c1_288, %c0_289, %c0_290] : memref<3x3x256x512xbf16, #tpu.memory_space<vmem>>, vector<1x1x256x512xbf16>
    %235 = vector.shape_cast %234 : vector<1x1x256x512xbf16> to vector<256x512xbf16>
    %cst_291 = arith.constant dense<0.000000e+00> : vector<128x512xf32>
    %236 = tpu.matmul %233, %235, %cst_291 {dimension_numbers = #tpu.dot_dimension_numbers<[1], [0], [0], [1], [0, 0, 1, 1], [], []>} : vector<128x256xbf16>, vector<256x512xbf16>, vector<128x512xf32> -> vector<128x512xf32>
    %237 = arith.addf %230, %236 : vector<128x512xf32>
    %c0_292 = arith.constant 0 : index
    %c2_293 = arith.constant 2 : index
    %c2_294 = arith.constant 2 : index
    %c0_295 = arith.constant 0 : index
    %238 = vector.load %arg23[%c0_292, %c2_293, %c2_294, %c0_295] : memref<2x10x10x256xf32, #tpu.memory_space<vmem>>, vector<2x8x8x256xf32>
    %239 = vector.shape_cast %238 : vector<2x8x8x256xf32> to vector<128x256xf32>
    %240 = arith.truncf %239 : vector<128x256xf32> to vector<128x256xbf16>
    %c2_296 = arith.constant 2 : index
    %c2_297 = arith.constant 2 : index
    %c0_298 = arith.constant 0 : index
    %c0_299 = arith.constant 0 : index
    %241 = vector.load %arg17[%c2_296, %c2_297, %c0_298, %c0_299] : memref<3x3x256x512xbf16, #tpu.memory_space<vmem>>, vector<1x1x256x512xbf16>
    %242 = vector.shape_cast %241 : vector<1x1x256x512xbf16> to vector<256x512xbf16>
    %cst_300 = arith.constant dense<0.000000e+00> : vector<128x512xf32>
    %243 = tpu.matmul %240, %242, %cst_300 {dimension_numbers = #tpu.dot_dimension_numbers<[1], [0], [0], [1], [0, 0, 1, 1], [], []>} : vector<128x256xbf16>, vector<256x512xbf16>, vector<128x512xf32> -> vector<128x512xf32>
    %244 = arith.addf %237, %243 : vector<128x512xf32>
    %c0_301 = arith.constant 0 : index
    %c0_302 = arith.constant 0 : index
    %245 = vector.load %arg18[%c0_301, %c0_302] : memref<1x512xf32, #tpu.memory_space<vmem>>, vector<1x512xf32>
    %246 = vector.broadcast %245 : vector<1x512xf32> to vector<128x512xf32>
    %247 = arith.addf %244, %246 : vector<128x512xf32>
    %248 = vector.extract_strided_slice %247 {offsets = [0, 0], sizes = [128, 128], strides = [1, 1]} : vector<128x512xf32> to vector<128x128xf32>
    %249 = arith.negf %248 : vector<128x128xf32>
    %250 = math.exp %249 : vector<128x128xf32>
    %cst_303 = arith.constant 1.000000e+00 : f32
    %251 = vector.broadcast %cst_303 : f32 to vector<128x128xf32>
    %252 = arith.addf %251, %250 : vector<128x128xf32>
    %253 = arith.divf %251, %252 : vector<128x128xf32>
    %254 = vector.extract_strided_slice %247 {offsets = [0, 128], sizes = [128, 128], strides = [1, 1]} : vector<128x512xf32> to vector<128x128xf32>
    %255 = arith.negf %254 : vector<128x128xf32>
    %256 = math.exp %255 : vector<128x128xf32>
    %cst_304 = arith.constant 1.000000e+00 : f32
    %257 = vector.broadcast %cst_304 : f32 to vector<128x128xf32>
    %258 = arith.addf %257, %256 : vector<128x128xf32>
    %259 = arith.divf %257, %258 : vector<128x128xf32>
    %260 = vector.extract_strided_slice %247 {offsets = [0, 256], sizes = [128, 128], strides = [1, 1]} : vector<128x512xf32> to vector<128x128xf32>
    %261 = math.tanh %260 : vector<128x128xf32>
    %262 = vector.extract_strided_slice %247 {offsets = [0, 384], sizes = [128, 128], strides = [1, 1]} : vector<128x512xf32> to vector<128x128xf32>
    %263 = arith.negf %262 : vector<128x128xf32>
    %264 = math.exp %263 : vector<128x128xf32>
    %cst_305 = arith.constant 1.000000e+00 : f32
    %265 = vector.broadcast %cst_305 : f32 to vector<128x128xf32>
    %266 = arith.addf %265, %264 : vector<128x128xf32>
    %267 = arith.divf %265, %266 : vector<128x128xf32>
    %c0_306 = arith.constant 0 : index
    %c0_307 = arith.constant 0 : index
    %c0_308 = arith.constant 0 : index
    %c0_309 = arith.constant 0 : index
    %268 = vector.load %arg2[%c0_306, %c0_307, %c0_308, %c0_309] : memref<2x8x8x128xf32, #tpu.memory_space<vmem>>, vector<2x8x8x128xf32>
    %269 = vector.shape_cast %268 : vector<2x8x8x128xf32> to vector<128x128xf32>
    %270 = arith.mulf %259, %269 : vector<128x128xf32>
    %271 = arith.mulf %253, %261 : vector<128x128xf32>
    %272 = arith.addf %270, %271 : vector<128x128xf32>
    %273 = math.tanh %272 : vector<128x128xf32>
    %274 = arith.mulf %267, %273 : vector<128x128xf32>
    %275 = arith.addf %274, %176 : vector<128x128xf32>
    %276 = vector.shape_cast %275 : vector<128x128xf32> to vector<2x8x8x128xf32>
    %c0_310 = arith.constant 0 : index
    %c1_311 = arith.constant 1 : index
    %c1_312 = arith.constant 1 : index
    %c0_313 = arith.constant 0 : index
    %277 = vector.load %arg22[%c0_310, %c1_311, %c1_312, %c0_313] : memref<2x10x10x128xf32, #tpu.memory_space<vmem>>, vector<2x8x8x128xf32>
    tpu.vector_store %arg22[%c0_310, %c1_311, %c1_312, %c0_313], %276 {strides = array<i32>} : memref<2x10x10x128xf32, #tpu.memory_space<vmem>>, vector<2x8x8x128xf32>,
    %cst_314 = arith.constant 0.000000e+00 : f32
    %278 = vector.broadcast %cst_314 : f32 to vector<128x128xf32>
    %c0_315 = arith.constant 0 : index
    %c0_316 = arith.constant 0 : index
    %c0_317 = arith.constant 0 : index
    %c0_318 = arith.constant 0 : index
    %279 = vector.load %arg22[%c0_315, %c0_316, %c0_317, %c0_318] : memref<2x10x10x128xf32, #tpu.memory_space<vmem>>, vector<2x8x8x128xf32>
    %280 = vector.shape_cast %279 : vector<2x8x8x128xf32> to vector<128x128xf32>
    %281 = arith.truncf %280 : vector<128x128xf32> to vector<128x128xbf16>
    %c0_319 = arith.constant 0 : index
    %c0_320 = arith.constant 0 : index
    %c0_321 = arith.constant 0 : index
    %c0_322 = arith.constant 0 : index
    %282 = vector.load %arg13[%c0_319, %c0_320, %c0_321, %c0_322] : memref<3x3x128x128xbf16, #tpu.memory_space<vmem>>, vector<1x1x128x128xbf16>
    %283 = vector.shape_cast %282 : vector<1x1x128x128xbf16> to vector<128x128xbf16>
    %cst_323 = arith.constant dense<0.000000e+00> : vector<128x128xf32>
    %284 = tpu.matmul %281, %283, %cst_323 {dimension_numbers = #tpu.dot_dimension_numbers<[1], [0], [0], [1], [0, 0, 1, 1], [], []>} : vector<128x128xbf16>, vector<128x128xbf16>, vector<128x128xf32> -> vector<128x128xf32>
    %285 = arith.addf %278, %284 : vector<128x128xf32>
    %c0_324 = arith.constant 0 : index
    %c0_325 = arith.constant 0 : index
    %c1_326 = arith.constant 1 : index
    %c0_327 = arith.constant 0 : index
    %286 = vector.load %arg22[%c0_324, %c0_325, %c1_326, %c0_327] : memref<2x10x10x128xf32, #tpu.memory_space<vmem>>, vector<2x8x8x128xf32>
    %287 = vector.shape_cast %286 : vector<2x8x8x128xf32> to vector<128x128xf32>
    %288 = arith.truncf %287 : vector<128x128xf32> to vector<128x128xbf16>
    %c0_328 = arith.constant 0 : index
    %c1_329 = arith.constant 1 : index
    %c0_330 = arith.constant 0 : index
    %c0_331 = arith.constant 0 : index
    %289 = vector.load %arg13[%c0_328, %c1_329, %c0_330, %c0_331] : memref<3x3x128x128xbf16, #tpu.memory_space<vmem>>, vector<1x1x128x128xbf16>
    %290 = vector.shape_cast %289 : vector<1x1x128x128xbf16> to vector<128x128xbf16>
    %cst_332 = arith.constant dense<0.000000e+00> : vector<128x128xf32>
    %291 = tpu.matmul %288, %290, %cst_332 {dimension_numbers = #tpu.dot_dimension_numbers<[1], [0], [0], [1], [0, 0, 1, 1], [], []>} : vector<128x128xbf16>, vector<128x128xbf16>, vector<128x128xf32> -> vector<128x128xf32>
    %292 = arith.addf %285, %291 : vector<128x128xf32>
    %c0_333 = arith.constant 0 : index
    %c0_334 = arith.constant 0 : index
    %c2_335 = arith.constant 2 : index
    %c0_336 = arith.constant 0 : index
    %293 = vector.load %arg22[%c0_333, %c0_334, %c2_335, %c0_336] : memref<2x10x10x128xf32, #tpu.memory_space<vmem>>, vector<2x8x8x128xf32>
    %294 = vector.shape_cast %293 : vector<2x8x8x128xf32> to vector<128x128xf32>
    %295 = arith.truncf %294 : vector<128x128xf32> to vector<128x128xbf16>
    %c0_337 = arith.constant 0 : index
    %c2_338 = arith.constant 2 : index
    %c0_339 = arith.constant 0 : index
    %c0_340 = arith.constant 0 : index
    %296 = vector.load %arg13[%c0_337, %c2_338, %c0_339, %c0_340] : memref<3x3x128x128xbf16, #tpu.memory_space<vmem>>, vector<1x1x128x128xbf16>
    %297 = vector.shape_cast %296 : vector<1x1x128x128xbf16> to vector<128x128xbf16>
    %cst_341 = arith.constant dense<0.000000e+00> : vector<128x128xf32>
    %298 = tpu.matmul %295, %297, %cst_341 {dimension_numbers = #tpu.dot_dimension_numbers<[1], [0], [0], [1], [0, 0, 1, 1], [], []>} : vector<128x128xbf16>, vector<128x128xbf16>, vector<128x128xf32> -> vector<128x128xf32>
    %299 = arith.addf %292, %298 : vector<128x128xf32>
    %c0_342 = arith.constant 0 : index
    %c1_343 = arith.constant 1 : index
    %c0_344 = arith.constant 0 : index
    %c0_345 = arith.constant 0 : index
    %300 = vector.load %arg22[%c0_342, %c1_343, %c0_344, %c0_345] : memref<2x10x10x128xf32, #tpu.memory_space<vmem>>, vector<2x8x8x128xf32>
    %301 = vector.shape_cast %300 : vector<2x8x8x128xf32> to vector<128x128xf32>
    %302 = arith.truncf %301 : vector<128x128xf32> to vector<128x128xbf16>
    %c1_346 = arith.constant 1 : index
    %c0_347 = arith.constant 0 : index
    %c0_348 = arith.constant 0 : index
    %c0_349 = arith.constant 0 : index
    %303 = vector.load %arg13[%c1_346, %c0_347, %c0_348, %c0_349] : memref<3x3x128x128xbf16, #tpu.memory_space<vmem>>, vector<1x1x128x128xbf16>
    %304 = vector.shape_cast %303 : vector<1x1x128x128xbf16> to vector<128x128xbf16>
    %cst_350 = arith.constant dense<0.000000e+00> : vector<128x128xf32>
    %305 = tpu.matmul %302, %304, %cst_350 {dimension_numbers = #tpu.dot_dimension_numbers<[1], [0], [0], [1], [0, 0, 1, 1], [], []>} : vector<128x128xbf16>, vector<128x128xbf16>, vector<128x128xf32> -> vector<128x128xf32>
    %306 = arith.addf %299, %305 : vector<128x128xf32>
    %c0_351 = arith.constant 0 : index
    %c1_352 = arith.constant 1 : index
    %c1_353 = arith.constant 1 : index
    %c0_354 = arith.constant 0 : index
    %307 = vector.load %arg22[%c0_351, %c1_352, %c1_353, %c0_354] : memref<2x10x10x128xf32, #tpu.memory_space<vmem>>, vector<2x8x8x128xf32>
    %308 = vector.shape_cast %307 : vector<2x8x8x128xf32> to vector<128x128xf32>
    %309 = arith.truncf %308 : vector<128x128xf32> to vector<128x128xbf16>
    %c1_355 = arith.constant 1 : index
    %c1_356 = arith.constant 1 : index
    %c0_357 = arith.constant 0 : index
    %c0_358 = arith.constant 0 : index
    %310 = vector.load %arg13[%c1_355, %c1_356, %c0_357, %c0_358] : memref<3x3x128x128xbf16, #tpu.memory_space<vmem>>, vector<1x1x128x128xbf16>
    %311 = vector.shape_cast %310 : vector<1x1x128x128xbf16> to vector<128x128xbf16>
    %cst_359 = arith.constant dense<0.000000e+00> : vector<128x128xf32>
    %312 = tpu.matmul %309, %311, %cst_359 {dimension_numbers = #tpu.dot_dimension_numbers<[1], [0], [0], [1], [0, 0, 1, 1], [], []>} : vector<128x128xbf16>, vector<128x128xbf16>, vector<128x128xf32> -> vector<128x128xf32>
    %313 = arith.addf %306, %312 : vector<128x128xf32>
    %c0_360 = arith.constant 0 : index
    %c1_361 = arith.constant 1 : index
    %c2_362 = arith.constant 2 : index
    %c0_363 = arith.constant 0 : index
    %314 = vector.load %arg22[%c0_360, %c1_361, %c2_362, %c0_363] : memref<2x10x10x128xf32, #tpu.memory_space<vmem>>, vector<2x8x8x128xf32>
    %315 = vector.shape_cast %314 : vector<2x8x8x128xf32> to vector<128x128xf32>
    %316 = arith.truncf %315 : vector<128x128xf32> to vector<128x128xbf16>
    %c1_364 = arith.constant 1 : index
    %c2_365 = arith.constant 2 : index
    %c0_366 = arith.constant 0 : index
    %c0_367 = arith.constant 0 : index
    %317 = vector.load %arg13[%c1_364, %c2_365, %c0_366, %c0_367] : memref<3x3x128x128xbf16, #tpu.memory_space<vmem>>, vector<1x1x128x128xbf16>
    %318 = vector.shape_cast %317 : vector<1x1x128x128xbf16> to vector<128x128xbf16>
    %cst_368 = arith.constant dense<0.000000e+00> : vector<128x128xf32>
    %319 = tpu.matmul %316, %318, %cst_368 {dimension_numbers = #tpu.dot_dimension_numbers<[1], [0], [0], [1], [0, 0, 1, 1], [], []>} : vector<128x128xbf16>, vector<128x128xbf16>, vector<128x128xf32> -> vector<128x128xf32>
    %320 = arith.addf %313, %319 : vector<128x128xf32>
    %c0_369 = arith.constant 0 : index
    %c2_370 = arith.constant 2 : index
    %c0_371 = arith.constant 0 : index
    %c0_372 = arith.constant 0 : index
    %321 = vector.load %arg22[%c0_369, %c2_370, %c0_371, %c0_372] : memref<2x10x10x128xf32, #tpu.memory_space<vmem>>, vector<2x8x8x128xf32>
    %322 = vector.shape_cast %321 : vector<2x8x8x128xf32> to vector<128x128xf32>
    %323 = arith.truncf %322 : vector<128x128xf32> to vector<128x128xbf16>
    %c2_373 = arith.constant 2 : index
    %c0_374 = arith.constant 0 : index
    %c0_375 = arith.constant 0 : index
    %c0_376 = arith.constant 0 : index
    %324 = vector.load %arg13[%c2_373, %c0_374, %c0_375, %c0_376] : memref<3x3x128x128xbf16, #tpu.memory_space<vmem>>, vector<1x1x128x128xbf16>
    %325 = vector.shape_cast %324 : vector<1x1x128x128xbf16> to vector<128x128xbf16>
    %cst_377 = arith.constant dense<0.000000e+00> : vector<128x128xf32>
    %326 = tpu.matmul %323, %325, %cst_377 {dimension_numbers = #tpu.dot_dimension_numbers<[1], [0], [0], [1], [0, 0, 1, 1], [], []>} : vector<128x128xbf16>, vector<128x128xbf16>, vector<128x128xf32> -> vector<128x128xf32>
    %327 = arith.addf %320, %326 : vector<128x128xf32>
    %c0_378 = arith.constant 0 : index
    %c2_379 = arith.constant 2 : index
    %c1_380 = arith.constant 1 : index
    %c0_381 = arith.constant 0 : index
    %328 = vector.load %arg22[%c0_378, %c2_379, %c1_380, %c0_381] : memref<2x10x10x128xf32, #tpu.memory_space<vmem>>, vector<2x8x8x128xf32>
    %329 = vector.shape_cast %328 : vector<2x8x8x128xf32> to vector<128x128xf32>
    %330 = arith.truncf %329 : vector<128x128xf32> to vector<128x128xbf16>
    %c2_382 = arith.constant 2 : index
    %c1_383 = arith.constant 1 : index
    %c0_384 = arith.constant 0 : index
    %c0_385 = arith.constant 0 : index
    %331 = vector.load %arg13[%c2_382, %c1_383, %c0_384, %c0_385] : memref<3x3x128x128xbf16, #tpu.memory_space<vmem>>, vector<1x1x128x128xbf16>
    %332 = vector.shape_cast %331 : vector<1x1x128x128xbf16> to vector<128x128xbf16>
    %cst_386 = arith.constant dense<0.000000e+00> : vector<128x128xf32>
    %333 = tpu.matmul %330, %332, %cst_386 {dimension_numbers = #tpu.dot_dimension_numbers<[1], [0], [0], [1], [0, 0, 1, 1], [], []>} : vector<128x128xbf16>, vector<128x128xbf16>, vector<128x128xf32> -> vector<128x128xf32>
    %334 = arith.addf %327, %333 : vector<128x128xf32>
    %c0_387 = arith.constant 0 : index
    %c2_388 = arith.constant 2 : index
    %c2_389 = arith.constant 2 : index
    %c0_390 = arith.constant 0 : index
    %335 = vector.load %arg22[%c0_387, %c2_388, %c2_389, %c0_390] : memref<2x10x10x128xf32, #tpu.memory_space<vmem>>, vector<2x8x8x128xf32>
    %336 = vector.shape_cast %335 : vector<2x8x8x128xf32> to vector<128x128xf32>
    %337 = arith.truncf %336 : vector<128x128xf32> to vector<128x128xbf16>
    %c2_391 = arith.constant 2 : index
    %c2_392 = arith.constant 2 : index
    %c0_393 = arith.constant 0 : index
    %c0_394 = arith.constant 0 : index
    %338 = vector.load %arg13[%c2_391, %c2_392, %c0_393, %c0_394] : memref<3x3x128x128xbf16, #tpu.memory_space<vmem>>, vector<1x1x128x128xbf16>
    %339 = vector.shape_cast %338 : vector<1x1x128x128xbf16> to vector<128x128xbf16>
    %cst_395 = arith.constant dense<0.000000e+00> : vector<128x128xf32>
    %340 = tpu.matmul %337, %339, %cst_395 {dimension_numbers = #tpu.dot_dimension_numbers<[1], [0], [0], [1], [0, 0, 1, 1], [], []>} : vector<128x128xbf16>, vector<128x128xbf16>, vector<128x128xf32> -> vector<128x128xf32>
    %341 = arith.addf %334, %340 : vector<128x128xf32>
    %c0_396 = arith.constant 0 : index
    %c0_397 = arith.constant 0 : index
    %342 = vector.load %arg14[%c0_396, %c0_397] : memref<1x128xf32, #tpu.memory_space<vmem>>, vector<1x128xf32>
    %343 = vector.broadcast %342 : vector<1x128xf32> to vector<128x128xf32>
    %344 = arith.addf %341, %343 : vector<128x128xf32>
    %cst_398 = arith.constant 0.000000e+00 : f32
    %345 = vector.broadcast %cst_398 : f32 to vector<128x128xf32>
    %346 = arith.maximumf %344, %345 : vector<128x128xf32>
    %347 = arith.addf %346, %105 : vector<128x128xf32>
    %348 = vector.shape_cast %347 : vector<128x128xf32> to vector<2x8x8x128xf32>
    %c0_399 = arith.constant 0 : index
    %c1_400 = arith.constant 1 : index
    %c1_401 = arith.constant 1 : index
    %c0_402 = arith.constant 0 : index
    %349 = vector.load %arg22[%c0_399, %c1_400, %c1_401, %c0_402] : memref<2x10x10x128xf32, #tpu.memory_space<vmem>>, vector<2x8x8x128xf32>
    tpu.vector_store %arg22[%c0_399, %c1_400, %c1_401, %c0_402], %348 {strides = array<i32>} : memref<2x10x10x128xf32, #tpu.memory_space<vmem>>, vector<2x8x8x128xf32>,
    %cst_403 = arith.constant 0.000000e+00 : f32
    %350 = vector.broadcast %cst_403 : f32 to vector<128x128xf32>
    %c0_404 = arith.constant 0 : index
    %c0_405 = arith.constant 0 : index
    %c0_406 = arith.constant 0 : index
    %c0_407 = arith.constant 0 : index
    %351 = vector.load %arg22[%c0_404, %c0_405, %c0_406, %c0_407] : memref<2x10x10x128xf32, #tpu.memory_space<vmem>>, vector<2x8x8x128xf32>
    %352 = vector.shape_cast %351 : vector<2x8x8x128xf32> to vector<128x128xf32>
    %353 = arith.truncf %352 : vector<128x128xf32> to vector<128x128xbf16>
    %c0_408 = arith.constant 0 : index
    %c0_409 = arith.constant 0 : index
    %c0_410 = arith.constant 0 : index
    %c0_411 = arith.constant 0 : index
    %354 = vector.load %arg15[%c0_408, %c0_409, %c0_410, %c0_411] : memref<3x3x128x128xbf16, #tpu.memory_space<vmem>>, vector<1x1x128x128xbf16>
    %355 = vector.shape_cast %354 : vector<1x1x128x128xbf16> to vector<128x128xbf16>
    %cst_412 = arith.constant dense<0.000000e+00> : vector<128x128xf32>
    %356 = tpu.matmul %353, %355, %cst_412 {dimension_numbers = #tpu.dot_dimension_numbers<[1], [0], [0], [1], [0, 0, 1, 1], [], []>} : vector<128x128xbf16>, vector<128x128xbf16>, vector<128x128xf32> -> vector<128x128xf32>
    %357 = arith.addf %350, %356 : vector<128x128xf32>
    %c0_413 = arith.constant 0 : index
    %c0_414 = arith.constant 0 : index
    %c1_415 = arith.constant 1 : index
    %c0_416 = arith.constant 0 : index
    %358 = vector.load %arg22[%c0_413, %c0_414, %c1_415, %c0_416] : memref<2x10x10x128xf32, #tpu.memory_space<vmem>>, vector<2x8x8x128xf32>
    %359 = vector.shape_cast %358 : vector<2x8x8x128xf32> to vector<128x128xf32>
    %360 = arith.truncf %359 : vector<128x128xf32> to vector<128x128xbf16>
    %c0_417 = arith.constant 0 : index
    %c1_418 = arith.constant 1 : index
    %c0_419 = arith.constant 0 : index
    %c0_420 = arith.constant 0 : index
    %361 = vector.load %arg15[%c0_417, %c1_418, %c0_419, %c0_420] : memref<3x3x128x128xbf16, #tpu.memory_space<vmem>>, vector<1x1x128x128xbf16>
    %362 = vector.shape_cast %361 : vector<1x1x128x128xbf16> to vector<128x128xbf16>
    %cst_421 = arith.constant dense<0.000000e+00> : vector<128x128xf32>
    %363 = tpu.matmul %360, %362, %cst_421 {dimension_numbers = #tpu.dot_dimension_numbers<[1], [0], [0], [1], [0, 0, 1, 1], [], []>} : vector<128x128xbf16>, vector<128x128xbf16>, vector<128x128xf32> -> vector<128x128xf32>
    %364 = arith.addf %357, %363 : vector<128x128xf32>
    %c0_422 = arith.constant 0 : index
    %c0_423 = arith.constant 0 : index
    %c2_424 = arith.constant 2 : index
    %c0_425 = arith.constant 0 : index
    %365 = vector.load %arg22[%c0_422, %c0_423, %c2_424, %c0_425] : memref<2x10x10x128xf32, #tpu.memory_space<vmem>>, vector<2x8x8x128xf32>
    %366 = vector.shape_cast %365 : vector<2x8x8x128xf32> to vector<128x128xf32>
    %367 = arith.truncf %366 : vector<128x128xf32> to vector<128x128xbf16>
    %c0_426 = arith.constant 0 : index
    %c2_427 = arith.constant 2 : index
    %c0_428 = arith.constant 0 : index
    %c0_429 = arith.constant 0 : index
    %368 = vector.load %arg15[%c0_426, %c2_427, %c0_428, %c0_429] : memref<3x3x128x128xbf16, #tpu.memory_space<vmem>>, vector<1x1x128x128xbf16>
    %369 = vector.shape_cast %368 : vector<1x1x128x128xbf16> to vector<128x128xbf16>
    %cst_430 = arith.constant dense<0.000000e+00> : vector<128x128xf32>
    %370 = tpu.matmul %367, %369, %cst_430 {dimension_numbers = #tpu.dot_dimension_numbers<[1], [0], [0], [1], [0, 0, 1, 1], [], []>} : vector<128x128xbf16>, vector<128x128xbf16>, vector<128x128xf32> -> vector<128x128xf32>
    %371 = arith.addf %364, %370 : vector<128x128xf32>
    %c0_431 = arith.constant 0 : index
    %c1_432 = arith.constant 1 : index
    %c0_433 = arith.constant 0 : index
    %c0_434 = arith.constant 0 : index
    %372 = vector.load %arg22[%c0_431, %c1_432, %c0_433, %c0_434] : memref<2x10x10x128xf32, #tpu.memory_space<vmem>>, vector<2x8x8x128xf32>
    %373 = vector.shape_cast %372 : vector<2x8x8x128xf32> to vector<128x128xf32>
    %374 = arith.truncf %373 : vector<128x128xf32> to vector<128x128xbf16>
    %c1_435 = arith.constant 1 : index
    %c0_436 = arith.constant 0 : index
    %c0_437 = arith.constant 0 : index
    %c0_438 = arith.constant 0 : index
    %375 = vector.load %arg15[%c1_435, %c0_436, %c0_437, %c0_438] : memref<3x3x128x128xbf16, #tpu.memory_space<vmem>>, vector<1x1x128x128xbf16>
    %376 = vector.shape_cast %375 : vector<1x1x128x128xbf16> to vector<128x128xbf16>
    %cst_439 = arith.constant dense<0.000000e+00> : vector<128x128xf32>
    %377 = tpu.matmul %374, %376, %cst_439 {dimension_numbers = #tpu.dot_dimension_numbers<[1], [0], [0], [1], [0, 0, 1, 1], [], []>} : vector<128x128xbf16>, vector<128x128xbf16>, vector<128x128xf32> -> vector<128x128xf32>
    %378 = arith.addf %371, %377 : vector<128x128xf32>
    %c0_440 = arith.constant 0 : index
    %c1_441 = arith.constant 1 : index
    %c1_442 = arith.constant 1 : index
    %c0_443 = arith.constant 0 : index
    %379 = vector.load %arg22[%c0_440, %c1_441, %c1_442, %c0_443] : memref<2x10x10x128xf32, #tpu.memory_space<vmem>>, vector<2x8x8x128xf32>
    %380 = vector.shape_cast %379 : vector<2x8x8x128xf32> to vector<128x128xf32>
    %381 = arith.truncf %380 : vector<128x128xf32> to vector<128x128xbf16>
    %c1_444 = arith.constant 1 : index
    %c1_445 = arith.constant 1 : index
    %c0_446 = arith.constant 0 : index
    %c0_447 = arith.constant 0 : index
    %382 = vector.load %arg15[%c1_444, %c1_445, %c0_446, %c0_447] : memref<3x3x128x128xbf16, #tpu.memory_space<vmem>>, vector<1x1x128x128xbf16>
    %383 = vector.shape_cast %382 : vector<1x1x128x128xbf16> to vector<128x128xbf16>
    %cst_448 = arith.constant dense<0.000000e+00> : vector<128x128xf32>
    %384 = tpu.matmul %381, %383, %cst_448 {dimension_numbers = #tpu.dot_dimension_numbers<[1], [0], [0], [1], [0, 0, 1, 1], [], []>} : vector<128x128xbf16>, vector<128x128xbf16>, vector<128x128xf32> -> vector<128x128xf32>
    %385 = arith.addf %378, %384 : vector<128x128xf32>
    %c0_449 = arith.constant 0 : index
    %c1_450 = arith.constant 1 : index
    %c2_451 = arith.constant 2 : index
    %c0_452 = arith.constant 0 : index
    %386 = vector.load %arg22[%c0_449, %c1_450, %c2_451, %c0_452] : memref<2x10x10x128xf32, #tpu.memory_space<vmem>>, vector<2x8x8x128xf32>
    %387 = vector.shape_cast %386 : vector<2x8x8x128xf32> to vector<128x128xf32>
    %388 = arith.truncf %387 : vector<128x128xf32> to vector<128x128xbf16>
    %c1_453 = arith.constant 1 : index
    %c2_454 = arith.constant 2 : index
    %c0_455 = arith.constant 0 : index
    %c0_456 = arith.constant 0 : index
    %389 = vector.load %arg15[%c1_453, %c2_454, %c0_455, %c0_456] : memref<3x3x128x128xbf16, #tpu.memory_space<vmem>>, vector<1x1x128x128xbf16>
    %390 = vector.shape_cast %389 : vector<1x1x128x128xbf16> to vector<128x128xbf16>
    %cst_457 = arith.constant dense<0.000000e+00> : vector<128x128xf32>
    %391 = tpu.matmul %388, %390, %cst_457 {dimension_numbers = #tpu.dot_dimension_numbers<[1], [0], [0], [1], [0, 0, 1, 1], [], []>} : vector<128x128xbf16>, vector<128x128xbf16>, vector<128x128xf32> -> vector<128x128xf32>
    %392 = arith.addf %385, %391 : vector<128x128xf32>
    %c0_458 = arith.constant 0 : index
    %c2_459 = arith.constant 2 : index
    %c0_460 = arith.constant 0 : index
    %c0_461 = arith.constant 0 : index
    %393 = vector.load %arg22[%c0_458, %c2_459, %c0_460, %c0_461] : memref<2x10x10x128xf32, #tpu.memory_space<vmem>>, vector<2x8x8x128xf32>
    %394 = vector.shape_cast %393 : vector<2x8x8x128xf32> to vector<128x128xf32>
    %395 = arith.truncf %394 : vector<128x128xf32> to vector<128x128xbf16>
    %c2_462 = arith.constant 2 : index
    %c0_463 = arith.constant 0 : index
    %c0_464 = arith.constant 0 : index
    %c0_465 = arith.constant 0 : index
    %396 = vector.load %arg15[%c2_462, %c0_463, %c0_464, %c0_465] : memref<3x3x128x128xbf16, #tpu.memory_space<vmem>>, vector<1x1x128x128xbf16>
    %397 = vector.shape_cast %396 : vector<1x1x128x128xbf16> to vector<128x128xbf16>
    %cst_466 = arith.constant dense<0.000000e+00> : vector<128x128xf32>
    %398 = tpu.matmul %395, %397, %cst_466 {dimension_numbers = #tpu.dot_dimension_numbers<[1], [0], [0], [1], [0, 0, 1, 1], [], []>} : vector<128x128xbf16>, vector<128x128xbf16>, vector<128x128xf32> -> vector<128x128xf32>
    %399 = arith.addf %392, %398 : vector<128x128xf32>
    %c0_467 = arith.constant 0 : index
    %c2_468 = arith.constant 2 : index
    %c1_469 = arith.constant 1 : index
    %c0_470 = arith.constant 0 : index
    %400 = vector.load %arg22[%c0_467, %c2_468, %c1_469, %c0_470] : memref<2x10x10x128xf32, #tpu.memory_space<vmem>>, vector<2x8x8x128xf32>
    %401 = vector.shape_cast %400 : vector<2x8x8x128xf32> to vector<128x128xf32>
    %402 = arith.truncf %401 : vector<128x128xf32> to vector<128x128xbf16>
    %c2_471 = arith.constant 2 : index
    %c1_472 = arith.constant 1 : index
    %c0_473 = arith.constant 0 : index
    %c0_474 = arith.constant 0 : index
    %403 = vector.load %arg15[%c2_471, %c1_472, %c0_473, %c0_474] : memref<3x3x128x128xbf16, #tpu.memory_space<vmem>>, vector<1x1x128x128xbf16>
    %404 = vector.shape_cast %403 : vector<1x1x128x128xbf16> to vector<128x128xbf16>
    %cst_475 = arith.constant dense<0.000000e+00> : vector<128x128xf32>
    %405 = tpu.matmul %402, %404, %cst_475 {dimension_numbers = #tpu.dot_dimension_numbers<[1], [0], [0], [1], [0, 0, 1, 1], [], []>} : vector<128x128xbf16>, vector<128x128xbf16>, vector<128x128xf32> -> vector<128x128xf32>
    %406 = arith.addf %399, %405 : vector<128x128xf32>
    %c0_476 = arith.constant 0 : index
    %c2_477 = arith.constant 2 : index
    %c2_478 = arith.constant 2 : index
    %c0_479 = arith.constant 0 : index
    %407 = vector.load %arg22[%c0_476, %c2_477, %c2_478, %c0_479] : memref<2x10x10x128xf32, #tpu.memory_space<vmem>>, vector<2x8x8x128xf32>
    %408 = vector.shape_cast %407 : vector<2x8x8x128xf32> to vector<128x128xf32>
    %409 = arith.truncf %408 : vector<128x128xf32> to vector<128x128xbf16>
    %c2_480 = arith.constant 2 : index
    %c2_481 = arith.constant 2 : index
    %c0_482 = arith.constant 0 : index
    %c0_483 = arith.constant 0 : index
    %410 = vector.load %arg15[%c2_480, %c2_481, %c0_482, %c0_483] : memref<3x3x128x128xbf16, #tpu.memory_space<vmem>>, vector<1x1x128x128xbf16>
    %411 = vector.shape_cast %410 : vector<1x1x128x128xbf16> to vector<128x128xbf16>
    %cst_484 = arith.constant dense<0.000000e+00> : vector<128x128xf32>
    %412 = tpu.matmul %409, %411, %cst_484 {dimension_numbers = #tpu.dot_dimension_numbers<[1], [0], [0], [1], [0, 0, 1, 1], [], []>} : vector<128x128xbf16>, vector<128x128xbf16>, vector<128x128xf32> -> vector<128x128xf32>
    %413 = arith.addf %406, %412 : vector<128x128xf32>
    %c0_485 = arith.constant 0 : index
    %c0_486 = arith.constant 0 : index
    %414 = vector.load %arg16[%c0_485, %c0_486] : memref<1x128xf32, #tpu.memory_space<vmem>>, vector<1x128xf32>
    %415 = vector.broadcast %414 : vector<1x128xf32> to vector<128x128xf32>
    %416 = arith.addf %413, %415 : vector<128x128xf32>
    %cst_487 = arith.constant 0.000000e+00 : f32
    %417 = vector.broadcast %cst_487 : f32 to vector<128x128xf32>
    %418 = arith.maximumf %416, %417 : vector<128x128xf32>
    %419 = vector.shape_cast %418 : vector<128x128xf32> to vector<2x8x8x128xf32>
    %c0_488 = arith.constant 0 : index
    %c0_489 = arith.constant 0 : index
    %c0_490 = arith.constant 0 : index
    %c0_491 = arith.constant 0 : index
    %420 = vector.load %arg19[%c0_488, %c0_489, %c0_490, %c0_491] : memref<2x8x8x128xf32, #tpu.memory_space<vmem>>, vector<2x8x8x128xf32>
    tpu.vector_store %arg19[%c0_488, %c0_489, %c0_490, %c0_491], %419 {strides = array<i32>} : memref<2x8x8x128xf32, #tpu.memory_space<vmem>>, vector<2x8x8x128xf32>,
    %421 = vector.shape_cast %275 : vector<128x128xf32> to vector<2x8x8x128xf32>
    %c0_492 = arith.constant 0 : index
    %c0_493 = arith.constant 0 : index
    %c0_494 = arith.constant 0 : index
    %c0_495 = arith.constant 0 : index
    %422 = vector.load %arg20[%c0_492, %c0_493, %c0_494, %c0_495] : memref<2x8x8x128xf32, #tpu.memory_space<vmem>>, vector<2x8x8x128xf32>
    tpu.vector_store %arg20[%c0_492, %c0_493, %c0_494, %c0_495], %421 {strides = array<i32>} : memref<2x8x8x128xf32, #tpu.memory_space<vmem>>, vector<2x8x8x128xf32>,
    %423 = vector.shape_cast %272 : vector<128x128xf32> to vector<2x8x8x128xf32>
    %c0_496 = arith.constant 0 : index
    %c0_497 = arith.constant 0 : index
    %c0_498 = arith.constant 0 : index
    %c0_499 = arith.constant 0 : index
    %424 = vector.load %arg21[%c0_496, %c0_497, %c0_498, %c0_499] : memref<2x8x8x128xf32, #tpu.memory_space<vmem>>, vector<2x8x8x128xf32>
    tpu.vector_store %arg21[%c0_496, %c0_497, %c0_498, %c0_499], %423 {strides = array<i32>} : memref<2x8x8x128xf32, #tpu.memory_space<vmem>>, vector<2x8x8x128xf32>,
    return
  }
}

</mosaic_0001>

<bundles_post_ra>
// kernel: branch2_pallas.1
= control target key start
LH: loop header
LB: loop body
LE: loop exit
PB: predicated region body
PF: predicated region fallthrough
CT: control target
= control target key end

     0   :  { %s24884_s0 = inlined_call_operand.hbm [shape: f32[2,8,8,128], index: 0, kind: input, shape index: {}]   ;;  %s24885_s1 = inlined_call_operand.hbm [shape: f32[2,8,8,128], index: 1, kind: input, shape index: {}]   ;;  %s24886_s2 = inlined_call_operand.hbm [shape: f32[2,8,8,128], index: 2, kind: input, shape index: {}]   ;;  %s24887_s3 = inlined_call_operand.vmem [shape: f32[128,16], index: 3, kind: input, shape index: {}]   ;;  %s24888_s4 = inlined_call_operand.hbm [shape: f32[1,16], index: 4, kind: input, shape index: {}]   ;;  %s24889_s5 = inlined_call_operand.hbm [shape: f32[16,16], index: 5, kind: input, shape index: {}]   ;;  %s24890_s6 = inlined_call_operand.hbm [shape: f32[1,16], index: 6, kind: input, shape index: {}]   ;;  %s24891_s7 = inlined_call_operand.hbm [shape: f32[16,128], index: 7, kind: input, shape index: {}]   ;;  %s24892_s8 = inlined_call_operand.hbm [shape: f32[1,128], index: 8, kind: input, shape index: {}]   ;;  %s24893_s9 = inlined_call_operand.hbm [shape: bf16[3,3,128,128], index: 9, kind: input, shape index: {}]   ;;  %s24894_s10 = inlined_call_operand.hbm [shape: f32[1,128], index: 10, kind: input, shape index: {}]   ;;  %s24895_s11 = inlined_call_operand.hbm [shape: bf16[3,3,128,128], index: 11, kind: input, shape index: {}]   ;;  %s24896_s12 = inlined_call_operand.hbm [shape: f32[1,128], index: 12, kind: input, shape index: {}]   ;;  %s24897_s13 = inlined_call_operand.hbm [shape: bf16[3,3,128,128], index: 13, kind: input, shape index: {}]   ;;  %s24898_s14 = inlined_call_operand.hbm [shape: f32[1,128], index: 14, kind: input, shape index: {}]   ;;  %s24899_s15 = inlined_call_operand.hbm [shape: bf16[3,3,128,128], index: 15, kind: input, shape index: {}]   ;;  %s24900_s16 = inlined_call_operand.hbm [shape: f32[1,128], index: 16, kind: input, shape index: {}]   ;;  %s24901_s17 = inlined_call_operand.hbm [shape: bf16[3,3,256,512], index: 17, kind: input, shape index: {}]   ;;  %s24902_s18 = inlined_call_operand.hbm [shape: f32[1,512], index: 18, kind: input, shape index: {}]   ;;  %s24903_s19 = inlined_call_operand.hbm [shape: f32[2,8,8,128], index: 19, kind: output, shape index: {0}]   ;;  %s24904_s20 = inlined_call_operand.hbm [shape: f32[2,8,8,128], index: 20, kind: output, shape index: {1}]   ;;  %s24905_s21 = inlined_call_operand.hbm [shape: f32[2,8,8,128], index: 21, kind: output, shape index: {2}]  }
   0x1   :  { %24974 = sst [smem:[#allocation71_spill]] %s24884_s0 }
   0x2   :  { %24975 = sst [smem:[#allocation72_spill]] %s24885_s1 }
   0x3   :  { %24976 = sst [smem:[#allocation73_spill]] %s24886_s2 }
   0x4   :  { %24977 = sst [smem:[#allocation74_spill]] %s24887_s3 }
   0x5   :  { %24978 = sst [smem:[#allocation75_spill]] %s24888_s4 }
   0x6   :  { %24979 = sst [smem:[#allocation76_spill]] %s24889_s5 }
   0x7   :  { %27 = vsyncpa [#allocation5], 0 }
   0x8   :  { %28 = vsyncpa [#allocation8], 0 }
   0x9   :  { %29 = vsyncpa [#allocation11], 0 }
   0xa   :  { %30 = vsyncpa [#allocation14], 0 }
   0xb   :  { %31 = vsyncpa [#allocation17], 0 }
   0xc   :  { %32 = vsyncpa [#allocation20], 0 }
   0xd   :  { %33 = vsyncpa [#allocation23], 0 }
   0xe   :  { %34 = vsyncpa [#allocation26], 0 }
   0xf   :  { %35 = vsyncpa [#allocation29], 0 }
  0x10   :  { %36 = vsyncpa [#allocation32], 0 }
  0x11   :  { %37 = vsyncpa [#allocation6], 0 }
  0x12   :  { %38 = vsyncpa [#allocation35], 0  ;;  %s22412_s2 = smov [#allocation7]   ;;  %s22413_s26 = smov [#allocation10]  }
  0x13   :  { %s56_s25 = sshll.u32 %s22412_s2, 4  ;;  %s83_s27 = sshll.u32 %s22413_s26, 4  ;;  %s57_s25 = int_to_ptr.vmem [resolvable:$true] %s56_s25  ;;  %s22553_s27 = int_to_ptr.vmem [resolvable:$true] %s83_s27 }
  0x14   :  { %s24980_s29 = sld [smem:[#allocation72_spill]] }
  0x1a   :  { %s21926_s0 = scalar_lea.hbm %s24980_s29, 2048 }
  0x1b   :  { %p21927_p0 = scmp.ne.s32.totalorder %s24980_s29, %s21926_s0  ;;  %p21930_p1 = scmp.lt.u32.totalorder %s21926_s0, %s24980_s29 }
  0x1d   :  { %p21932_p2 = pnand %p21930_p1, %p21927_p0 }
  0x1f   :  { %21935 = shalt.err (!%p21932_p2)
}
  0x20   :  { %s21936_s23 = scalar_lea.vmem %s57_s25, 2048  ;;  %p21941_p4 = scmp.lt.s32.totalorder %s57_s25, %s57_s25 }
  0x21   :  { %p21937_p3 = scmp.ne.s32.totalorder %s57_s25, %s21936_s23  ;;  %p21942_p5 = scmp.lt.s32.totalorder %s21936_s23, %s21936_s23 }
  0x23   :  { %p21943_p6 = por %p21942_p5, %p21941_p4 }
  0x25   :  { %p21944_p7 = pnand %p21943_p6, %p21937_p3 }
  0x27   :  { %21947 = shalt.err (!%p21944_p7)
}
  0x28   :  { %s24912_s1 = smov 128   ;;  %s24914_s24 = smov 8  }
  0x29   :  { %62 = dma.hbm_to_vmem [thread:$0]  %s24980_s29, 2048, %s57_s25, [#allocation8], %s24912_s1, %s24912_s1, %s24914_s24  }
  0x2a   :  { %s24981_s0 = sld [smem:[#allocation75_spill]] }
  0x30   :  { %s21948_s4 = scalar_lea.hbm %s24981_s0, 16 }
  0x31   :  { %p21949_p8 = scmp.ne.s32.totalorder %s24981_s0, %s21948_s4  ;;  %p21952_p9 = scmp.lt.u32.totalorder %s21948_s4, %s24981_s0 }
  0x33   :  { %p21954_p10 = pnand %p21952_p9, %p21949_p8 }
  0x35   :  { %21957 = shalt.err (!%p21954_p10)
}
  0x36   :  { %s21958_s2 = scalar_lea.vmem %s22553_s27, 16  ;;  %s21962_s25 = scalar_lea.vmem %s22553_s27, 32 }
  0x37   :  { %p21959_p11 = scmp.ne.s32.totalorder %s22553_s27, %s21958_s2  ;;  %p21963_p12 = scmp.lt.s32.totalorder %s22553_s27, %s22553_s27 }
  0x38   :  { %p21964_p13 = scmp.lt.s32.totalorder %s21962_s25, %s21958_s2 }
  0x3a   :  { %p21965_p0 = por %p21964_p13, %p21963_p12 }
  0x3c   :  { %p21966_p1 = pnand %p21965_p0, %p21959_p11 }
  0x3e   :  { %21969 = shalt.err (!%p21966_p1)
}
  0x3f   :  { %86 = dma.hbm_to_vmem [thread:$0]  %s24981_s0, 16, %s22553_s27, [#allocation11]  }
  0x40   :  { %s22416_s3 = smov [#allocation13]   ;;  %s22417_s4 = smov [#allocation16]  }
  0x41   :  { %s105_s28 = sshll.u32 %s22416_s3, 4  ;;  %s127_s30 = sshll.u32 %s22417_s4, 4  ;;  %s106_s28 = int_to_ptr.vmem [resolvable:$true] %s105_s28  ;;  %s128_s30 = int_to_ptr.vmem [resolvable:$true] %s127_s30 }
  0x42   :  { %s21970_s23 = scalar_lea.hbm %s24890_s6, 16 }
  0x43   :  { %p21971_p2 = scmp.ne.s32.totalorder %s24890_s6, %s21970_s23  ;;  %p21974_p3 = scmp.lt.u32.totalorder %s21970_s23, %s24890_s6 }
  0x45   :  { %p21976_p4 = pnand %p21974_p3, %p21971_p2 }
  0x47   :  { %21979 = shalt.err (!%p21976_p4)
}
  0x48   :  { %s21980_s27 = scalar_lea.vmem %s106_s28, 16  ;;  %s21984_s0 = scalar_lea.vmem %s106_s28, 32 }
  0x49   :  { %p21981_p5 = scmp.ne.s32.totalorder %s106_s28, %s21980_s27  ;;  %p21985_p6 = scmp.lt.s32.totalorder %s106_s28, %s106_s28 }
  0x4a   :  { %p21986_p7 = scmp.lt.s32.totalorder %s21984_s0, %s21980_s27 }
  0x4c   :  { %p21987_p8 = por %p21986_p7, %p21985_p6 }
  0x4e   :  { %p21988_p9 = pnand %p21987_p8, %p21981_p5 }
  0x50   :  { %21991 = shalt.err (!%p21988_p9)
}
  0x51   :  { %108 = dma.hbm_to_vmem [thread:$0]  %s24890_s6, 16, %s106_s28, [#allocation14]  }
  0x52   :  { %s21992_s4 = scalar_lea.hbm %s24892_s8, 16 }
  0x53   :  { %p21993_p10 = scmp.ne.s32.totalorder %s24892_s8, %s21992_s4  ;;  %p21996_p11 = scmp.lt.u32.totalorder %s21992_s4, %s24892_s8 }
  0x55   :  { %p21998_p12 = pnand %p21996_p11, %p21993_p10 }
  0x57   :  { %22001 = shalt.err (!%p21998_p12)
}
  0x58   :  { %s22002_s2 = scalar_lea.vmem %s128_s30, 16  ;;  %s22006_s25 = scalar_lea.vmem %s128_s30, 32 }
  0x59   :  { %p22003_p13 = scmp.ne.s32.totalorder %s128_s30, %s22002_s2  ;;  %p22007_p0 = scmp.lt.s32.totalorder %s128_s30, %s128_s30 }
  0x5a   :  { %p22008_p1 = scmp.lt.s32.totalorder %s22006_s25, %s22002_s2 }
  0x5c   :  { %p22009_p2 = por %p22008_p1, %p22007_p0 }
  0x5e   :  { %p22010_p3 = pnand %p22009_p2, %p22003_p13 }
  0x60   :  { %22013 = shalt.err (!%p22010_p3)
}
  0x61   :  { %130 = dma.hbm_to_vmem [thread:$0]  %s24892_s8, 16, %s128_s30, [#allocation17]  }
  0x62   :  { %s22418_s27 = smov [#allocation19]   ;;  %s22419_s29 = smov [#allocation22]  }
  0x63   :  { %s149_s0 = sshll.u32 %s22418_s27, 4  ;;  %s171_s26 = sshll.u32 %s22419_s29, 4  ;;  %s150_s0 = int_to_ptr.vmem [resolvable:$true] %s149_s0  ;;  %s172_s26 = int_to_ptr.vmem [resolvable:$true] %s171_s26 }
  0x64   :  { %s22014_s4 = scalar_lea.hbm %s24894_s10, 16 }
  0x65   :  { %p22015_p4 = scmp.ne.s32.totalorder %s24894_s10, %s22014_s4  ;;  %p22018_p5 = scmp.lt.u32.totalorder %s22014_s4, %s24894_s10 }
  0x67   :  { %p22020_p6 = pnand %p22018_p5, %p22015_p4 }
  0x69   :  { %22023 = shalt.err (!%p22020_p6)
}
  0x6a   :  { %s22024_s8 = scalar_lea.vmem %s150_s0, 16  ;;  %s22028_s30 = scalar_lea.vmem %s150_s0, 32 }
  0x6b   :  { %p22025_p7 = scmp.ne.s32.totalorder %s150_s0, %s22024_s8  ;;  %p22029_p8 = scmp.lt.s32.totalorder %s150_s0, %s150_s0 }
  0x6c   :  { %p22030_p9 = scmp.lt.s32.totalorder %s22028_s30, %s22024_s8 }
  0x6e   :  { %p22031_p10 = por %p22030_p9, %p22029_p8 }
  0x70   :  { %p22032_p11 = pnand %p22031_p10, %p22025_p7 }
  0x72   :  { %22035 = shalt.err (!%p22032_p11)
}
  0x73   :  { %152 = dma.hbm_to_vmem [thread:$0]  %s24894_s10, 16, %s150_s0, [#allocation20]  }
  0x74   :  { %s22036_s27 = scalar_lea.hbm %s24896_s12, 16 }
  0x75   :  { %p22037_p12 = scmp.ne.s32.totalorder %s24896_s12, %s22036_s27  ;;  %p22040_p13 = scmp.lt.u32.totalorder %s22036_s27, %s24896_s12 }
  0x77   :  { %p22042_p0 = pnand %p22040_p13, %p22037_p12 }
  0x79   :  { %22045 = shalt.err (!%p22042_p0)
}
  0x7a   :  { %s22046_s24 = scalar_lea.vmem %s172_s26, 16  ;;  %s22050_s5 = scalar_lea.vmem %s172_s26, 32 }
  0x7b   :  { %p22047_p1 = scmp.ne.s32.totalorder %s172_s26, %s22046_s24  ;;  %p22051_p2 = scmp.lt.s32.totalorder %s172_s26, %s172_s26 }
  0x7c   :  { %p22052_p3 = scmp.lt.s32.totalorder %s22050_s5, %s22046_s24 }
  0x7e   :  { %p22053_p4 = por %p22052_p3, %p22051_p2 }
  0x80   :  { %p22054_p5 = pnand %p22053_p4, %p22047_p1 }
  0x82   :  { %22057 = shalt.err (!%p22054_p5)
}
  0x83   :  { %174 = dma.hbm_to_vmem [thread:$0]  %s24896_s12, 16, %s172_s26, [#allocation23]  }
  0x84   :  { %s22420_s22 = smov [#allocation25]   ;;  %s22421_s8 = smov [#allocation28]  }
  0x85   :  { %s193_s23 = sshll.u32 %s22420_s22, 4  ;;  %s215_s30 = sshll.u32 %s22421_s8, 4  ;;  %s194_s23 = int_to_ptr.vmem [resolvable:$true] %s193_s23  ;;  %s216_s30 = int_to_ptr.vmem [resolvable:$true] %s215_s30 }
  0x86   :  { %s22058_s6 = scalar_lea.hbm %s24898_s14, 16 }
  0x87   :  { %p22059_p6 = scmp.ne.s32.totalorder %s24898_s14, %s22058_s6  ;;  %p22062_p7 = scmp.lt.u32.totalorder %s22058_s6, %s24898_s14 }
  0x89   :  { %p22064_p8 = pnand %p22062_p7, %p22059_p6 }
  0x8b   :  { %22067 = shalt.err (!%p22064_p8)
}
  0x8c   :  { %s22068_s12 = scalar_lea.vmem %s194_s23, 16  ;;  %s22072_s26 = scalar_lea.vmem %s194_s23, 32 }
  0x8d   :  { %p22069_p9 = scmp.ne.s32.totalorder %s194_s23, %s22068_s12  ;;  %p22073_p10 = scmp.lt.s32.totalorder %s194_s23, %s194_s23 }
  0x8e   :  { %p22074_p11 = scmp.lt.s32.totalorder %s22072_s26, %s22068_s12 }
  0x90   :  { %p22075_p12 = por %p22074_p11, %p22073_p10 }
  0x92   :  { %p22076_p13 = pnand %p22075_p12, %p22069_p9 }
  0x94   :  { %22079 = shalt.err (!%p22076_p13)
}
  0x95   :  { %196 = dma.hbm_to_vmem [thread:$0]  %s24898_s14, 16, %s194_s23, [#allocation26]  }
  0x96   :  { %s22080_s10 = scalar_lea.hbm %s24900_s16, 16 }
  0x97   :  { %p22081_p0 = scmp.ne.s32.totalorder %s24900_s16, %s22080_s10  ;;  %p22084_p1 = scmp.lt.u32.totalorder %s22080_s10, %s24900_s16 }
  0x99   :  { %p22086_p2 = pnand %p22084_p1, %p22081_p0 }
  0x9b   :  { %22089 = shalt.err (!%p22086_p2)
}
  0x9c   :  { %s22090_s25 = scalar_lea.vmem %s216_s30, 16  ;;  %s22094_s6 = scalar_lea.vmem %s216_s30, 32 }
  0x9d   :  { %p22091_p3 = scmp.ne.s32.totalorder %s216_s30, %s22090_s25  ;;  %p22095_p4 = scmp.lt.s32.totalorder %s216_s30, %s216_s30 }
  0x9e   :  { %p22096_p5 = scmp.lt.s32.totalorder %s22094_s6, %s22090_s25 }
  0xa0   :  { %p22097_p6 = por %p22096_p5, %p22095_p4 }
  0xa2   :  { %p22098_p7 = pnand %p22097_p6, %p22091_p3 }
  0xa4   :  { %22101 = shalt.err (!%p22098_p7)
}
  0xa5   :  { %218 = dma.hbm_to_vmem [thread:$0]  %s24900_s16, 16, %s216_s30, [#allocation29]  }
  0xa6   :  { %s22422_s28 = smov [#allocation4]   ;;  %s22423_s29 = smov [#allocation9]  }
  0xa7   :  { %s44_s27 = sshll.u32 %s22422_s28, 4  ;;  %s68_s1 = sshll.u32 %s22423_s29, 4  ;;  %s45_s27 = int_to_ptr.vmem [resolvable:$true] %s44_s27  ;;  %s22660_s1 = int_to_ptr.vmem [resolvable:$true] %s68_s1 }
  0xa8   :  { %s24982_s3 = sld [smem:[#allocation71_spill]] }
  0xae   :  { %s22102_s4 = scalar_lea.hbm %s24982_s3, 2048 }
  0xaf   :  { %p22103_p8 = scmp.ne.s32.totalorder %s24982_s3, %s22102_s4  ;;  %p22106_p9 = scmp.lt.u32.totalorder %s22102_s4, %s24982_s3 }
  0xb1   :  { %p22108_p10 = pnand %p22106_p9, %p22103_p8 }
  0xb3   :  { %22111 = shalt.err (!%p22108_p10)
}
  0xb4   :  { %s22112_s16 = scalar_lea.vmem %s45_s27, 2048  ;;  %p22117_p12 = scmp.lt.s32.totalorder %s45_s27, %s45_s27 }
  0xb5   :  { %p22113_p11 = scmp.ne.s32.totalorder %s45_s27, %s22112_s16  ;;  %p22118_p13 = scmp.lt.s32.totalorder %s22112_s16, %s22112_s16 }
  0xb7   :  { %p22119_p0 = por %p22118_p13, %p22117_p12 }
  0xb9   :  { %p22120_p1 = pnand %p22119_p0, %p22113_p11 }
  0xbb   :  { %22123 = shalt.err (!%p22120_p1)
}
  0xbc   :  { %s24983_s30 = smov 8   ;;  %s24984_s22 = smov 128  }
  0xbd   :  { %50 = dma.hbm_to_vmem [thread:$0]  %s24982_s3, 2048, %s45_s27, [#allocation5], %s24984_s22, %s24984_s22, %s24983_s30  }
  0xbe   :  { %s24985_s14 = sld [smem:[#allocation73_spill]] }
  0xc4   :  { %s22124_s23 = scalar_lea.hbm %s24985_s14, 2048 }
  0xc5   :  { %p22125_p2 = scmp.ne.s32.totalorder %s24985_s14, %s22124_s23  ;;  %p22128_p3 = scmp.lt.u32.totalorder %s22124_s23, %s24985_s14 }
  0xc7   :  { %p22130_p4 = pnand %p22128_p3, %p22125_p2 }
  0xc9   :  { %22133 = shalt.err (!%p22130_p4)
}
  0xca   :  { %s22134_s4 = scalar_lea.vmem %s22660_s1, 2048  ;;  %p22139_p6 = scmp.lt.s32.totalorder %s22660_s1, %s22660_s1 }
  0xcb   :  { %p22135_p5 = scmp.ne.s32.totalorder %s22660_s1, %s22134_s4  ;;  %p22140_p7 = scmp.lt.s32.totalorder %s22134_s4, %s22134_s4 }
  0xcd   :  { %p22141_p8 = por %p22140_p7, %p22139_p6 }
  0xcf   :  { %p22142_p9 = pnand %p22141_p8, %p22135_p5 }
  0xd1   :  { %22145 = shalt.err (!%p22142_p9)
}
  0xd2   :  { %74 = dma.hbm_to_vmem [thread:$0]  %s24985_s14, 2048, %s22660_s1, [#allocation8], %s24984_s22, %s24984_s22, %s24983_s30  }
  0xd3   :  { %s22424_s24 = smov [#allocation12]   ;;  %s22425_s10 = smov [#allocation15]  }
  0xd4   :  { %s92_s5 = sshll.u32 %s22424_s24, 4  ;;  %s114_s0 = sshll.u32 %s22425_s10, 4  ;;  %s93_s5 = int_to_ptr.vmem [resolvable:$true] %s92_s5  ;;  %s22697_s0 = int_to_ptr.vmem [resolvable:$true] %s114_s0 }
  0xd5   :  { %s24986_s2 = sld [smem:[#allocation76_spill]] }
  0xdb   :  { %s22146_s25 = scalar_lea.hbm %s24986_s2, 256 }
  0xdc   :  { %p22147_p10 = scmp.ne.s32.totalorder %s24986_s2, %s22146_s25  ;;  %p22150_p11 = scmp.lt.u32.totalorder %s22146_s25, %s24986_s2 }
  0xde   :  { %p22152_p12 = pnand %p22150_p11, %p22147_p10 }
  0xe0   :  { %22155 = shalt.err (!%p22152_p12)
}
  0xe1   :  { %s22156_s1 = scalar_lea.vmem %s93_s5, 256  ;;  %p22161_p0 = scmp.lt.s32.totalorder %s93_s5, %s93_s5 }
  0xe2   :  { %p22157_p13 = scmp.ne.s32.totalorder %s93_s5, %s22156_s1  ;;  %p22162_p1 = scmp.lt.s32.totalorder %s22156_s1, %s22156_s1 }
  0xe4   :  { %p22163_p2 = por %p22162_p1, %p22161_p0 }
  0xe6   :  { %p22164_p3 = pnand %p22163_p2, %p22157_p13 }
  0xe8   :  { %22167 = shalt.err (!%p22164_p3)
}
  0xe9   :  { %98 = dma.hbm_to_vmem [thread:$0]  %s24986_s2, 256, %s93_s5, [#allocation11], %s24984_s22, %s24984_s22, %s24983_s30  }
  0xea   :  { %s22168_s27 = scalar_lea.hbm %s24891_s7, 256 }
  0xeb   :  { %p22169_p4 = scmp.ne.s32.totalorder %s24891_s7, %s22168_s27  ;;  %p22172_p5 = scmp.lt.u32.totalorder %s22168_s27, %s24891_s7 }
  0xed   :  { %p22174_p6 = pnand %p22172_p5, %p22169_p4 }
  0xef   :  { %22177 = shalt.err (!%p22174_p6)
}
  0xf0   :  { %s22178_s8 = scalar_lea.vmem %s22697_s0, 256  ;;  %p22183_p8 = scmp.lt.s32.totalorder %s22697_s0, %s22697_s0 }
  0xf1   :  { %p22179_p7 = scmp.ne.s32.totalorder %s22697_s0, %s22178_s8  ;;  %p22184_p9 = scmp.lt.s32.totalorder %s22178_s8, %s22178_s8 }
  0xf3   :  { %p22185_p10 = por %p22184_p9, %p22183_p8 }
  0xf5   :  { %p22186_p11 = pnand %p22185_p10, %p22179_p7 }
  0xf7   :  { %22189 = shalt.err (!%p22186_p11)
}
  0xf8   :  { %120 = dma.hbm_to_vmem [thread:$0]  %s24891_s7, 256, %s22697_s0, [#allocation14], %s24984_s22, %s24984_s22, %s24983_s30  }
  0xf9   :  { %s22426_s25 = smov [#allocation18]   ;;  %s22190_s29 = scalar_lea.hbm %s24893_s9, 9216 }
  0xfa   :  { %s136_s6 = sshll.u32 %s22426_s25, 4  ;;  %p22191_p12 = scmp.ne.s32.totalorder %s24893_s9, %s22190_s29  ;;  %s137_s6 = int_to_ptr.vmem [resolvable:$true] %s136_s6 }
  0xfb   :  { %p22194_p13 = scmp.lt.u32.totalorder %s22190_s29, %s24893_s9 }
  0xfd   :  { %p22196_p0 = pnand %p22194_p13, %p22191_p12 }
  0xff   :  { %22199 = shalt.err (!%p22196_p0)
}
 0x100   :  { %s22200_s4 = scalar_lea.vmem %s137_s6, 9216  ;;  %p22205_p2 = scmp.lt.s32.totalorder %s137_s6, %s137_s6 }
 0x101   :  { %p22201_p1 = scmp.ne.s32.totalorder %s137_s6, %s22200_s4  ;;  %p22206_p3 = scmp.lt.s32.totalorder %s22200_s4, %s22200_s4 }
 0x103   :  { %p22207_p4 = por %p22206_p3, %p22205_p2 }
 0x105   :  { %p22208_p5 = pnand %p22207_p4, %p22201_p1 }
 0x107   :  { %22211 = shalt.err (!%p22208_p5)
}
 0x108   :  { %s22427_s7 = smov 64   ;;  %s22428_s0 = smov 4  }
 0x109   :  { %142 = dma.hbm_to_vmem [thread:$0]  %s24893_s9, 9216, %s137_s6, [#allocation17], %s22427_s7, %s22427_s7, %s22428_s0  }
 0x10a   :  { %s22429_s24 = smov [#allocation21]   ;;  %s22430_s16 = smov [#allocation24]  }
 0x10b   :  { %s158_s10 = sshll.u32 %s22429_s24, 4  ;;  %s180_s8 = sshll.u32 %s22430_s16, 4  ;;  %s159_s10 = int_to_ptr.vmem [resolvable:$true] %s158_s10  ;;  %s181_s8 = int_to_ptr.vmem [resolvable:$true] %s180_s8 }
 0x10c   :  { %s22212_s25 = scalar_lea.hbm %s24895_s11, 9216 }
 0x10d   :  { %p22213_p6 = scmp.ne.s32.totalorder %s24895_s11, %s22212_s25  ;;  %p22216_p7 = scmp.lt.u32.totalorder %s22212_s25, %s24895_s11 }
 0x10f   :  { %p22218_p8 = pnand %p22216_p7, %p22213_p6 }
 0x111   :  { %22221 = shalt.err (!%p22218_p8)
}
 0x112   :  { %s22222_s9 = scalar_lea.vmem %s159_s10, 9216  ;;  %p22227_p10 = scmp.lt.s32.totalorder %s159_s10, %s159_s10 }
 0x113   :  { %p22223_p9 = scmp.ne.s32.totalorder %s159_s10, %s22222_s9  ;;  %p22228_p11 = scmp.lt.s32.totalorder %s22222_s9, %s22222_s9 }
 0x115   :  { %p22229_p12 = por %p22228_p11, %p22227_p10 }
 0x117   :  { %p22230_p13 = pnand %p22229_p12, %p22223_p9 }
 0x119   :  { %22233 = shalt.err (!%p22230_p13)
}
 0x11a   :  { %164 = dma.hbm_to_vmem [thread:$0]  %s24895_s11, 9216, %s159_s10, [#allocation20], %s22427_s7, %s22427_s7, %s22428_s0  }
 0x11b   :  { %s22234_s4 = scalar_lea.hbm %s24897_s13, 9216 }
 0x11c   :  { %p22235_p0 = scmp.ne.s32.totalorder %s24897_s13, %s22234_s4  ;;  %p22238_p1 = scmp.lt.u32.totalorder %s22234_s4, %s24897_s13 }
 0x11e   :  { %p22240_p2 = pnand %p22238_p1, %p22235_p0 }
 0x120   :  { %22243 = shalt.err (!%p22240_p2)
}
 0x121   :  { %s22244_s5 = scalar_lea.vmem %s181_s8, 9216  ;;  %p22249_p4 = scmp.lt.s32.totalorder %s181_s8, %s181_s8 }
 0x122   :  { %p22245_p3 = scmp.ne.s32.totalorder %s181_s8, %s22244_s5  ;;  %p22250_p5 = scmp.lt.s32.totalorder %s22244_s5, %s22244_s5 }
 0x124   :  { %p22251_p6 = por %p22250_p5, %p22249_p4 }
 0x126   :  { %p22252_p7 = pnand %p22251_p6, %p22245_p3 }
 0x128   :  { %22255 = shalt.err (!%p22252_p7)
}
 0x129   :  { %186 = dma.hbm_to_vmem [thread:$0]  %s24897_s13, 9216, %s181_s8, [#allocation23], %s22427_s7, %s22427_s7, %s22428_s0  }
 0x12a   :  { %s22431_s2 = smov [#allocation27]   ;;  %s22432_s23 = smov [#allocation30]  }
 0x12b   :  { %s202_s25 = sshll.u32 %s22431_s2, 4  ;;  %s224_s28 = sshll.u32 %s22432_s23, 4  ;;  %s203_s25 = int_to_ptr.vmem [resolvable:$true] %s202_s25  ;;  %s225_s28 = int_to_ptr.vmem [resolvable:$true] %s224_s28 }
 0x12c   :  { %s22256_s9 = scalar_lea.hbm %s24899_s15, 9216 }
 0x12d   :  { %p22257_p8 = scmp.ne.s32.totalorder %s24899_s15, %s22256_s9  ;;  %p22260_p9 = scmp.lt.u32.totalorder %s22256_s9, %s24899_s15 }
 0x12f   :  { %p22262_p10 = pnand %p22260_p9, %p22257_p8 }
 0x131   :  { %22265 = shalt.err (!%p22262_p10)
}
 0x132   :  { %s22266_s13 = scalar_lea.vmem %s203_s25, 9216  ;;  %p22271_p12 = scmp.lt.s32.totalorder %s203_s25, %s203_s25 }
 0x133   :  { %p22267_p11 = scmp.ne.s32.totalorder %s203_s25, %s22266_s13  ;;  %p22272_p13 = scmp.lt.s32.totalorder %s22266_s13, %s22266_s13 }
 0x135   :  { %p22273_p0 = por %p22272_p13, %p22271_p12 }
 0x137   :  { %p22274_p1 = pnand %p22273_p0, %p22267_p11 }
 0x139   :  { %22277 = shalt.err (!%p22274_p1)
}
 0x13a   :  { %208 = dma.hbm_to_vmem [thread:$0]  %s24899_s15, 9216, %s203_s25, [#allocation26], %s22427_s7, %s22427_s7, %s22428_s0  }
 0x13b   :  { %s22278_s24 = scalar_lea.hbm %s24901_s17, 73728 }
 0x13c   :  { %p22279_p2 = scmp.ne.s32.totalorder %s24901_s17, %s22278_s24  ;;  %p22282_p3 = scmp.lt.u32.totalorder %s22278_s24, %s24901_s17 }
 0x13e   :  { %p22284_p4 = pnand %p22282_p3, %p22279_p2 }
 0x140   :  { %22287 = shalt.err (!%p22284_p4)
}
 0x141   :  { %s22288_s2 = scalar_lea.vmem %s225_s28, 73728  ;;  %p22293_p6 = scmp.lt.s32.totalorder %s225_s28, %s225_s28 }
 0x142   :  { %p22289_p5 = scmp.ne.s32.totalorder %s225_s28, %s22288_s2  ;;  %p22294_p7 = scmp.lt.s32.totalorder %s22288_s2, %s22288_s2 }
 0x144   :  { %p22295_p8 = por %p22294_p7, %p22293_p6 }
 0x146   :  { %p22296_p9 = pnand %p22295_p8, %p22289_p5 }
 0x148   :  { %22299 = shalt.err (!%p22296_p9)
}
 0x149   :  { %s22433_s15 = smov 256   ;;  %s22434_s7 = smov 16  }
 0x14a   :  { %230 = dma.hbm_to_vmem [thread:$0]  %s24901_s17, 73728, %s225_s28, [#allocation29], %s22433_s15, %s22433_s15, %s22434_s7  }
 0x14b   :  { %s22435_s23 = smov [#allocation31]   ;;  %s22300_s6 = scalar_lea.hbm %s24902_s18, 64 }
 0x14c   :  { %s237_s29 = sshll.u32 %s22435_s23, 4  ;;  %p22301_p10 = scmp.ne.s32.totalorder %s24902_s18, %s22300_s6  ;;  %s238_s29 = int_to_ptr.vmem [resolvable:$true] %s237_s29 }
 0x14d   :  { %p22304_p11 = scmp.lt.u32.totalorder %s22300_s6, %s24902_s18 }
 0x14f   :  { %p22306_p12 = pnand %p22304_p11, %p22301_p10 }
 0x151   :  { %22309 = shalt.err (!%p22306_p12)
}
 0x152   :  { %s22310_s8 = scalar_lea.vmem %s238_s29, 64  ;;  %p22315_p0 = scmp.lt.s32.totalorder %s238_s29, %s238_s29 }
 0x153   :  { %p22311_p13 = scmp.ne.s32.totalorder %s238_s29, %s22310_s8  ;;  %p22316_p1 = scmp.lt.s32.totalorder %s22310_s8, %s22310_s8 }
 0x155   :  { %p22317_p2 = por %p22316_p1, %p22315_p0 }
 0x157   :  { %p22318_p3 = pnand %p22317_p2, %p22311_p13 }
 0x159   :  { %22321 = shalt.err (!%p22318_p3)
}
 0x15a   :  { %240 = dma.hbm_to_vmem [thread:$0]  %s24902_s18, 64, %s238_s29, [#allocation32]  }
 0x15b   :  { %22388 = dma.done.wait [#allocation5], 2048  }
 0x15c   :  { %22389 = vsyncadd [#allocation5], 4294965248 }
 0x15d   :  { %22390 = dma.done.wait [#allocation8], 4096  }
 0x15e   :  { %22391 = vsyncadd [#allocation8], 4294963200 }
 0x15f   :  { %22392 = dma.done.wait [#allocation11], 272  }
 0x160   :  { %22393 = vsyncadd [#allocation11], 4294967024 }
 0x161   :  { %22394 = dma.done.wait [#allocation14], 272  }
 0x162   :  { %22395 = vsyncadd [#allocation14], 4294967024 }
 0x163   :  { %22396 = dma.done.wait [#allocation17], 9232  }
 0x164   :  { %22397 = vsyncadd [#allocation17], 4294958064 }
 0x165   :  { %22398 = dma.done.wait [#allocation20], 9232  }
 0x166   :  { %22399 = vsyncadd [#allocation20], 4294958064 }
 0x167   :  { %22400 = dma.done.wait [#allocation23], 9232  }
 0x168   :  { %22401 = vsyncadd [#allocation23], 4294958064 }
 0x169   :  { %22402 = dma.done.wait [#allocation26], 9232  }
 0x16a   :  { %22403 = vsyncadd [#allocation26], 4294958064 }
 0x16b   :  { %22404 = dma.done.wait [#allocation29], 73744  }
 0x16c   :  { %22405 = vsyncadd [#allocation29], 4294893552 }
 0x16d   :  { %22406 = dma.done.wait [#allocation32], 64  }
 0x16e   :  { %22407 = vsyncadd [#allocation32], 4294967232  ;;  %v22436_v0 = vmov 0.0|0.0   ;;  %vm22437_vm0 = vmmov 0   ;;  %v22438_v1 = vmov 0.0   ;;  %s24987_s27 = sld [smem:[#allocation74_spill]] }
 0x16f   :  { %19390 = vmatprep.subr.bf16.mxu0 %v22436_v0  ;;  %18221 = vmatprep.mubr.msk.f32.mxu0 %vm22437_vm0, %v22438_v1  ;;  %661 = vst [vmem:[#allocation2] sm:$0xff] %v22438_v1  ;;  %662 = vst [vmem:[#allocation2 + $0x8] sm:$0x3] %v22438_v1  ;;  %v296_v10 = vld [vmem:[#allocation4] sm:$0xff]  ;;  %v297_v11 = vld [vmem:[#allocation4 + $0x8] sm:$0xff]  ;;  %vm366_vm1 = vcmask 1041409  }
 0x170   :  { %663 = vst [vmem:[#allocation2 + $0x10] sm:$0xff] %v22438_v1  ;;  %664 = vst [vmem:[#allocation2 + $0x18] sm:$0x3] %v22438_v1  ;;  %19414 = vmatprep.subr.bf16.mxu1 %v22436_v0  ;;  %18228 = vmatprep.mubr.msk.f32.mxu1 %vm22437_vm0, %v22438_v1  ;;  %v298_v12 = vld [vmem:[#allocation4 + $0x10] sm:$0xff]  ;;  %v312_v13 = vadd.f32 %v297_v11, %v296_v10  ;;  %v299_v17 = vld [vmem:[#allocation4 + $0x18] sm:$0xff]  ;;  %vm449_vm2 = vcmask 130048  }
 0x171   :  { %665 = vst [vmem:[#allocation2 + $0x20] sm:$0xff] %v22438_v1  ;;  %666 = vst [vmem:[#allocation2 + $0x28] sm:$0x3] %v22438_v1  ;;  %v304_v18 = vld [vmem:[#allocation4 + $0x40] sm:$0xff]  ;;  %v305_v19 = vld [vmem:[#allocation4 + $0x48] sm:$0xff]  ;;  %vm4880_vm3 = vcmask 1046528  }
 0x172   :  { %667 = vst [vmem:[#allocation2 + $0x30] sm:$0xff] %v22438_v1  ;;  %668 = vst [vmem:[#allocation2 + $0x38] sm:$0x3] %v22438_v1  ;;  %v306_v20 = vld [vmem:[#allocation4 + $0x50] sm:$0xff]  ;;  %v313_v21 = vadd.f32 %v312_v13, %v298_v12  ;;  %v300_v22 = vld [vmem:[#allocation4 + $0x20] sm:$0xff]  ;;  %v325_v23 = vadd.f32 %v305_v19, %v304_v18  ;;  %vm6310_vm4 = vcmask 1045504  }
 0x173   :  { %669 = vst [vmem:[#allocation2 + $0x40] sm:$0xff] %v22438_v1  ;;  %670 = vst [vmem:[#allocation2 + $0x48] sm:$0x3] %v22438_v1  ;;  %v301_v26 = vld [vmem:[#allocation4 + $0x28] sm:$0xff]  ;;  %v307_v27 = vld [vmem:[#allocation4 + $0x58] sm:$0xff] }
 0x174   :  { %671 = vst [vmem:[#allocation2 + $0x50] sm:$0xff] %v22438_v1  ;;  %672 = vst [vmem:[#allocation2 + $0x58] sm:$0x3] %v22438_v1  ;;  %v341_v2 = vld [vmem:[%s24987_s27] sm:$0xff]  ;;  %v342_v3 = vld [vmem:[%s24987_s27 + $0x8] sm:$0xff]  ;;  %v314_v29 = vadd.f32 %v313_v21, %v299_v17  ;;  %v326_v32 = vadd.f32 %v325_v23, %v306_v20 }
 0x175   :  { %673 = vst [vmem:[#allocation2 + $0x60] sm:$0xff] %v22438_v1  ;;  %674 = vst [vmem:[#allocation2 + $0x68] sm:$0x3] %v22438_v1  ;;  %v343_v4 = vld [vmem:[%s24987_s27 + $0x10] sm:$0xff]  ;;  %v19391_v5 = vpack.c.bf16 %v342_v3, %v341_v2  ;;  %v344_v6 = vld [vmem:[%s24987_s27 + $0x18] sm:$0xff] }
 0x176   :  { %675 = vst [vmem:[#allocation2 + $0x70] sm:$0xff] %v22438_v1  ;;  %676 = vst [vmem:[#allocation2 + $0x78] sm:$0x3] %v22438_v1  ;;  %v19394_v7 = vpack.c.bf16 %v344_v6, %v343_v4  ;;  %v345_v8 = vld [vmem:[%s24987_s27 + $0x20] sm:$0xff]  ;;  %v346_v9 = vld [vmem:[%s24987_s27 + $0x28] sm:$0xff]  ;;  %v315_v34 = vadd.f32 %v314_v29, %v300_v22  ;;  %v327_v36 = vadd.f32 %v326_v32, %v307_v27 }
 0x177   :  { %677 = vst [vmem:[#allocation2 + $0x80] sm:$0xff] %v22438_v1  ;;  %678 = vst [vmem:[#allocation2 + $0x88] sm:$0x3] %v22438_v1  ;;  %19392 = vmatpush3.bf16.msra.mxu0 %v19391_v5  ;;  %v19397_v14 = vpack.c.bf16 %v346_v9, %v345_v8  ;;  %v347_v15 = vld [vmem:[%s24987_s27 + $0x30] sm:$0xff]  ;;  %v348_v16 = vld [vmem:[%s24987_s27 + $0x38] sm:$0xff] }
 0x178   :  { %679 = vst [vmem:[#allocation2 + $0x90] sm:$0xff] %v22438_v1  ;;  %680 = vst [vmem:[#allocation2 + $0x98] sm:$0x3] %v22438_v1  ;;  %19393 = vmatprep.subr.bf16.mxu0 %v22436_v0  ;;  %v349_v24 = vld [vmem:[%s24987_s27 + $0x40] sm:$0xff]  ;;  %v350_v25 = vld [vmem:[%s24987_s27 + $0x48] sm:$0xff]  ;;  %v19400_v30 = vpack.c.bf16 %v348_v16, %v347_v15  ;;  %v316_v40 = vadd.f32 %v315_v34, %v301_v26 }
 0x179   :  { %681 = vst [vmem:[#allocation2 + $0xa0] sm:$0xff] %v22438_v1  ;;  %682 = vst [vmem:[#allocation2 + $0xa8] sm:$0x3] %v22438_v1  ;;  %v308_v28 = vld [vmem:[#allocation4 + $0x60] sm:$0xff]  ;;  %v302_v31 = vld [vmem:[#allocation4 + $0x30] sm:$0xff]  ;;  %v19403_v41 = vpack.c.bf16 %v350_v25, %v349_v24 }
 0x17a   :  { %683 = vst [vmem:[#allocation2 + $0xb0] sm:$0xff] %v22438_v1  ;;  %684 = vst [vmem:[#allocation2 + $0xb8] sm:$0x3] %v22438_v1  ;;  %v309_v33 = vld [vmem:[#allocation4 + $0x68] sm:$0xff]  ;;  %v303_v35 = vld [vmem:[#allocation4 + $0x38] sm:$0xff]  ;;  %v328_v42 = vadd.f32 %v327_v36, %v308_v28  ;;  %v317_v44 = vadd.f32 %v316_v40, %v302_v31 }
 0x17b   :  { %685 = vst [vmem:[#allocation2 + $0xc0] sm:$0xff] %v22438_v1  ;;  %686 = vst [vmem:[#allocation2 + $0xc8] sm:$0x3] %v22438_v1  ;;  %19395 = vmatpush3.bf16.msra.mxu0 %v19394_v7  ;;  %v351_v37 = vld [vmem:[%s24987_s27 + $0x50] sm:$0xff]  ;;  %v352_v38 = vld [vmem:[%s24987_s27 + $0x58] sm:$0xff] }
 0x17c   :  { %687 = vst [vmem:[#allocation2 + $0xd0] sm:$0xff] %v22438_v1  ;;  %688 = vst [vmem:[#allocation2 + $0xd8] sm:$0x3] %v22438_v1  ;;  %19396 = vmatprep.subr.bf16.mxu0 %v22436_v0  ;;  %v310_v39 = vld [vmem:[#allocation4 + $0x70] sm:$0xff]  ;;  %v311_v43 = vld [vmem:[#allocation4 + $0x78] sm:$0xff]  ;;  %v329_v45 = vadd.f32 %v328_v42, %v309_v33  ;;  %v318_v48 = vadd.f32 %v317_v44, %v303_v35  ;;  %v19406_v49 = vpack.c.bf16 %v352_v38, %v351_v37  ;;  %v616_v42 = vlaneseq }
 0x17d   :  { %689 = vst [vmem:[#allocation2 + $0xe0] sm:$0xff] %v22438_v1  ;;  %690 = vst [vmem:[#allocation2 + $0xe8] sm:$0x3] %v22438_v1  ;;  %v353_v46 = vld [vmem:[%s24987_s27 + $0x60] sm:$0xff]  ;;  %v354_v47 = vld [vmem:[%s24987_s27 + $0x68] sm:$0xff] }
 0x17e   :  { %691 = vst [vmem:[#allocation2 + $0xf0] sm:$0xff] %v22438_v1  ;;  %692 = vst [vmem:[#allocation2 + $0xf8] sm:$0x3] %v22438_v1  ;;  %v330_v50 = vadd.f32 %v329_v45, %v310_v39  ;;  %v319_v51 = vrot.slane %v318_v48, 4  ;;  %v355_v53 = vld [vmem:[%s24987_s27 + $0x70] sm:$0xff]  ;;  %v356_v54 = vld [vmem:[%s24987_s27 + $0x78] sm:$0xff]  ;;  %v19409_v56 = vpack.c.bf16 %v354_v47, %v353_v46 }
 0x17f   :  { %693 = vst [vmem:[#allocation2 + $0x100] sm:$0xff] %v22438_v1  ;;  %694 = vst [vmem:[#allocation2 + $0x108] sm:$0x3] %v22438_v1  ;;  %19398 = vmatpush3.bf16.msra.mxu0 %v19397_v14  ;;  %v19412_v61 = vpack.c.bf16 %v356_v54, %v355_v53  ;;  %v440_v8 = vld [vmem:[#allocation12] sm:$0xff]  ;;  %v441_v9 = vld [vmem:[#allocation12 + $0x8] sm:$0xff]  ;;  %v23004_v44 = vshrl.u32 %v616_v42, 7 }
 0x180   :  { %695 = vst [vmem:[#allocation2 + $0x110] sm:$0xff] %v22438_v1  ;;  %696 = vst [vmem:[#allocation2 + $0x118] sm:$0x3] %v22438_v1  ;;  %19399 = vmatprep.subr.bf16.mxu0 %v22436_v0  ;;  %v331_v52 = vadd.f32 %v330_v50, %v311_v43  ;;  %v320_v55 = vadd.f32 %v319_v51, %v318_v48  ;;  %v19415_v10 = vpack.c.bf16 %v441_v9, %v440_v8  ;;  %v16668_v11 = vld [vmem:[#allocation10] ss:$0 sm:$0xff]  ;;  %v524_v17 = vld [vmem:[#allocation15] sm:$0xff] }
 0x181   :  { %697 = vst [vmem:[#allocation2 + $0x120] sm:$0xff] %v22438_v1  ;;  %698 = vst [vmem:[#allocation2 + $0x128] sm:$0x3] %v22438_v1  ;;  %v21903_v16 = vld [vmem:[#allocation2] sm:$0xff]  ;;  %v16669_v20 = vld [vmem:[#allocation13] ss:$0 sm:$0xff] }
 0x182   :  { %699 = vst [vmem:[#allocation2 + $0x130] sm:$0xff] %v22438_v1  ;;  %700 = vst [vmem:[#allocation2 + $0x138] sm:$0x3] %v22438_v1  ;;  %v332_v57 = vrot.slane %v331_v52, 4  ;;  %v321_v58 = vrot.slane %v320_v55, 2  ;;  %19416 = vmatpush3.bf16.msra.mxu1 %v19415_v10  ;;  %v525_v18 = vld [vmem:[#allocation15 + $0x8] sm:$0xff] }
 0x183   :  { %701 = vst [vmem:[#allocation3] sm:$0xff] %v22438_v1  ;;  %702 = vst [vmem:[#allocation3 + $0x8] sm:$0xff] %v22438_v1  ;;  %19401 = vmatpush3.bf16.msra.mxu0 %v19400_v30  ;;  %19417 = vmatprep.subr.bf16.mxu1 %v22436_v0  ;;  %v19418_v19 = vpack.c.bf16 %v525_v18, %v524_v17  ;;  %v20492_v25 = vld [vmem:[#allocation18 + $0x48] sm:$0xff]   ;;  %v20493_v26 = vld [vmem:[#allocation18 + $0x50] sm:$0xff]   ;;  %v22439_v40 = vmov 1966171168  }
 0x184   :  { %703 = vst [vmem:[#allocation3 + $0x10] sm:$0x3] %v22438_v1  ;;  %704 = vst [vmem:[#allocation3 + $0x18] sm:$0x3] %v22438_v1  ;;  %19402 = vmatprep.subr.bf16.mxu0 %v22436_v0  ;;  %v333_v59 = vadd.f32 %v332_v57, %v331_v52  ;;  %v322_v60 = vadd.f32 %v321_v58, %v320_v55  ;;  %v20494_v27 = vld [vmem:[#allocation18 + $0x58] sm:$0xff]   ;;  %v20495_v28 = vld [vmem:[#allocation18 + $0x60] sm:$0xff]  }
 0x185   :  { %705 = vst [vmem:[#allocation3 + $0x20] sm:$0xff] %v22438_v1  ;;  %706 = vst [vmem:[#allocation3 + $0x28] sm:$0xff] %v22438_v1  ;;  %v20496_v29 = vld [vmem:[#allocation18 + $0x68] sm:$0xff]   ;;  %v20497_v30 = vld [vmem:[#allocation18 + $0x70] sm:$0xff]   ;;  %v23008_v48 = vsub.s32 0, %v23004_v44  ;;  %s22440_s27 = smov [#allocation34]  }
 0x186   :  { %707 = vst [vmem:[#allocation3 + $0x30] sm:$0x3] %v22438_v1  ;;  %708 = vst [vmem:[#allocation3 + $0x38] sm:$0x3] %v22438_v1  ;;  %v334_v62 = vrot.slane %v333_v59, 2  ;;  %v323_v63 = vrot.slane %v322_v60, 1 }
 0x187   :  { %709 = vst [vmem:[#allocation3 + $0x40] sm:$0xff] %v22438_v1  ;;  %710 = vst [vmem:[#allocation3 + $0x48] sm:$0xff] %v22438_v1  ;;  %19404 = vmatpush3.bf16.msra.mxu0 %v19403_v41  ;;  %v20498_v31 = vld [vmem:[#allocation18 + $0x78] sm:$0xff]   ;;  %v23001_v32 = vld [vmem:[#allocation18] sm:$0xff]   ;;  %v614_v41 = vunpack.c.l.s4 %v22439_v40  ;;  %s16628_s10 = sshll.u32 %s22440_s27, 4  ;;  %s16629_s10 = int_to_ptr.vmem [resolvable:$true] %s16628_s10 }
 0x188   :  { %711 = vst [vmem:[#allocation3 + $0x50] sm:$0x3] %v22438_v1  ;;  %712 = vst [vmem:[#allocation3 + $0x58] sm:$0x3] %v22438_v1  ;;  %19405 = vmatprep.subr.bf16.mxu0 %v22436_v0  ;;  %v324_v2 = vadd.f32 %v323_v63, %v322_v60  ;;  %v16671_v33 = vld [vmem:[#allocation16] ss:$0 sm:$0xff]  ;;  %p22327_p5 = scmp.lt.s32.totalorder %s16629_s10, %s16629_s10 }
 0x189   :  { %713 = vst [vmem:[#allocation3 + $0x60] sm:$0xff] %v22438_v1  ;;  %714 = vst [vmem:[#allocation3 + $0x68] sm:$0xff] %v22438_v1  ;;  %v615_v43 = vunpack.c.0.s8 %v614_v41  ;;  %v838_v53 = vld [vmem:[#allocation2 + $0x1] sm:$0xff]  ;;  %v20504_v42 = vld [vmem:[#allocation18 + $0x28] sm:$0xff]   ;;  %s22322_s2 = scalar_lea.vmem %s16629_s10, 2048 }
 0x18a   :  { %715 = vst [vmem:[#allocation3 + $0x70] sm:$0x3] %v22438_v1  ;;  %716 = vst [vmem:[#allocation3 + $0x78] sm:$0x3] %v22438_v1  ;;  %v339_v4 = vmul.f32 0.015625, %v324_v2  ;;  %v21904_v55 = vld [vmem:[#allocation4] sm:$0xff]  ;;  %p22323_p4 = scmp.ne.s32.totalorder %s16629_s10, %s22322_s2  ;;  %p22328_p6 = scmp.lt.s32.totalorder %s22322_s2, %s22322_s2 }
 0x18b   :  { %717 = vst [vmem:[#allocation3 + $0x80] sm:$0xff] %v22438_v1  ;;  %718 = vst [vmem:[#allocation3 + $0x88] sm:$0xff] %v22438_v1  ;;  %19407 = vmatpush3.bf16.msra.mxu0 %v19406_v49  ;;  %v618_v45 = vsub.s32 %v615_v43, %v23004_v44  ;;  %v21905_v57 = vld [vmem:[#allocation4 + $0x8] sm:$0xff]  ;;  %v21908_v63 = vld [vmem:[#allocation4 + $0x20] sm:$0xff] }
 0x18c   :  { %719 = vst [vmem:[#allocation3 + $0x90] sm:$0x3] %v22438_v1  ;;  %720 = vst [vmem:[#allocation3 + $0x98] sm:$0x3] %v22438_v1  ;;  %19408 = vmatprep.subr.bf16.mxu0 %v22436_v0  ;;  %v21909_v2 = vld [vmem:[#allocation4 + $0x28] sm:$0xff]  ;;  %v21911_v8 = vld [vmem:[#allocation4 + $0x40] sm:$0xff]  ;;  %p22329_p7 = por %p22328_p6, %p22327_p5 }
 0x18d   :  { %721 = vst [vmem:[#allocation3 + $0xa0] sm:$0xff] %v22438_v1  ;;  %722 = vst [vmem:[#allocation3 + $0xa8] sm:$0xff] %v22438_v1  ;;  %v21912_v10 = vld [vmem:[#allocation4 + $0x48] sm:$0xff]  ;;  %v21915_v18 = vld [vmem:[#allocation4 + $0x60] sm:$0xff] }
 0x18e   :  { %723 = vst [vmem:[#allocation3 + $0xb0] sm:$0x3] %v22438_v1  ;;  %724 = vst [vmem:[#allocation3 + $0xb8] sm:$0x3] %v22438_v1  ;;  %v20503_v40 = vld [vmem:[#allocation18 + $0x20] sm:$0xff]   ;;  %p22330_p8 = pnand %p22329_p7, %p22323_p4 }
 0x18f   :  { %725 = vst [vmem:[#allocation3 + $0xc0] sm:$0xff] %v22438_v1  ;;  %726 = vst [vmem:[#allocation3 + $0xc8] sm:$0xff] %v22438_v1  ;;  %19410 = vmatpush3.bf16.msra.mxu0 %v19409_v56 }
 0x190   :  { %727 = vst [vmem:[#allocation3 + $0xd0] sm:$0x3] %v22438_v1  ;;  %728 = vst [vmem:[#allocation3 + $0xd8] sm:$0x3] %v22438_v1  ;;  %19411 = vmatprep.subr.bf16.mxu0 %v22436_v0  ;;  %v20491_v0 = vld [vmem:[#allocation18 + $0x40] sm:$0xff]  }
 0x191   :  { %729 = vst [vmem:[#allocation3 + $0xe0] sm:$0xff] %v22438_v1  ;;  %730 = vst [vmem:[#allocation3 + $0xe8] sm:$0xff] %v22438_v1 }
 0x192   :  { %731 = vst [vmem:[#allocation3 + $0xf0] sm:$0x3] %v22438_v1  ;;  %732 = vst [vmem:[#allocation3 + $0xf8] sm:$0x3] %v22438_v1 }
 0x193   :  { %733 = vst [vmem:[#allocation3 + $0x100] sm:$0xff] %v22438_v1  ;;  %734 = vst [vmem:[#allocation3 + $0x108] sm:$0xff] %v22438_v1  ;;  %19413 = vmatpush3.bf16.msra.mxu0 %v19412_v61  ;;  %v21907_v61 = vld [vmem:[#allocation4 + $0x18] sm:$0xff] }
 0x194   :  { %735 = vst [vmem:[#allocation3 + $0x110] sm:$0x3] %v22438_v1  ;;  %736 = vst [vmem:[#allocation3 + $0x118] sm:$0x3] %v22438_v1 }
 0x195   :  { %737 = vst [vmem:[#allocation3 + $0x120] sm:$0xff] %v22438_v1  ;;  %738 = vst [vmem:[#allocation3 + $0x128] sm:$0xff] %v22438_v1 }
 0x196   :  { %739 = vst [vmem:[#allocation3 + $0x130] sm:$0x3] %v22438_v1  ;;  %740 = vst [vmem:[#allocation3 + $0x138] sm:$0x3] %v22438_v1 }
 0x197   :  { %741 = vst [vmem:[#allocation3 + $0x140] sm:$0xff] %v22438_v1  ;;  %742 = vst [vmem:[#allocation3 + $0x148] sm:$0xff] %v22438_v1 }
 0x198   :  { %743 = vst [vmem:[#allocation3 + $0x150] sm:$0x3] %v22438_v1  ;;  %744 = vst [vmem:[#allocation3 + $0x158] sm:$0x3] %v22438_v1 }
 0x199   :  { %745 = vst [vmem:[#allocation3 + $0x160] sm:$0xff] %v22438_v1  ;;  %746 = vst [vmem:[#allocation3 + $0x168] sm:$0xff] %v22438_v1 }
 0x19a   :  { %747 = vst [vmem:[#allocation3 + $0x170] sm:$0x3] %v22438_v1  ;;  %748 = vst [vmem:[#allocation3 + $0x178] sm:$0x3] %v22438_v1 }
 0x19b   :  { %749 = vst [vmem:[#allocation3 + $0x180] sm:$0xff] %v22438_v1  ;;  %750 = vst [vmem:[#allocation3 + $0x188] sm:$0xff] %v22438_v1 }
 0x19c   :  { %751 = vst [vmem:[#allocation3 + $0x190] sm:$0x3] %v22438_v1  ;;  %752 = vst [vmem:[#allocation3 + $0x198] sm:$0x3] %v22438_v1 }
 0x19d   :  { %753 = vst [vmem:[#allocation3 + $0x1a0] sm:$0xff] %v22438_v1  ;;  %754 = vst [vmem:[#allocation3 + $0x1a8] sm:$0xff] %v22438_v1 }
 0x19e   :  { %755 = vst [vmem:[#allocation3 + $0x1b0] sm:$0x3] %v22438_v1  ;;  %756 = vst [vmem:[#allocation3 + $0x1b8] sm:$0x3] %v22438_v1 }
 0x19f   :  { %757 = vst [vmem:[#allocation3 + $0x1c0] sm:$0xff] %v22438_v1  ;;  %758 = vst [vmem:[#allocation3 + $0x1c8] sm:$0xff] %v22438_v1 }
 0x1a0   :  { %759 = vst [vmem:[#allocation3 + $0x1d0] sm:$0x3] %v22438_v1  ;;  %760 = vst [vmem:[#allocation3 + $0x1d8] sm:$0x3] %v22438_v1 }
 0x1a1   :  { %761 = vst [vmem:[#allocation3 + $0x1e0] sm:$0xff] %v22438_v1  ;;  %762 = vst [vmem:[#allocation3 + $0x1e8] sm:$0xff] %v22438_v1 }
 0x1a2   :  { %763 = vst [vmem:[#allocation3 + $0x1f0] sm:$0x3] %v22438_v1  ;;  %764 = vst [vmem:[#allocation3 + $0x1f8] sm:$0x3] %v22438_v1 }
 0x1a3   :  { %765 = vst [vmem:[#allocation3 + $0x200] sm:$0xff] %v22438_v1  ;;  %766 = vst [vmem:[#allocation3 + $0x208] sm:$0xff] %v22438_v1 }
 0x1a4   :  { %767 = vst [vmem:[#allocation3 + $0x210] sm:$0x3] %v22438_v1  ;;  %768 = vst [vmem:[#allocation3 + $0x218] sm:$0x3] %v22438_v1 }
 0x1a5   :  { %769 = vst [vmem:[#allocation3 + $0x220] sm:$0xff] %v22438_v1  ;;  %770 = vst [vmem:[#allocation3 + $0x228] sm:$0xff] %v22438_v1 }
 0x1a6   :  { %771 = vst [vmem:[#allocation3 + $0x230] sm:$0x3] %v22438_v1  ;;  %772 = vst [vmem:[#allocation3 + $0x238] sm:$0x3] %v22438_v1 }
 0x1a7   :  { %773 = vst [vmem:[#allocation3 + $0x240] sm:$0xff] %v22438_v1  ;;  %774 = vst [vmem:[#allocation3 + $0x248] sm:$0xff] %v22438_v1 }
 0x1a8   :  { %775 = vst [vmem:[#allocation3 + $0x250] sm:$0x3] %v22438_v1  ;;  %776 = vst [vmem:[#allocation3 + $0x258] sm:$0x3] %v22438_v1 }
 0x1a9   :  { %777 = vst [vmem:[#allocation3 + $0x260] sm:$0xff] %v22438_v1  ;;  %778 = vst [vmem:[#allocation3 + $0x268] sm:$0xff] %v22438_v1 }
 0x1aa   :  { %779 = vst [vmem:[#allocation3 + $0x270] sm:$0x3] %v22438_v1  ;;  %780 = vst [vmem:[#allocation3 + $0x278] sm:$0x3] %v22438_v1  ;;  %v335_v1 = vadd.f32 %v334_v62, %v333_v59  ;;  %v21906_v59 = vld [vmem:[#allocation4 + $0x10] sm:$0xff] }
 0x1ab   :  { %24988 = vst [vmem:[#allocation49_spill] sm:$0xff] %v23004_v44  ;;  %24989 = vst [vmem:[#allocation50_spill] sm:$0xff] %v23008_v48 }
 0x1ac   :  { %v336_v3 = vrot.slane %v335_v1, 1 }
 0x1ae   :  { %v337_v5 = vadd.f32 %v336_v3, %v335_v1 }
 0x1b0   :  { %v340_v6 = vmul.f32 0.015625, %v337_v5 }
 0x1b2   :  { %v367_v7 = vsel %vm366_vm1, %v340_v6, %v339_v4  ;;  %v21910_v4 = vld [vmem:[#allocation4 + $0x30] sm:$0xff] }
 0x1b3   :  { %18222 = vmatmul.mubr.f32.vlgmr.msra.gmra.mrb[0].mxu0 %v367_v7 }
 0x286   :  { %v435_v12 = vpop.f32.mrb[0].mxu0 }
 0x287   :  { %v436_v13 = vadd.f32 %v16668_v11, %v435_v12  ;;  %v18223_v14 = vpop.f32.mrb[1].mxu0  ;;  %v20500_v12 = vld [vmem:[#allocation18 + $0x8] sm:$0xff]  }
 0x289   :  { %v439_v15 = vmax.f32 %v436_v13, 0.0  ;;  %v21913_v13 = vld [vmem:[#allocation4 + $0x50] sm:$0xff] }
 0x28b   :  { %18229 = vmatmul.mubr.msk.f32.vlgmr.msra.gmra.mrb[0].mxu1 %vm449_vm2, %v439_v15  ;;  %v21914_v15 = vld [vmem:[#allocation4 + $0x58] sm:$0xff] }
 0x28c   :  { %18235 = vmatprep.mubr.msk.f32.mxu1 %vm22437_vm0, %v21903_v16  ;;  %19419 = vmatpush3.bf16.msra.mxu1 %v19418_v19 }
 0x28d   :  { %18238 = vmatprep.subr.bf16.mxu1 %v20491_v0 }
 0x35e   :  { %v519_v21 = vpop.f32.mrb[0].mxu1 }
 0x35f   :  { %v520_v22 = vadd.f32 %v16669_v20, %v519_v21  ;;  %v18230_v23 = vpop.f32.mrb[1].mxu1  ;;  %v21916_v20 = vld [vmem:[#allocation4 + $0x68] sm:$0xff] }
 0x361   :  { %v523_v24 = vmax.f32 %v520_v22, 0.0  ;;  %v21917_v22 = vld [vmem:[#allocation4 + $0x70] sm:$0xff] }
 0x363   :  { %18236 = vmatmul.mubr.msk.f32.vlgmr.msra.gmra.mrb[2].mxu1 %vm449_vm2, %v523_v24  ;;  %v21918_v24 = vld [vmem:[#allocation4 + $0x38] sm:$0xff] }
 0x364   :  { %18239 = vmatpush3.bf16.msra.mxu1 %v20491_v0 }
 0x365   :  { %18240 = vmatprep.subr.bf16.mxu1 %v20492_v25 }
 0x368   :  { %18241 = vmatpush3.bf16.msra.mxu1 %v20492_v25  ;;  %v21919_v25 = vld [vmem:[#allocation4 + $0x78] sm:$0xff] }
 0x369   :  { %18242 = vmatprep.subr.bf16.mxu1 %v20493_v26 }
 0x36c   :  { %18243 = vmatpush3.bf16.msra.mxu1 %v20493_v26 }
 0x36d   :  { %18244 = vmatprep.subr.bf16.mxu1 %v20494_v27 }
 0x370   :  { %18245 = vmatpush3.bf16.msra.mxu1 %v20494_v27 }
 0x371   :  { %18246 = vmatprep.subr.bf16.mxu1 %v20495_v28 }
 0x374   :  { %18247 = vmatpush3.bf16.msra.mxu1 %v20495_v28 }
 0x375   :  { %18248 = vmatprep.subr.bf16.mxu1 %v20496_v29 }
 0x378   :  { %18249 = vmatpush3.bf16.msra.mxu1 %v20496_v29  ;;  %v20501_v29 = vld [vmem:[#allocation18 + $0x10] sm:$0xff]  }
 0x379   :  { %18250 = vmatprep.subr.bf16.mxu1 %v20497_v30 }
 0x37c   :  { %18251 = vmatpush3.bf16.msra.mxu1 %v20497_v30 }
 0x37d   :  { %18252 = vmatprep.subr.bf16.mxu1 %v20498_v31 }
 0x380   :  { %18253 = vmatpush3.bf16.msra.mxu1 %v20498_v31 }
 0x381   :  { %18270 = vmatprep.subr.bf16.mxu1 %v23001_v32 }
 0x436   :  { %v602_v34 = vpop.f32.mrb[2].mxu1 }
 0x437   :  { %v603_v35 = vadd.f32 %v16671_v33, %v602_v34  ;;  %v18237_v36 = vpop.f32.mrb[3].mxu1  ;;  %v20518_v33 = vld [vmem:[#allocation18 + $0xd8] sm:$0xff]  }
 0x438   :  { %v846_v36 = vld [vmem:[#allocation2 + $0xa1] sm:$0xff] }
 0x439   :  { %v16673_v37 = vmul.f32 -1.442695, %v603_v35 }
 0x43b   :  { %21643 = vpow2.f32 %v16673_v37 }
 0x445   :  { %v21644_v38 = vpop.eup %21643 }
 0x446   :  { %v609_v39 = vadd.f32 1.0, %v21644_v38  ;;  %v20502_v38 = vld [vmem:[#allocation18 + $0x18] sm:$0xff]  }
 0x448   :  { %21645 = vrcp.f32 %v609_v39 }
 0x452   :  { %v21646_v46 = vpop.eup %21645 }
 0x453   :  { %v619_v47 = vrot.slane %v21646_v46, %v618_v45 }
 0x455   :  { %v620_v49 = vcombine.high %v619_v47, %v619_v47  ;;  %v627_v50 = vrot.slane %v619_v47, %v618_v45 }
 0x457   :  { %v634_v51 = vrot.slane %v620_v49, %v618_v45  ;;  %v638_v52 = vrot.slane %v627_v50, %v23008_v48  ;;  %v20505_v45 = vld [vmem:[#allocation18 + $0x30] sm:$0xff]   ;;  %v20506_v49 = vld [vmem:[#allocation18 + $0x38] sm:$0xff]  }
 0x458   :  { %v23104_v50 = vld [vmem:[#allocation2] sm:$0xff] }
 0x459   :  { %v642_v54 = vrot.slane %v634_v51, %v23008_v48  ;;  %v23012_v56 = vmul.f32 %v21904_v55, %v638_v52  ;;  %v23014_v58 = vmul.f32 %v21905_v57, %v638_v52  ;;  %v23016_v60 = vmul.f32 %v21906_v59, %v638_v52 }
 0x45a   :  { %v23018_v62 = vmul.f32 %v21907_v61, %v638_v52  ;;  %v23020_v1 = vmul.f32 %v21908_v63, %v638_v52  ;;  %v23022_v3 = vmul.f32 %v21909_v2, %v638_v52  ;;  %v23024_v5 = vmul.f32 %v21910_v4, %v638_v52  ;;  %v20508_v61 = vld [vmem:[#allocation18 + $0x88] sm:$0xff]   ;;  %v20509_v2 = vld [vmem:[#allocation18 + $0x90] sm:$0xff]  }
 0x45b   :  { %782 = vst [vmem:[#allocation2 + $0x11] sm:$0xff] %v23012_v56  ;;  %v854_v6 = vpack.c.bf16 %v23012_v56, %v838_v53  ;;  %783 = vst [vmem:[#allocation2 + $0x21] sm:$0xff] %v23014_v58  ;;  %v855_v7 = vpack.c.bf16 %v23016_v60, %v23014_v58  ;;  %v23032_v9 = vmul.f32 %v21911_v8, %v642_v54 }
 0x45c   :  { %784 = vst [vmem:[#allocation2 + $0x31] sm:$0xff] %v23016_v60  ;;  %v23034_v11 = vmul.f32 %v21912_v10, %v642_v54  ;;  %785 = vst [vmem:[#allocation2 + $0x41] sm:$0xff] %v23018_v62  ;;  %v23040_v14 = vmul.f32 %v21913_v13, %v642_v54  ;;  %v23042_v16 = vmul.f32 %v21914_v15, %v642_v54  ;;  %v20510_v10 = vld [vmem:[#allocation18 + $0x98] sm:$0xff]   ;;  %v20511_v13 = vld [vmem:[#allocation18 + $0xa0] sm:$0xff]  }
 0x45d   :  { %786 = vst [vmem:[#allocation2 + $0x51] sm:$0xff] %v23020_v1  ;;  %787 = vst [vmem:[#allocation2 + $0x61] sm:$0xff] %v23022_v3  ;;  %18254 = vmatprep.mubr.bf16.mxu1 %v854_v6  ;;  %v856_v17 = vpack.c.bf16 %v23020_v1, %v23018_v62  ;;  %v23048_v19 = vmul.f32 %v21915_v18, %v642_v54  ;;  %v23050_v21 = vmul.f32 %v21916_v20, %v642_v54 }
 0x45e   :  { %788 = vst [vmem:[#allocation2 + $0x71] sm:$0xff] %v23024_v5  ;;  %790 = vst [vmem:[#allocation2 + $0xb1] sm:$0xff] %v23032_v9  ;;  %v23052_v23 = vmul.f32 %v21917_v22, %v642_v54  ;;  %18255 = vmatmul.mubr.bf16.vlgmr.msra.gmra.mrb[4].mxu1 %v855_v7  ;;  %v23056_v0 = vmul.f32 %v21918_v24, %v638_v52  ;;  %v23058_v26 = vmul.f32 %v21919_v25, %v642_v54  ;;  %v20507_v52 = vld [vmem:[#allocation18 + $0x80] sm:$0xff]   ;;  %v20512_v24 = vld [vmem:[#allocation18 + $0xa8] sm:$0xff]  }
 0x45f   :  { %791 = vst [vmem:[#allocation2 + $0xc1] sm:$0xff] %v23034_v11  ;;  %792 = vst [vmem:[#allocation2 + $0xd1] sm:$0xff] %v23040_v14  ;;  %18271 = vmatpush3.bf16.msra.mxu1 %v23001_v32  ;;  %18258 = vmatprep.mubr.bf16.mxu1 %v856_v17  ;;  %v23084_v37 = vpack.c.bf16 %v23024_v5, %v23022_v3  ;;  %v858_v39 = vpack.c.bf16 %v23032_v9, %v846_v36  ;;  %v20519_v32 = vld [vmem:[#allocation18 + $0xe0] sm:$0xff]  }
 0x460   :  { %793 = vst [vmem:[#allocation2 + $0xe1] sm:$0xff] %v23042_v16  ;;  %794 = vst [vmem:[#allocation2 + $0xf1] sm:$0xff] %v23048_v19  ;;  %18272 = vmatprep.subr.bf16.mxu1 %v20500_v12  ;;  %v23090_v41 = vpack.c.bf16 %v23040_v14, %v23034_v11  ;;  %v23094_v43 = vpack.c.bf16 %v23048_v19, %v23042_v16  ;;  %v23102_v47 = vpack.c.bf16 %v23052_v23, %v23050_v21 }
 0x461   :  { %795 = vst [vmem:[#allocation2 + $0x101] sm:$0xff] %v23050_v21  ;;  %796 = vst [vmem:[#allocation2 + $0x111] sm:$0xff] %v23052_v23 }
 0x462   :  { %789 = vst [vmem:[#allocation2 + $0x81] sm:$0xff] %v23056_v0  ;;  %797 = vst [vmem:[#allocation2 + $0x121] sm:$0xff] %v23058_v26  ;;  %v23098_v46 = vld [vmem:[#allocation2 + $0x10] sm:$0xff]  ;;  %v23109_v53 = vld [vmem:[#allocation2 + $0x20] sm:$0xff] }
 0x463   :  { %18273 = vmatpush3.bf16.msra.mxu1 %v20500_v12  ;;  %v814_v51 = vpack.c.bf16 %v23098_v46, %v23104_v50  ;;  %v23111_v54 = vld [vmem:[#allocation2 + $0x30] sm:$0xff]  ;;  %v23113_v55 = vld [vmem:[#allocation2 + $0x40] sm:$0xff] }
 0x464   :  { %18274 = vmatprep.subr.bf16.mxu1 %v20501_v29  ;;  %v23115_v57 = vld [vmem:[#allocation2 + $0x50] sm:$0xff]  ;;  %v23119_v59 = vpack.c.bf16 %v23111_v54, %v23109_v53  ;;  %v23127_v4 = vld [vmem:[#allocation2 + $0x60] sm:$0xff] }
 0x465   :  { %v23123_v63 = vpack.c.bf16 %v23115_v57, %v23113_v55  ;;  %v23129_v6 = vld [vmem:[#allocation2 + $0x70] sm:$0xff] }
 0x466   :  { %18259 = vmatmul.mubr.bf16.gmra.mrb[8].mxu1 %v23084_v37  ;;  %v23131_v7 = vld [vmem:[#allocation2 + $0xb0] sm:$0xff]  ;;  %v23135_v8 = vpack.c.bf16 %v23129_v6, %v23127_v4  ;;  %v23140_v15 = vld [vmem:[#allocation2 + $0xc0] sm:$0xff] }
 0x467   :  { %18275 = vmatpush3.bf16.msra.mxu1 %v20501_v29  ;;  %18262 = vmatprep.mubr.bf16.mxu1 %v858_v39  ;;  %v818_v12 = vpack.c.bf16 %v23131_v7, %v23104_v50  ;;  %v23142_v17 = vld [vmem:[#allocation2 + $0xd0] sm:$0xff]  ;;  %v23144_v18 = vld [vmem:[#allocation2 + $0xe0] sm:$0xff] }
 0x468   :  { %18276 = vmatprep.subr.bf16.mxu1 %v20502_v38  ;;  %v23146_v20 = vld [vmem:[#allocation2 + $0xf0] sm:$0xff]  ;;  %v23150_v22 = vpack.c.bf16 %v23142_v17, %v23140_v15  ;;  %v23158_v36 = vld [vmem:[#allocation2 + $0x100] sm:$0xff] }
 0x469   :  { %v23154_v25 = vpack.c.bf16 %v23146_v20, %v23144_v18  ;;  %v20513_v29 = vld [vmem:[#allocation18 + $0xb0] sm:$0xff]   ;;  %v1169_v39 = vld [vmem:[#allocation2 + $0x2] sm:$0xff] }
 0x46a   :  { %v23192_v35 = vld [vmem:[#allocation2 + $0xb2] sm:$0xff]  ;;  %v23200_v31 = vld [vmem:[#allocation2 + $0xc2] sm:$0xff] }
 0x46b   :  { %18277 = vmatpush3.bf16.msra.mxu1 %v20502_v38  ;;  %v23160_v38 = vld [vmem:[#allocation2 + $0x110] sm:$0xff]  ;;  %v23204_v28 = vld [vmem:[#allocation2 + $0xe2] sm:$0xff] }
 0x46c   :  { %18278 = vmatprep.subr.bf16.mxu1 %v20503_v40  ;;  %v23202_v30 = vld [vmem:[#allocation2 + $0xd2] sm:$0xff]  ;;  %v23218_v48 = vld [vmem:[#allocation2 + $0x102] sm:$0xff] }
 0x46d   :  { %v23210_v27 = vpack.c.bf16 %v23202_v30, %v23200_v31 }
 0x46e   :  { %18263 = vmatmul.mubr.bf16.gmra.mrb[12].mxu1 %v23090_v41 }
 0x46f   :  { %18279 = vmatpush3.bf16.msra.mxu1 %v20503_v40  ;;  %18266 = vmatprep.mubr.bf16.mxu1 %v23094_v43  ;;  %v23162_v40 = vld [vmem:[#allocation2 + $0x12] sm:$0xff]  ;;  %24992 = vst [vmem:[#allocation53_spill] sm:$0xff] %v23210_v27 }
 0x470   :  { %18280 = vmatprep.subr.bf16.mxu1 %v20504_v42 }
 0x473   :  { %18281 = vmatpush3.bf16.msra.mxu1 %v20504_v42  ;;  %v23166_v42 = vpack.c.bf16 %v23160_v38, %v23158_v36 }
 0x474   :  { %18282 = vmatprep.subr.bf16.mxu1 %v20505_v45 }
 0x476   :  { %18267 = vmatmul.mubr.bf16.gmra.mrb[16].mxu1 %v23102_v47 }
 0x477   :  { %18283 = vmatpush3.bf16.msra.mxu1 %v20505_v45  ;;  %18286 = vmatprep.mubr.bf16.mxu1 %v814_v51  ;;  %v20514_v45 = vld [vmem:[#allocation18 + $0xb8] sm:$0xff]   ;;  %v20515_v51 = vld [vmem:[#allocation18 + $0xc0] sm:$0xff]  }
 0x478   :  { %18284 = vmatprep.subr.bf16.mxu1 %v20506_v49 }
 0x47b   :  { %18285 = vmatpush3.bf16.msra.mxu1 %v20506_v49  ;;  %v1185_v49 = vpack.c.bf16 %v23162_v40, %v1169_v39  ;;  %v23188_v39 = vld [vmem:[#allocation2 + $0x62] sm:$0xff] }
 0x47c   :  { %18302 = vmatprep.subr.bf16.mxu1 %v20507_v52 }
 0x47e   :  { %18287 = vmatmul.mubr.bf16.vlgmr.msra.gmra.mrb[4].mxu1 %v23119_v59 }
 0x47f   :  { %18303 = vmatpush3.bf16.msra.mxu1 %v20507_v52  ;;  %18290 = vmatprep.mubr.bf16.mxu1 %v23123_v63  ;;  %v23170_v52 = vld [vmem:[#allocation2 + $0x22] sm:$0xff] }
 0x480   :  { %18304 = vmatprep.subr.bf16.mxu1 %v20508_v61 }
 0x483   :  { %18305 = vmatpush3.bf16.msra.mxu1 %v20508_v61  ;;  %v23172_v61 = vld [vmem:[#allocation2 + $0x32] sm:$0xff] }
 0x484   :  { %18306 = vmatprep.subr.bf16.mxu1 %v20509_v2 }
 0x486   :  { %18291 = vmatmul.mubr.bf16.gmra.mrb[8].mxu1 %v23135_v8 }
 0x487   :  { %18307 = vmatpush3.bf16.msra.mxu1 %v20509_v2  ;;  %18294 = vmatprep.mubr.bf16.mxu1 %v818_v12  ;;  %v23174_v2 = vld [vmem:[#allocation2 + $0x42] sm:$0xff]  ;;  %v23180_v12 = vpack.c.bf16 %v23172_v61, %v23170_v52 }
 0x488   :  { %18308 = vmatprep.subr.bf16.mxu1 %v20510_v10 }
 0x48b   :  { %18309 = vmatpush3.bf16.msra.mxu1 %v20510_v10  ;;  %v23176_v10 = vld [vmem:[#allocation2 + $0x52] sm:$0xff] }
 0x48c   :  { %18310 = vmatprep.subr.bf16.mxu1 %v20511_v13 }
 0x48e   :  { %18295 = vmatmul.mubr.bf16.gmra.mrb[12].mxu1 %v23150_v22 }
 0x48f   :  { %18311 = vmatpush3.bf16.msra.mxu1 %v20511_v13  ;;  %18298 = vmatprep.mubr.bf16.mxu1 %v23154_v25  ;;  %v20516_v13 = vld [vmem:[#allocation18 + $0xc8] sm:$0xff]  }
 0x490   :  { %18312 = vmatprep.subr.bf16.mxu1 %v20512_v24 }
 0x493   :  { %18313 = vmatpush3.bf16.msra.mxu1 %v20512_v24  ;;  %v23184_v24 = vpack.c.bf16 %v23176_v10, %v23174_v2 }
 0x494   :  { %18314 = vmatprep.subr.bf16.mxu1 %v20513_v29 }
 0x495   :  { %24990 = vst [vmem:[#allocation51_spill] sm:$0xff] %v23184_v24 }
 0x496   :  { %18299 = vmatmul.mubr.bf16.gmra.mrb[16].mxu1 %v23166_v42 }
 0x497   :  { %18315 = vmatpush3.bf16.msra.mxu1 %v20513_v29  ;;  %18318 = vmatprep.mubr.bf16.mxu1 %v1185_v49  ;;  %v20517_v29 = vld [vmem:[#allocation18 + $0xd0] sm:$0xff]   ;;  %v1177_v49 = vld [vmem:[#allocation2 + $0xa2] sm:$0xff] }
 0x498   :  { %18316 = vmatprep.subr.bf16.mxu1 %v20514_v45 }
 0x49b   :  { %18317 = vmatpush3.bf16.msra.mxu1 %v20514_v45  ;;  %v23190_v45 = vld [vmem:[#allocation2 + $0x72] sm:$0xff] }
 0x49c   :  { %18334 = vmatprep.subr.bf16.mxu1 %v20515_v51  ;;  %v23196_v34 = vpack.c.bf16 %v23190_v45, %v23188_v39 }
 0x49e   :  { %18319 = vmatmul.mubr.bf16.vlgmr.msra.gmra.mrb[4].mxu1 %v23180_v12  ;;  %24991 = vst [vmem:[#allocation52_spill] sm:$0xff] %v23196_v34 }
 0x49f   :  { %18335 = vmatpush3.bf16.msra.mxu1 %v20515_v51  ;;  %18322 = vmatprep.mubr.bf16.mxu1 %v23184_v24  ;;  %v1189_v51 = vpack.c.bf16 %v23192_v35, %v1177_v49  ;;  %v20520_v49 = vld [vmem:[#allocation18 + $0xe8] sm:$0xff]   ;;  %v1387_v24 = vpack.c.bf16 %v23109_v53, %v23098_v46  ;;  %v20525_v46 = vld [vmem:[#allocation18 + $0x110] sm:$0xff]   ;;  %v23233_v53 = vld [vmem:[#allocation2 + $0x80] sm:$0xff] }
 0x4a0   :  { %18336 = vmatprep.subr.bf16.mxu1 %v20516_v13 }
 0x4a3   :  { %18337 = vmatpush3.bf16.msra.mxu1 %v20516_v13  ;;  %v23206_v13 = vld [vmem:[#allocation2 + $0xf2] sm:$0xff] }
 0x4a4   :  { %18338 = vmatprep.subr.bf16.mxu1 %v20517_v29 }
 0x4a6   :  { %18323 = vmatmul.mubr.bf16.gmra.mrb[8].mxu1 %v23196_v34  ;;  %v20522_v34 = vld [vmem:[#allocation18 + $0xf8] sm:$0xff]  }
 0x4a7   :  { %18339 = vmatpush3.bf16.msra.mxu1 %v20517_v29  ;;  %18326 = vmatprep.mubr.bf16.mxu1 %v1189_v51  ;;  %v23214_v29 = vpack.c.bf16 %v23206_v13, %v23204_v28  ;;  %v20521_v51 = vld [vmem:[#allocation18 + $0xf0] sm:$0xff]  }
 0x4a8   :  { %18340 = vmatprep.subr.bf16.mxu1 %v20518_v33 }
 0x4a9   :  { %24993 = vst [vmem:[#allocation54_spill] sm:$0xff] %v23214_v29 }
 0x4ab   :  { %18341 = vmatpush3.bf16.msra.mxu1 %v20518_v33  ;;  %v23220_v33 = vld [vmem:[#allocation2 + $0x112] sm:$0xff] }
 0x4ac   :  { %18342 = vmatprep.subr.bf16.mxu1 %v20519_v32  ;;  %v23224_v44 = vpack.c.bf16 %v23220_v33, %v23218_v48 }
 0x4ae   :  { %18327 = vmatmul.mubr.bf16.gmra.mrb[12].mxu1 %v23210_v27  ;;  %v1389_v27 = vpack.c.bf16 %v23127_v4, %v23115_v57  ;;  %v20528_v57 = vld [vmem:[#allocation18 + $0x128] sm:$0xff]   ;;  %v1393_v4 = vpack.c.bf16 %v23158_v36, %v23146_v20  ;;  %v24995_v36 = vpack.c.bf16 %v23018_v62, %v23016_v60  ;;  %v20535_v60 = vld [vmem:[#allocation18 + $0x160] sm:$0xff]  }
 0x4af   :  { %18343 = vmatpush3.bf16.msra.mxu1 %v20519_v32  ;;  %18330 = vmatprep.mubr.bf16.mxu1 %v23214_v29  ;;  %v20523_v32 = vld [vmem:[#allocation18 + $0x100] sm:$0xff]   ;;  %v20524_v29 = vld [vmem:[#allocation18 + $0x108] sm:$0xff]  }
 0x4b0   :  { %18344 = vmatprep.subr.bf16.mxu1 %v20520_v49  ;;  %v20532_v20 = vld [vmem:[#allocation18 + $0x148] sm:$0xff]  }
 0x4b1   :  { %v20536_v62 = vld [vmem:[#allocation18 + $0x168] sm:$0xff]  }
 0x4b3   :  { %18345 = vmatpush3.bf16.msra.mxu1 %v20520_v49  ;;  %v1388_v49 = vpack.c.bf16 %v23113_v55, %v23111_v54  ;;  %v1391_v54 = vpack.c.bf16 %v23140_v15, %v23131_v7  ;;  %v20527_v55 = vld [vmem:[#allocation18 + $0x120] sm:$0xff]  }
 0x4b4   :  { %18346 = vmatprep.subr.bf16.mxu1 %v20521_v51  ;;  %v23243_v7 = vld [vmem:[#allocation2 + $0x120] sm:$0xff] }
 0x4b5   :  { %v1394_v15 = vpack.c.bf16 %v23243_v7, %v23160_v38  ;;  %v24996_v38 = vpack.c.bf16 %v23022_v3, %v23020_v1  ;;  %v24999_v1 = vpack.c.bf16 %v23042_v16, %v23040_v14  ;;  %v25000_v3 = vpack.c.bf16 %v23050_v21, %v23048_v19  ;;  %v20564_v14 = vld [vmem:[#allocation21 + $0x48] sm:$0xff]   ;;  %v20539_v16 = vld [vmem:[#allocation18 + $0x180] sm:$0xff]   ;;  %v20565_v19 = vld [vmem:[#allocation21 + $0x50] sm:$0xff]  }
 0x4b6   :  { %18331 = vmatmul.mubr.bf16.gmra.mrb[16].mxu1 %v23224_v44  ;;  %v1792_v21 = vpack.c.bf16 %v23174_v2, %v23172_v61  ;;  %v20542_v2 = vld [vmem:[#allocation18 + $0x198] sm:$0xff]  }
 0x4b7   :  { %18347 = vmatpush3.bf16.msra.mxu1 %v20521_v51  ;;  %18350 = vmatprep.mubr.bf16.mxu1 %v1387_v24  ;;  %v20526_v24 = vld [vmem:[#allocation18 + $0x118] sm:$0xff]   ;;  %v20533_v51 = vld [vmem:[#allocation18 + $0x150] sm:$0xff]  }
 0x4b8   :  { %18348 = vmatprep.subr.bf16.mxu1 %v20522_v34 }
 0x4bb   :  { %18349 = vmatpush3.bf16.msra.mxu1 %v20522_v34  ;;  %v1390_v34 = vpack.c.bf16 %v23233_v53, %v23129_v6  ;;  %v20529_v6 = vld [vmem:[#allocation18 + $0x130] sm:$0xff]  }
 0x4bc   :  { %18366 = vmatprep.subr.bf16.mxu1 %v20523_v32 }
 0x4be   :  { %18351 = vmatmul.mubr.bf16.vlgmr.msra.gmra.mrb[4].mxu1 %v1388_v49  ;;  %v25001_v49 = vpack.c.bf16 %v23058_v26, %v23052_v23  ;;  %v1793_v23 = vpack.c.bf16 %v23188_v39, %v23176_v10  ;;  %v1795_v10 = vpack.c.bf16 %v23200_v31, %v23192_v35  ;;  %v20543_v39 = vld [vmem:[#allocation18 + $0x1a0] sm:$0xff]   ;;  %v20545_v31 = vld [vmem:[#allocation18 + $0x1b0] sm:$0xff]  }
 0x4bf   :  { %18367 = vmatpush3.bf16.msra.mxu1 %v20523_v32  ;;  %18354 = vmatprep.mubr.bf16.mxu1 %v1389_v27  ;;  %v1392_v27 = vpack.c.bf16 %v23144_v18, %v23142_v17  ;;  %v24994_v17 = vpack.c.bf16 %v23014_v58, %v23012_v56  ;;  %v20531_v18 = vld [vmem:[#allocation18 + $0x140] sm:$0xff]   ;;  %v20534_v56 = vld [vmem:[#allocation18 + $0x158] sm:$0xff]   ;;  %v24997_v58 = vpack.c.bf16 %v23056_v0, %v23024_v5  ;;  %v20537_v5 = vld [vmem:[#allocation18 + $0x170] sm:$0xff]  }
 0x4c0   :  { %18368 = vmatprep.subr.bf16.mxu1 %v20524_v29  ;;  %v24998_v32 = vpack.c.bf16 %v23034_v11, %v23032_v9  ;;  %v20538_v9 = vld [vmem:[#allocation18 + $0x178] sm:$0xff]   ;;  %v1791_v11 = vpack.c.bf16 %v23170_v52, %v23162_v40  ;;  %v20540_v40 = vld [vmem:[#allocation18 + $0x188] sm:$0xff]  }
 0x4c1   :  { %v20566_v52 = vld [vmem:[#allocation21 + $0x58] sm:$0xff]  }
 0x4c2   :  { %v23287_v35 = vld [vmem:[#allocation2 + $0x122] sm:$0xff] }
 0x4c3   :  { %18369 = vmatpush3.bf16.msra.mxu1 %v20524_v29  ;;  %v20530_v29 = vld [vmem:[#allocation18 + $0x138] sm:$0xff]  }
 0x4c4   :  { %18370 = vmatprep.subr.bf16.mxu1 %v20525_v46 }
 0x4c6   :  { %18355 = vmatmul.mubr.bf16.gmra.mrb[8].mxu1 %v1390_v34  ;;  %v20541_v34 = vld [vmem:[#allocation18 + $0x190] sm:$0xff]  }
 0x4c7   :  { %18371 = vmatpush3.bf16.msra.mxu1 %v20525_v46  ;;  %18358 = vmatprep.mubr.bf16.mxu1 %v1391_v54  ;;  %v20563_v46 = vld [vmem:[#allocation21 + $0x40] sm:$0xff]   ;;  %v1796_v54 = vpack.c.bf16 %v23204_v28, %v23202_v30  ;;  %v20549_v30 = vld [vmem:[#allocation18 + $0x1d0] sm:$0xff]  }
 0x4c8   :  { %18372 = vmatprep.subr.bf16.mxu1 %v20526_v24  ;;  %18526 = vmatprep.subr.bf16.mxu0 %v20563_v46  ;;  %v20547_v28 = vld [vmem:[#allocation18 + $0x1c0] sm:$0xff]  }
 0x4c9   :  { %18527 = vmatpush3.bf16.msra.mxu0 %v20563_v46  ;;  %v23315_v46 = vld [vmem:[#allocation19] ss:$0 sm:$0xff] }
 0x4ca   :  { %18528 = vmatprep.subr.bf16.mxu0 %v20564_v14 }
 0x4cb   :  { %18373 = vmatpush3.bf16.msra.mxu1 %v20526_v24  ;;  %v23277_v24 = vld [vmem:[#allocation2 + $0x82] sm:$0xff] }
 0x4cc   :  { %18374 = vmatprep.subr.bf16.mxu1 %v20527_v55  ;;  %v1794_v61 = vpack.c.bf16 %v23277_v24, %v23190_v45  ;;  %v1798_v45 = vpack.c.bf16 %v23287_v35, %v23220_v33  ;;  %v20550_v33 = vld [vmem:[#allocation18 + $0x1d8] sm:$0xff]  }
 0x4cd   :  { %18529 = vmatpush3.bf16.msra.mxu0 %v20564_v14 }
 0x4ce   :  { %18359 = vmatmul.mubr.bf16.gmra.mrb[12].mxu1 %v1392_v27  ;;  %18530 = vmatprep.subr.bf16.mxu0 %v20565_v19  ;;  %v1797_v27 = vpack.c.bf16 %v23218_v48, %v23206_v13  ;;  %v20548_v48 = vld [vmem:[#allocation18 + $0x1c8] sm:$0xff]   ;;  %v1997_v13 = vpack.c.bf16 %v23104_v50, %v23233_v53  ;;  %v2001_v53 = vpack.c.bf16 %v23104_v50, %v23243_v7 }
 0x4cf   :  { %18375 = vmatpush3.bf16.msra.mxu1 %v20527_v55  ;;  %18362 = vmatprep.mubr.bf16.mxu1 %v1393_v4  ;;  %v20544_v55 = vld [vmem:[#allocation18 + $0x1a8] sm:$0xff]   ;;  %v2180_v4 = vld [vmem:[#allocation2 + $0x21] sm:$0xff] }
 0x4d0   :  { %18376 = vmatprep.subr.bf16.mxu1 %v20528_v57  ;;  %v2187_v7 = vld [vmem:[#allocation2 + $0x91] sm:$0xff] }
 0x4d1   :  { %18531 = vmatpush3.bf16.msra.mxu0 %v20565_v19 }
 0x4d2   :  { %18532 = vmatprep.subr.bf16.mxu0 %v20566_v52 }
 0x4d3   :  { %18377 = vmatpush3.bf16.msra.mxu1 %v20528_v57  ;;  %v20546_v57 = vld [vmem:[#allocation18 + $0x1b8] sm:$0xff]  }
 0x4d4   :  { %18378 = vmatprep.subr.bf16.mxu1 %v20529_v6 }
 0x4d5   :  { %18533 = vmatpush3.bf16.msra.mxu0 %v20566_v52 }
 0x4d6   :  { %18363 = vmatmul.mubr.bf16.gmra.mrb[16].mxu1 %v1394_v15 }
 0x4d7   :  { %18379 = vmatpush3.bf16.msra.mxu1 %v20529_v6  ;;  %18382 = vmatprep.mubr.bf16.mxu1 %v24994_v17  ;;  %v2181_v6 = vld [vmem:[#allocation2 + $0x31] sm:$0xff] }
 0x4d8   :  { %18380 = vmatprep.subr.bf16.mxu1 %v20530_v29  ;;  %v2196_v15 = vpack.c.bf16 %v2181_v6, %v2180_v4  ;;  %v2183_v17 = vld [vmem:[#allocation2 + $0x51] sm:$0xff] }
 0x4db   :  { %18381 = vmatpush3.bf16.msra.mxu1 %v20530_v29  ;;  %v20555_v29 = vld [vmem:[#allocation18 + $0x200] sm:$0xff]  }
 0x4dc   :  { %18398 = vmatprep.subr.bf16.mxu1 %v20531_v18 }
 0x4de   :  { %18383 = vmatmul.mubr.bf16.vlgmr.msra.gmra.mrb[4].mxu1 %v24995_v36  ;;  %v2199_v36 = vpack.c.bf16 %v2187_v7, %v23056_v0  ;;  %v2687_v7 = vld [vmem:[#allocation2 + $0xa1] sm:$0xff] }
 0x4df   :  { %18399 = vmatpush3.bf16.msra.mxu1 %v20531_v18  ;;  %18386 = vmatprep.mubr.bf16.mxu1 %v24996_v38  ;;  %v20556_v18 = vld [vmem:[#allocation18 + $0x208] sm:$0xff]   ;;  %v20558_v38 = vld [vmem:[#allocation18 + $0x218] sm:$0xff]  }
 0x4e0   :  { %18400 = vmatprep.subr.bf16.mxu1 %v20532_v20 }
 0x4e3   :  { %18401 = vmatpush3.bf16.msra.mxu1 %v20532_v20  ;;  %v20557_v20 = vld [vmem:[#allocation18 + $0x210] sm:$0xff]  }
 0x4e4   :  { %18402 = vmatprep.subr.bf16.mxu1 %v20533_v51 }
 0x4e6   :  { %18387 = vmatmul.mubr.bf16.gmra.mrb[8].mxu1 %v24997_v58  ;;  %v2195_v58 = vld [vmem:[#allocation2 + $0x131] sm:$0xff] }
 0x4e7   :  { %18403 = vmatpush3.bf16.msra.mxu1 %v20533_v51  ;;  %18390 = vmatprep.mubr.bf16.mxu1 %v24998_v32  ;;  %v20559_v51 = vld [vmem:[#allocation18 + $0x220] sm:$0xff]   ;;  %v2203_v0 = vpack.c.bf16 %v2195_v58, %v23058_v26  ;;  %v20562_v32 = vld [vmem:[#allocation18 + $0x238] sm:$0xff]   ;;  %v2397_v26 = vld [vmem:[#allocation2 + $0x132] sm:$0xff] }
 0x4e8   :  { %18404 = vmatprep.subr.bf16.mxu1 %v20534_v56 }
 0x4eb   :  { %18405 = vmatpush3.bf16.msra.mxu1 %v20534_v56  ;;  %v20560_v56 = vld [vmem:[#allocation18 + $0x228] sm:$0xff]  }
 0x4ec   :  { %18406 = vmatprep.subr.bf16.mxu1 %v20535_v60 }
 0x4ee   :  { %18391 = vmatmul.mubr.bf16.gmra.mrb[12].mxu1 %v24999_v1  ;;  %v25005_v1 = vld [vmem:[#allocation54_spill] sm:$0xff] }
 0x4ef   :  { %18407 = vmatpush3.bf16.msra.mxu1 %v20535_v60  ;;  %18394 = vmatprep.mubr.bf16.mxu1 %v25000_v3  ;;  %v2389_v60 = vld [vmem:[#allocation2 + $0x92] sm:$0xff]  ;;  %v2405_v3 = vpack.c.bf16 %v2397_v26, %v23287_v35 }
 0x4f0   :  { %18408 = vmatprep.subr.bf16.mxu1 %v20536_v62 }
 0x4f3   :  { %18409 = vmatpush3.bf16.msra.mxu1 %v20536_v62  ;;  %v25004_v62 = vld [vmem:[#allocation53_spill] sm:$0xff] }
 0x4f4   :  { %18410 = vmatprep.subr.bf16.mxu1 %v20537_v5 }
 0x4f6   :  { %18395 = vmatmul.mubr.bf16.gmra.mrb[16].mxu1 %v25001_v49  ;;  %v20571_v49 = vld [vmem:[#allocation21] sm:$0xff]  }
 0x4f7   :  { %18411 = vmatpush3.bf16.msra.mxu1 %v20537_v5  ;;  %18414 = vmatprep.mubr.bf16.mxu1 %v1791_v11  ;;  %v20568_v5 = vld [vmem:[#allocation21 + $0x68] sm:$0xff]   ;;  %v20570_v11 = vld [vmem:[#allocation21 + $0x78] sm:$0xff]  }
 0x4f8   :  { %18412 = vmatprep.subr.bf16.mxu1 %v20538_v9 }
 0x4fb   :  { %18413 = vmatpush3.bf16.msra.mxu1 %v20538_v9  ;;  %v20569_v9 = vld [vmem:[#allocation21 + $0x70] sm:$0xff]  }
 0x4fc   :  { %18430 = vmatprep.subr.bf16.mxu1 %v20539_v16 }
 0x4fe   :  { %18415 = vmatmul.mubr.bf16.vlgmr.msra.gmra.mrb[4].mxu1 %v1792_v21 }
 0x4ff   :  { %18431 = vmatpush3.bf16.msra.mxu1 %v20539_v16  ;;  %18418 = vmatprep.mubr.bf16.mxu1 %v1793_v23 }
 0x500   :  { %18432 = vmatprep.subr.bf16.mxu1 %v20540_v40 }
 0x503   :  { %18433 = vmatpush3.bf16.msra.mxu1 %v20540_v40 }
 0x504   :  { %18434 = vmatprep.subr.bf16.mxu1 %v20541_v34 }
 0x506   :  { %18419 = vmatmul.mubr.bf16.gmra.mrb[8].mxu1 %v1794_v61 }
 0x507   :  { %18435 = vmatpush3.bf16.msra.mxu1 %v20541_v34  ;;  %18422 = vmatprep.mubr.bf16.mxu1 %v1795_v10  ;;  %v2679_v34 = vld [vmem:[#allocation2 + $0x1] sm:$0xff] }
 0x508   :  { %18436 = vmatprep.subr.bf16.mxu1 %v20542_v2 }
 0x50b   :  { %18437 = vmatpush3.bf16.msra.mxu1 %v20542_v2 }
 0x50c   :  { %18438 = vmatprep.subr.bf16.mxu1 %v20543_v39 }
 0x50e   :  { %18423 = vmatmul.mubr.bf16.gmra.mrb[12].mxu1 %v1796_v54 }
 0x50f   :  { %18439 = vmatpush3.bf16.msra.mxu1 %v20543_v39  ;;  %18426 = vmatprep.mubr.bf16.mxu1 %v1797_v27  ;;  %v20572_v27 = vld [vmem:[#allocation21 + $0x8] sm:$0xff]  }
 0x510   :  { %18440 = vmatprep.subr.bf16.mxu1 %v20544_v55 }
 0x513   :  { %18441 = vmatpush3.bf16.msra.mxu1 %v20544_v55 }
 0x514   :  { %18442 = vmatprep.subr.bf16.mxu1 %v20545_v31 }
 0x516   :  { %18427 = vmatmul.mubr.bf16.gmra.mrb[16].mxu1 %v1798_v45 }
 0x517   :  { %18443 = vmatpush3.bf16.msra.mxu1 %v20545_v31  ;;  %18446 = vmatprep.mubr.bf16.mxu1 %v23119_v59  ;;  %v20551_v59 = vld [vmem:[#allocation18 + $0x1e0] sm:$0xff]  }
 0x518   :  { %18444 = vmatprep.subr.bf16.mxu1 %v20546_v57 }
 0x51b   :  { %18445 = vmatpush3.bf16.msra.mxu1 %v20546_v57 }
 0x51c   :  { %18462 = vmatprep.subr.bf16.mxu1 %v20547_v28 }
 0x51e   :  { %18447 = vmatmul.mubr.bf16.vlgmr.msra.gmra.mrb[4].mxu1 %v23123_v63  ;;  %v20552_v63 = vld [vmem:[#allocation18 + $0x1e8] sm:$0xff]  }
 0x51f   :  { %18463 = vmatpush3.bf16.msra.mxu1 %v20547_v28  ;;  %18450 = vmatprep.mubr.bf16.mxu1 %v23135_v8  ;;  %v20553_v8 = vld [vmem:[#allocation18 + $0x1f0] sm:$0xff]  }
 0x520   :  { %18464 = vmatprep.subr.bf16.mxu1 %v20548_v48 }
 0x523   :  { %18465 = vmatpush3.bf16.msra.mxu1 %v20548_v48 }
 0x524   :  { %18466 = vmatprep.subr.bf16.mxu1 %v20549_v30 }
 0x526   :  { %18451 = vmatmul.mubr.bf16.gmra.mrb[8].mxu1 %v1997_v13 }
 0x527   :  { %18467 = vmatpush3.bf16.msra.mxu1 %v20549_v30  ;;  %18454 = vmatprep.mubr.bf16.mxu1 %v23150_v22  ;;  %v20554_v22 = vld [vmem:[#allocation18 + $0x1f8] sm:$0xff]  }
 0x528   :  { %18468 = vmatprep.subr.bf16.mxu1 %v20550_v33 }
 0x52b   :  { %18469 = vmatpush3.bf16.msra.mxu1 %v20550_v33 }
 0x52c   :  { %18470 = vmatprep.subr.bf16.mxu1 %v20551_v59 }
 0x52e   :  { %18455 = vmatmul.mubr.bf16.gmra.mrb[12].mxu1 %v23154_v25  ;;  %v2182_v25 = vld [vmem:[#allocation2 + $0x41] sm:$0xff] }
 0x52f   :  { %18471 = vmatpush3.bf16.msra.mxu1 %v20551_v59  ;;  %18458 = vmatprep.mubr.bf16.mxu1 %v23166_v42  ;;  %v2197_v42 = vpack.c.bf16 %v2183_v17, %v2182_v25  ;;  %v20573_v59 = vld [vmem:[#allocation21 + $0x10] sm:$0xff]  }
 0x530   :  { %18472 = vmatprep.subr.bf16.mxu1 %v20552_v63 }
 0x533   :  { %18473 = vmatpush3.bf16.msra.mxu1 %v20552_v63 }
 0x534   :  { %18474 = vmatprep.subr.bf16.mxu1 %v20553_v8 }
 0x536   :  { %18459 = vmatmul.mubr.bf16.gmra.mrb[16].mxu1 %v2001_v53 }
 0x537   :  { %18475 = vmatpush3.bf16.msra.mxu1 %v20553_v8  ;;  %18478 = vmatprep.mubr.bf16.mxu1 %v2196_v15 }
 0x538   :  { %18476 = vmatprep.subr.bf16.mxu1 %v20554_v22 }
 0x53b   :  { %18477 = vmatpush3.bf16.msra.mxu1 %v20554_v22  ;;  %v20574_v22 = vld [vmem:[#allocation21 + $0x18] sm:$0xff]  }
 0x53c   :  { %18494 = vmatprep.subr.bf16.mxu1 %v20555_v29 }
 0x53e   :  { %18479 = vmatmul.mubr.bf16.vlgmr.msra.gmra.mrb[4].mxu1 %v2197_v42 }
 0x53f   :  { %18495 = vmatpush3.bf16.msra.mxu1 %v20555_v29  ;;  %18482 = vmatprep.mubr.bf16.mxu1 %v23084_v37  ;;  %v20561_v37 = vld [vmem:[#allocation18 + $0x230] sm:$0xff]  }
 0x540   :  { %18496 = vmatprep.subr.bf16.mxu1 %v20556_v18 }
 0x543   :  { %18497 = vmatpush3.bf16.msra.mxu1 %v20556_v18 }
 0x544   :  { %18498 = vmatprep.subr.bf16.mxu1 %v20557_v20 }
 0x546   :  { %18483 = vmatmul.mubr.bf16.gmra.mrb[8].mxu1 %v2199_v36 }
 0x547   :  { %18499 = vmatpush3.bf16.msra.mxu1 %v20557_v20  ;;  %18486 = vmatprep.mubr.bf16.mxu1 %v23090_v41  ;;  %v25002_v41 = vld [vmem:[#allocation51_spill] sm:$0xff] }
 0x548   :  { %18500 = vmatprep.subr.bf16.mxu1 %v20558_v38 }
 0x54b   :  { %18501 = vmatpush3.bf16.msra.mxu1 %v20558_v38 }
 0x54c   :  { %18502 = vmatprep.subr.bf16.mxu1 %v20559_v51 }
 0x54e   :  { %18487 = vmatmul.mubr.bf16.gmra.mrb[12].mxu1 %v23094_v43  ;;  %v25003_v43 = vld [vmem:[#allocation52_spill] sm:$0xff] }
 0x54f   :  { %18503 = vmatpush3.bf16.msra.mxu1 %v20559_v51  ;;  %18490 = vmatprep.mubr.bf16.mxu1 %v23102_v47  ;;  %v2401_v47 = vpack.c.bf16 %v2389_v60, %v23277_v24  ;;  %v20575_v51 = vld [vmem:[#allocation21 + $0x20] sm:$0xff]  }
 0x550   :  { %18504 = vmatprep.subr.bf16.mxu1 %v20560_v56 }
 0x553   :  { %18505 = vmatpush3.bf16.msra.mxu1 %v20560_v56 }
 0x554   :  { %18506 = vmatprep.subr.bf16.mxu1 %v20561_v37 }
 0x556   :  { %18491 = vmatmul.mubr.bf16.gmra.mrb[16].mxu1 %v2203_v0 }
 0x557   :  { %18507 = vmatpush3.bf16.msra.mxu1 %v20561_v37  ;;  %18510 = vmatprep.mubr.bf16.mxu1 %v23180_v12  ;;  %v20567_v12 = vld [vmem:[#allocation21 + $0x60] sm:$0xff]  }
 0x558   :  { %18508 = vmatprep.subr.bf16.mxu1 %v20562_v32  ;;  %18534 = vmatprep.subr.bf16.mxu0 %v20567_v12 }
 0x559   :  { %18535 = vmatpush3.bf16.msra.mxu0 %v20567_v12 }
 0x55a   :  { %18536 = vmatprep.subr.bf16.mxu0 %v20568_v5 }
 0x55b   :  { %18509 = vmatpush3.bf16.msra.mxu1 %v20562_v32 }
 0x55d   :  { %18537 = vmatpush3.bf16.msra.mxu0 %v20568_v5 }
 0x55e   :  { %18511 = vmatmul.mubr.bf16.vlgmr.msra.gmra.mrb[4].mxu1 %v25002_v41  ;;  %18538 = vmatprep.subr.bf16.mxu0 %v20569_v9  ;;  %v20576_v41 = vld [vmem:[#allocation21 + $0x28] sm:$0xff]  }
 0x55f   :  { %18514 = vmatprep.mubr.bf16.mxu1 %v25003_v43 }
 0x561   :  { %18539 = vmatpush3.bf16.msra.mxu0 %v20569_v9  ;;  %v20577_v9 = vld [vmem:[#allocation21 + $0x30] sm:$0xff]  }
 0x562   :  { %18540 = vmatprep.subr.bf16.mxu0 %v20570_v11 }
 0x565   :  { %18541 = vmatpush3.bf16.msra.mxu0 %v20570_v11 }
 0x566   :  { %18515 = vmatmul.mubr.bf16.gmra.mrb[8].mxu1 %v2401_v47  ;;  %18558 = vmatprep.subr.bf16.mxu0 %v20571_v49 }
 0x567   :  { %18518 = vmatprep.mubr.bf16.mxu1 %v25004_v62 }
 0x56e   :  { %18519 = vmatmul.mubr.bf16.gmra.mrb[12].mxu1 %v25005_v1 }
 0x56f   :  { %18522 = vmatprep.mubr.bf16.mxu1 %v23224_v44 }
 0x576   :  { %18523 = vmatmul.mubr.bf16.gmra.mrb[16].mxu1 %v2405_v3 }
 0x631   :  { %v18512_v44 = vpop.f32.mrb[4].mxu1 }
 0x632   :  { %v2593_v14 = vadd.f32 %v18512_v44, %v23315_v46  ;;  %v2505_v16 = vpop.f32.mrb[5].mxu1 }
 0x633   :  { %v2591_v19 = vadd.f32 %v23315_v46, %v2505_v16  ;;  %v18513_v21 = vpop.f32.mrb[6].mxu1  ;;  %v20578_v16 = vld [vmem:[#allocation21 + $0x38] sm:$0xff]  }
 0x634   :  { %v23319_v40 = vmax.f32 %v2593_v14, 0.0  ;;  %v2594_v23 = vadd.f32 %v18513_v21, %v23315_v46  ;;  %v2508_v52 = vpop.f32.mrb[7].mxu1  ;;  %v20579_v21 = vld [vmem:[#allocation21 + $0x80] sm:$0xff]  }
 0x635   :  { %v23322_v24 = vmax.f32 %v2591_v19, 0.0  ;;  %v2592_v61 = vadd.f32 %v23315_v46, %v2508_v52 }
 0x636   :  { %25006 = vst [vmem:[#allocation51_spill] sm:$0xff] %v23319_v40  ;;  %2625 = vst [vmem:[#allocation2 + $0x31] sm:$0xff] %v23319_v40  ;;  %v23326_v2 = vmax.f32 %v2594_v23, 0.0 }
 0x637   :  { %25007 = vst [vmem:[#allocation52_spill] sm:$0xff] %v23322_v24  ;;  %2623 = vst [vmem:[#allocation2 + $0x11] sm:$0xff] %v23322_v24  ;;  %v23329_v10 = vmax.f32 %v2592_v61, 0.0  ;;  %v2695_v39 = vpack.c.bf16 %v23322_v24, %v2679_v34 }
 0x638   :  { %25008 = vst [vmem:[#allocation53_spill] sm:$0xff] %v23326_v2  ;;  %2626 = vst [vmem:[#allocation2 + $0x41] sm:$0xff] %v23326_v2 }
 0x639   :  { %25009 = vst [vmem:[#allocation54_spill] sm:$0xff] %v23329_v10  ;;  %2624 = vst [vmem:[#allocation2 + $0x21] sm:$0xff] %v23329_v10  ;;  %v18516_v54 = vpop.f32.mrb[8].mxu1  ;;  %18542 = vmatprep.mubr.bf16.mxu0 %v2695_v39  ;;  %v2696_v55 = vpack.c.bf16 %v23319_v40, %v23329_v10 }
 0x63a   :  { %v2597_v31 = vadd.f32 %v18516_v54, %v23315_v46  ;;  %v2521_v35 = vpop.f32.mrb[9].mxu1  ;;  %v20580_v54 = vld [vmem:[#allocation21 + $0x88] sm:$0xff]  }
 0x63b   :  { %v2595_v45 = vadd.f32 %v23315_v46, %v2521_v35  ;;  %v18517_v57 = vpop.f32.mrb[10].mxu1  ;;  %18543 = vmatmul.mubr.bf16.vlgmr.msra.gmra.mrb[4].mxu0 %v2696_v55 }
 0x63c   :  { %v23338_v28 = vmax.f32 %v2597_v31, 0.0  ;;  %v2598_v48 = vadd.f32 %v18517_v57, %v23315_v46  ;;  %v2524_v30 = vpop.f32.mrb[11].mxu1  ;;  %18559 = vmatpush3.bf16.msra.mxu0 %v20571_v49 }
 0x63d   :  { %v23341_v13 = vmax.f32 %v2595_v45, 0.0  ;;  %v2596_v33 = vadd.f32 %v23315_v46, %v2524_v30  ;;  %18560 = vmatprep.subr.bf16.mxu0 %v20572_v27  ;;  %v23403_v34 = vld [vmem:[#allocation2 + $0x30] sm:$0xff] }
 0x63e   :  { %25010 = vst [vmem:[#allocation55_spill] sm:$0xff] %v23338_v28  ;;  %2629 = vst [vmem:[#allocation2 + $0x71] sm:$0xff] %v23338_v28  ;;  %v23345_v63 = vmax.f32 %v2598_v48, 0.0  ;;  %v23391_v14 = vld [vmem:[#allocation2 + $0x10] sm:$0xff]  ;;  %v20582_v48 = vld [vmem:[#allocation21 + $0x98] sm:$0xff]  }
 0x63f   :  { %25011 = vst [vmem:[#allocation56_spill] sm:$0xff] %v23341_v13  ;;  %2627 = vst [vmem:[#allocation2 + $0x51] sm:$0xff] %v23341_v13  ;;  %v23348_v8 = vmax.f32 %v2596_v33, 0.0  ;;  %v2697_v4 = vpack.c.bf16 %v23341_v13, %v23326_v2  ;;  %v2655_v19 = vpack.c.bf16 %v23391_v14, %v23104_v50  ;;  %v23409_v39 = vld [vmem:[#allocation2 + $0x40] sm:$0xff]  ;;  %v20583_v33 = vld [vmem:[#allocation21 + $0xa0] sm:$0xff]  }
 0x640   :  { %25012 = vst [vmem:[#allocation57_spill] sm:$0xff] %v23345_v63  ;;  %2630 = vst [vmem:[#allocation2 + $0x81] sm:$0xff] %v23345_v63  ;;  %18561 = vmatpush3.bf16.msra.mxu0 %v20572_v27  ;;  %v23399_v23 = vld [vmem:[#allocation2 + $0x20] sm:$0xff]  ;;  %v20581_v27 = vld [vmem:[#allocation21 + $0x90] sm:$0xff]  }
 0x641   :  { %25013 = vst [vmem:[#allocation58_spill] sm:$0xff] %v23348_v8  ;;  %2628 = vst [vmem:[#allocation2 + $0x61] sm:$0xff] %v23348_v8  ;;  %v18520_v6 = vpop.f32.mrb[12].mxu1  ;;  %18546 = vmatprep.mubr.bf16.mxu0 %v2697_v4  ;;  %18562 = vmatprep.subr.bf16.mxu0 %v20573_v59  ;;  %v2698_v53 = vpack.c.bf16 %v23338_v28, %v23348_v8  ;;  %v23407_v61 = vpack.c.bf16 %v23403_v34, %v23399_v23 }
 0x642   :  { %v2601_v15 = vadd.f32 %v18520_v6, %v23315_v46  ;;  %v2537_v29 = vpop.f32.mrb[13].mxu1 }
 0x643   :  { %v2599_v25 = vadd.f32 %v23315_v46, %v2537_v29  ;;  %v18521_v17 = vpop.f32.mrb[14].mxu1  ;;  %18547 = vmatmul.mubr.bf16.gmra.mrb[8].mxu0 %v2698_v53  ;;  %v20585_v29 = vld [vmem:[#allocation21 + $0xb0] sm:$0xff]  }
 0x644   :  { %v23358_v42 = vmax.f32 %v2601_v15, 0.0  ;;  %v2602_v18 = vadd.f32 %v18521_v17, %v23315_v46  ;;  %v2540_v20 = vpop.f32.mrb[15].mxu1  ;;  %18563 = vmatpush3.bf16.msra.mxu0 %v20573_v59  ;;  %v3010_v17 = vld [vmem:[#allocation2 + $0x2] sm:$0xff] }
 0x645   :  { %v23361_v36 = vmax.f32 %v2599_v25, 0.0  ;;  %v2600_v38 = vadd.f32 %v23315_v46, %v2540_v20  ;;  %18564 = vmatprep.subr.bf16.mxu0 %v20574_v22  ;;  %v23421_v45 = vld [vmem:[#allocation2 + $0x70] sm:$0xff] }
 0x646   :  { %25014 = vst [vmem:[#allocation59_spill] sm:$0xff] %v23358_v42  ;;  %2633 = vst [vmem:[#allocation2 + $0xd1] sm:$0xff] %v23358_v42  ;;  %v23365_v56 = vmax.f32 %v2602_v18, 0.0  ;;  %v23401_v52 = vld [vmem:[#allocation2 + $0x50] sm:$0xff] }
 0x647   :  { %25015 = vst [vmem:[#allocation60_spill] sm:$0xff] %v23361_v36  ;;  %2631 = vst [vmem:[#allocation2 + $0xb1] sm:$0xff] %v23361_v36  ;;  %v23368_v37 = vmax.f32 %v2600_v38, 0.0  ;;  %v2699_v58 = vpack.c.bf16 %v23361_v36, %v2687_v7  ;;  %v23413_v55 = vpack.c.bf16 %v23401_v52, %v23409_v39  ;;  %v23450_v18 = vld [vmem:[#allocation2 + $0x12] sm:$0xff]  ;;  %v20586_v38 = vld [vmem:[#allocation21 + $0xb8] sm:$0xff]  }
 0x648   :  { %25016 = vst [vmem:[#allocation61_spill] sm:$0xff] %v23365_v56  ;;  %2634 = vst [vmem:[#allocation2 + $0xe1] sm:$0xff] %v23365_v56  ;;  %18565 = vmatpush3.bf16.msra.mxu0 %v20574_v22  ;;  %v23417_v31 = vld [vmem:[#allocation2 + $0x60] sm:$0xff] }
 0x649   :  { %25017 = vst [vmem:[#allocation62_spill] sm:$0xff] %v23368_v37  ;;  %2632 = vst [vmem:[#allocation2 + $0xc1] sm:$0xff] %v23368_v37  ;;  %v18524_v0 = vpop.f32.mrb[16].mxu1  ;;  %18550 = vmatprep.mubr.bf16.mxu0 %v2699_v58  ;;  %18566 = vmatprep.subr.bf16.mxu0 %v20575_v51  ;;  %v2700_v32 = vpack.c.bf16 %v23358_v42, %v23368_v37  ;;  %v23425_v57 = vpack.c.bf16 %v23421_v45, %v23417_v31  ;;  %v20587_v58 = vld [vmem:[#allocation21 + $0xc0] sm:$0xff]  }
 0x64a   :  { %v2605_v43 = vadd.f32 %v18524_v0, %v23315_v46  ;;  %v2553_v60 = vpop.f32.mrb[17].mxu1  ;;  %v23460_v0 = vld [vmem:[#allocation2 + $0x22] sm:$0xff] }
 0x64b   :  { %v2603_v47 = vadd.f32 %v23315_v46, %v2553_v60  ;;  %v18525_v62 = vpop.f32.mrb[18].mxu1  ;;  %18551 = vmatmul.mubr.bf16.gmra.mrb[12].mxu0 %v2700_v32  ;;  %v23462_v32 = vld [vmem:[#allocation2 + $0x52] sm:$0xff]  ;;  %v23470_v60 = vld [vmem:[#allocation2 + $0x42] sm:$0xff] }
 0x64c   :  { %v23377_v1 = vmax.f32 %v2605_v43, 0.0  ;;  %v2606_v26 = vadd.f32 %v18525_v62, %v23315_v46  ;;  %v2556_v3 = vpop.f32.mrb[19].mxu1  ;;  %18567 = vmatpush3.bf16.msra.mxu0 %v20575_v51  ;;  %v3026_v51 = vpack.c.bf16 %v23450_v18, %v3010_v17  ;;  %v23474_v62 = vpack.c.bf16 %v23462_v32, %v23470_v60  ;;  %v20593_v17 = vld [vmem:[#allocation21 + $0xf0] sm:$0xff]  }
 0x64d   :  { %v23380_v12 = vmax.f32 %v2603_v47, 0.0  ;;  %v2604_v5 = vadd.f32 %v23315_v46, %v2556_v3  ;;  %18568 = vmatprep.subr.bf16.mxu0 %v20576_v41  ;;  %v23434_v6 = vld [vmem:[#allocation2 + $0xd0] sm:$0xff]  ;;  %v23478_v3 = vld [vmem:[#allocation2 + $0x62] sm:$0xff] }
 0x64e   :  { %25018 = vst [vmem:[#allocation63_spill] sm:$0xff] %v23377_v1  ;;  %2637 = vst [vmem:[#allocation2 + $0x111] sm:$0xff] %v23377_v1  ;;  %v23384_v11 = vmax.f32 %v2606_v26, 0.0  ;;  %v23419_v35 = vld [vmem:[#allocation2 + $0xb0] sm:$0xff]  ;;  %v20589_v26 = vld [vmem:[#allocation21 + $0xd0] sm:$0xff]  }
 0x64f   :  { %25019 = vst [vmem:[#allocation64_spill] sm:$0xff] %v23380_v12  ;;  %2635 = vst [vmem:[#allocation2 + $0xf1] sm:$0xff] %v23380_v12  ;;  %v23387_v49 = vmax.f32 %v2604_v5, 0.0  ;;  %v2701_v44 = vpack.c.bf16 %v23380_v12, %v23365_v56  ;;  %v2659_v30 = vpack.c.bf16 %v23419_v35, %v23104_v50  ;;  %v23440_v22 = vld [vmem:[#allocation2 + $0xe0] sm:$0xff]  ;;  %v20584_v50 = vld [vmem:[#allocation21 + $0xa8] sm:$0xff]  }
 0x650   :  { %25020 = vst [vmem:[#allocation65_spill] sm:$0xff] %v23384_v11  ;;  %2638 = vst [vmem:[#allocation2 + $0x121] sm:$0xff] %v23384_v11  ;;  %18569 = vmatpush3.bf16.msra.mxu0 %v20576_v41  ;;  %v23430_v59 = vld [vmem:[#allocation2 + $0xc0] sm:$0xff]  ;;  %v23464_v41 = vld [vmem:[#allocation2 + $0x32] sm:$0xff] }
 0x651   :  { %25021 = vst [vmem:[#allocation66_spill] sm:$0xff] %v23387_v49  ;;  %2636 = vst [vmem:[#allocation2 + $0x101] sm:$0xff] %v23387_v49  ;;  %18554 = vmatprep.mubr.bf16.mxu0 %v2701_v44  ;;  %18570 = vmatprep.subr.bf16.mxu0 %v20577_v9  ;;  %v2702_v46 = vpack.c.bf16 %v23377_v1, %v23387_v49  ;;  %v23438_v53 = vpack.c.bf16 %v23434_v6, %v23430_v59  ;;  %v20588_v47 = vld [vmem:[#allocation21 + $0xc8] sm:$0xff]   ;;  %v3018_v5 = vld [vmem:[#allocation2 + $0xa2] sm:$0xff] }
 0x652   :  { %v23468_v43 = vpack.c.bf16 %v23464_v41, %v23460_v0  ;;  %v23482_v44 = vld [vmem:[#allocation2 + $0x72] sm:$0xff] }
 0x653   :  { %18555 = vmatmul.mubr.bf16.gmra.mrb[16].mxu0 %v2702_v46  ;;  %v23486_v46 = vpack.c.bf16 %v23482_v44, %v23478_v3 }
 0x654   :  { %18571 = vmatpush3.bf16.msra.mxu0 %v20577_v9  ;;  %18574 = vmatprep.mubr.bf16.mxu0 %v2655_v19  ;;  %v23480_v9 = vld [vmem:[#allocation2 + $0xb2] sm:$0xff] }
 0x655   :  { %18572 = vmatprep.subr.bf16.mxu0 %v20578_v16  ;;  %v23452_v20 = vld [vmem:[#allocation2 + $0x110] sm:$0xff]  ;;  %v3030_v19 = vpack.c.bf16 %v23480_v9, %v3018_v5  ;;  %v20595_v5 = vld [vmem:[#allocation21 + $0x100] sm:$0xff]  }
 0x656   :  { %v23432_v4 = vld [vmem:[#allocation2 + $0xf0] sm:$0xff] }
 0x657   :  { %v23444_v15 = vpack.c.bf16 %v23432_v4, %v23440_v22 }
 0x658   :  { %18573 = vmatpush3.bf16.msra.mxu0 %v20578_v16  ;;  %v23448_v25 = vld [vmem:[#allocation2 + $0x100] sm:$0xff] }
 0x659   :  { %18590 = vmatprep.subr.bf16.mxu0 %v20579_v21  ;;  %v23456_v7 = vpack.c.bf16 %v23452_v20, %v23448_v25  ;;  %v20590_v16 = vld [vmem:[#allocation21 + $0xd8] sm:$0xff]  }
 0x65b   :  { %18575 = vmatmul.mubr.bf16.vlgmr.msra.gmra.mrb[4].mxu0 %v23407_v61 }
 0x65c   :  { %18591 = vmatpush3.bf16.msra.mxu0 %v20579_v21  ;;  %18578 = vmatprep.mubr.bf16.mxu0 %v23413_v55  ;;  %v20591_v21 = vld [vmem:[#allocation21 + $0xe0] sm:$0xff]  }
 0x65d   :  { %18592 = vmatprep.subr.bf16.mxu0 %v20580_v54 }
 0x660   :  { %18593 = vmatpush3.bf16.msra.mxu0 %v20580_v54  ;;  %v23490_v54 = vld [vmem:[#allocation2 + $0xc2] sm:$0xff] }
 0x661   :  { %18594 = vmatprep.subr.bf16.mxu0 %v20581_v27 }
 0x663   :  { %18579 = vmatmul.mubr.bf16.gmra.mrb[8].mxu0 %v23425_v57 }
 0x664   :  { %18595 = vmatpush3.bf16.msra.mxu0 %v20581_v27  ;;  %18582 = vmatprep.mubr.bf16.mxu0 %v2659_v30  ;;  %v23492_v27 = vld [vmem:[#allocation2 + $0xf2] sm:$0xff] }
 0x665   :  { %18596 = vmatprep.subr.bf16.mxu0 %v20582_v48 }
 0x668   :  { %18597 = vmatpush3.bf16.msra.mxu0 %v20582_v48  ;;  %v23494_v48 = vld [vmem:[#allocation2 + $0xd2] sm:$0xff] }
 0x669   :  { %18598 = vmatprep.subr.bf16.mxu0 %v20583_v33  ;;  %v23498_v30 = vpack.c.bf16 %v23494_v48, %v23490_v54 }
 0x66b   :  { %18583 = vmatmul.mubr.bf16.gmra.mrb[12].mxu0 %v23438_v53 }
 0x66c   :  { %18599 = vmatpush3.bf16.msra.mxu0 %v20583_v33  ;;  %18586 = vmatprep.mubr.bf16.mxu0 %v23444_v15  ;;  %v23500_v33 = vld [vmem:[#allocation2 + $0xe2] sm:$0xff] }
 0x66d   :  { %18600 = vmatprep.subr.bf16.mxu0 %v20584_v50 }
 0x670   :  { %18601 = vmatpush3.bf16.msra.mxu0 %v20584_v50  ;;  %v20592_v50 = vld [vmem:[#allocation21 + $0xe8] sm:$0xff]  }
 0x671   :  { %18602 = vmatprep.subr.bf16.mxu0 %v20585_v29 }
 0x673   :  { %18587 = vmatmul.mubr.bf16.gmra.mrb[16].mxu0 %v23456_v7 }
 0x674   :  { %18603 = vmatpush3.bf16.msra.mxu0 %v20585_v29  ;;  %18606 = vmatprep.mubr.bf16.mxu0 %v3026_v51  ;;  %v23504_v29 = vpack.c.bf16 %v23492_v27, %v23500_v33  ;;  %v23510_v51 = vld [vmem:[#allocation2 + $0x112] sm:$0xff] }
 0x675   :  { %18604 = vmatprep.subr.bf16.mxu0 %v20586_v38 }
 0x678   :  { %18605 = vmatpush3.bf16.msra.mxu0 %v20586_v38  ;;  %v23508_v38 = vld [vmem:[#allocation2 + $0x102] sm:$0xff] }
 0x679   :  { %18622 = vmatprep.subr.bf16.mxu0 %v20587_v58 }
 0x67b   :  { %18607 = vmatmul.mubr.bf16.vlgmr.msra.gmra.mrb[4].mxu0 %v23468_v43 }
 0x67c   :  { %18623 = vmatpush3.bf16.msra.mxu0 %v20587_v58  ;;  %18610 = vmatprep.mubr.bf16.mxu0 %v23474_v62  ;;  %v23514_v58 = vpack.c.bf16 %v23510_v51, %v23508_v38 }
 0x67d   :  { %18624 = vmatprep.subr.bf16.mxu0 %v20588_v47 }
 0x680   :  { %18625 = vmatpush3.bf16.msra.mxu0 %v20588_v47  ;;  %v20594_v47 = vld [vmem:[#allocation21 + $0xf8] sm:$0xff]  }
 0x681   :  { %18626 = vmatprep.subr.bf16.mxu0 %v20589_v26 }
 0x683   :  { %18611 = vmatmul.mubr.bf16.gmra.mrb[8].mxu0 %v23486_v46 }
 0x684   :  { %18627 = vmatpush3.bf16.msra.mxu0 %v20589_v26  ;;  %18614 = vmatprep.mubr.bf16.mxu0 %v3030_v19  ;;  %v3228_v26 = vpack.c.bf16 %v23399_v23, %v23391_v14  ;;  %v20596_v19 = vld [vmem:[#allocation21 + $0x108] sm:$0xff]   ;;  %v20597_v14 = vld [vmem:[#allocation21 + $0x110] sm:$0xff]   ;;  %v23523_v23 = vld [vmem:[#allocation2 + $0x80] sm:$0xff] }
 0x685   :  { %18628 = vmatprep.subr.bf16.mxu0 %v20590_v16 }
 0x688   :  { %18629 = vmatpush3.bf16.msra.mxu0 %v20590_v16  ;;  %v3229_v16 = vpack.c.bf16 %v23409_v39, %v23403_v34  ;;  %v3232_v34 = vpack.c.bf16 %v23430_v59, %v23419_v35  ;;  %v3233_v39 = vpack.c.bf16 %v23440_v22, %v23434_v6  ;;  %v23533_v35 = vld [vmem:[#allocation2 + $0x120] sm:$0xff]  ;;  %v3430_v6 = vpack.c.bf16 %v23329_v10, %v23322_v24 }
 0x689   :  { %18630 = vmatprep.subr.bf16.mxu0 %v20591_v21  ;;  %v3235_v59 = vpack.c.bf16 %v23533_v35, %v23452_v20  ;;  %v3431_v22 = vpack.c.bf16 %v23326_v2, %v23319_v40  ;;  %v20605_v20 = vld [vmem:[#allocation21 + $0x150] sm:$0xff]  }
 0x68b   :  { %18615 = vmatmul.mubr.bf16.gmra.mrb[12].mxu0 %v23498_v30 }
 0x68c   :  { %18631 = vmatpush3.bf16.msra.mxu0 %v20591_v21  ;;  %18618 = vmatprep.mubr.bf16.mxu0 %v23504_v29  ;;  %v3230_v21 = vpack.c.bf16 %v23417_v31, %v23401_v52  ;;  %v20599_v52 = vld [vmem:[#allocation21 + $0x120] sm:$0xff]   ;;  %v20600_v31 = vld [vmem:[#allocation21 + $0x128] sm:$0xff]  }
 0x68d   :  { %18632 = vmatprep.subr.bf16.mxu0 %v20592_v50 }
 0x690   :  { %18633 = vmatpush3.bf16.msra.mxu0 %v20592_v50  ;;  %v3231_v50 = vpack.c.bf16 %v23523_v23, %v23421_v45  ;;  %v20601_v45 = vld [vmem:[#allocation21 + $0x130] sm:$0xff]  }
 0x691   :  { %18634 = vmatprep.subr.bf16.mxu0 %v20593_v17 }
 0x693   :  { %18619 = vmatmul.mubr.bf16.gmra.mrb[16].mxu0 %v23514_v58 }
 0x694   :  { %18635 = vmatpush3.bf16.msra.mxu0 %v20593_v17  ;;  %18638 = vmatprep.mubr.bf16.mxu0 %v3228_v26  ;;  %v20598_v17 = vld [vmem:[#allocation21 + $0x118] sm:$0xff]  }
 0x695   :  { %18636 = vmatprep.subr.bf16.mxu0 %v20594_v47  ;;  %v20602_v26 = vld [vmem:[#allocation21 + $0x138] sm:$0xff]  }
 0x698   :  { %18637 = vmatpush3.bf16.msra.mxu0 %v20594_v47  ;;  %v3234_v47 = vpack.c.bf16 %v23448_v25, %v23432_v4  ;;  %v20603_v4 = vld [vmem:[#allocation21 + $0x140] sm:$0xff]   ;;  %v20604_v25 = vld [vmem:[#allocation21 + $0x148] sm:$0xff]  }
 0x699   :  { %18654 = vmatprep.subr.bf16.mxu0 %v20595_v5 }
 0x69b   :  { %18639 = vmatmul.mubr.bf16.vlgmr.msra.gmra.mrb[4].mxu0 %v3229_v16  ;;  %v3433_v16 = vpack.c.bf16 %v23345_v63, %v23338_v28 }
 0x69c   :  { %18655 = vmatpush3.bf16.msra.mxu0 %v20595_v5  ;;  %18642 = vmatprep.mubr.bf16.mxu0 %v3230_v21  ;;  %v3432_v5 = vpack.c.bf16 %v23348_v8, %v23341_v13  ;;  %v3434_v21 = vpack.c.bf16 %v23368_v37, %v23361_v36 }
 0x69d   :  { %18656 = vmatprep.subr.bf16.mxu0 %v20596_v19 }
 0x6a0   :  { %18657 = vmatpush3.bf16.msra.mxu0 %v20596_v19  ;;  %v20606_v19 = vld [vmem:[#allocation21 + $0x158] sm:$0xff]  }
 0x6a1   :  { %18658 = vmatprep.subr.bf16.mxu0 %v20597_v14 }
 0x6a3   :  { %18643 = vmatmul.mubr.bf16.gmra.mrb[8].mxu0 %v3231_v50  ;;  %v3435_v50 = vpack.c.bf16 %v23365_v56, %v23358_v42 }
 0x6a4   :  { %18659 = vmatpush3.bf16.msra.mxu0 %v20597_v14  ;;  %18646 = vmatprep.mubr.bf16.mxu0 %v3232_v34  ;;  %v20607_v14 = vld [vmem:[#allocation21 + $0x160] sm:$0xff]   ;;  %v3436_v34 = vpack.c.bf16 %v23387_v49, %v23380_v12 }
 0x6a5   :  { %18660 = vmatprep.subr.bf16.mxu0 %v20598_v17 }
 0x6a8   :  { %18661 = vmatpush3.bf16.msra.mxu0 %v20598_v17  ;;  %v20608_v17 = vld [vmem:[#allocation21 + $0x168] sm:$0xff]  }
 0x6a9   :  { %18662 = vmatprep.subr.bf16.mxu0 %v20599_v52 }
 0x6ab   :  { %18647 = vmatmul.mubr.bf16.gmra.mrb[12].mxu0 %v3233_v39  ;;  %v3437_v39 = vpack.c.bf16 %v23384_v11, %v23377_v1 }
 0x6ac   :  { %18663 = vmatpush3.bf16.msra.mxu0 %v20599_v52  ;;  %18650 = vmatprep.mubr.bf16.mxu0 %v3234_v47  ;;  %v20609_v52 = vld [vmem:[#allocation21 + $0x170] sm:$0xff]   ;;  %v3632_v47 = vpack.c.bf16 %v23460_v0, %v23450_v18  ;;  %v3634_v18 = vpack.c.bf16 %v23478_v3, %v23462_v32 }
 0x6ad   :  { %18664 = vmatprep.subr.bf16.mxu0 %v20600_v31  ;;  %v20647_v0 = vld [vmem:[#allocation30 + $0x240] ss:$16 sps:$4 sm:$0xff]  }
 0x6ae   :  { %v20659_v3 = vld [vmem:[#allocation30 + $0x280] ss:$16 sps:$4 sm:$0xff]  }
 0x6b0   :  { %18665 = vmatpush3.bf16.msra.mxu0 %v20600_v31  ;;  %v20610_v31 = vld [vmem:[#allocation21 + $0x178] sm:$0xff]  }
 0x6b1   :  { %18666 = vmatprep.subr.bf16.mxu0 %v20601_v45 }
 0x6b3   :  { %18651 = vmatmul.mubr.bf16.gmra.mrb[16].mxu0 %v3235_v59  ;;  %v20637_v59 = vld [vmem:[#allocation30 + $0x204] ss:$16 sps:$4 sm:$0xff]  }
 0x6b4   :  { %18667 = vmatpush3.bf16.msra.mxu0 %v20601_v45  ;;  %18670 = vmatprep.mubr.bf16.mxu0 %v3430_v6  ;;  %v20635_v45 = vld [vmem:[#allocation30 + $0x200] ss:$16 sps:$4 sm:$0xff]  }
 0x6b5   :  { %18668 = vmatprep.subr.bf16.mxu0 %v20602_v26  ;;  %v20611_v6 = vld [vmem:[#allocation21 + $0x180] sm:$0xff]   ;;  %5410 = vmatprep.subr.bf16.mxu1 %v20637_v59 }
 0x6b6   :  { %5411 = vmatpush1.bf16.msra.mxu1 %v20635_v45  ;;  %v23569_v45 = vld [vmem:[#allocation2 + $0x122] sm:$0xff]  ;;  %v20677_v59 = vld [vmem:[#allocation30 + $0x2e0] ss:$16 sps:$4 sm:$0xff]  }
 0x6b8   :  { %18669 = vmatpush3.bf16.msra.mxu0 %v20602_v26  ;;  %v20643_v26 = vld [vmem:[#allocation30 + $0x224] ss:$16 sps:$4 sm:$0xff]  }
 0x6b9   :  { %18686 = vmatprep.subr.bf16.mxu0 %v20603_v4  ;;  %5412 = vmatprep.subr.bf16.mxu1 %v20643_v26  ;;  %v20685_v26 = vld [vmem:[#allocation30 + $0x304] ss:$16 sps:$4 sm:$0xff]  }
 0x6bb   :  { %18671 = vmatmul.mubr.bf16.vlgmr.msra.gmra.mrb[4].mxu0 %v3431_v22  ;;  %v20649_v22 = vld [vmem:[#allocation30 + $0x244] ss:$16 sps:$4 sm:$0xff]  }
 0x6bc   :  { %18687 = vmatpush3.bf16.msra.mxu0 %v20603_v4  ;;  %18674 = vmatprep.mubr.bf16.mxu0 %v3432_v5  ;;  %v20641_v4 = vld [vmem:[#allocation30 + $0x220] ss:$16 sps:$4 sm:$0xff]  }
 0x6bd   :  { %18688 = vmatprep.subr.bf16.mxu0 %v20604_v25  ;;  %v20612_v5 = vld [vmem:[#allocation21 + $0x188] sm:$0xff]   ;;  %5413 = vmatpush1.bf16.msra.mxu1 %v20641_v4 }
 0x6be   :  { %5414 = vmatprep.subr.bf16.mxu1 %v20649_v22  ;;  %v20689_v4 = vld [vmem:[#allocation30 + $0x320] ss:$16 sps:$4 sm:$0xff]   ;;  %v20697_v22 = vld [vmem:[#allocation30 + $0x344] ss:$16 sps:$4 sm:$0xff]  }
 0x6c0   :  { %18689 = vmatpush3.bf16.msra.mxu0 %v20604_v25  ;;  %v3633_v25 = vpack.c.bf16 %v23470_v60, %v23464_v41  ;;  %v20614_v41 = vld [vmem:[#allocation21 + $0x198] sm:$0xff]   ;;  %v3636_v60 = vpack.c.bf16 %v23490_v54, %v23480_v9  ;;  %v3638_v9 = vpack.c.bf16 %v23508_v38, %v23492_v27  ;;  %v3639_v27 = vpack.c.bf16 %v23569_v45, %v23510_v51 }
 0x6c1   :  { %18690 = vmatprep.subr.bf16.mxu0 %v20605_v20  ;;  %5415 = vmatpush1.bf16.msra.mxu1 %v20647_v0  ;;  %v20671_v54 = vld [vmem:[#allocation30 + $0x2c0] ss:$16 sps:$4 sm:$0xff]   ;;  %v20691_v38 = vld [vmem:[#allocation30 + $0x324] ss:$16 sps:$4 sm:$0xff]  }
 0x6c2   :  { %v20695_v51 = vld [vmem:[#allocation30 + $0x340] ss:$16 sps:$4 sm:$0xff]  }
 0x6c3   :  { %18675 = vmatmul.mubr.bf16.gmra.mrb[8].mxu0 %v3433_v16  ;;  %v20613_v16 = vld [vmem:[#allocation21 + $0x190] sm:$0xff]   ;;  %v20622_v0 = vld [vmem:[#allocation21 + $0x1d8] sm:$0xff]  }
 0x6c4   :  { %18691 = vmatpush3.bf16.msra.mxu0 %v20605_v20  ;;  %18678 = vmatprep.mubr.bf16.mxu0 %v3434_v21  ;;  %v20655_v20 = vld [vmem:[#allocation30 + $0x264] ss:$16 sps:$4 sm:$0xff]   ;;  %v20653_v21 = vld [vmem:[#allocation30 + $0x260] ss:$16 sps:$4 sm:$0xff]  }
 0x6c5   :  { %18692 = vmatprep.subr.bf16.mxu0 %v20606_v19  ;;  %5416 = vmatprep.subr.bf16.mxu1 %v20655_v20  ;;  %v20623_v20 = vld [vmem:[#allocation21 + $0x1e0] sm:$0xff]  }
 0x6c6   :  { %5417 = vmatpush1.bf16.msra.mxu1 %v20653_v21  ;;  %v4021_v21 = vld [vmem:[#allocation2 + $0x31] sm:$0xff] }
 0x6c8   :  { %18693 = vmatpush3.bf16.msra.mxu0 %v20606_v19  ;;  %v23559_v19 = vld [vmem:[#allocation2 + $0x82] sm:$0xff] }
 0x6c9   :  { %18694 = vmatprep.subr.bf16.mxu0 %v20607_v14  ;;  %v3635_v32 = vpack.c.bf16 %v23559_v19, %v23482_v44  ;;  %v3637_v44 = vpack.c.bf16 %v23500_v33, %v23494_v48  ;;  %v20618_v48 = vld [vmem:[#allocation21 + $0x1b8] sm:$0xff]  }
 0x6ca   :  { %v20683_v33 = vld [vmem:[#allocation30 + $0x300] ss:$16 sps:$4 sm:$0xff]  }
 0x6cb   :  { %18679 = vmatmul.mubr.bf16.gmra.mrb[12].mxu0 %v3435_v50  ;;  %v20667_v50 = vld [vmem:[#allocation30 + $0x2a4] ss:$16 sps:$4 sm:$0xff]  }
 0x6cc   :  { %18695 = vmatpush3.bf16.msra.mxu0 %v20607_v14  ;;  %18682 = vmatprep.mubr.bf16.mxu0 %v3436_v34  ;;  %v20661_v14 = vld [vmem:[#allocation30 + $0x284] ss:$16 sps:$4 sm:$0xff]   ;;  %v20665_v34 = vld [vmem:[#allocation30 + $0x2a0] ss:$16 sps:$4 sm:$0xff]  }
 0x6cd   :  { %18696 = vmatprep.subr.bf16.mxu0 %v20608_v17  ;;  %5418 = vmatprep.subr.bf16.mxu1 %v20661_v14  ;;  %v20626_v14 = vld [vmem:[#allocation21 + $0x1f8] sm:$0xff]  }
 0x6ce   :  { %5419 = vmatpush1.bf16.msra.mxu1 %v20659_v3  ;;  %v4025_v3 = vld [vmem:[#allocation2 + $0x71] sm:$0xff] }
 0x6cf   :  { %5420 = vmatprep.subr.bf16.mxu1 %v20667_v50  ;;  %v20628_v50 = vld [vmem:[#allocation21 + $0x208] sm:$0xff]  }
 0x6d0   :  { %18697 = vmatpush3.bf16.msra.mxu0 %v20608_v17  ;;  %v20615_v17 = vld [vmem:[#allocation21 + $0x1a0] sm:$0xff]  }
 0x6d1   :  { %18698 = vmatprep.subr.bf16.mxu0 %v20609_v52 }
 0x6d2   :  { %5421 = vmatpush1.bf16.msra.mxu1 %v20665_v34  ;;  %v4026_v34 = vld [vmem:[#allocation2 + $0x81] sm:$0xff] }
 0x6d3   :  { %18683 = vmatmul.mubr.bf16.gmra.mrb[16].mxu0 %v3437_v39  ;;  %v20616_v39 = vld [vmem:[#allocation21 + $0x1a8] sm:$0xff]  }
 0x6d4   :  { %18699 = vmatpush3.bf16.msra.mxu0 %v20609_v52  ;;  %18702 = vmatprep.mubr.bf16.mxu0 %v3632_v47  ;;  %v20673_v52 = vld [vmem:[#allocation30 + $0x2c4] ss:$16 sps:$4 sm:$0xff]   ;;  %v20617_v47 = vld [vmem:[#allocation21 + $0x1b0] sm:$0xff]  }
 0x6d5   :  { %18700 = vmatprep.subr.bf16.mxu0 %v20610_v31  ;;  %5422 = vmatprep.subr.bf16.mxu1 %v20673_v52  ;;  %v4027_v52 = vld [vmem:[#allocation2 + $0x91] sm:$0xff] }
 0x6d6   :  { %5423 = vmatpush1.bf16.msra.mxu1 %v20671_v54  ;;  %v20630_v54 = vld [vmem:[#allocation21 + $0x218] sm:$0xff]  }
 0x6d8   :  { %18701 = vmatpush3.bf16.msra.mxu0 %v20610_v31  ;;  %v20679_v31 = vld [vmem:[#allocation30 + $0x2e4] ss:$16 sps:$4 sm:$0xff]  }
 0x6d9   :  { %18718 = vmatprep.subr.bf16.mxu0 %v20611_v6  ;;  %5424 = vmatprep.subr.bf16.mxu1 %v20679_v31 }
 0x6da   :  { %5425 = vmatpush1.bf16.msra.mxu1 %v20677_v59  ;;  %v4031_v59 = vld [vmem:[#allocation2 + $0xf1] sm:$0xff] }
 0x6db   :  { %18703 = vmatmul.mubr.bf16.vlgmr.msra.gmra.mrb[4].mxu0 %v3633_v25  ;;  %5426 = vmatprep.subr.bf16.mxu1 %v20685_v26  ;;  %v20620_v25 = vld [vmem:[#allocation21 + $0x1c8] sm:$0xff]   ;;  %v4032_v26 = vld [vmem:[#allocation2 + $0x101] sm:$0xff] }
 0x6dc   :  { %18719 = vmatpush3.bf16.msra.mxu0 %v20611_v6  ;;  %18706 = vmatprep.mubr.bf16.mxu0 %v3634_v18  ;;  %v20619_v6 = vld [vmem:[#allocation21 + $0x1c0] sm:$0xff]  }
 0x6dd   :  { %18720 = vmatprep.subr.bf16.mxu0 %v20612_v5 }
 0x6de   :  { %5427 = vmatpush1.bf16.msra.mxu1 %v20683_v33  ;;  %v4033_v33 = vld [vmem:[#allocation2 + $0x111] sm:$0xff] }
 0x6df   :  { %5428 = vmatprep.subr.bf16.mxu1 %v20691_v38  ;;  %v20632_v38 = vld [vmem:[#allocation21 + $0x228] sm:$0xff]  }
 0x6e0   :  { %18721 = vmatpush3.bf16.msra.mxu0 %v20612_v5  ;;  %v20621_v5 = vld [vmem:[#allocation21 + $0x1d0] sm:$0xff]  }
 0x6e1   :  { %18722 = vmatprep.subr.bf16.mxu0 %v20613_v16 }
 0x6e2   :  { %5429 = vmatpush1.bf16.msra.mxu1 %v20689_v4  ;;  %v20633_v4 = vld [vmem:[#allocation21 + $0x230] sm:$0xff]  }
 0x6e3   :  { %18707 = vmatmul.mubr.bf16.gmra.mrb[8].mxu0 %v3635_v32  ;;  %5430 = vmatprep.subr.bf16.mxu1 %v20697_v22  ;;  %v20627_v32 = vld [vmem:[#allocation21 + $0x200] sm:$0xff]  }
 0x6e4   :  { %18723 = vmatpush3.bf16.msra.mxu0 %v20613_v16  ;;  %18710 = vmatprep.mubr.bf16.mxu0 %v3636_v60  ;;  %v4020_v16 = vld [vmem:[#allocation2 + $0x21] sm:$0xff] }
 0x6e5   :  { %18724 = vmatprep.subr.bf16.mxu0 %v20614_v41  ;;  %v4022_v60 = vld [vmem:[#allocation2 + $0x41] sm:$0xff] }
 0x6e6   :  { %5431 = vmatpush1.bf16.msra.mxu1 %v20695_v51  ;;  %v4034_v22 = vld [vmem:[#allocation2 + $0x121] sm:$0xff] }
 0x6e8   :  { %18725 = vmatpush3.bf16.msra.mxu0 %v20614_v41  ;;  %v4023_v41 = vld [vmem:[#allocation2 + $0x51] sm:$0xff] }
 0x6e9   :  { %18726 = vmatprep.subr.bf16.mxu0 %v20615_v17 }
 0x6eb   :  { %18711 = vmatmul.mubr.bf16.gmra.mrb[12].mxu0 %v3637_v44  ;;  %v4028_v44 = vld [vmem:[#allocation2 + $0xc1] sm:$0xff] }
 0x6ec   :  { %18727 = vmatpush3.bf16.msra.mxu0 %v20615_v17  ;;  %18714 = vmatprep.mubr.bf16.mxu0 %v3638_v9  ;;  %v4029_v9 = vld [vmem:[#allocation2 + $0xd1] sm:$0xff] }
 0x6ed   :  { %18728 = vmatprep.subr.bf16.mxu0 %v20616_v39  ;;  %v4040_v31 = vpack.c.bf16 %v4029_v9, %v4028_v44  ;;  %v20707_v44 = vld [vmem:[#allocation30 + $0x380] ss:$16 sps:$4 sm:$0xff]   ;;  %v20710_v9 = vld [vmem:[#allocation30 + $0x388] ss:$16 sps:$4 sm:$0xff]  }
 0x6f0   :  { %18729 = vmatpush3.bf16.msra.mxu0 %v20616_v39  ;;  %v4039_v39 = vpack.c.bf16 %v4027_v52, %v4026_v34  ;;  %v20704_v34 = vld [vmem:[#allocation30 + $0x368] ss:$16 sps:$4 sm:$0xff]   ;;  %v20706_v52 = vld [vmem:[#allocation30 + $0x36c] ss:$16 sps:$4 sm:$0xff]  }
 0x6f1   :  { %18730 = vmatprep.subr.bf16.mxu0 %v20617_v47 }
 0x6f3   :  { %18715 = vmatmul.mubr.bf16.gmra.mrb[16].mxu0 %v3639_v27  ;;  %v4030_v27 = vld [vmem:[#allocation2 + $0xe1] sm:$0xff] }
 0x6f4   :  { %18731 = vmatpush3.bf16.msra.mxu0 %v20617_v47  ;;  %18734 = vmatprep.mubr.bf16.mxu0 %v23407_v61  ;;  %v21921_v61 = vld [vmem:[#allocation2] sm:$0xff]  ;;  %v20631_v47 = vld [vmem:[#allocation21 + $0x220] sm:$0xff]  }
 0x6f5   :  { %18732 = vmatprep.subr.bf16.mxu0 %v20618_v48  ;;  %v3837_v18 = vpack.c.bf16 %v21921_v61, %v23523_v23  ;;  %v3841_v23 = vpack.c.bf16 %v21921_v61, %v23533_v35  ;;  %v20629_v35 = vld [vmem:[#allocation21 + $0x210] sm:$0xff]  }
 0x6f6   :  { %v20640_v61 = vld [vmem:[#allocation30 + $0x20c] ss:$16 sps:$4 sm:$0xff]  }
 0x6f8   :  { %18733 = vmatpush3.bf16.msra.mxu0 %v20618_v48  ;;  %v4041_v48 = vpack.c.bf16 %v4031_v59, %v4030_v27  ;;  %v20716_v59 = vld [vmem:[#allocation30 + $0x3a8] ss:$16 sps:$4 sm:$0xff]  }
 0x6f9   :  { %18750 = vmatprep.subr.bf16.mxu0 %v20619_v6  ;;  %v4544_v27 = vld [vmem:[#allocation7] sm:$0xff] }
 0x6fb   :  { %18735 = vmatmul.mubr.bf16.vlgmr.msra.gmra.mrb[4].mxu0 %v23413_v55  ;;  %v20624_v55 = vld [vmem:[#allocation21 + $0x1e8] sm:$0xff]  }
 0x6fc   :  { %18751 = vmatpush3.bf16.msra.mxu0 %v20619_v6  ;;  %18738 = vmatprep.mubr.bf16.mxu0 %v23425_v57  ;;  %v20625_v57 = vld [vmem:[#allocation21 + $0x1f0] sm:$0xff]   ;;  %v4042_v6 = vpack.c.bf16 %v4033_v33, %v4032_v26 }
 0x6fd   :  { %18752 = vmatprep.subr.bf16.mxu0 %v20620_v25  ;;  %v20718_v26 = vld [vmem:[#allocation30 + $0x3ac] ss:$16 sps:$4 sm:$0xff]   ;;  %v20719_v33 = vld [vmem:[#allocation30 + $0x3c0] ss:$16 sps:$4 sm:$0xff]  }
 0x700   :  { %18753 = vmatpush3.bf16.msra.mxu0 %v20620_v25  ;;  %v4035_v25 = vld [vmem:[#allocation2 + $0x131] sm:$0xff] }
 0x701   :  { %18754 = vmatprep.subr.bf16.mxu0 %v20621_v5  ;;  %v4043_v51 = vpack.c.bf16 %v4035_v25, %v4034_v22  ;;  %v20725_v22 = vld [vmem:[#allocation30 + $0x3e0] ss:$16 sps:$4 sm:$0xff]   ;;  %v20727_v25 = vld [vmem:[#allocation30 + $0x3e4] ss:$16 sps:$4 sm:$0xff]  }
 0x703   :  { %18739 = vmatmul.mubr.bf16.gmra.mrb[8].mxu0 %v3837_v18  ;;  %v20638_v18 = vld [vmem:[#allocation30 + $0x208] ss:$16 sps:$4 sm:$0xff]  }
 0x704   :  { %18755 = vmatpush3.bf16.msra.mxu0 %v20621_v5  ;;  %18742 = vmatprep.mubr.bf16.mxu0 %v23438_v53  ;;  %v4036_v53 = vpack.c.bf16 %v4021_v21, %v4020_v16  ;;  %v20634_v5 = vld [vmem:[#allocation21 + $0x238] sm:$0xff]  }
 0x705   :  { %18756 = vmatprep.subr.bf16.mxu0 %v20622_v0  ;;  %v20650_v16 = vld [vmem:[#allocation30 + $0x248] ss:$16 sps:$4 sm:$0xff]  }
 0x706   :  { %v20656_v21 = vld [vmem:[#allocation30 + $0x268] ss:$16 sps:$4 sm:$0xff]  }
 0x708   :  { %18757 = vmatpush3.bf16.msra.mxu0 %v20622_v0  ;;  %v20646_v0 = vld [vmem:[#allocation30 + $0x22c] ss:$16 sps:$4 sm:$0xff]  }
 0x709   :  { %18758 = vmatprep.subr.bf16.mxu0 %v20623_v20 }
 0x70b   :  { %18743 = vmatmul.mubr.bf16.gmra.mrb[12].mxu0 %v23444_v15  ;;  %v4024_v15 = vld [vmem:[#allocation2 + $0x61] sm:$0xff] }
 0x70c   :  { %18759 = vmatpush3.bf16.msra.mxu0 %v20623_v20  ;;  %18746 = vmatprep.mubr.bf16.mxu0 %v23456_v7  ;;  %v4037_v7 = vpack.c.bf16 %v4023_v41, %v4022_v60  ;;  %v4038_v17 = vpack.c.bf16 %v4025_v3, %v4024_v15  ;;  %v20644_v20 = vld [vmem:[#allocation30 + $0x228] ss:$16 sps:$4 sm:$0xff]   ;;  %v20682_v15 = vld [vmem:[#allocation30 + $0x2ec] ss:$16 sps:$4 sm:$0xff]  }
 0x70d   :  { %18760 = vmatprep.subr.bf16.mxu0 %v20624_v55  ;;  %v20674_v41 = vld [vmem:[#allocation30 + $0x2c8] ss:$16 sps:$4 sm:$0xff]  }
 0x70e   :  { %v20680_v60 = vld [vmem:[#allocation30 + $0x2e8] ss:$16 sps:$4 sm:$0xff]  }
 0x70f   :  { %v20692_v3 = vld [vmem:[#allocation30 + $0x328] ss:$16 sps:$4 sm:$0xff]  }
 0x710   :  { %18761 = vmatpush3.bf16.msra.mxu0 %v20624_v55  ;;  %v20652_v55 = vld [vmem:[#allocation30 + $0x24c] ss:$16 sps:$4 sm:$0xff]  }
 0x711   :  { %18762 = vmatprep.subr.bf16.mxu0 %v20625_v57 }
 0x713   :  { %18747 = vmatmul.mubr.bf16.gmra.mrb[16].mxu0 %v3841_v23 }
 0x714   :  { %18763 = vmatpush3.bf16.msra.mxu0 %v20625_v57  ;;  %18766 = vmatprep.mubr.bf16.mxu0 %v4036_v53  ;;  %v4229_v57 = vld [vmem:[#allocation2 + $0x92] sm:$0xff] }
 0x715   :  { %18764 = vmatprep.subr.bf16.mxu0 %v20626_v14  ;;  %v4241_v23 = vpack.c.bf16 %v4229_v57, %v23559_v19  ;;  %v20668_v53 = vld [vmem:[#allocation30 + $0x2a8] ss:$16 sps:$4 sm:$0xff]   ;;  %v20676_v19 = vld [vmem:[#allocation30 + $0x2cc] ss:$16 sps:$4 sm:$0xff]  }
 0x718   :  { %18765 = vmatpush3.bf16.msra.mxu0 %v20626_v14  ;;  %v20670_v14 = vld [vmem:[#allocation30 + $0x2ac] ss:$16 sps:$4 sm:$0xff]  }
 0x719   :  { %18782 = vmatprep.subr.bf16.mxu0 %v20627_v32 }
 0x71b   :  { %18767 = vmatmul.mubr.bf16.vlgmr.msra.gmra.mrb[4].mxu0 %v4037_v7  ;;  %v20688_v7 = vld [vmem:[#allocation30 + $0x30c] ss:$16 sps:$4 sm:$0xff]  }
 0x71c   :  { %18783 = vmatpush3.bf16.msra.mxu0 %v20627_v32  ;;  %18770 = vmatprep.mubr.bf16.mxu0 %v4038_v17  ;;  %v4237_v32 = vld [vmem:[#allocation2 + $0x132] sm:$0xff] }
 0x71d   :  { %18784 = vmatprep.subr.bf16.mxu0 %v20628_v50  ;;  %v20698_v17 = vld [vmem:[#allocation30 + $0x348] ss:$16 sps:$4 sm:$0xff]  }
 0x720   :  { %18785 = vmatpush3.bf16.msra.mxu0 %v20628_v50  ;;  %v20700_v50 = vld [vmem:[#allocation30 + $0x34c] ss:$16 sps:$4 sm:$0xff]  }
 0x721   :  { %18786 = vmatprep.subr.bf16.mxu0 %v20629_v35 }
 0x723   :  { %18771 = vmatmul.mubr.bf16.gmra.mrb[8].mxu0 %v4039_v39  ;;  %v20709_v39 = vld [vmem:[#allocation30 + $0x384] ss:$16 sps:$4 sm:$0xff]  }
 0x724   :  { %18787 = vmatpush3.bf16.msra.mxu0 %v20629_v35  ;;  %18774 = vmatprep.mubr.bf16.mxu0 %v4040_v31  ;;  %v20703_v35 = vld [vmem:[#allocation30 + $0x364] ss:$16 sps:$4 sm:$0xff]   ;;  %v20713_v31 = vld [vmem:[#allocation30 + $0x3a0] ss:$16 sps:$4 sm:$0xff]  }
 0x725   :  { %18788 = vmatprep.subr.bf16.mxu0 %v20630_v54  ;;  %5432 = vmatprep.subr.bf16.mxu1 %v20703_v35  ;;  %v4553_v35 = vld [vmem:[#allocation7 + $0x48] sm:$0xff] }
 0x728   :  { %18789 = vmatpush3.bf16.msra.mxu0 %v20630_v54  ;;  %v20712_v54 = vld [vmem:[#allocation30 + $0x38c] ss:$16 sps:$4 sm:$0xff]  }
 0x729   :  { %18790 = vmatprep.subr.bf16.mxu0 %v20631_v47 }
 0x72b   :  { %18775 = vmatmul.mubr.bf16.gmra.mrb[12].mxu0 %v4041_v48  ;;  %v4576_v48 = vrot.slane %v4544_v27, 7 }
 0x72c   :  { %18791 = vmatpush3.bf16.msra.mxu0 %v20631_v47  ;;  %18778 = vmatprep.mubr.bf16.mxu0 %v4042_v6  ;;  %v20715_v47 = vld [vmem:[#allocation30 + $0x3a4] ss:$16 sps:$4 sm:$0xff]   ;;  %v20722_v6 = vld [vmem:[#allocation30 + $0x3c8] ss:$16 sps:$4 sm:$0xff]  }
 0x72d   :  { %18792 = vmatprep.subr.bf16.mxu0 %v20632_v38  ;;  %4608 = vst [vmem:[#allocation3 + $0x28] sm:$0xfe] %v4576_v48  ;;  %4609 = vst [vmem:[#allocation3 + $0x38] sm:$0x1] %v4576_v48  ;;  %v23591_v48 = vld [vmem:[#allocation22] ss:$0 sm:$0xff] }
 0x730   :  { %18793 = vmatpush3.bf16.msra.mxu0 %v20632_v38  ;;  %v20721_v38 = vld [vmem:[#allocation30 + $0x3c4] ss:$16 sps:$4 sm:$0xff]  }
 0x731   :  { %18794 = vmatprep.subr.bf16.mxu0 %v20633_v4 }
 0x733   :  { %18779 = vmatmul.mubr.bf16.gmra.mrb[16].mxu0 %v4043_v51  ;;  %v20728_v51 = vld [vmem:[#allocation30 + $0x3e8] ss:$16 sps:$4 sm:$0xff]  }
 0x734   :  { %18795 = vmatpush3.bf16.msra.mxu0 %v20633_v4  ;;  %18798 = vmatprep.mubr.bf16.mxu0 %v23468_v43  ;;  %v20658_v43 = vld [vmem:[#allocation30 + $0x26c] ss:$16 sps:$4 sm:$0xff]  }
 0x735   :  { %18796 = vmatprep.subr.bf16.mxu0 %v20634_v5  ;;  %v20724_v4 = vld [vmem:[#allocation30 + $0x3cc] ss:$16 sps:$4 sm:$0xff]  }
 0x736   :  { %v4757_v57 = vld [vmem:[#allocation3 + $0x28] sm:$0xfe] }
 0x738   :  { %18797 = vmatpush3.bf16.msra.mxu0 %v20634_v5  ;;  %v20730_v5 = vld [vmem:[#allocation30 + $0x3ec] ss:$16 sps:$4 sm:$0xff]  }
 0x739   :  { %5523 = vmatprep.subr.bf16.mxu0 %v20640_v61  ;;  %v4545_v61 = vld [vmem:[#allocation7 + $0x8] sm:$0xff] }
 0x73b   :  { %18799 = vmatmul.mubr.bf16.vlgmr.msra.gmra.mrb[4].mxu0 %v23474_v62  ;;  %v20664_v62 = vld [vmem:[#allocation30 + $0x28c] ss:$16 sps:$4 sm:$0xff]  }
 0x73c   :  { %18802 = vmatprep.mubr.bf16.mxu0 %v23486_v46  ;;  %5524 = vmatpush1.bf16.msra.mxu0 %v20638_v18  ;;  %v20662_v46 = vld [vmem:[#allocation30 + $0x288] ss:$16 sps:$4 sm:$0xff]  }
 0x73d   :  { %5525 = vmatprep.subr.bf16.mxu0 %v20646_v0  ;;  %v4546_v18 = vld [vmem:[#allocation7 + $0x10] sm:$0xff]  ;;  %v4577_v0 = vrot.slane %v4545_v61, 7 }
 0x73f   :  { %4610 = vst [vmem:[#allocation3 + $0x48] sm:$0xfe] %v4577_v0  ;;  %4611 = vst [vmem:[#allocation3 + $0x58] sm:$0x1] %v4577_v0 }
 0x740   :  { %5526 = vmatpush1.bf16.msra.mxu0 %v20644_v20  ;;  %v4753_v20 = vld [vmem:[#allocation3 + $0x8] sm:$0xfe] }
 0x741   :  { %5527 = vmatprep.subr.bf16.mxu0 %v20652_v55  ;;  %v4755_v55 = vld [vmem:[#allocation3 + $0x18] sm:$0x1] }
 0x743   :  { %18803 = vmatmul.mubr.bf16.gmra.mrb[8].mxu0 %v4241_v23  ;;  %v4884_v23 = vrot.slane %v4753_v20, 1 }
 0x744   :  { %18806 = vmatprep.mubr.bf16.mxu0 %v23498_v30  ;;  %5528 = vmatpush1.bf16.msra.mxu0 %v20650_v16  ;;  %v4245_v30 = vpack.c.bf16 %v4237_v32, %v23569_v45  ;;  %v20701_v45 = vld [vmem:[#allocation30 + $0x360] ss:$16 sps:$4 sm:$0xff]   ;;  %v4759_v16 = vld [vmem:[#allocation3 + $0x38] sm:$0x1]  ;;  %v20736_v32 = vld [vmem:[#allocation30 + $0xc] ss:$16 sps:$4 sm:$0xff]  }
 0x745   :  { %5529 = vmatprep.subr.bf16.mxu0 %v20658_v43  ;;  %5433 = vmatpush1.bf16.msra.mxu1 %v20701_v45  ;;  %v4885_v43 = vrot.slane %v4755_v55, 1 }
 0x746   :  { %5434 = vmatprep.subr.bf16.mxu1 %v20709_v39  ;;  %v4555_v39 = vld [vmem:[#allocation7 + $0x58] sm:$0xff] }
 0x748   :  { %5530 = vmatpush1.bf16.msra.mxu0 %v20656_v21  ;;  %v4890_v21 = vrot.slane %v4757_v57, 1 }
 0x749   :  { %5531 = vmatprep.subr.bf16.mxu0 %v20664_v62  ;;  %5435 = vmatpush1.bf16.msra.mxu1 %v20707_v44  ;;  %v4891_v62 = vrot.slane %v4759_v16, 1  ;;  %v4752_v16 = vld [vmem:[#allocation3] sm:$0xfe] }
 0x74a   :  { %5436 = vmatprep.subr.bf16.mxu1 %v20715_v47  ;;  %v4557_v47 = vld [vmem:[#allocation7 + $0x68] sm:$0xff] }
 0x74b   :  { %18807 = vmatmul.mubr.bf16.gmra.mrb[12].mxu0 %v23504_v29  ;;  %v20686_v29 = vld [vmem:[#allocation30 + $0x308] ss:$16 sps:$4 sm:$0xff]  }
 0x74c   :  { %18810 = vmatprep.mubr.bf16.mxu0 %v23514_v58  ;;  %5532 = vmatpush1.bf16.msra.mxu0 %v20662_v46  ;;  %v20694_v58 = vld [vmem:[#allocation30 + $0x32c] ss:$16 sps:$4 sm:$0xff]   ;;  %v20733_v46 = vld [vmem:[#allocation30 + $0x4] ss:$16 sps:$4 sm:$0xff]  }
 0x74d   :  { %5533 = vmatprep.subr.bf16.mxu0 %v20670_v14  ;;  %5437 = vmatpush1.bf16.msra.mxu1 %v20713_v31  ;;  %v4578_v14 = vrot.slane %v4546_v18, 7 }
 0x74e   :  { %5438 = vmatprep.subr.bf16.mxu1 %v20721_v38 }
 0x74f   :  { %4612 = vst [vmem:[#allocation3 + $0x68] sm:$0xfe] %v4578_v14  ;;  %4613 = vst [vmem:[#allocation3 + $0x78] sm:$0x1] %v4578_v14 }
 0x750   :  { %5534 = vmatpush1.bf16.msra.mxu0 %v20668_v53  ;;  %v4886_v53 = vsel %vm4880_vm3, %v4884_v23, %v4885_v43  ;;  %v4754_v23 = vld [vmem:[#allocation3 + $0x10] sm:$0x1] }
 0x751   :  { %5535 = vmatprep.subr.bf16.mxu0 %v20676_v19  ;;  %5439 = vmatpush1.bf16.msra.mxu1 %v20719_v33  ;;  %v4892_v19 = vsel %vm4880_vm3, %v4890_v21, %v4891_v62  ;;  %v4761_v21 = vld [vmem:[#allocation3 + $0x48] sm:$0xfe]  ;;  %v4763_v62 = vld [vmem:[#allocation3 + $0x58] sm:$0x1] }
 0x752   :  { %5440 = vmatprep.subr.bf16.mxu1 %v20727_v25 }
 0x753   :  { %18811 = vmatmul.mubr.bf16.gmra.mrb[16].mxu0 %v4245_v30  ;;  %v4547_v30 = vld [vmem:[#allocation7 + $0x18] sm:$0xff] }
 0x754   :  { %5536 = vmatpush1.bf16.msra.mxu0 %v20674_v41  ;;  %v5010_v41 = vpack.c.bf16 %v4892_v19, %v4886_v53 }
 0x755   :  { %5537 = vmatprep.subr.bf16.mxu0 %v20682_v15  ;;  %5441 = vmatpush1.bf16.msra.mxu1 %v20725_v22  ;;  %v4579_v15 = vrot.slane %v4547_v30, 7  ;;  %v4881_v30 = vrot.slane %v4752_v16, 1 }
 0x756   :  { %5956 = vmatprep.subr.bf16.mxu1 %v20733_v46  ;;  %5442 = vmatprep.mubr.bf16.mxu1 %v5010_v41  ;;  %v4765_v53 = vld [vmem:[#allocation3 + $0x68] sm:$0xfe]  ;;  %v4767_v19 = vld [vmem:[#allocation3 + $0x78] sm:$0x1] }
 0x757   :  { %5555 = vmatprep.mubr.bf16.mxu0 %v5010_v41  ;;  %4614 = vst [vmem:[#allocation3 + $0x88] sm:$0xfe] %v4579_v15  ;;  %4615 = vst [vmem:[#allocation3 + $0x98] sm:$0x1] %v4579_v15 }
 0x758   :  { %5538 = vmatpush1.bf16.msra.mxu0 %v20680_v60  ;;  %v4548_v60 = vld [vmem:[#allocation7 + $0x20] sm:$0xff] }
 0x759   :  { %5539 = vmatprep.subr.bf16.mxu0 %v20688_v7  ;;  %v4580_v7 = vrot.slane %v4548_v60, 7 }
 0x75b   :  { %4616 = vst [vmem:[#allocation3 + $0xa8] sm:$0xfe] %v4580_v7  ;;  %4617 = vst [vmem:[#allocation3 + $0xb8] sm:$0x1] %v4580_v7  ;;  %v4882_v7 = vrot.slane %v4754_v23, 1 }
 0x75c   :  { %5540 = vmatpush1.bf16.msra.mxu0 %v20686_v29  ;;  %v4549_v29 = vld [vmem:[#allocation7 + $0x28] sm:$0xff] }
 0x75d   :  { %5541 = vmatprep.subr.bf16.mxu0 %v20694_v58  ;;  %v4550_v58 = vld [vmem:[#allocation7 + $0x30] sm:$0xff] }
 0x75e   :  { %v20731_v23 = vld [vmem:[#allocation30] ss:$16 sps:$4 sm:$0xff]  }
 0x760   :  { %5542 = vmatpush1.bf16.msra.mxu0 %v20692_v3  ;;  %v4581_v3 = vrot.slane %v4549_v29, 7  ;;  %v4896_v29 = vrot.slane %v4761_v21, 1 }
 0x761   :  { %5543 = vmatprep.subr.bf16.mxu0 %v20700_v50  ;;  %v4582_v50 = vrot.slane %v4550_v58, 7  ;;  %v4897_v58 = vrot.slane %v4763_v62, 1  ;;  %v20734_v62 = vld [vmem:[#allocation30 + $0x8] ss:$16 sps:$4 sm:$0xff]  }
 0x762   :  { %4618 = vst [vmem:[#allocation3 + $0xc8] sm:$0xfe] %v4581_v3  ;;  %4619 = vst [vmem:[#allocation3 + $0xd8] sm:$0x1] %v4581_v3 }
 0x763   :  { %4620 = vst [vmem:[#allocation3 + $0xe8] sm:$0xfe] %v4582_v50  ;;  %4621 = vst [vmem:[#allocation3 + $0xf8] sm:$0x1] %v4582_v50 }
 0x764   :  { %5544 = vmatpush1.bf16.msra.mxu0 %v20698_v17  ;;  %v4552_v17 = vld [vmem:[#allocation7 + $0x40] sm:$0xff] }
 0x765   :  { %5545 = vmatprep.subr.bf16.mxu0 %v20706_v52  ;;  %v4584_v45 = vrot.slane %v4552_v17, 7  ;;  %v4585_v52 = vrot.slane %v4553_v35, 7  ;;  %v4903_v35 = vrot.slane %v4767_v19, 1  ;;  %v20739_v19 = vld [vmem:[#allocation30 + $0x24] ss:$16 sps:$4 sm:$0xff]  }
 0x767   :  { %4624 = vst [vmem:[#allocation3 + $0x168] sm:$0xfe] %v4584_v45  ;;  %4625 = vst [vmem:[#allocation3 + $0x178] sm:$0x1] %v4584_v45  ;;  %v4902_v45 = vrot.slane %v4765_v53, 1 }
 0x768   :  { %5546 = vmatpush1.bf16.msra.mxu0 %v20704_v34  ;;  %v4554_v34 = vld [vmem:[#allocation7 + $0x50] sm:$0xff]  ;;  %4626 = vst [vmem:[#allocation3 + $0x188] sm:$0xfe] %v4585_v52  ;;  %4627 = vst [vmem:[#allocation3 + $0x198] sm:$0x1] %v4585_v52 }
 0x769   :  { %5547 = vmatprep.subr.bf16.mxu0 %v20712_v54  ;;  %v4586_v44 = vrot.slane %v4554_v34, 7  ;;  %v4587_v54 = vrot.slane %v4555_v39, 7 }
 0x76b   :  { %4628 = vst [vmem:[#allocation3 + $0x1a8] sm:$0xfe] %v4586_v44  ;;  %4629 = vst [vmem:[#allocation3 + $0x1b8] sm:$0x1] %v4586_v44 }
 0x76c   :  { %5548 = vmatpush1.bf16.msra.mxu0 %v20710_v9  ;;  %v4556_v9 = vld [vmem:[#allocation7 + $0x60] sm:$0xff]  ;;  %4630 = vst [vmem:[#allocation3 + $0x1c8] sm:$0xfe] %v4587_v54  ;;  %4631 = vst [vmem:[#allocation3 + $0x1d8] sm:$0x1] %v4587_v54 }
 0x76d   :  { %5549 = vmatprep.subr.bf16.mxu0 %v20718_v26  ;;  %v4588_v31 = vrot.slane %v4556_v9, 7  ;;  %v4589_v26 = vrot.slane %v4557_v47, 7  ;;  %v23634_v9 = vld [vmem:[#allocation3 + $0x88] sm:$0xfe]  ;;  %v23636_v54 = vld [vmem:[#allocation3 + $0x98] sm:$0x1] }
 0x76f   :  { %4632 = vst [vmem:[#allocation3 + $0x1e8] sm:$0xfe] %v4588_v31  ;;  %4633 = vst [vmem:[#allocation3 + $0x1f8] sm:$0x1] %v4588_v31 }
 0x770   :  { %5550 = vmatpush1.bf16.msra.mxu0 %v20716_v59  ;;  %v4558_v59 = vld [vmem:[#allocation7 + $0x70] sm:$0xff]  ;;  %4634 = vst [vmem:[#allocation3 + $0x208] sm:$0xfe] %v4589_v26  ;;  %4635 = vst [vmem:[#allocation3 + $0x218] sm:$0x1] %v4589_v26 }
 0x771   :  { %5551 = vmatprep.subr.bf16.mxu0 %v20724_v4  ;;  %v4590_v27 = vrot.slane %v4558_v59, 7  ;;  %v23641_v59 = vld [vmem:[#allocation3 + $0xa8] sm:$0xfe]  ;;  %v23643_v26 = vld [vmem:[#allocation3 + $0xb8] sm:$0x1] }
 0x773   :  { %4636 = vst [vmem:[#allocation3 + $0x228] sm:$0xfe] %v4590_v27  ;;  %4637 = vst [vmem:[#allocation3 + $0x238] sm:$0x1] %v4590_v27 }
 0x774   :  { %5552 = vmatpush1.bf16.msra.mxu0 %v20722_v6 }
 0x775   :  { %5553 = vmatprep.subr.bf16.mxu0 %v20730_v5 }
 0x778   :  { %5554 = vmatpush1.bf16.msra.mxu0 %v20728_v51 }
 0x779   :  { %6069 = vmatprep.subr.bf16.mxu0 %v20736_v32 }
 0x80e   :  { %v18800_v33 = vpop.f32.mrb[4].mxu0 }
 0x80f   :  { %v23594_v38 = vadd.f32 %v18800_v33, %v23591_v48  ;;  %v4345_v6 = vpop.f32.mrb[5].mxu0 }
 0x810   :  { %v23597_v4 = vadd.f32 %v23591_v48, %v4345_v6  ;;  %v18801_v22 = vpop.f32.mrb[6].mxu0 }
 0x811   :  { %v24936_v25 = vmax.f32 %v23594_v38, 0.0  ;;  %v23601_v51 = vadd.f32 %v18801_v22, %v23591_v48  ;;  %v4348_v5 = vpop.f32.mrb[7].mxu0  ;;  %v4883_v22 = vsel %vm4880_vm3, %v4881_v30, %v4882_v7 }
 0x812   :  { %v24938_v61 = vmax.f32 %v23597_v4, 0.0  ;;  %v23605_v18 = vadd.f32 %v23591_v48, %v4348_v5  ;;  %v4898_v5 = vsel %vm4880_vm3, %v4896_v29, %v4897_v58  ;;  %v25028_v24 = vmax.f32 %v23597_v4, 0.0 }
 0x813   :  { %v4481_v0 = vrot.slane %v24936_v25, 7  ;;  %v24935_v20 = vmax.f32 %v23601_v51, 0.0 }
 0x814   :  { %v4479_v55 = vrot.slane %v24938_v61, 7  ;;  %v24937_v57 = vmax.f32 %v23605_v18, 0.0 }
 0x815   :  { %4516 = vst [vmem:[#allocation3 + $0x60] sm:$0xfe] %v4481_v0  ;;  %4517 = vst [vmem:[#allocation3 + $0x70] sm:$0x1] %v4481_v0  ;;  %v4482_v43 = vrot.slane %v24935_v20, 7  ;;  %v4904_v0 = vsel %vm4880_vm3, %v4902_v45, %v4903_v35  ;;  %v4914_v45 = vrot.slane %v23641_v59, 1 }
 0x816   :  { %4512 = vst [vmem:[#allocation3 + $0x20] sm:$0xfe] %v4479_v55  ;;  %4513 = vst [vmem:[#allocation3 + $0x30] sm:$0x1] %v4479_v55  ;;  %v4480_v46 = vrot.slane %v24937_v57, 7  ;;  %v18804_v14 = vpop.f32.mrb[8].mxu0 }
 0x817   :  { %4518 = vst [vmem:[#allocation3 + $0x80] sm:$0xfe] %v4482_v43  ;;  %4519 = vst [vmem:[#allocation3 + $0x90] sm:$0x1] %v4482_v43  ;;  %v23618_v32 = vadd.f32 %v18804_v14, %v23591_v48  ;;  %v4361_v41 = vpop.f32.mrb[9].mxu0  ;;  %v4915_v35 = vrot.slane %v23643_v26, 1 }
 0x818   :  { %4514 = vst [vmem:[#allocation3 + $0x40] sm:$0xfe] %v4480_v46  ;;  %4515 = vst [vmem:[#allocation3 + $0x50] sm:$0x1] %v4480_v46  ;;  %v23621_v15 = vadd.f32 %v23591_v48, %v4361_v41  ;;  %v18805_v60 = vpop.f32.mrb[10].mxu0  ;;  %v4908_v46 = vrot.slane %v23634_v9, 1 }
 0x819   :  { %v24928_v3 = vmax.f32 %v23618_v32, 0.0  ;;  %v23625_v50 = vadd.f32 %v18805_v60, %v23591_v48  ;;  %v4364_v17 = vpop.f32.mrb[11].mxu0  ;;  %v4909_v60 = vrot.slane %v23636_v54, 1 }
 0x81a   :  { %v24930_v34 = vmax.f32 %v23621_v15, 0.0  ;;  %v23629_v52 = vadd.f32 %v23591_v48, %v4364_v17  ;;  %v20742_v17 = vld [vmem:[#allocation30 + $0x2c] ss:$16 sps:$4 sm:$0xff]  }
 0x81b   :  { %v4485_v44 = vrot.slane %v24928_v3, 7  ;;  %v24927_v39 = vmax.f32 %v23625_v50, 0.0 }
 0x81c   :  { %v4483_v31 = vrot.slane %v24930_v34, 7  ;;  %v24929_v47 = vmax.f32 %v23629_v52, 0.0 }
 0x81d   :  { %4524 = vst [vmem:[#allocation3 + $0xe0] sm:$0xfe] %v4485_v44  ;;  %4525 = vst [vmem:[#allocation3 + $0xf0] sm:$0x1] %v4485_v44  ;;  %v4486_v27 = vrot.slane %v24927_v39, 7 }
 0x81e   :  { %v4756_v33 = vld [vmem:[#allocation3 + $0x20] sm:$0xfe]  ;;  %v4758_v6 = vld [vmem:[#allocation3 + $0x30] sm:$0x1]  ;;  %4520 = vst [vmem:[#allocation3 + $0xa0] sm:$0xfe] %v4483_v31 }
 0x81f   :  { %4521 = vst [vmem:[#allocation3 + $0xb0] sm:$0x1] %v4483_v31  ;;  %v4484_v55 = vrot.slane %v24929_v47, 7  ;;  %v18808_v16 = vpop.f32.mrb[12].mxu0  ;;  %v4887_v43 = vrot.slane %v4756_v33, 1  ;;  %v4888_v21 = vrot.slane %v4758_v6, 1 }
 0x820   :  { %4526 = vst [vmem:[#allocation3 + $0x100] sm:$0xfe] %v4486_v27  ;;  %4527 = vst [vmem:[#allocation3 + $0x110] sm:$0x1] %v4486_v27  ;;  %v23654_v14 = vadd.f32 %v18808_v16, %v23591_v48  ;;  %v4377_v53 = vpop.f32.mrb[13].mxu0  ;;  %v5012_v27 = vpack.c.bf16 %v4904_v0, %v4898_v5 }
 0x821   :  { %v4760_v41 = vld [vmem:[#allocation3 + $0x40] sm:$0xfe]  ;;  %v4762_v30 = vld [vmem:[#allocation3 + $0x50] sm:$0x1]  ;;  %4522 = vst [vmem:[#allocation3 + $0xc0] sm:$0xfe] %v4484_v55  ;;  %v23658_v7 = vadd.f32 %v23591_v48, %v4377_v53  ;;  %v4889_v58 = vsel %vm4880_vm3, %v4887_v43, %v4888_v21 }
 0x822   :  { %4523 = vst [vmem:[#allocation3 + $0xd0] sm:$0x1] %v4484_v55  ;;  %v18809_v29 = vpop.f32.mrb[14].mxu0  ;;  %v24923_v44 = vmax.f32 %v23654_v14, 0.0  ;;  %v5009_v54 = vpack.c.bf16 %v4889_v58, %v4883_v22  ;;  %v4764_v33 = vld [vmem:[#allocation3 + $0x60] sm:$0xfe] }
 0x823   :  { %v23665_v9 = vadd.f32 %v18809_v29, %v23591_v48  ;;  %v4380_v31 = vpop.f32.mrb[15].mxu0  ;;  %v4766_v6 = vld [vmem:[#allocation3 + $0x70] sm:$0x1]  ;;  %v24925_v55 = vmax.f32 %v23658_v7, 0.0  ;;  %v4893_v21 = vrot.slane %v4760_v41, 1  ;;  %v4894_v59 = vrot.slane %v4762_v30, 1 }
 0x824   :  { %v23669_v16 = vadd.f32 %v23591_v48, %v4380_v31  ;;  %v20737_v43 = vld [vmem:[#allocation30 + $0x20] ss:$16 sps:$4 sm:$0xff]   ;;  %v4489_v26 = vrot.slane %v24923_v44, 7  ;;  %5443 = vmatmul.mubr.bf16.vlgmr.msra.gmra.mrb[20].mxu1 %v5009_v54  ;;  %5556 = vmatmul.mubr.bf16.vlgmr.msra.gmra.mrb[20].mxu0 %v5009_v54  ;;  %v20740_v29 = vld [vmem:[#allocation30 + $0x28] ss:$16 sps:$4 sm:$0xff]   ;;  %v4899_v58 = vrot.slane %v4764_v33, 1 }
 0x825   :  { %v24924_v53 = vmax.f32 %v23665_v9, 0.0  ;;  %v20745_v22 = vld [vmem:[#allocation30 + $0x44] ss:$16 sps:$4 sm:$0xff]   ;;  %v4487_v5 = vrot.slane %v24925_v55, 7  ;;  %5957 = vmatpush1.bf16.msra.mxu1 %v20731_v23  ;;  %6070 = vmatpush1.bf16.msra.mxu0 %v20734_v62  ;;  %v4900_v31 = vrot.slane %v4766_v6, 1  ;;  %v4895_v6 = vsel %vm4880_vm3, %v4893_v21, %v4894_v59 }
 0x826   :  { %v24926_v0 = vmax.f32 %v23669_v16, 0.0  ;;  %v20748_v41 = vld [vmem:[#allocation30 + $0x4c] ss:$16 sps:$4 sm:$0xff]   ;;  %4532 = vst [vmem:[#allocation3 + $0x1a0] sm:$0xfe] %v4489_v26  ;;  %5958 = vmatprep.subr.bf16.mxu1 %v20739_v19  ;;  %6071 = vmatprep.subr.bf16.mxu0 %v20742_v17  ;;  %v18812_v62 = vpop.f32.mrb[16].mxu0  ;;  %v4916_v19 = vsel %vm4880_vm3, %v4914_v45, %v4915_v35 }
 0x827   :  { %4533 = vst [vmem:[#allocation3 + $0x1b0] sm:$0x1] %v4489_v26  ;;  %v4490_v30 = vrot.slane %v24924_v53, 7  ;;  %v23679_v54 = vld [vmem:[#allocation3 + $0xc8] sm:$0xfe]  ;;  %5452 = vmatprep.mubr.bf16.mxu1 %v5012_v27  ;;  %5565 = vmatprep.mubr.bf16.mxu0 %v5012_v27  ;;  %v4910_v53 = vsel %vm4880_vm3, %v4908_v46, %v4909_v60  ;;  %v4393_v55 = vpop.f32.mrb[17].mxu0  ;;  %v4901_v60 = vsel %vm4880_vm3, %v4899_v58, %v4900_v31 }
 0x828   :  { %v23681_v44 = vld [vmem:[#allocation3 + $0xd8] sm:$0x1]  ;;  %4528 = vst [vmem:[#allocation3 + $0x160] sm:$0xfe] %v4487_v5  ;;  %4529 = vst [vmem:[#allocation3 + $0x170] sm:$0x1] %v4487_v5  ;;  %v23691_v5 = vadd.f32 %v18812_v62, %v23591_v48  ;;  %v23694_v21 = vadd.f32 %v23591_v48, %v4393_v55  ;;  %v5014_v55 = vpack.c.bf16 %v4916_v19, %v4910_v53 }
 0x829   :  { %v4488_v23 = vrot.slane %v24926_v0, 7  ;;  %v20743_v33 = vld [vmem:[#allocation30 + $0x40] ss:$16 sps:$4 sm:$0xff]   ;;  %v20746_v26 = vld [vmem:[#allocation30 + $0x48] ss:$16 sps:$4 sm:$0xff]   ;;  %5959 = vmatpush1.bf16.msra.mxu1 %v20737_v43  ;;  %v18813_v46 = vpop.f32.mrb[18].mxu0  ;;  %6072 = vmatpush1.bf16.msra.mxu0 %v20740_v29 }
 0x82a   :  { %v23688_v17 = vld [vmem:[#allocation3 + $0xe8] sm:$0xfe]  ;;  %4534 = vst [vmem:[#allocation3 + $0x1c0] sm:$0xfe] %v4490_v30  ;;  %4535 = vst [vmem:[#allocation3 + $0x1d0] sm:$0x1] %v4490_v30  ;;  %v23701_v62 = vadd.f32 %v18813_v46, %v23591_v48  ;;  %5960 = vmatprep.subr.bf16.mxu1 %v20745_v22  ;;  %6073 = vmatprep.subr.bf16.mxu0 %v20748_v41 }
 0x82b   :  { %25022 = vst [vmem:[#allocation67_spill] sm:$0xff] %v23691_v5  ;;  %v20751_v0 = vld [vmem:[#allocation30 + $0x64] ss:$16 sps:$4 sm:$0xff]   ;;  %v20754_v39 = vld [vmem:[#allocation30 + $0x6c] ss:$16 sps:$4 sm:$0xff]   ;;  %25023 = vst [vmem:[#allocation68_spill] sm:$0xff] %v23694_v21 }
 0x82c   :  { %v4772_v3 = vld [vmem:[#allocation3 + $0xa0] sm:$0xfe]  ;;  %v4774_v27 = vld [vmem:[#allocation3 + $0xb0] sm:$0x1]  ;;  %4530 = vst [vmem:[#allocation3 + $0x180] sm:$0xfe] %v4488_v23 }
 0x82d   :  { %4531 = vst [vmem:[#allocation3 + $0x190] sm:$0x1] %v4488_v23  ;;  %v4783_v45 = vld [vmem:[#allocation3 + $0xf8] sm:$0x1]  ;;  %v4920_v35 = vrot.slane %v23679_v54, 1  ;;  %v4921_v59 = vrot.slane %v23681_v44, 1  ;;  %v5011_v23 = vpack.c.bf16 %v4901_v60, %v4895_v6  ;;  %5961 = vmatpush1.bf16.msra.mxu1 %v20743_v33  ;;  %6074 = vmatpush1.bf16.msra.mxu0 %v20746_v26 }
 0x82e   :  { %v24932_v30 = vmax.f32 %v23691_v5, 0.0  ;;  %25024 = vst [vmem:[#allocation69_spill] sm:$0xff] %v23701_v62  ;;  %v4396_v47 = vpop.f32.mrb[19].mxu0  ;;  %v4768_v43 = vld [vmem:[#allocation3 + $0x80] sm:$0xfe]  ;;  %v24934_v29 = vmax.f32 %v23694_v21, 0.0  ;;  %5962 = vmatprep.subr.bf16.mxu1 %v20751_v0  ;;  %6075 = vmatprep.subr.bf16.mxu0 %v20754_v39 }
 0x82f   :  { %v4770_v34 = vld [vmem:[#allocation3 + $0x90] sm:$0x1]  ;;  %v23705_v58 = vadd.f32 %v23591_v48, %v4396_v47  ;;  %v4911_v31 = vrot.slane %v4772_v3, 1  ;;  %v4912_v54 = vrot.slane %v4774_v27, 1  ;;  %v24931_v46 = vmax.f32 %v23701_v62, 0.0  ;;  %5453 = vmatmul.mubr.bf16.gmra.mrb[24].mxu1 %v5011_v23  ;;  %5566 = vmatmul.mubr.bf16.gmra.mrb[24].mxu0 %v5011_v23 }
 0x830   :  { %v4493_v44 = vrot.slane %v24932_v30, 7  ;;  %v20749_v22 = vld [vmem:[#allocation30 + $0x60] ss:$16 sps:$4 sm:$0xff]   ;;  %v4926_v41 = vrot.slane %v23688_v17, 1  ;;  %v4927_v53 = vrot.slane %v4783_v45, 1  ;;  %v4491_v6 = vrot.slane %v24934_v29, 7  ;;  %5462 = vmatprep.mubr.bf16.mxu1 %v5014_v55  ;;  %5575 = vmatprep.mubr.bf16.mxu0 %v5014_v55 }
 0x831   :  { %25025 = vst [vmem:[#allocation70_spill] sm:$0xff] %v23705_v58  ;;  %v24933_v19 = vmax.f32 %v23705_v58, 0.0  ;;  %v20752_v48 = vld [vmem:[#allocation30 + $0x68] ss:$16 sps:$4 sm:$0xff]   ;;  %v4905_v3 = vrot.slane %v4768_v43, 1  ;;  %v4906_v47 = vrot.slane %v4770_v34, 1  ;;  %v4913_v26 = vsel %vm4880_vm3, %v4911_v31, %v4912_v54  ;;  %5963 = vmatpush1.bf16.msra.mxu1 %v20749_v22 }
 0x832   :  { %4540 = vst [vmem:[#allocation3 + $0x220] sm:$0xfe] %v4493_v44  ;;  %4541 = vst [vmem:[#allocation3 + $0x230] sm:$0x1] %v4493_v44  ;;  %v4494_v27 = vrot.slane %v24931_v46, 7  ;;  %v4922_v43 = vsel %vm4880_vm3, %v4920_v35, %v4921_v59  ;;  %v4928_v39 = vsel %vm4880_vm3, %v4926_v41, %v4927_v53  ;;  %6076 = vmatpush1.bf16.msra.mxu0 %v20752_v48 }
 0x833   :  { %v20757_v60 = vld [vmem:[#allocation30 + $0x84] ss:$16 sps:$4 sm:$0xff]   ;;  %v20760_v17 = vld [vmem:[#allocation30 + $0x8c] ss:$16 sps:$4 sm:$0xff]   ;;  %4536 = vst [vmem:[#allocation3 + $0x1e0] sm:$0xfe] %v4491_v6  ;;  %v4907_v55 = vsel %vm4880_vm3, %v4905_v3, %v4906_v47  ;;  %v5016_v59 = vpack.c.bf16 %v4928_v39, %v4922_v43 }
 0x834   :  { %4537 = vst [vmem:[#allocation3 + $0x1f0] sm:$0x1] %v4491_v6  ;;  %v4492_v45 = vrot.slane %v24933_v19, 7  ;;  %v20755_v33 = vld [vmem:[#allocation30 + $0x80] ss:$16 sps:$4 sm:$0xff]   ;;  %5964 = vmatprep.subr.bf16.mxu1 %v20757_v60  ;;  %v5013_v54 = vpack.c.bf16 %v4913_v26, %v4907_v55  ;;  %6077 = vmatprep.subr.bf16.mxu0 %v20760_v17 }
 0x835   :  { %v20758_v34 = vld [vmem:[#allocation30 + $0x88] ss:$16 sps:$4 sm:$0xff]   ;;  %4542 = vst [vmem:[#allocation3 + $0x240] sm:$0xfe] %v4494_v27  ;;  %4543 = vst [vmem:[#allocation3 + $0x250] sm:$0x1] %v4494_v27  ;;  %5965 = vmatpush1.bf16.msra.mxu1 %v20755_v33 }
 0x836   :  { %v20763_v23 = vld [vmem:[#allocation30 + $0xa4] ss:$16 sps:$4 sm:$0xff]   ;;  %v4778_v44 = vld [vmem:[#allocation3 + $0xd0] sm:$0x1]  ;;  %v4785_v46 = vld [vmem:[#allocation3 + $0x148] sm:$0xfe]  ;;  %6078 = vmatpush1.bf16.msra.mxu0 %v20758_v34 }
 0x837   :  { %v4776_v0 = vld [vmem:[#allocation3 + $0xc0] sm:$0xfe]  ;;  %4538 = vst [vmem:[#allocation3 + $0x200] sm:$0xfe] %v4492_v45  ;;  %4539 = vst [vmem:[#allocation3 + $0x210] sm:$0x1] %v4492_v45  ;;  %5463 = vmatmul.mubr.bf16.gmra.mrb[28].mxu1 %v5013_v54  ;;  %5576 = vmatmul.mubr.bf16.gmra.mrb[28].mxu0 %v5013_v54 }
 0x838   :  { %v4787_v6 = vld [vmem:[#allocation3 + $0x158] sm:$0x1]  ;;  %v4789_v30 = vld [vmem:[#allocation3 + $0x168] sm:$0xfe]  ;;  %v4780_v19 = vld [vmem:[#allocation3 + $0xe0] sm:$0xfe]  ;;  %5966 = vmatprep.subr.bf16.mxu1 %v20763_v23  ;;  %5472 = vmatprep.mubr.bf16.mxu1 %v5016_v59 }
 0x839   :  { %v4791_v31 = vld [vmem:[#allocation3 + $0x178] sm:$0x1]  ;;  %v20766_v27 = vld [vmem:[#allocation30 + $0xac] ss:$16 sps:$4 sm:$0xff]   ;;  %v4782_v35 = vld [vmem:[#allocation3 + $0xf0] sm:$0x1]  ;;  %5585 = vmatprep.mubr.bf16.mxu0 %v5016_v59 }
 0x83a   :  { %v4917_v41 = vrot.slane %v4776_v0, 1  ;;  %v4918_v53 = vrot.slane %v4778_v44, 1  ;;  %v4932_v29 = vrot.slane %v4785_v46, 1  ;;  %v4933_v45 = vrot.slane %v4787_v6, 1  ;;  %v20761_v3 = vld [vmem:[#allocation30 + $0xa0] ss:$16 sps:$4 sm:$0xff]   ;;  %6079 = vmatprep.subr.bf16.mxu0 %v20766_v27 }
 0x83b   :  { %v4938_v22 = vrot.slane %v4789_v30, 1  ;;  %v4939_v48 = vrot.slane %v4791_v31, 1  ;;  %v20764_v47 = vld [vmem:[#allocation30 + $0xa8] ss:$16 sps:$4 sm:$0xff]   ;;  %v4923_v20 = vrot.slane %v4780_v19, 1  ;;  %v4924_v60 = vrot.slane %v4782_v35, 1  ;;  %5967 = vmatpush1.bf16.msra.mxu1 %v20761_v3 }
 0x83c   :  { %v20769_v17 = vld [vmem:[#allocation30 + $0xc4] ss:$16 sps:$4 sm:$0xff]   ;;  %v20772_v26 = vld [vmem:[#allocation30 + $0xcc] ss:$16 sps:$4 sm:$0xff]   ;;  %v20767_v43 = vld [vmem:[#allocation30 + $0xc0] ss:$16 sps:$4 sm:$0xff]   ;;  %v4919_v39 = vsel %vm4880_vm3, %v4917_v41, %v4918_v53  ;;  %v4934_v30 = vsel %vm4880_vm3, %v4932_v29, %v4933_v45  ;;  %6080 = vmatpush1.bf16.msra.mxu0 %v20764_v47 }
 0x83d   :  { %v20770_v0 = vld [vmem:[#allocation30 + $0xc8] ss:$16 sps:$4 sm:$0xff]   ;;  %v4786_v44 = vld [vmem:[#allocation3 + $0x150] sm:$0x1]  ;;  %v4940_v33 = vsel %vm4880_vm3, %v4938_v22, %v4939_v48  ;;  %v4925_v23 = vsel %vm4880_vm3, %v4923_v20, %v4924_v60  ;;  %5968 = vmatprep.subr.bf16.mxu1 %v20769_v17  ;;  %6081 = vmatprep.subr.bf16.mxu0 %v20772_v26  ;;  %v20775_v35 = vld [vmem:[#allocation30 + $0xe4] ss:$16 sps:$4 sm:$0xff]  }
 0x83e   :  { %v4784_v46 = vld [vmem:[#allocation3 + $0x140] sm:$0xfe]  ;;  %v4790_v55 = vld [vmem:[#allocation3 + $0x170] sm:$0x1]  ;;  %v4793_v19 = vld [vmem:[#allocation3 + $0x188] sm:$0xfe]  ;;  %v5015_v27 = vpack.c.bf16 %v4925_v23, %v4919_v39  ;;  %v5018_v53 = vpack.c.bf16 %v4940_v33, %v4934_v30 }
 0x83f   :  { %v4788_v34 = vld [vmem:[#allocation3 + $0x160] sm:$0xfe]  ;;  %v4795_v6 = vld [vmem:[#allocation3 + $0x198] sm:$0x1]  ;;  %v4797_v31 = vld [vmem:[#allocation3 + $0x1a8] sm:$0xfe]  ;;  %5969 = vmatpush1.bf16.msra.mxu1 %v20767_v43 }
 0x840   :  { %v4799_v54 = vld [vmem:[#allocation3 + $0x1b8] sm:$0x1]  ;;  %v20778_v59 = vld [vmem:[#allocation30 + $0xec] ss:$16 sps:$4 sm:$0xff]   ;;  %v4929_v41 = vrot.slane %v4784_v46, 1  ;;  %v4930_v29 = vrot.slane %v4786_v44, 1  ;;  %5473 = vmatmul.mubr.bf16.gmra.mrb[32].mxu1 %v5015_v27  ;;  %5586 = vmatmul.mubr.bf16.gmra.mrb[32].mxu0 %v5015_v27 }
 0x841   :  { %v4935_v45 = vrot.slane %v4788_v34, 1  ;;  %v4936_v22 = vrot.slane %v4790_v55, 1  ;;  %v4944_v48 = vrot.slane %v4793_v19, 1  ;;  %v4945_v3 = vrot.slane %v4795_v6, 1  ;;  %6082 = vmatpush1.bf16.msra.mxu0 %v20770_v0  ;;  %v20773_v20 = vld [vmem:[#allocation30 + $0xe0] ss:$16 sps:$4 sm:$0xff]   ;;  %5970 = vmatprep.subr.bf16.mxu1 %v20775_v35 }
 0x842   :  { %v4950_v47 = vrot.slane %v4797_v31, 1  ;;  %v4951_v25 = vrot.slane %v4799_v54, 1  ;;  %v20776_v60 = vld [vmem:[#allocation30 + $0xe8] ss:$16 sps:$4 sm:$0xff]   ;;  %6083 = vmatprep.subr.bf16.mxu0 %v20778_v59  ;;  %v20781_v17 = vld [vmem:[#allocation30 + $0x104] ss:$16 sps:$4 sm:$0xff]   ;;  %5482 = vmatprep.mubr.bf16.mxu1 %v5018_v53  ;;  %v4931_v46 = vsel %vm4880_vm3, %v4929_v41, %v4930_v29 }
 0x843   :  { %v20784_v26 = vld [vmem:[#allocation30 + $0x10c] ss:$16 sps:$4 sm:$0xff]   ;;  %5595 = vmatprep.mubr.bf16.mxu0 %v5018_v53  ;;  %v20779_v39 = vld [vmem:[#allocation30 + $0x100] ss:$16 sps:$4 sm:$0xff]   ;;  %v4937_v44 = vsel %vm4880_vm3, %v4935_v45, %v4936_v22  ;;  %v20782_v30 = vld [vmem:[#allocation30 + $0x108] ss:$16 sps:$4 sm:$0xff]   ;;  %v4946_v34 = vsel %vm4880_vm3, %v4944_v48, %v4945_v3  ;;  %5971 = vmatpush1.bf16.msra.mxu1 %v20773_v20 }
 0x844   :  { %v20787_v33 = vld [vmem:[#allocation30 + $0x124] ss:$16 sps:$4 sm:$0xff]   ;;  %v4952_v43 = vsel %vm4880_vm3, %v4950_v47, %v4951_v25  ;;  %v4794_v55 = vld [vmem:[#allocation3 + $0x190] sm:$0x1]  ;;  %v4801_v19 = vld [vmem:[#allocation3 + $0x1c8] sm:$0xfe]  ;;  %5972 = vmatprep.subr.bf16.mxu1 %v20781_v17  ;;  %v5017_v54 = vpack.c.bf16 %v4937_v44, %v4931_v46 }
 0x845   :  { %v4792_v0 = vld [vmem:[#allocation3 + $0x180] sm:$0xfe]  ;;  %6084 = vmatpush1.bf16.msra.mxu0 %v20776_v60  ;;  %v4803_v23 = vld [vmem:[#allocation3 + $0x1d8] sm:$0x1]  ;;  %v4805_v6 = vld [vmem:[#allocation3 + $0x1e8] sm:$0xfe]  ;;  %v5020_v41 = vpack.c.bf16 %v4952_v43, %v4946_v34 }
 0x846   :  { %v4807_v31 = vld [vmem:[#allocation3 + $0x1f8] sm:$0x1]  ;;  %6085 = vmatprep.subr.bf16.mxu0 %v20784_v26  ;;  %v20790_v27 = vld [vmem:[#allocation30 + $0x12c] ss:$16 sps:$4 sm:$0xff]   ;;  %v4796_v35 = vld [vmem:[#allocation3 + $0x1a0] sm:$0xfe] }
 0x847   :  { %v4798_v59 = vld [vmem:[#allocation3 + $0x1b0] sm:$0x1]  ;;  %v4941_v53 = vrot.slane %v4792_v0, 1  ;;  %v4942_v29 = vrot.slane %v4794_v55, 1  ;;  %v4956_v25 = vrot.slane %v4801_v19, 1  ;;  %v4957_v45 = vrot.slane %v4803_v23, 1  ;;  %5973 = vmatpush1.bf16.msra.mxu1 %v20779_v39 }
 0x848   :  { %5483 = vmatmul.mubr.bf16.gmra.mrb[36].mxu1 %v5017_v54  ;;  %5596 = vmatmul.mubr.bf16.gmra.mrb[36].mxu0 %v5017_v54  ;;  %v4962_v22 = vrot.slane %v4805_v6, 1  ;;  %v4963_v48 = vrot.slane %v4807_v31, 1  ;;  %v20785_v3 = vld [vmem:[#allocation30 + $0x120] ss:$16 sps:$4 sm:$0xff]   ;;  %v20788_v47 = vld [vmem:[#allocation30 + $0x128] ss:$16 sps:$4 sm:$0xff]  }
 0x849   :  { %6086 = vmatpush1.bf16.msra.mxu0 %v20782_v30  ;;  %v4947_v20 = vrot.slane %v4796_v35, 1  ;;  %v4948_v60 = vrot.slane %v4798_v59, 1  ;;  %5974 = vmatprep.subr.bf16.mxu1 %v20787_v33  ;;  %v20793_v17 = vld [vmem:[#allocation30 + $0x144] ss:$16 sps:$4 sm:$0xff]   ;;  %v20796_v26 = vld [vmem:[#allocation30 + $0x14c] ss:$16 sps:$4 sm:$0xff]   ;;  %v4943_v44 = vsel %vm4880_vm3, %v4941_v53, %v4942_v29  ;;  %v4958_v0 = vsel %vm4880_vm3, %v4956_v25, %v4957_v45 }
 0x84a   :  { %6087 = vmatprep.subr.bf16.mxu0 %v20790_v27  ;;  %5492 = vmatprep.mubr.bf16.mxu1 %v5020_v41  ;;  %v20791_v46 = vld [vmem:[#allocation30 + $0x140] ss:$16 sps:$4 sm:$0xff]   ;;  %v20794_v34 = vld [vmem:[#allocation30 + $0x148] ss:$16 sps:$4 sm:$0xff]   ;;  %v20799_v43 = vld [vmem:[#allocation30 + $0x164] ss:$16 sps:$4 sm:$0xff]   ;;  %v4964_v39 = vsel %vm4880_vm3, %v4962_v22, %v4963_v48 }
 0x84b   :  { %5605 = vmatprep.mubr.bf16.mxu0 %v5020_v41  ;;  %v4804_v30 = vld [vmem:[#allocation3 + $0x1e0] sm:$0xfe]  ;;  %v4806_v55 = vld [vmem:[#allocation3 + $0x1f0] sm:$0x1]  ;;  %v4809_v19 = vld [vmem:[#allocation3 + $0x208] sm:$0xfe]  ;;  %5975 = vmatpush1.bf16.msra.mxu1 %v20785_v3  ;;  %v4949_v33 = vsel %vm4880_vm3, %v4947_v20, %v4948_v60  ;;  %v5022_v41 = vpack.c.bf16 %v4964_v39, %v4958_v0 }
 0x84c   :  { %v4811_v23 = vld [vmem:[#allocation3 + $0x218] sm:$0x1]  ;;  %v4813_v6 = vld [vmem:[#allocation3 + $0x228] sm:$0xfe]  ;;  %5976 = vmatprep.subr.bf16.mxu1 %v20793_v17  ;;  %v5019_v54 = vpack.c.bf16 %v4949_v33, %v4943_v44  ;;  %v4800_v35 = vld [vmem:[#allocation3 + $0x1c0] sm:$0xfe] }
 0x84d   :  { %6088 = vmatpush1.bf16.msra.mxu0 %v20788_v47  ;;  %v4815_v31 = vld [vmem:[#allocation3 + $0x238] sm:$0x1]  ;;  %v20802_v27 = vld [vmem:[#allocation30 + $0x16c] ss:$16 sps:$4 sm:$0xff]   ;;  %v4802_v59 = vld [vmem:[#allocation3 + $0x1d0] sm:$0x1] }
 0x84e   :  { %6089 = vmatprep.subr.bf16.mxu0 %v20796_v26  ;;  %v4959_v53 = vrot.slane %v4804_v30, 1  ;;  %v4960_v29 = vrot.slane %v4806_v55, 1  ;;  %v4968_v25 = vrot.slane %v4809_v19, 1  ;;  %v4969_v45 = vrot.slane %v4811_v23, 1  ;;  %v20797_v3 = vld [vmem:[#allocation30 + $0x160] ss:$16 sps:$4 sm:$0xff]  }
 0x84f   :  { %v4974_v22 = vrot.slane %v4813_v6, 1  ;;  %v4975_v48 = vrot.slane %v4815_v31, 1  ;;  %5977 = vmatpush1.bf16.msra.mxu1 %v20791_v46  ;;  %v20800_v47 = vld [vmem:[#allocation30 + $0x168] ss:$16 sps:$4 sm:$0xff]   ;;  %v4953_v20 = vrot.slane %v4800_v35, 1  ;;  %v4954_v60 = vrot.slane %v4802_v59, 1 }
 0x850   :  { %5493 = vmatmul.mubr.bf16.gmra.mrb[40].mxu1 %v5019_v54  ;;  %5606 = vmatmul.mubr.bf16.gmra.mrb[40].mxu0 %v5019_v54  ;;  %v20805_v17 = vld [vmem:[#allocation30 + $0x184] ss:$16 sps:$4 sm:$0xff]   ;;  %v20808_v26 = vld [vmem:[#allocation30 + $0x18c] ss:$16 sps:$4 sm:$0xff]   ;;  %v4961_v44 = vsel %vm4880_vm3, %v4959_v53, %v4960_v29  ;;  %v4970_v0 = vsel %vm4880_vm3, %v4968_v25, %v4969_v45  ;;  %v4810_v55 = vld [vmem:[#allocation3 + $0x210] sm:$0x1] }
 0x851   :  { %6090 = vmatpush1.bf16.msra.mxu0 %v20794_v34  ;;  %5978 = vmatprep.subr.bf16.mxu1 %v20799_v43  ;;  %v4976_v39 = vsel %vm4880_vm3, %v4974_v22, %v4975_v48  ;;  %v4808_v30 = vld [vmem:[#allocation3 + $0x200] sm:$0xfe]  ;;  %v4955_v34 = vsel %vm4880_vm3, %v4953_v20, %v4954_v60  ;;  %v20814_v23 = vld [vmem:[#allocation30 + $0x1ac] ss:$16 sps:$4 sm:$0xff]   ;;  %v4814_v31 = vld [vmem:[#allocation3 + $0x230] sm:$0x1] }
 0x852   :  { %6091 = vmatprep.subr.bf16.mxu0 %v20802_v27  ;;  %5502 = vmatprep.mubr.bf16.mxu1 %v5022_v41  ;;  %v20803_v46 = vld [vmem:[#allocation30 + $0x180] ss:$16 sps:$4 sm:$0xff]   ;;  %v20806_v19 = vld [vmem:[#allocation30 + $0x188] ss:$16 sps:$4 sm:$0xff]   ;;  %v20811_v43 = vld [vmem:[#allocation30 + $0x1a4] ss:$16 sps:$4 sm:$0xff]   ;;  %v5021_v33 = vpack.c.bf16 %v4961_v44, %v4955_v34  ;;  %v5024_v54 = vpack.c.bf16 %v4976_v39, %v4970_v0 }
 0x853   :  { %5615 = vmatprep.mubr.bf16.mxu0 %v5022_v41  ;;  %5979 = vmatpush1.bf16.msra.mxu1 %v20797_v3  ;;  %v4812_v6 = vld [vmem:[#allocation3 + $0x220] sm:$0xfe]  ;;  %v4965_v27 = vrot.slane %v4808_v30, 1  ;;  %v4966_v35 = vrot.slane %v4810_v55, 1  ;;  %v4972_v29 = vrot.slane %v4814_v31, 1  ;;  %v4643_v48 = vld [vmem:[#allocation3 + $0x28] sm:$0xff] }
 0x854   :  { %5980 = vmatprep.subr.bf16.mxu1 %v20805_v17  ;;  %v20809_v59 = vld [vmem:[#allocation30 + $0x1a0] ss:$16 sps:$4 sm:$0xff]   ;;  %v20812_v41 = vld [vmem:[#allocation30 + $0x1a8] ss:$16 sps:$4 sm:$0xff]   ;;  %v4971_v53 = vrot.slane %v4812_v6, 1 }
 0x855   :  { %6092 = vmatpush1.bf16.msra.mxu0 %v20800_v47  ;;  %v20817_v25 = vld [vmem:[#allocation30 + $0x1c4] ss:$16 sps:$4 sm:$0xff]   ;;  %v20820_v45 = vld [vmem:[#allocation30 + $0x1cc] ss:$16 sps:$4 sm:$0xff]   ;;  %v4967_v22 = vsel %vm4880_vm3, %v4965_v27, %v4966_v35  ;;  %v20815_v3 = vld [vmem:[#allocation30 + $0x1c0] ss:$16 sps:$4 sm:$0xff]  }
 0x856   :  { %6093 = vmatprep.subr.bf16.mxu0 %v20808_v26  ;;  %v4973_v47 = vsel %vm4880_vm3, %v4971_v53, %v4972_v29  ;;  %v20818_v20 = vld [vmem:[#allocation30 + $0x1c8] ss:$16 sps:$4 sm:$0xff]   ;;  %v20823_v17 = vld [vmem:[#allocation30 + $0x1e4] ss:$16 sps:$4 sm:$0xff]   ;;  %v20826_v26 = vld [vmem:[#allocation30 + $0x1ec] ss:$16 sps:$4 sm:$0xff]  }
 0x857   :  { %5981 = vmatpush1.bf16.msra.mxu1 %v20803_v46  ;;  %v5023_v60 = vpack.c.bf16 %v4973_v47, %v4967_v22  ;;  %v23740_v44 = vld [vmem:[#allocation2] sm:$0xff]  ;;  %v20832_v46 = vld [vmem:[#allocation30 + $0x40c] ss:$16 sps:$4 sm:$0xff]  }
 0x858   :  { %5503 = vmatmul.mubr.bf16.gmra.mrb[44].mxu1 %v5021_v33  ;;  %5616 = vmatmul.mubr.bf16.gmra.mrb[44].mxu0 %v5021_v33  ;;  %v4673_v0 = vpack.c.bf16 %v4643_v48, %v23740_v44  ;;  %v20821_v39 = vld [vmem:[#allocation30 + $0x1e0] ss:$16 sps:$4 sm:$0xff]   ;;  %v20824_v30 = vld [vmem:[#allocation30 + $0x1e8] ss:$16 sps:$4 sm:$0xff]   ;;  %v20829_v55 = vld [vmem:[#allocation30 + $0x404] ss:$16 sps:$4 sm:$0xff]  }
 0x859   :  { %6094 = vmatpush1.bf16.msra.mxu0 %v20806_v19  ;;  %5982 = vmatprep.subr.bf16.mxu1 %v20811_v43  ;;  %v4642_v34 = vld [vmem:[#allocation3 + $0x20] sm:$0xff]  ;;  %v4645_v19 = vld [vmem:[#allocation3 + $0x48] sm:$0xff] }
 0x85a   :  { %6095 = vmatprep.subr.bf16.mxu0 %v20814_v23  ;;  %5512 = vmatprep.mubr.bf16.mxu1 %v5024_v54  ;;  %v4647_v43 = vld [vmem:[#allocation3 + $0x68] sm:$0xff]  ;;  %v4672_v6 = vpack.c.bf16 %v4642_v34, %v23740_v44  ;;  %v20835_v31 = vld [vmem:[#allocation30 + $0x424] ss:$16 sps:$4 sm:$0xff]  }
 0x85b   :  { %5625 = vmatprep.mubr.bf16.mxu0 %v5024_v54  ;;  %5983 = vmatpush1.bf16.msra.mxu1 %v20809_v59  ;;  %v20827_v33 = vld [vmem:[#allocation30 + $0x400] ss:$16 sps:$4 sm:$0xff]   ;;  %v20830_v23 = vld [vmem:[#allocation30 + $0x408] ss:$16 sps:$4 sm:$0xff]   ;;  %v20838_v54 = vld [vmem:[#allocation30 + $0x42c] ss:$16 sps:$4 sm:$0xff]   ;;  %v4675_v27 = vpack.c.bf16 %v4647_v43, %v4645_v19 }
 0x85c   :  { %5984 = vmatprep.subr.bf16.mxu1 %v20817_v25  ;;  %v20833_v35 = vld [vmem:[#allocation30 + $0x420] ss:$16 sps:$4 sm:$0xff]   ;;  %v20836_v59 = vld [vmem:[#allocation30 + $0x428] ss:$16 sps:$4 sm:$0xff]   ;;  %v20844_v53 = vld [vmem:[#allocation30 + $0x44c] ss:$16 sps:$4 sm:$0xff]  }
 0x85d   :  { %6096 = vmatpush1.bf16.msra.mxu0 %v20812_v41  ;;  %v20841_v41 = vld [vmem:[#allocation30 + $0x444] ss:$16 sps:$4 sm:$0xff]   ;;  %v4649_v25 = vld [vmem:[#allocation3 + $0x88] sm:$0xff] }
 0x85e   :  { %6097 = vmatprep.subr.bf16.mxu0 %v20820_v45  ;;  %v4644_v29 = vld [vmem:[#allocation3 + $0x40] sm:$0xff]  ;;  %v4651_v45 = vld [vmem:[#allocation3 + $0xa8] sm:$0xff] }
 0x85f   :  { %5985 = vmatpush1.bf16.msra.mxu1 %v20815_v3  ;;  %v20839_v22 = vld [vmem:[#allocation30 + $0x440] ss:$16 sps:$4 sm:$0xff]   ;;  %v20842_v3 = vld [vmem:[#allocation30 + $0x448] ss:$16 sps:$4 sm:$0xff]  }
 0x860   :  { %5513 = vmatmul.mubr.bf16.gmra.mrb[48].mxu1 %v5023_v60  ;;  %5626 = vmatmul.mubr.bf16.gmra.mrb[48].mxu0 %v5023_v60  ;;  %v4646_v48 = vld [vmem:[#allocation3 + $0x60] sm:$0xff]  ;;  %v20850_v60 = vld [vmem:[#allocation30 + $0x46c] ss:$16 sps:$4 sm:$0xff]  }
 0x861   :  { %6098 = vmatpush1.bf16.msra.mxu0 %v20818_v20  ;;  %5986 = vmatprep.subr.bf16.mxu1 %v20823_v17  ;;  %v4674_v47 = vpack.c.bf16 %v4646_v48, %v4644_v29  ;;  %v20847_v20 = vld [vmem:[#allocation30 + $0x464] ss:$16 sps:$4 sm:$0xff]   ;;  %v4677_v17 = vpack.c.bf16 %v4651_v45, %v4649_v25  ;;  %v4655_v34 = vld [vmem:[#allocation3 + $0xe8] sm:$0xff]  ;;  %v4551_v48 = vld [vmem:[#allocation7 + $0x38] sm:$0xff] }
 0x862   :  { %6099 = vmatprep.subr.bf16.mxu0 %v20826_v26  ;;  %5988 = vmatprep.mubr.bf16.mxu1 %v4673_v0  ;;  %v20845_v26 = vld [vmem:[#allocation30 + $0x460] ss:$16 sps:$4 sm:$0xff]  }
 0x863   :  { %6101 = vmatprep.mubr.bf16.mxu0 %v4673_v0  ;;  %5987 = vmatpush1.bf16.msra.mxu1 %v20821_v39  ;;  %v20848_v0 = vld [vmem:[#allocation30 + $0x468] ss:$16 sps:$4 sm:$0xff]   ;;  %v20853_v39 = vld [vmem:[#allocation30 + $0x484] ss:$16 sps:$4 sm:$0xff]   ;;  %v20851_v19 = vld [vmem:[#allocation30 + $0x480] ss:$16 sps:$4 sm:$0xff]  }
 0x864   :  { %6840 = vmatprep.subr.bf16.mxu1 %v20829_v55  ;;  %v4650_v55 = vld [vmem:[#allocation3 + $0xa0] sm:$0xff]  ;;  %v4659_v25 = vld [vmem:[#allocation3 + $0x168] sm:$0xff] }
 0x865   :  { %6100 = vmatpush1.bf16.msra.mxu0 %v20824_v30  ;;  %v20856_v30 = vld [vmem:[#allocation30 + $0x48c] ss:$16 sps:$4 sm:$0xff]   ;;  %v4648_v43 = vld [vmem:[#allocation3 + $0x80] sm:$0xff] }
 0x866   :  { %6953 = vmatprep.subr.bf16.mxu0 %v20832_v46  ;;  %v4653_v46 = vld [vmem:[#allocation3 + $0xc8] sm:$0xff]  ;;  %v4654_v45 = vld [vmem:[#allocation3 + $0xe0] sm:$0xff] }
 0x867   :  { %v20863_v29 = vld [vmem:[#allocation30 + $0x4c0] ss:$16 sps:$4 sm:$0xff]  }
 0x868   :  { %5989 = vmatmul.mubr.bf16.vlgmr.msra.gmra.mrb[20].mxu1 %v4672_v6  ;;  %6102 = vmatmul.mubr.bf16.vlgmr.msra.gmra.mrb[20].mxu0 %v4672_v6  ;;  %v20859_v6 = vld [vmem:[#allocation30 + $0x4a4] ss:$16 sps:$4 sm:$0xff]  }
 0x869   :  { %6841 = vmatpush1.bf16.msra.mxu1 %v20827_v33  ;;  %6954 = vmatpush1.bf16.msra.mxu0 %v20830_v23  ;;  %v20854_v33 = vld [vmem:[#allocation30 + $0x488] ss:$16 sps:$4 sm:$0xff]   ;;  %v4676_v23 = vpack.c.bf16 %v4650_v55, %v4648_v43 }
 0x86a   :  { %6842 = vmatprep.subr.bf16.mxu1 %v20835_v31  ;;  %6955 = vmatprep.subr.bf16.mxu0 %v20838_v54  ;;  %v20862_v31 = vld [vmem:[#allocation30 + $0x4ac] ss:$16 sps:$4 sm:$0xff]   ;;  %v4679_v54 = vpack.c.bf16 %v4655_v34, %v4653_v46  ;;  %v4658_v55 = vld [vmem:[#allocation3 + $0x160] sm:$0xff] }
 0x86b   :  { %5998 = vmatprep.mubr.bf16.mxu1 %v4675_v27  ;;  %6111 = vmatprep.mubr.bf16.mxu0 %v4675_v27  ;;  %v20857_v27 = vld [vmem:[#allocation30 + $0x4a0] ss:$16 sps:$4 sm:$0xff]   ;;  %v20878_v43 = vld [vmem:[#allocation30 + $0x508] ss:$16 sps:$4 sm:$0xff]  }
 0x86c   :  { %v4661_v46 = vld [vmem:[#allocation3 + $0x188] sm:$0xff] }
 0x86d   :  { %6843 = vmatpush1.bf16.msra.mxu1 %v20833_v35  ;;  %6956 = vmatpush1.bf16.msra.mxu0 %v20836_v59  ;;  %v20860_v35 = vld [vmem:[#allocation30 + $0x4a8] ss:$16 sps:$4 sm:$0xff]   ;;  %v20865_v59 = vld [vmem:[#allocation30 + $0x4c4] ss:$16 sps:$4 sm:$0xff]  }
 0x86e   :  { %6844 = vmatprep.subr.bf16.mxu1 %v20841_v41  ;;  %6957 = vmatprep.subr.bf16.mxu0 %v20844_v53  ;;  %v20868_v41 = vld [vmem:[#allocation30 + $0x4cc] ss:$16 sps:$4 sm:$0xff]   ;;  %v4652_v53 = vld [vmem:[#allocation3 + $0xc0] sm:$0xff] }
 0x86f   :  { %v4663_v34 = vld [vmem:[#allocation3 + $0x1a8] sm:$0xff] }
 0x870   :  { %5999 = vmatmul.mubr.bf16.gmra.mrb[24].mxu1 %v4674_v47  ;;  %6112 = vmatmul.mubr.bf16.gmra.mrb[24].mxu0 %v4674_v47  ;;  %v20871_v47 = vld [vmem:[#allocation30 + $0x4e4] ss:$16 sps:$4 sm:$0xff]  }
 0x871   :  { %6845 = vmatpush1.bf16.msra.mxu1 %v20839_v22  ;;  %6958 = vmatpush1.bf16.msra.mxu0 %v20842_v3  ;;  %v20866_v22 = vld [vmem:[#allocation30 + $0x4c8] ss:$16 sps:$4 sm:$0xff]   ;;  %v4678_v3 = vpack.c.bf16 %v4654_v45, %v4652_v53 }
 0x872   :  { %6846 = vmatprep.subr.bf16.mxu1 %v20847_v20  ;;  %6959 = vmatprep.subr.bf16.mxu0 %v20850_v60  ;;  %v20874_v20 = vld [vmem:[#allocation30 + $0x4ec] ss:$16 sps:$4 sm:$0xff]   ;;  %v4583_v60 = vrot.slane %v4551_v48, 7  ;;  %v20890_v45 = vld [vmem:[#allocation30 + $0x548] ss:$16 sps:$4 sm:$0xff]  }
 0x873   :  { %6008 = vmatprep.mubr.bf16.mxu1 %v4677_v17  ;;  %6121 = vmatprep.mubr.bf16.mxu0 %v4677_v17  ;;  %v4681_v17 = vpack.c.bf16 %v4659_v25, %v23740_v44  ;;  %v4665_v53 = vld [vmem:[#allocation3 + $0x1c8] sm:$0xff]  ;;  %v4662_v25 = vld [vmem:[#allocation3 + $0x1a0] sm:$0xff] }
 0x874   :  { %4622 = vst [vmem:[#allocation3 + $0x108] sm:$0xfe] %v4583_v60  ;;  %4623 = vst [vmem:[#allocation3 + $0x118] sm:$0x1] %v4583_v60  ;;  %v20895_v48 = vld [vmem:[#allocation30 + $0x564] ss:$16 sps:$4 sm:$0xff]  }
 0x875   :  { %6847 = vmatpush1.bf16.msra.mxu1 %v20845_v26  ;;  %6960 = vmatpush1.bf16.msra.mxu0 %v20848_v0  ;;  %v20869_v26 = vld [vmem:[#allocation30 + $0x4e0] ss:$16 sps:$4 sm:$0xff]   ;;  %v20872_v0 = vld [vmem:[#allocation30 + $0x4e8] ss:$16 sps:$4 sm:$0xff]  }
 0x876   :  { %6848 = vmatprep.subr.bf16.mxu1 %v20853_v39  ;;  %6961 = vmatprep.subr.bf16.mxu0 %v20856_v30  ;;  %v20877_v39 = vld [vmem:[#allocation30 + $0x504] ss:$16 sps:$4 sm:$0xff]   ;;  %v20880_v30 = vld [vmem:[#allocation30 + $0x50c] ss:$16 sps:$4 sm:$0xff]   ;;  %v20896_v60 = vld [vmem:[#allocation30 + $0x568] ss:$16 sps:$4 sm:$0xff]  }
 0x878   :  { %6009 = vmatmul.mubr.bf16.gmra.mrb[28].mxu1 %v4676_v23  ;;  %6122 = vmatmul.mubr.bf16.gmra.mrb[28].mxu0 %v4676_v23  ;;  %v20883_v23 = vld [vmem:[#allocation30 + $0x524] ss:$16 sps:$4 sm:$0xff]  }
 0x879   :  { %6849 = vmatpush1.bf16.msra.mxu1 %v20851_v19  ;;  %6962 = vmatpush1.bf16.msra.mxu0 %v20854_v33  ;;  %v20875_v19 = vld [vmem:[#allocation30 + $0x500] ss:$16 sps:$4 sm:$0xff]   ;;  %v4680_v33 = vpack.c.bf16 %v4658_v55, %v23740_v44 }
 0x87a   :  { %6850 = vmatprep.subr.bf16.mxu1 %v20859_v6  ;;  %6963 = vmatprep.subr.bf16.mxu0 %v20862_v31  ;;  %v20886_v6 = vld [vmem:[#allocation30 + $0x52c] ss:$16 sps:$4 sm:$0xff]   ;;  %v4683_v31 = vpack.c.bf16 %v4663_v34, %v4661_v46  ;;  %v20887_v44 = vld [vmem:[#allocation30 + $0x540] ss:$16 sps:$4 sm:$0xff]  }
 0x87b   :  { %6018 = vmatprep.mubr.bf16.mxu1 %v4679_v54  ;;  %6131 = vmatprep.mubr.bf16.mxu0 %v4679_v54  ;;  %v20881_v54 = vld [vmem:[#allocation30 + $0x520] ss:$16 sps:$4 sm:$0xff]  }
 0x87c   :  { %v4669_v55 = vld [vmem:[#allocation3 + $0x208] sm:$0xff] }
 0x87d   :  { %6851 = vmatpush1.bf16.msra.mxu1 %v20857_v27  ;;  %6964 = vmatpush1.bf16.msra.mxu0 %v20860_v35  ;;  %v20884_v27 = vld [vmem:[#allocation30 + $0x528] ss:$16 sps:$4 sm:$0xff]   ;;  %v20889_v35 = vld [vmem:[#allocation30 + $0x544] ss:$16 sps:$4 sm:$0xff]   ;;  %v6183_v34 = vld [vmem:[#allocation3 + $0x8] sm:$0xfc] }
 0x87e   :  { %6852 = vmatprep.subr.bf16.mxu1 %v20865_v59  ;;  %6965 = vmatprep.subr.bf16.mxu0 %v20868_v41  ;;  %v20892_v59 = vld [vmem:[#allocation30 + $0x54c] ss:$16 sps:$4 sm:$0xff]   ;;  %v4660_v41 = vld [vmem:[#allocation3 + $0x180] sm:$0xff] }
 0x87f   :  { %v4671_v46 = vld [vmem:[#allocation3 + $0x228] sm:$0xff] }
 0x880   :  { %6019 = vmatmul.mubr.bf16.gmra.mrb[32].mxu1 %v4678_v3  ;;  %6132 = vmatmul.mubr.bf16.gmra.mrb[32].mxu0 %v4678_v3  ;;  %v20898_v3 = vld [vmem:[#allocation30 + $0x56c] ss:$16 sps:$4 sm:$0xff]  }
 0x881   :  { %6853 = vmatpush1.bf16.msra.mxu1 %v20863_v29  ;;  %6966 = vmatpush1.bf16.msra.mxu0 %v20866_v22  ;;  %v4667_v29 = vld [vmem:[#allocation3 + $0x1e8] sm:$0xff]  ;;  %v4682_v22 = vpack.c.bf16 %v4662_v25, %v4660_v41  ;;  %v6182_v25 = vld [vmem:[#allocation3] sm:$0xfc] }
 0x882   :  { %6854 = vmatprep.subr.bf16.mxu1 %v20871_v47  ;;  %6967 = vmatprep.subr.bf16.mxu0 %v20874_v20  ;;  %v4685_v47 = vpack.c.bf16 %v4667_v29, %v4665_v53  ;;  %v20893_v20 = vld [vmem:[#allocation30 + $0x560] ss:$16 sps:$4 sm:$0xff]  }
 0x883   :  { %6028 = vmatprep.mubr.bf16.mxu1 %v4681_v17  ;;  %6141 = vmatprep.mubr.bf16.mxu0 %v4681_v17  ;;  %v20901_v17 = vld [vmem:[#allocation30 + $0x584] ss:$16 sps:$4 sm:$0xff]   ;;  %v20905_v29 = vld [vmem:[#allocation30 + $0x5a0] ss:$16 sps:$4 sm:$0xff]  }
 0x885   :  { %6855 = vmatpush1.bf16.msra.mxu1 %v20869_v26  ;;  %6968 = vmatpush1.bf16.msra.mxu0 %v20872_v0  ;;  %v20904_v26 = vld [vmem:[#allocation30 + $0x58c] ss:$16 sps:$4 sm:$0xff]   ;;  %v20899_v0 = vld [vmem:[#allocation30 + $0x580] ss:$16 sps:$4 sm:$0xff]  }
 0x886   :  { %6856 = vmatprep.subr.bf16.mxu1 %v20877_v39  ;;  %6969 = vmatprep.subr.bf16.mxu0 %v20880_v30  ;;  %v4666_v39 = vld [vmem:[#allocation3 + $0x1e0] sm:$0xff] }
 0x887   :  { %v20902_v30 = vld [vmem:[#allocation30 + $0x588] ss:$16 sps:$4 sm:$0xff]  }
 0x888   :  { %6029 = vmatmul.mubr.bf16.gmra.mrb[36].mxu1 %v4680_v33  ;;  %6142 = vmatmul.mubr.bf16.gmra.mrb[36].mxu0 %v4680_v33  ;;  %v6187_v33 = vld [vmem:[#allocation3 + $0x28] sm:$0xfc] }
 0x889   :  { %6857 = vmatpush1.bf16.msra.mxu1 %v20875_v19  ;;  %6970 = vmatpush1.bf16.msra.mxu0 %v20878_v43  ;;  %v6185_v19 = vld [vmem:[#allocation3 + $0x18] sm:$0x3]  ;;  %v4664_v43 = vld [vmem:[#allocation3 + $0x1c0] sm:$0xff]  ;;  %v6320_v41 = vrot.slane %v6187_v33, 2 }
 0x88a   :  { %6858 = vmatprep.subr.bf16.mxu1 %v20883_v23  ;;  %6971 = vmatprep.subr.bf16.mxu0 %v20886_v6  ;;  %v6189_v23 = vld [vmem:[#allocation3 + $0x38] sm:$0x3]  ;;  %v4684_v6 = vpack.c.bf16 %v4666_v39, %v4664_v43  ;;  %v20919_v33 = vld [vmem:[#allocation30 + $0x5e4] ss:$16 sps:$4 sm:$0xff]  }
 0x88b   :  { %6038 = vmatprep.mubr.bf16.mxu1 %v4683_v31  ;;  %6151 = vmatprep.mubr.bf16.mxu0 %v4683_v31  ;;  %v20907_v31 = vld [vmem:[#allocation30 + $0x5a4] ss:$16 sps:$4 sm:$0xff]   ;;  %v6321_v53 = vrot.slane %v6189_v23, 2  ;;  %v20922_v23 = vld [vmem:[#allocation30 + $0x5ec] ss:$16 sps:$4 sm:$0xff]  }
 0x88d   :  { %6859 = vmatpush1.bf16.msra.mxu1 %v20881_v54  ;;  %6972 = vmatpush1.bf16.msra.mxu0 %v20884_v27  ;;  %v20910_v54 = vld [vmem:[#allocation30 + $0x5ac] ss:$16 sps:$4 sm:$0xff]   ;;  %v4687_v27 = vpack.c.bf16 %v4671_v46, %v4669_v55  ;;  %v6322_v39 = vsel %vm6310_vm4, %v6320_v41, %v6321_v53  ;;  %v6193_v55 = vld [vmem:[#allocation3 + $0x58] sm:$0x3] }
 0x88e   :  { %6860 = vmatprep.subr.bf16.mxu1 %v20889_v35  ;;  %6973 = vmatprep.subr.bf16.mxu0 %v20892_v59  ;;  %v6314_v35 = vrot.slane %v6183_v34, 2  ;;  %v6315_v59 = vrot.slane %v6185_v19, 2  ;;  %v6195_v46 = vld [vmem:[#allocation3 + $0x68] sm:$0xfc]  ;;  %v6197_v34 = vld [vmem:[#allocation3 + $0x78] sm:$0x3] }
 0x88f   :  { %v4559_v19 = vld [vmem:[#allocation7 + $0x78] sm:$0xff]  ;;  %v6327_v41 = vrot.slane %v6193_v55, 2  ;;  %v6332_v53 = vrot.slane %v6195_v46, 2  ;;  %v6203_v46 = vld [vmem:[#allocation3 + $0xa8] sm:$0xfc] }
 0x890   :  { %6039 = vmatmul.mubr.bf16.gmra.mrb[40].mxu1 %v4682_v22  ;;  %6152 = vmatmul.mubr.bf16.gmra.mrb[40].mxu0 %v4682_v22  ;;  %v20916_v22 = vld [vmem:[#allocation30 + $0x5cc] ss:$16 sps:$4 sm:$0xff]   ;;  %v6201_v55 = vld [vmem:[#allocation3 + $0x98] sm:$0x3] }
 0x891   :  { %6861 = vmatpush1.bf16.msra.mxu1 %v20887_v44  ;;  %6974 = vmatpush1.bf16.msra.mxu0 %v20890_v45  ;;  %v20908_v44 = vld [vmem:[#allocation30 + $0x5a8] ss:$16 sps:$4 sm:$0xff]   ;;  %v20913_v45 = vld [vmem:[#allocation30 + $0x5c4] ss:$16 sps:$4 sm:$0xff]  }
 0x892   :  { %6862 = vmatprep.subr.bf16.mxu1 %v20895_v48  ;;  %6975 = vmatprep.subr.bf16.mxu0 %v20898_v3  ;;  %v6184_v48 = vld [vmem:[#allocation3 + $0x10] sm:$0x3] }
 0x893   :  { %6048 = vmatprep.mubr.bf16.mxu1 %v4685_v47  ;;  %6161 = vmatprep.mubr.bf16.mxu0 %v4685_v47  ;;  %v20911_v3 = vld [vmem:[#allocation30 + $0x5c0] ss:$16 sps:$4 sm:$0xff]  }
 0x894   :  { %v4668_v47 = vld [vmem:[#allocation3 + $0x200] sm:$0xff] }
 0x895   :  { %6863 = vmatpush1.bf16.msra.mxu1 %v20893_v20  ;;  %6976 = vmatpush1.bf16.msra.mxu0 %v20896_v60  ;;  %v20914_v20 = vld [vmem:[#allocation30 + $0x5c8] ss:$16 sps:$4 sm:$0xff]  }
 0x896   :  { %6864 = vmatprep.subr.bf16.mxu1 %v20901_v17  ;;  %6977 = vmatprep.subr.bf16.mxu0 %v20904_v26  ;;  %v6186_v60 = vld [vmem:[#allocation3 + $0x20] sm:$0xfc]  ;;  %v6188_v17 = vld [vmem:[#allocation3 + $0x30] sm:$0x3] }
 0x897   :  { %v4670_v26 = vld [vmem:[#allocation3 + $0x220] sm:$0xff]  ;;  %v6317_v57 = vrot.slane %v6186_v60, 2 }
 0x898   :  { %6049 = vmatmul.mubr.bf16.gmra.mrb[44].mxu1 %v4684_v6  ;;  %6162 = vmatmul.mubr.bf16.gmra.mrb[44].mxu0 %v4684_v6  ;;  %v4686_v43 = vpack.c.bf16 %v4670_v26, %v4668_v47  ;;  %v6311_v6 = vrot.slane %v6182_v25, 2  ;;  %v20925_v25 = vld [vmem:[#allocation30 + $0x604] ss:$16 sps:$4 sm:$0xff]  }
 0x899   :  { %6865 = vmatpush1.bf16.msra.mxu1 %v20899_v0  ;;  %6978 = vmatpush1.bf16.msra.mxu0 %v20902_v30  ;;  %v6316_v0 = vsel %vm6310_vm4, %v6314_v35, %v6315_v59  ;;  %v6191_v30 = vld [vmem:[#allocation3 + $0x48] sm:$0xfc]  ;;  %v6318_v35 = vrot.slane %v6188_v17, 2  ;;  %v20926_v17 = vld [vmem:[#allocation30 + $0x608] ss:$16 sps:$4 sm:$0xff]  }
 0x89a   :  { %6866 = vmatprep.subr.bf16.mxu1 %v20907_v31  ;;  %6979 = vmatprep.subr.bf16.mxu0 %v20910_v54  ;;  %v4591_v31 = vrot.slane %v4559_v19, 7  ;;  %v6440_v54 = vpack.c.bf16 %v6322_v39, %v6316_v0  ;;  %v6326_v59 = vrot.slane %v6191_v30, 2  ;;  %v20931_v26 = vld [vmem:[#allocation30 + $0x624] ss:$16 sps:$4 sm:$0xff]   ;;  %v6192_v39 = vld [vmem:[#allocation3 + $0x50] sm:$0x3] }
 0x89b   :  { %6058 = vmatprep.mubr.bf16.mxu1 %v4687_v27  ;;  %6171 = vmatprep.mubr.bf16.mxu0 %v4687_v27  ;;  %v6312_v27 = vrot.slane %v6184_v48, 2  ;;  %v20923_v48 = vld [vmem:[#allocation30 + $0x600] ss:$16 sps:$4 sm:$0xff]   ;;  %v6319_v60 = vsel %vm6310_vm4, %v6317_v57, %v6318_v35  ;;  %v6344_v35 = vrot.slane %v6203_v46, 2  ;;  %v6213_v46 = vld [vmem:[#allocation3 + $0xf8] sm:$0x3] }
 0x89c   :  { %4638 = vst [vmem:[#allocation3 + $0x248] sm:$0xfe] %v4591_v31  ;;  %4639 = vst [vmem:[#allocation3 + $0x258] sm:$0x1] %v4591_v31  ;;  %v6328_v0 = vsel %vm6310_vm4, %v6326_v59, %v6327_v41  ;;  %v6199_v30 = vld [vmem:[#allocation3 + $0x88] sm:$0xfc] }
 0x89d   :  { %6867 = vmatpush1.bf16.msra.mxu1 %v20905_v29  ;;  %6980 = vmatpush1.bf16.msra.mxu0 %v20908_v44  ;;  %v6333_v29 = vrot.slane %v6197_v34, 2  ;;  %v20917_v44 = vld [vmem:[#allocation30 + $0x5e0] ss:$16 sps:$4 sm:$0xff]   ;;  %v6313_v47 = vsel %vm6310_vm4, %v6311_v6, %v6312_v27  ;;  %v6205_v34 = vld [vmem:[#allocation3 + $0xb8] sm:$0x3]  ;;  %v6324_v31 = vrot.slane %v6192_v39, 2 }
 0x89e   :  { %6868 = vmatprep.subr.bf16.mxu1 %v20913_v45  ;;  %6981 = vmatprep.subr.bf16.mxu0 %v20916_v22  ;;  %v20920_v45 = vld [vmem:[#allocation30 + $0x5e8] ss:$16 sps:$4 sm:$0xff]   ;;  %v20928_v22 = vld [vmem:[#allocation30 + $0x60c] ss:$16 sps:$4 sm:$0xff]   ;;  %v6439_v19 = vpack.c.bf16 %v6319_v60, %v6313_v47  ;;  %v6196_v57 = vld [vmem:[#allocation3 + $0x70] sm:$0x3] }
 0x89f   :  { %v6339_v27 = vrot.slane %v6201_v55, 2  ;;  %v6345_v59 = vrot.slane %v6205_v34, 2  ;;  %v20929_v41 = vld [vmem:[#allocation30 + $0x620] ss:$16 sps:$4 sm:$0xff]   ;;  %v20938_v60 = vld [vmem:[#allocation30 + $0x648] ss:$16 sps:$4 sm:$0xff]  }
 0x8a0   :  { %6059 = vmatmul.mubr.bf16.gmra.mrb[48].mxu1 %v4686_v43  ;;  %6172 = vmatmul.mubr.bf16.gmra.mrb[48].mxu0 %v4686_v43  ;;  %v20934_v43 = vld [vmem:[#allocation30 + $0x62c] ss:$16 sps:$4 sm:$0xff]  }
 0x8a1   :  { %6869 = vmatpush1.bf16.msra.mxu1 %v20911_v3  ;;  %6982 = vmatpush1.bf16.msra.mxu0 %v20914_v20  ;;  %v6334_v3 = vsel %vm6310_vm4, %v6332_v53, %v6333_v29  ;;  %v6190_v20 = vld [vmem:[#allocation3 + $0x40] sm:$0xfc]  ;;  %v6207_v39 = vld [vmem:[#allocation3 + $0xc8] sm:$0xfc] }
 0x8a2   :  { %6870 = vmatprep.subr.bf16.mxu1 %v20919_v33  ;;  %6983 = vmatprep.subr.bf16.mxu0 %v20922_v23  ;;  %v6194_v33 = vld [vmem:[#allocation3 + $0x60] sm:$0xfc]  ;;  %v6442_v23 = vpack.c.bf16 %v6334_v3, %v6328_v0  ;;  %v6323_v6 = vrot.slane %v6190_v20, 2  ;;  %v6204_v20 = vld [vmem:[#allocation3 + $0xb0] sm:$0x3] }
 0x8a3   :  { %6872 = vmatprep.mubr.bf16.mxu1 %v6440_v54  ;;  %6985 = vmatprep.mubr.bf16.mxu0 %v6440_v54  ;;  %v6338_v54 = vrot.slane %v6199_v30, 2  ;;  %v20932_v53 = vld [vmem:[#allocation30 + $0x628] ss:$16 sps:$4 sm:$0xff]   ;;  %v6329_v29 = vrot.slane %v6194_v33, 2  ;;  %v20943_v0 = vld [vmem:[#allocation30 + $0x664] ss:$16 sps:$4 sm:$0xff]  }
 0x8a4   :  { %v6325_v47 = vsel %vm6310_vm4, %v6323_v6, %v6324_v31  ;;  %v6209_v30 = vld [vmem:[#allocation3 + $0xd8] sm:$0x3]  ;;  %v6211_v55 = vld [vmem:[#allocation3 + $0xe8] sm:$0xfc]  ;;  %v6200_v33 = vld [vmem:[#allocation3 + $0x90] sm:$0x3] }
 0x8a5   :  { %6871 = vmatpush1.bf16.msra.mxu1 %v20917_v44  ;;  %6984 = vmatpush1.bf16.msra.mxu0 %v20920_v45  ;;  %v6330_v44 = vrot.slane %v6196_v57, 2  ;;  %v20937_v45 = vld [vmem:[#allocation30 + $0x644] ss:$16 sps:$4 sm:$0xff]   ;;  %v6340_v3 = vsel %vm6310_vm4, %v6338_v54, %v6339_v27  ;;  %v6342_v6 = vrot.slane %v6204_v20, 2  ;;  %v6350_v31 = vrot.slane %v6207_v39, 2 }
 0x8a6   :  { %7563 = vmatprep.subr.bf16.mxu1 %v20925_v25  ;;  %7676 = vmatprep.subr.bf16.mxu0 %v20928_v22  ;;  %v20940_v25 = vld [vmem:[#allocation30 + $0x64c] ss:$16 sps:$4 sm:$0xff]   ;;  %v20935_v22 = vld [vmem:[#allocation30 + $0x640] ss:$16 sps:$4 sm:$0xff]   ;;  %v6351_v54 = vrot.slane %v6209_v30, 2  ;;  %v6356_v27 = vrot.slane %v6211_v55, 2 }
 0x8a7   :  { %v6208_v20 = vld [vmem:[#allocation3 + $0xd0] sm:$0x3]  ;;  %v6215_v39 = vld [vmem:[#allocation3 + $0x148] sm:$0xfc]  ;;  %v6221_v55 = vld [vmem:[#allocation3 + $0x178] sm:$0x3] }
 0x8a8   :  { %6873 = vmatmul.mubr.bf16.vlgmr.msra.gmra.mrb[20].mxu1 %v6439_v19  ;;  %6986 = vmatmul.mubr.bf16.vlgmr.msra.gmra.mrb[20].mxu0 %v6439_v19  ;;  %v20946_v19 = vld [vmem:[#allocation30 + $0x66c] ss:$16 sps:$4 sm:$0xff]  }
 0x8a9   :  { %7564 = vmatpush1.bf16.msra.mxu1 %v20923_v48  ;;  %7677 = vmatpush1.bf16.msra.mxu0 %v20926_v17  ;;  %v6346_v48 = vsel %vm6310_vm4, %v6344_v35, %v6345_v59  ;;  %v6202_v17 = vld [vmem:[#allocation3 + $0xa0] sm:$0xfc]  ;;  %v6357_v35 = vrot.slane %v6213_v46, 2  ;;  %v20941_v59 = vld [vmem:[#allocation30 + $0x660] ss:$16 sps:$4 sm:$0xff]  }
 0x8aa   :  { %7565 = vmatprep.subr.bf16.mxu1 %v20931_v26  ;;  %7678 = vmatprep.subr.bf16.mxu0 %v20934_v43  ;;  %v6331_v26 = vsel %vm6310_vm4, %v6329_v29, %v6330_v44  ;;  %v6198_v43 = vld [vmem:[#allocation3 + $0x80] sm:$0xfc]  ;;  %v6444_v57 = vpack.c.bf16 %v6346_v48, %v6340_v3  ;;  %v6336_v29 = vrot.slane %v6200_v33, 2  ;;  %v6219_v30 = vld [vmem:[#allocation3 + $0x168] sm:$0xfc] }
 0x8ab   :  { %6882 = vmatprep.mubr.bf16.mxu1 %v6442_v23  ;;  %6995 = vmatprep.mubr.bf16.mxu0 %v6442_v23  ;;  %v6441_v34 = vpack.c.bf16 %v6331_v26, %v6325_v47  ;;  %v6341_v23 = vrot.slane %v6202_v17, 2  ;;  %v20949_v44 = vld [vmem:[#allocation30 + $0x684] ss:$16 sps:$4 sm:$0xff]   ;;  %v20950_v3 = vld [vmem:[#allocation30 + $0x688] ss:$16 sps:$4 sm:$0xff]   ;;  %v6352_v17 = vsel %vm6310_vm4, %v6350_v31, %v6351_v54  ;;  %v6368_v54 = vrot.slane %v6219_v30, 2 }
 0x8ac   :  { %v20955_v48 = vld [vmem:[#allocation30 + $0x6a4] ss:$16 sps:$4 sm:$0xff]   ;;  %v6217_v26 = vld [vmem:[#allocation3 + $0x158] sm:$0x3]  ;;  %v6227_v30 = vld [vmem:[#allocation3 + $0x1a8] sm:$0xfc] }
 0x8ad   :  { %7566 = vmatpush1.bf16.msra.mxu1 %v20929_v41  ;;  %7679 = vmatpush1.bf16.msra.mxu0 %v20932_v53  ;;  %v20944_v41 = vld [vmem:[#allocation30 + $0x668] ss:$16 sps:$4 sm:$0xff]   ;;  %v6335_v53 = vrot.slane %v6198_v43, 2  ;;  %v6343_v47 = vsel %vm6310_vm4, %v6341_v23, %v6342_v6  ;;  %v6212_v43 = vld [vmem:[#allocation3 + $0xf0] sm:$0x3]  ;;  %v6348_v23 = vrot.slane %v6208_v20, 2 }
 0x8ae   :  { %7567 = vmatprep.subr.bf16.mxu1 %v20937_v45  ;;  %7680 = vmatprep.subr.bf16.mxu0 %v20940_v25  ;;  %v20952_v45 = vld [vmem:[#allocation30 + $0x68c] ss:$16 sps:$4 sm:$0xff]   ;;  %v20947_v25 = vld [vmem:[#allocation30 + $0x680] ss:$16 sps:$4 sm:$0xff]   ;;  %v6362_v6 = vrot.slane %v6215_v39, 2  ;;  %v6363_v31 = vrot.slane %v6217_v26, 2 }
 0x8af   :  { %v6220_v39 = vld [vmem:[#allocation3 + $0x170] sm:$0x3]  ;;  %v6225_v26 = vld [vmem:[#allocation3 + $0x198] sm:$0x3] }
 0x8b0   :  { %6883 = vmatmul.mubr.bf16.gmra.mrb[24].mxu1 %v6441_v34  ;;  %6996 = vmatmul.mubr.bf16.gmra.mrb[24].mxu0 %v6441_v34  ;;  %v20958_v34 = vld [vmem:[#allocation30 + $0x6ac] ss:$16 sps:$4 sm:$0xff]   ;;  %v6364_v20 = vsel %vm6310_vm4, %v6362_v6, %v6363_v31  ;;  %v6366_v6 = vrot.slane %v6220_v39, 2 }
 0x8b1   :  { %7568 = vmatpush1.bf16.msra.mxu1 %v20935_v22  ;;  %7681 = vmatpush1.bf16.msra.mxu0 %v20938_v60  ;;  %v6358_v22 = vsel %vm6310_vm4, %v6356_v27, %v6357_v35  ;;  %v6206_v60 = vld [vmem:[#allocation3 + $0xc0] sm:$0xfc]  ;;  %v6369_v27 = vrot.slane %v6221_v55, 2  ;;  %v20953_v35 = vld [vmem:[#allocation30 + $0x6a0] ss:$16 sps:$4 sm:$0xff]  }
 0x8b2   :  { %7569 = vmatprep.subr.bf16.mxu1 %v20943_v0  ;;  %7682 = vmatprep.subr.bf16.mxu0 %v20946_v19  ;;  %v6337_v0 = vsel %vm6310_vm4, %v6335_v53, %v6336_v29  ;;  %v6210_v19 = vld [vmem:[#allocation3 + $0xe0] sm:$0xfc]  ;;  %v6446_v33 = vpack.c.bf16 %v6358_v22, %v6352_v17  ;;  %v6354_v53 = vrot.slane %v6212_v43, 2  ;;  %v6229_v55 = vld [vmem:[#allocation3 + $0x1b8] sm:$0x3] }
 0x8b3   :  { %6892 = vmatprep.mubr.bf16.mxu1 %v6444_v57  ;;  %7005 = vmatprep.mubr.bf16.mxu0 %v6444_v57  ;;  %v6443_v46 = vpack.c.bf16 %v6343_v47, %v6337_v0  ;;  %v6347_v57 = vrot.slane %v6206_v60, 2  ;;  %v20961_v29 = vld [vmem:[#allocation30 + $0x6c4] ss:$16 sps:$4 sm:$0xff]   ;;  %v20959_v47 = vld [vmem:[#allocation30 + $0x6c0] ss:$16 sps:$4 sm:$0xff]  }
 0x8b4   :  { %v20962_v22 = vld [vmem:[#allocation30 + $0x6c8] ss:$16 sps:$4 sm:$0xff]   ;;  %v6216_v60 = vld [vmem:[#allocation3 + $0x150] sm:$0x3]  ;;  %v6223_v0 = vld [vmem:[#allocation3 + $0x188] sm:$0xfc] }
 0x8b5   :  { %7570 = vmatpush1.bf16.msra.mxu1 %v20941_v59  ;;  %7683 = vmatpush1.bf16.msra.mxu0 %v20944_v41  ;;  %v20956_v59 = vld [vmem:[#allocation30 + $0x6a8] ss:$16 sps:$4 sm:$0xff]   ;;  %v6353_v41 = vrot.slane %v6210_v19, 2  ;;  %v6349_v17 = vsel %vm6310_vm4, %v6347_v57, %v6348_v23  ;;  %v20970_v19 = vld [vmem:[#allocation30 + $0x6ec] ss:$16 sps:$4 sm:$0xff]   ;;  %v6360_v57 = vrot.slane %v6216_v60, 2 }
 0x8b6   :  { %7571 = vmatprep.subr.bf16.mxu1 %v20949_v44  ;;  %7684 = vmatprep.subr.bf16.mxu0 %v20952_v45  ;;  %v20964_v44 = vld [vmem:[#allocation30 + $0x6cc] ss:$16 sps:$4 sm:$0xff]   ;;  %v6214_v45 = vld [vmem:[#allocation3 + $0x140] sm:$0xfc]  ;;  %v6374_v31 = vrot.slane %v6223_v0, 2 }
 0x8b7   :  { %v6359_v43 = vrot.slane %v6214_v45, 2  ;;  %v20974_v60 = vld [vmem:[#allocation30 + $0x708] ss:$16 sps:$4 sm:$0xff]   ;;  %v6231_v39 = vld [vmem:[#allocation3 + $0x1c8] sm:$0xfc] }
 0x8b8   :  { %6893 = vmatmul.mubr.bf16.gmra.mrb[28].mxu1 %v6443_v46  ;;  %7006 = vmatmul.mubr.bf16.gmra.mrb[28].mxu0 %v6443_v46  ;;  %v6233_v0 = vld [vmem:[#allocation3 + $0x1d8] sm:$0x3] }
 0x8b9   :  { %7572 = vmatpush1.bf16.msra.mxu1 %v20947_v25  ;;  %7685 = vmatpush1.bf16.msra.mxu0 %v20950_v3  ;;  %v6370_v25 = vsel %vm6310_vm4, %v6368_v54, %v6369_v27  ;;  %v6218_v3 = vld [vmem:[#allocation3 + $0x160] sm:$0xfc]  ;;  %v6375_v54 = vrot.slane %v6225_v26, 2  ;;  %v6380_v27 = vrot.slane %v6227_v30, 2  ;;  %v6361_v45 = vsel %vm6310_vm4, %v6359_v43, %v6360_v57  ;;  %v6237_v26 = vld [vmem:[#allocation3 + $0x1f8] sm:$0x3] }
 0x8ba   :  { %7573 = vmatprep.subr.bf16.mxu1 %v20955_v48  ;;  %7686 = vmatprep.subr.bf16.mxu0 %v20958_v34  ;;  %v6355_v48 = vsel %vm6310_vm4, %v6353_v41, %v6354_v53  ;;  %v20967_v34 = vld [vmem:[#allocation30 + $0x6e4] ss:$16 sps:$4 sm:$0xff]   ;;  %v6365_v23 = vrot.slane %v6218_v3, 2  ;;  %v20968_v41 = vld [vmem:[#allocation30 + $0x6e8] ss:$16 sps:$4 sm:$0xff]   ;;  %v6386_v57 = vrot.slane %v6231_v39, 2 }
 0x8bb   :  { %6902 = vmatprep.mubr.bf16.mxu1 %v6446_v33  ;;  %7015 = vmatprep.mubr.bf16.mxu0 %v6446_v33  ;;  %v6445_v46 = vpack.c.bf16 %v6355_v48, %v6349_v17  ;;  %v6448_v33 = vpack.c.bf16 %v6370_v25, %v6364_v20  ;;  %v20973_v53 = vld [vmem:[#allocation30 + $0x704] ss:$16 sps:$4 sm:$0xff]   ;;  %v6376_v25 = vsel %vm6310_vm4, %v6374_v31, %v6375_v54  ;;  %v6224_v3 = vld [vmem:[#allocation3 + $0x190] sm:$0x3]  ;;  %v6235_v48 = vld [vmem:[#allocation3 + $0x1e8] sm:$0xfc] }
 0x8bc   :  { %v6367_v17 = vsel %vm6310_vm4, %v6365_v23, %v6366_v6  ;;  %v20979_v20 = vld [vmem:[#allocation30 + $0x724] ss:$16 sps:$4 sm:$0xff]   ;;  %v6387_v23 = vrot.slane %v6233_v0, 2  ;;  %v6392_v6 = vrot.slane %v6235_v48, 2  ;;  %v6393_v31 = vrot.slane %v6237_v26, 2 }
 0x8bd   :  { %7574 = vmatpush1.bf16.msra.mxu1 %v20953_v35  ;;  %7687 = vmatpush1.bf16.msra.mxu0 %v20956_v59  ;;  %v6381_v35 = vrot.slane %v6229_v55, 2  ;;  %v20965_v59 = vld [vmem:[#allocation30 + $0x6e0] ss:$16 sps:$4 sm:$0xff]   ;;  %v6447_v30 = vpack.c.bf16 %v6367_v17, %v6361_v45  ;;  %v20982_v55 = vld [vmem:[#allocation30 + $0x72c] ss:$16 sps:$4 sm:$0xff]  }
 0x8be   :  { %7575 = vmatprep.subr.bf16.mxu1 %v20961_v29  ;;  %7688 = vmatprep.subr.bf16.mxu0 %v20964_v44  ;;  %v20976_v29 = vld [vmem:[#allocation30 + $0x70c] ss:$16 sps:$4 sm:$0xff]   ;;  %v20971_v44 = vld [vmem:[#allocation30 + $0x700] ss:$16 sps:$4 sm:$0xff]   ;;  %v20986_v17 = vld [vmem:[#allocation30 + $0x748] ss:$16 sps:$4 sm:$0xff]  }
 0x8bf   :  { %v20977_v54 = vld [vmem:[#allocation30 + $0x720] ss:$16 sps:$4 sm:$0xff]   ;;  %v6241_v39 = vld [vmem:[#allocation3 + $0x218] sm:$0x3] }
 0x8c0   :  { %6903 = vmatmul.mubr.bf16.gmra.mrb[32].mxu1 %v6445_v46  ;;  %7016 = vmatmul.mubr.bf16.gmra.mrb[32].mxu0 %v6445_v46  ;;  %v6226_v46 = vld [vmem:[#allocation3 + $0x1a0] sm:$0xfc]  ;;  %v6243_v0 = vld [vmem:[#allocation3 + $0x228] sm:$0xfc]  ;;  %v6245_v48 = vld [vmem:[#allocation3 + $0x238] sm:$0x3] }
 0x8c1   :  { %7576 = vmatpush1.bf16.msra.mxu1 %v20959_v47  ;;  %7689 = vmatpush1.bf16.msra.mxu0 %v20962_v22  ;;  %v6382_v47 = vsel %vm6310_vm4, %v6380_v27, %v6381_v35  ;;  %v6222_v22 = vld [vmem:[#allocation3 + $0x180] sm:$0xfc]  ;;  %v6377_v35 = vrot.slane %v6226_v46, 2  ;;  %v6232_v46 = vld [vmem:[#allocation3 + $0x1d0] sm:$0x3] }
 0x8c2   :  { %7577 = vmatprep.subr.bf16.mxu1 %v20967_v34  ;;  %7690 = vmatprep.subr.bf16.mxu0 %v20970_v19  ;;  %v6228_v34 = vld [vmem:[#allocation3 + $0x1b0] sm:$0x3]  ;;  %v6450_v19 = vpack.c.bf16 %v6382_v47, %v6376_v25  ;;  %v6371_v43 = vrot.slane %v6222_v22, 2  ;;  %v20980_v27 = vld [vmem:[#allocation30 + $0x728] ss:$16 sps:$4 sm:$0xff]   ;;  %v6388_v47 = vsel %vm6310_vm4, %v6386_v57, %v6387_v23  ;;  %v6399_v57 = vrot.slane %v6241_v39, 2 }
 0x8c3   :  { %6912 = vmatprep.mubr.bf16.mxu1 %v6448_v33  ;;  %7025 = vmatprep.mubr.bf16.mxu0 %v6448_v33  ;;  %v6372_v33 = vrot.slane %v6224_v3, 2  ;;  %v20991_v25 = vld [vmem:[#allocation30 + $0x764] ss:$16 sps:$4 sm:$0xff]   ;;  %v6236_v22 = vld [vmem:[#allocation3 + $0x1f0] sm:$0x3]  ;;  %v6404_v23 = vrot.slane %v6243_v0, 2 }
 0x8c4   :  { %v6239_v3 = vld [vmem:[#allocation3 + $0x208] sm:$0xfc]  ;;  %v6242_v39 = vld [vmem:[#allocation3 + $0x220] sm:$0xfc]  ;;  %v6244_v0 = vld [vmem:[#allocation3 + $0x230] sm:$0x3] }
 0x8c5   :  { %7578 = vmatpush1.bf16.msra.mxu1 %v20965_v59  ;;  %7691 = vmatpush1.bf16.msra.mxu0 %v20968_v41  ;;  %v6378_v59 = vrot.slane %v6228_v34, 2  ;;  %v20985_v41 = vld [vmem:[#allocation30 + $0x744] ss:$16 sps:$4 sm:$0xff]   ;;  %v6373_v45 = vsel %vm6310_vm4, %v6371_v43, %v6372_v33  ;;  %v6390_v43 = vrot.slane %v6236_v22, 2  ;;  %v6398_v33 = vrot.slane %v6239_v3, 2 }
 0x8c6   :  { %7579 = vmatprep.subr.bf16.mxu1 %v20973_v53  ;;  %7692 = vmatprep.subr.bf16.mxu0 %v20976_v29  ;;  %v20988_v53 = vld [vmem:[#allocation30 + $0x74c] ss:$16 sps:$4 sm:$0xff]   ;;  %v20983_v29 = vld [vmem:[#allocation30 + $0x740] ss:$16 sps:$4 sm:$0xff]   ;;  %v20998_v22 = vld [vmem:[#allocation30 + $0x788] ss:$16 sps:$4 sm:$0xff]  }
 0x8c8   :  { %6913 = vmatmul.mubr.bf16.gmra.mrb[36].mxu1 %v6447_v30  ;;  %7026 = vmatmul.mubr.bf16.gmra.mrb[36].mxu0 %v6447_v30  ;;  %v20994_v30 = vld [vmem:[#allocation30 + $0x76c] ss:$16 sps:$4 sm:$0xff]  }
 0x8c9   :  { %7580 = vmatpush1.bf16.msra.mxu1 %v20971_v44  ;;  %7693 = vmatpush1.bf16.msra.mxu0 %v20974_v60  ;;  %v6394_v44 = vsel %vm6310_vm4, %v6392_v6, %v6393_v31  ;;  %v6234_v60 = vld [vmem:[#allocation3 + $0x1e0] sm:$0xfc]  ;;  %v6405_v6 = vrot.slane %v6245_v48, 2  ;;  %v20989_v31 = vld [vmem:[#allocation30 + $0x760] ss:$16 sps:$4 sm:$0xff]  }
 0x8ca   :  { %7581 = vmatprep.subr.bf16.mxu1 %v20979_v20  ;;  %7694 = vmatprep.subr.bf16.mxu0 %v20982_v55  ;;  %v6379_v20 = vsel %vm6310_vm4, %v6377_v35, %v6378_v59  ;;  %v6230_v55 = vld [vmem:[#allocation3 + $0x1c0] sm:$0xfc]  ;;  %v6452_v34 = vpack.c.bf16 %v6394_v44, %v6388_v47  ;;  %v6384_v35 = vrot.slane %v6232_v46, 2 }
 0x8cb   :  { %6922 = vmatprep.mubr.bf16.mxu1 %v6450_v19  ;;  %7035 = vmatprep.mubr.bf16.mxu0 %v6450_v19  ;;  %v6449_v26 = vpack.c.bf16 %v6379_v20, %v6373_v45  ;;  %v6389_v19 = vrot.slane %v6234_v60, 2  ;;  %v20997_v59 = vld [vmem:[#allocation30 + $0x784] ss:$16 sps:$4 sm:$0xff]   ;;  %v6400_v45 = vsel %vm6310_vm4, %v6398_v33, %v6399_v57  ;;  %v6406_v47 = vsel %vm6310_vm4, %v6404_v23, %v6405_v6  ;;  %v6240_v60 = vld [vmem:[#allocation3 + $0x210] sm:$0x3]  ;;  %v7131_v23 = vld [vmem:[#allocation3 + $0x28] sm:$0xff] }
 0x8cc   :  { %v6238_v44 = vld [vmem:[#allocation3 + $0x200] sm:$0xfc]  ;;  %v21006_v20 = vld [vmem:[#allocation30 + $0x7ac] ss:$16 sps:$4 sm:$0xff]   ;;  %v6454_v48 = vpack.c.bf16 %v6406_v47, %v6400_v45  ;;  %v21013_v45 = vld [vmem:[#allocation30 + $0x7e0] ss:$16 sps:$4 sm:$0xff]  }
 0x8cd   :  { %7582 = vmatpush1.bf16.msra.mxu1 %v20977_v54  ;;  %7695 = vmatpush1.bf16.msra.mxu0 %v20980_v27  ;;  %v20992_v54 = vld [vmem:[#allocation30 + $0x768] ss:$16 sps:$4 sm:$0xff]   ;;  %v6383_v27 = vrot.slane %v6230_v55, 2  ;;  %v21001_v55 = vld [vmem:[#allocation30 + $0x7a0] ss:$16 sps:$4 sm:$0xff]  }
 0x8ce   :  { %7583 = vmatprep.subr.bf16.mxu1 %v20985_v41  ;;  %7696 = vmatprep.subr.bf16.mxu0 %v20988_v53  ;;  %v21000_v41 = vld [vmem:[#allocation30 + $0x78c] ss:$16 sps:$4 sm:$0xff]   ;;  %v6391_v53 = vsel %vm6310_vm4, %v6389_v19, %v6390_v43  ;;  %v21004_v46 = vld [vmem:[#allocation30 + $0x7a8] ss:$16 sps:$4 sm:$0xff]   ;;  %v6402_v19 = vrot.slane %v6244_v0, 2 }
 0x8cf   :  { %v21009_v43 = vld [vmem:[#allocation30 + $0x7c4] ss:$16 sps:$4 sm:$0xff]   ;;  %v21012_v33 = vld [vmem:[#allocation30 + $0x7cc] ss:$16 sps:$4 sm:$0xff]   ;;  %v21016_v47 = vld [vmem:[#allocation30 + $0x7e8] ss:$16 sps:$4 sm:$0xff]  }
 0x8d0   :  { %6923 = vmatmul.mubr.bf16.gmra.mrb[40].mxu1 %v6449_v26  ;;  %7036 = vmatmul.mubr.bf16.gmra.mrb[40].mxu0 %v6449_v26  ;;  %v6395_v26 = vrot.slane %v6238_v44, 2  ;;  %v7133_v6 = vld [vmem:[#allocation3 + $0x48] sm:$0xff]  ;;  %v21021_v44 = vld [vmem:[#allocation30 + $0x804] ss:$16 sps:$4 sm:$0xff]  }
 0x8d1   :  { %7584 = vmatpush1.bf16.msra.mxu1 %v20983_v29  ;;  %7697 = vmatpush1.bf16.msra.mxu0 %v20986_v17  ;;  %v20995_v29 = vld [vmem:[#allocation30 + $0x780] ss:$16 sps:$4 sm:$0xff]   ;;  %v6385_v17 = vsel %vm6310_vm4, %v6383_v27, %v6384_v35  ;;  %v21010_v27 = vld [vmem:[#allocation30 + $0x7c8] ss:$16 sps:$4 sm:$0xff]   ;;  %v21027_v0 = vld [vmem:[#allocation30 + $0x824] ss:$16 sps:$4 sm:$0xff]  }
 0x8d2   :  { %7585 = vmatprep.subr.bf16.mxu1 %v20991_v25  ;;  %7698 = vmatprep.subr.bf16.mxu0 %v20994_v30  ;;  %v21003_v25 = vld [vmem:[#allocation30 + $0x7a4] ss:$16 sps:$4 sm:$0xff]   ;;  %v6451_v3 = vpack.c.bf16 %v6391_v53, %v6385_v17  ;;  %v6396_v30 = vrot.slane %v6240_v60, 2  ;;  %v7163_v53 = vpack.c.bf16 %v7133_v6, %v7131_v23  ;;  %v21024_v60 = vld [vmem:[#allocation30 + $0x80c] ss:$16 sps:$4 sm:$0xff]  }
 0x8d3   :  { %6932 = vmatprep.mubr.bf16.mxu1 %v6452_v34  ;;  %7045 = vmatprep.mubr.bf16.mxu0 %v6452_v34  ;;  %v6401_v34 = vrot.slane %v6242_v39, 2  ;;  %v7135_v17 = vld [vmem:[#allocation3 + $0x68] sm:$0xff]  ;;  %v7134_v23 = vld [vmem:[#allocation3 + $0x60] sm:$0xff] }
 0x8d4   :  { %v6397_v57 = vsel %vm6310_vm4, %v6395_v26, %v6396_v30  ;;  %v21025_v30 = vld [vmem:[#allocation30 + $0x820] ss:$16 sps:$4 sm:$0xff]   ;;  %v21034_v6 = vld [vmem:[#allocation30 + $0x848] ss:$16 sps:$4 sm:$0xff]  }
 0x8d5   :  { %7586 = vmatpush1.bf16.msra.mxu1 %v20989_v31  ;;  %7699 = vmatpush1.bf16.msra.mxu0 %v20992_v54  ;;  %v21007_v31 = vld [vmem:[#allocation30 + $0x7c0] ss:$16 sps:$4 sm:$0xff]   ;;  %v6403_v54 = vsel %vm6310_vm4, %v6401_v34, %v6402_v19  ;;  %v21036_v34 = vld [vmem:[#allocation30 + $0x84c] ss:$16 sps:$4 sm:$0xff]  }
 0x8d6   :  { %7587 = vmatprep.subr.bf16.mxu1 %v20997_v59  ;;  %7700 = vmatprep.subr.bf16.mxu0 %v21000_v41  ;;  %v6453_v35 = vpack.c.bf16 %v6403_v54, %v6397_v57  ;;  %v21015_v59 = vld [vmem:[#allocation30 + $0x7e4] ss:$16 sps:$4 sm:$0xff]   ;;  %v21018_v41 = vld [vmem:[#allocation30 + $0x7ec] ss:$16 sps:$4 sm:$0xff]   ;;  %v21031_v57 = vld [vmem:[#allocation30 + $0x840] ss:$16 sps:$4 sm:$0xff]  }
 0x8d7   :  { %v7136_v19 = vld [vmem:[#allocation3 + $0x80] sm:$0xff] }
 0x8d8   :  { %6933 = vmatmul.mubr.bf16.gmra.mrb[44].mxu1 %v6451_v3  ;;  %7046 = vmatmul.mubr.bf16.gmra.mrb[44].mxu0 %v6451_v3  ;;  %v7130_v3 = vld [vmem:[#allocation3 + $0x20] sm:$0xff] }
 0x8d9   :  { %7588 = vmatpush1.bf16.msra.mxu1 %v20995_v29  ;;  %7701 = vmatpush1.bf16.msra.mxu0 %v20998_v22  ;;  %v7132_v29 = vld [vmem:[#allocation3 + $0x40] sm:$0xff]  ;;  %v7137_v22 = vld [vmem:[#allocation3 + $0x88] sm:$0xff] }
 0x8da   :  { %7589 = vmatprep.subr.bf16.mxu1 %v21003_v25  ;;  %7702 = vmatprep.subr.bf16.mxu0 %v21006_v20  ;;  %v21019_v25 = vld [vmem:[#allocation30 + $0x800] ss:$16 sps:$4 sm:$0xff]   ;;  %v21022_v20 = vld [vmem:[#allocation30 + $0x808] ss:$16 sps:$4 sm:$0xff]   ;;  %v7162_v39 = vpack.c.bf16 %v7132_v29, %v7130_v3  ;;  %v7165_v26 = vpack.c.bf16 %v7137_v22, %v7135_v17  ;;  %v21039_v54 = vld [vmem:[#allocation30 + $0x864] ss:$16 sps:$4 sm:$0xff]  }
 0x8db   :  { %6942 = vmatprep.mubr.bf16.mxu1 %v6454_v48  ;;  %7055 = vmatprep.mubr.bf16.mxu0 %v6454_v48  ;;  %v21030_v48 = vld [vmem:[#allocation30 + $0x82c] ss:$16 sps:$4 sm:$0xff]   ;;  %v21043_v29 = vld [vmem:[#allocation30 + $0x880] ss:$16 sps:$4 sm:$0xff]   ;;  %v21046_v22 = vld [vmem:[#allocation30 + $0x888] ss:$16 sps:$4 sm:$0xff]  }
 0x8dc   :  { %v7138_v17 = vld [vmem:[#allocation3 + $0xa0] sm:$0xff] }
 0x8dd   :  { %7590 = vmatpush1.bf16.msra.mxu1 %v21001_v55  ;;  %7703 = vmatpush1.bf16.msra.mxu0 %v21004_v46  ;;  %v21028_v55 = vld [vmem:[#allocation30 + $0x828] ss:$16 sps:$4 sm:$0xff]   ;;  %v21033_v46 = vld [vmem:[#allocation30 + $0x844] ss:$16 sps:$4 sm:$0xff]  }
 0x8de   :  { %7591 = vmatprep.subr.bf16.mxu1 %v21009_v43  ;;  %7704 = vmatprep.subr.bf16.mxu0 %v21012_v33  ;;  %v7139_v43 = vld [vmem:[#allocation3 + $0xa8] sm:$0xff]  ;;  %v21051_v3 = vld [vmem:[#allocation30 + $0x8a4] ss:$16 sps:$4 sm:$0xff]  }
 0x8df   :  { %v7141_v33 = vld [vmem:[#allocation3 + $0xc8] sm:$0xff] }
 0x8e0   :  { %6943 = vmatmul.mubr.bf16.gmra.mrb[48].mxu1 %v6453_v35  ;;  %7056 = vmatmul.mubr.bf16.gmra.mrb[48].mxu0 %v6453_v35  ;;  %v7167_v35 = vpack.c.bf16 %v7141_v33, %v7139_v43  ;;  %v7142_v43 = vld [vmem:[#allocation3 + $0xe0] sm:$0xff] }
 0x8e1   :  { %7592 = vmatpush1.bf16.msra.mxu1 %v21007_v31  ;;  %7705 = vmatpush1.bf16.msra.mxu0 %v21010_v27  ;;  %v7164_v31 = vpack.c.bf16 %v7136_v19, %v7134_v23  ;;  %v21042_v27 = vld [vmem:[#allocation30 + $0x86c] ss:$16 sps:$4 sm:$0xff]   ;;  %v21055_v19 = vld [vmem:[#allocation30 + $0x8c0] ss:$16 sps:$4 sm:$0xff]   ;;  %v21058_v33 = vld [vmem:[#allocation30 + $0x8c8] ss:$16 sps:$4 sm:$0xff]  }
 0x8e2   :  { %7593 = vmatprep.subr.bf16.mxu1 %v21015_v59  ;;  %7706 = vmatprep.subr.bf16.mxu0 %v21018_v41  ;;  %v21037_v59 = vld [vmem:[#allocation30 + $0x860] ss:$16 sps:$4 sm:$0xff]   ;;  %v21040_v41 = vld [vmem:[#allocation30 + $0x868] ss:$16 sps:$4 sm:$0xff]   ;;  %v21063_v23 = vld [vmem:[#allocation30 + $0x8e4] ss:$16 sps:$4 sm:$0xff]  }
 0x8e3   :  { %7595 = vmatprep.mubr.bf16.mxu1 %v7163_v53  ;;  %7708 = vmatprep.mubr.bf16.mxu0 %v7163_v53  ;;  %v21045_v53 = vld [vmem:[#allocation30 + $0x884] ss:$16 sps:$4 sm:$0xff]  }
 0x8e5   :  { %7594 = vmatpush1.bf16.msra.mxu1 %v21013_v45  ;;  %7707 = vmatpush1.bf16.msra.mxu0 %v21016_v47  ;;  %v21048_v45 = vld [vmem:[#allocation30 + $0x88c] ss:$16 sps:$4 sm:$0xff]   ;;  %v7140_v47 = vld [vmem:[#allocation3 + $0xc0] sm:$0xff] }
 0x8e6   :  { %8510 = vmatprep.subr.bf16.mxu1 %v21021_v44  ;;  %8623 = vmatprep.subr.bf16.mxu0 %v21024_v60  ;;  %v7143_v44 = vld [vmem:[#allocation3 + $0xe8] sm:$0xff] }
 0x8e7   :  { %v7145_v60 = vld [vmem:[#allocation3 + $0x108] sm:$0xff] }
 0x8e8   :  { %7596 = vmatmul.mubr.bf16.vlgmr.msra.gmra.mrb[20].mxu1 %v7162_v39  ;;  %7709 = vmatmul.mubr.bf16.vlgmr.msra.gmra.mrb[20].mxu0 %v7162_v39  ;;  %v7169_v39 = vpack.c.bf16 %v7145_v60, %v7143_v44  ;;  %v7146_v44 = vld [vmem:[#allocation3 + $0x160] sm:$0xff] }
 0x8e9   :  { %8511 = vmatpush1.bf16.msra.mxu1 %v21019_v25  ;;  %8624 = vmatpush1.bf16.msra.mxu0 %v21022_v20  ;;  %v7166_v25 = vpack.c.bf16 %v7140_v47, %v7138_v17  ;;  %v21054_v20 = vld [vmem:[#allocation30 + $0x8ac] ss:$16 sps:$4 sm:$0xff]   ;;  %v21067_v47 = vld [vmem:[#allocation30 + $0x900] ss:$16 sps:$4 sm:$0xff]   ;;  %v21070_v60 = vld [vmem:[#allocation30 + $0x908] ss:$16 sps:$4 sm:$0xff]  }
 0x8ea   :  { %8512 = vmatprep.subr.bf16.mxu1 %v21027_v0  ;;  %8625 = vmatprep.subr.bf16.mxu0 %v21030_v48  ;;  %v21049_v0 = vld [vmem:[#allocation30 + $0x8a0] ss:$16 sps:$4 sm:$0xff]   ;;  %v21052_v48 = vld [vmem:[#allocation30 + $0x8a8] ss:$16 sps:$4 sm:$0xff]   ;;  %v21075_v17 = vld [vmem:[#allocation30 + $0x924] ss:$16 sps:$4 sm:$0xff]  }
 0x8eb   :  { %7605 = vmatprep.mubr.bf16.mxu1 %v7165_v26  ;;  %7718 = vmatprep.mubr.bf16.mxu0 %v7165_v26  ;;  %v21057_v26 = vld [vmem:[#allocation30 + $0x8c4] ss:$16 sps:$4 sm:$0xff]  }
 0x8ed   :  { %8513 = vmatpush1.bf16.msra.mxu1 %v21025_v30  ;;  %8626 = vmatpush1.bf16.msra.mxu0 %v21028_v55  ;;  %v21060_v30 = vld [vmem:[#allocation30 + $0x8cc] ss:$16 sps:$4 sm:$0xff]   ;;  %v7144_v55 = vld [vmem:[#allocation3 + $0x100] sm:$0xff] }
 0x8ee   :  { %8514 = vmatprep.subr.bf16.mxu1 %v21033_v46  ;;  %8627 = vmatprep.subr.bf16.mxu0 %v21036_v34  ;;  %v7147_v46 = vld [vmem:[#allocation3 + $0x168] sm:$0xff] }
 0x8ef   :  { %v7149_v34 = vld [vmem:[#allocation3 + $0x188] sm:$0xff] }
 0x8f0   :  { %7606 = vmatmul.mubr.bf16.gmra.mrb[24].mxu1 %v7164_v31  ;;  %7719 = vmatmul.mubr.bf16.gmra.mrb[24].mxu0 %v7164_v31  ;;  %v7171_v31 = vpack.c.bf16 %v7149_v34, %v7147_v46  ;;  %v7150_v46 = vld [vmem:[#allocation3 + $0x1a0] sm:$0xff] }
 0x8f1   :  { %8515 = vmatpush1.bf16.msra.mxu1 %v21031_v57  ;;  %8628 = vmatpush1.bf16.msra.mxu0 %v21034_v6  ;;  %v7168_v57 = vpack.c.bf16 %v7144_v55, %v7142_v43  ;;  %v21066_v6 = vld [vmem:[#allocation30 + $0x8ec] ss:$16 sps:$4 sm:$0xff]   ;;  %v21079_v55 = vld [vmem:[#allocation30 + $0x940] ss:$16 sps:$4 sm:$0xff]   ;;  %v21082_v34 = vld [vmem:[#allocation30 + $0x948] ss:$16 sps:$4 sm:$0xff]  }
 0x8f2   :  { %8516 = vmatprep.subr.bf16.mxu1 %v21039_v54  ;;  %8629 = vmatprep.subr.bf16.mxu0 %v21042_v27  ;;  %v21061_v54 = vld [vmem:[#allocation30 + $0x8e0] ss:$16 sps:$4 sm:$0xff]   ;;  %v21064_v27 = vld [vmem:[#allocation30 + $0x8e8] ss:$16 sps:$4 sm:$0xff]   ;;  %v21087_v43 = vld [vmem:[#allocation30 + $0x964] ss:$16 sps:$4 sm:$0xff]  }
 0x8f3   :  { %7615 = vmatprep.mubr.bf16.mxu1 %v7167_v35  ;;  %7728 = vmatprep.mubr.bf16.mxu0 %v7167_v35  ;;  %v21069_v35 = vld [vmem:[#allocation30 + $0x904] ss:$16 sps:$4 sm:$0xff]  }
 0x8f5   :  { %8517 = vmatpush1.bf16.msra.mxu1 %v21037_v59  ;;  %8630 = vmatpush1.bf16.msra.mxu0 %v21040_v41  ;;  %v21072_v59 = vld [vmem:[#allocation30 + $0x90c] ss:$16 sps:$4 sm:$0xff]   ;;  %v7148_v41 = vld [vmem:[#allocation3 + $0x180] sm:$0xff] }
 0x8f6   :  { %8518 = vmatprep.subr.bf16.mxu1 %v21045_v53  ;;  %8631 = vmatprep.subr.bf16.mxu0 %v21048_v45  ;;  %v7151_v53 = vld [vmem:[#allocation3 + $0x1a8] sm:$0xff] }
 0x8f7   :  { %v7153_v45 = vld [vmem:[#allocation3 + $0x1c8] sm:$0xff] }
 0x8f8   :  { %7616 = vmatmul.mubr.bf16.gmra.mrb[28].mxu1 %v7166_v25  ;;  %7729 = vmatmul.mubr.bf16.gmra.mrb[28].mxu0 %v7166_v25  ;;  %v7173_v25 = vpack.c.bf16 %v7153_v45, %v7151_v53  ;;  %v7159_v53 = vld [vmem:[#allocation3 + $0x228] sm:$0xff] }
 0x8f9   :  { %8519 = vmatpush1.bf16.msra.mxu1 %v21043_v29  ;;  %8632 = vmatpush1.bf16.msra.mxu0 %v21046_v22  ;;  %v7170_v29 = vpack.c.bf16 %v7148_v41, %v7146_v44  ;;  %v21078_v22 = vld [vmem:[#allocation30 + $0x92c] ss:$16 sps:$4 sm:$0xff]   ;;  %v21094_v41 = vld [vmem:[#allocation30 + $0x988] ss:$16 sps:$4 sm:$0xff]  }
 0x8fa   :  { %8520 = vmatprep.subr.bf16.mxu1 %v21051_v3  ;;  %8633 = vmatprep.subr.bf16.mxu0 %v21054_v20  ;;  %v21073_v3 = vld [vmem:[#allocation30 + $0x920] ss:$16 sps:$4 sm:$0xff]   ;;  %v21076_v20 = vld [vmem:[#allocation30 + $0x928] ss:$16 sps:$4 sm:$0xff]  }
 0x8fb   :  { %7625 = vmatprep.mubr.bf16.mxu1 %v7169_v39  ;;  %7738 = vmatprep.mubr.bf16.mxu0 %v7169_v39  ;;  %v21081_v39 = vld [vmem:[#allocation30 + $0x944] ss:$16 sps:$4 sm:$0xff]   ;;  %v7161_v45 = vld [vmem:[#allocation3 + $0x248] sm:$0xff]  ;;  %v7856_v44 = vld [vmem:[#allocation3 + $0x38] sm:$0x1] }
 0x8fd   :  { %8521 = vmatpush1.bf16.msra.mxu1 %v21049_v0  ;;  %8634 = vmatpush1.bf16.msra.mxu0 %v21052_v48  ;;  %v21084_v0 = vld [vmem:[#allocation30 + $0x94c] ss:$16 sps:$4 sm:$0xff]   ;;  %v7152_v48 = vld [vmem:[#allocation3 + $0x1c0] sm:$0xff] }
 0x8fe   :  { %8522 = vmatprep.subr.bf16.mxu1 %v21057_v26  ;;  %8635 = vmatprep.subr.bf16.mxu0 %v21060_v30  ;;  %v7155_v26 = vld [vmem:[#allocation3 + $0x1e8] sm:$0xff] }
 0x8ff   :  { %v7157_v30 = vld [vmem:[#allocation3 + $0x208] sm:$0xff] }
 0x900   :  { %7626 = vmatmul.mubr.bf16.gmra.mrb[32].mxu1 %v7168_v57  ;;  %7739 = vmatmul.mubr.bf16.gmra.mrb[32].mxu0 %v7168_v57  ;;  %v7175_v57 = vpack.c.bf16 %v7157_v30, %v7155_v26  ;;  %v21097_v26 = vld [vmem:[#allocation30 + $0x9a0] ss:$16 sps:$4 sm:$0xff]   ;;  %v21100_v30 = vld [vmem:[#allocation30 + $0x9a8] ss:$16 sps:$4 sm:$0xff]  }
 0x901   :  { %8523 = vmatpush1.bf16.msra.mxu1 %v21055_v19  ;;  %8636 = vmatpush1.bf16.msra.mxu0 %v21058_v33  ;;  %v7172_v19 = vpack.c.bf16 %v7152_v48, %v7150_v46  ;;  %v21090_v33 = vld [vmem:[#allocation30 + $0x96c] ss:$16 sps:$4 sm:$0xff]  }
 0x902   :  { %8524 = vmatprep.subr.bf16.mxu1 %v21063_v23  ;;  %8637 = vmatprep.subr.bf16.mxu0 %v21066_v6  ;;  %v21085_v23 = vld [vmem:[#allocation30 + $0x960] ss:$16 sps:$4 sm:$0xff]   ;;  %v21088_v6 = vld [vmem:[#allocation30 + $0x968] ss:$16 sps:$4 sm:$0xff]   ;;  %v21108_v46 = vld [vmem:[#allocation30 + $0x9cc] ss:$16 sps:$4 sm:$0xff]  }
 0x903   :  { %7635 = vmatprep.mubr.bf16.mxu1 %v7171_v31  ;;  %7748 = vmatprep.mubr.bf16.mxu0 %v7171_v31  ;;  %v21093_v31 = vld [vmem:[#allocation30 + $0x984] ss:$16 sps:$4 sm:$0xff]  }
 0x905   :  { %8525 = vmatpush1.bf16.msra.mxu1 %v21061_v54  ;;  %8638 = vmatpush1.bf16.msra.mxu0 %v21064_v27  ;;  %v21096_v54 = vld [vmem:[#allocation30 + $0x98c] ss:$16 sps:$4 sm:$0xff]   ;;  %v21091_v27 = vld [vmem:[#allocation30 + $0x980] ss:$16 sps:$4 sm:$0xff]  }
 0x906   :  { %8526 = vmatprep.subr.bf16.mxu1 %v21069_v35  ;;  %8639 = vmatprep.subr.bf16.mxu0 %v21072_v59  ;;  %v7154_v35 = vld [vmem:[#allocation3 + $0x1e0] sm:$0xff] }
 0x907   :  { %v7156_v59 = vld [vmem:[#allocation3 + $0x200] sm:$0xff] }
 0x908   :  { %7636 = vmatmul.mubr.bf16.gmra.mrb[36].mxu1 %v7170_v29  ;;  %7749 = vmatmul.mubr.bf16.gmra.mrb[36].mxu0 %v7170_v29  ;;  %v7860_v29 = vld [vmem:[#allocation3 + $0x58] sm:$0x1] }
 0x909   :  { %8527 = vmatpush1.bf16.msra.mxu1 %v21067_v47  ;;  %8640 = vmatpush1.bf16.msra.mxu0 %v21070_v60  ;;  %v7854_v47 = vld [vmem:[#allocation3 + $0x28] sm:$0xfe]  ;;  %v7991_v48 = vrot.slane %v7860_v29, 1 }
 0x90a   :  { %8528 = vmatprep.subr.bf16.mxu1 %v21075_v17  ;;  %8641 = vmatprep.subr.bf16.mxu0 %v21078_v22  ;;  %v7858_v60 = vld [vmem:[#allocation3 + $0x48] sm:$0xfe]  ;;  %v7174_v17 = vpack.c.bf16 %v7156_v59, %v7154_v35  ;;  %v21099_v22 = vld [vmem:[#allocation30 + $0x9a4] ss:$16 sps:$4 sm:$0xff]   ;;  %v7864_v35 = vld [vmem:[#allocation3 + $0x78] sm:$0x1] }
 0x90b   :  { %7645 = vmatprep.mubr.bf16.mxu1 %v7173_v25  ;;  %7758 = vmatprep.mubr.bf16.mxu0 %v7173_v25  ;;  %v21102_v25 = vld [vmem:[#allocation30 + $0x9ac] ss:$16 sps:$4 sm:$0xff]  }
 0x90c   :  { %v7866_v59 = vld [vmem:[#allocation3 + $0x88] sm:$0xfe] }
 0x90d   :  { %8529 = vmatpush1.bf16.msra.mxu1 %v21073_v3  ;;  %8642 = vmatpush1.bf16.msra.mxu0 %v21076_v20  ;;  %v7177_v3 = vpack.c.bf16 %v7161_v45, %v7159_v53  ;;  %v7984_v20 = vrot.slane %v7854_v47, 1  ;;  %v21111_v45 = vld [vmem:[#allocation30 + $0x9e4] ss:$16 sps:$4 sm:$0xff]   ;;  %v21114_v47 = vld [vmem:[#allocation30 + $0x9ec] ss:$16 sps:$4 sm:$0xff]  }
 0x90e   :  { %8530 = vmatprep.subr.bf16.mxu1 %v21081_v39  ;;  %8643 = vmatprep.subr.bf16.mxu0 %v21084_v0  ;;  %v7985_v39 = vrot.slane %v7856_v44, 1  ;;  %v7990_v0 = vrot.slane %v7858_v60, 1  ;;  %v7855_v44 = vld [vmem:[#allocation3 + $0x30] sm:$0x1] }
 0x910   :  { %7646 = vmatmul.mubr.bf16.gmra.mrb[40].mxu1 %v7172_v19  ;;  %7759 = vmatmul.mubr.bf16.gmra.mrb[40].mxu0 %v7172_v19  ;;  %v7160_v19 = vld [vmem:[#allocation3 + $0x240] sm:$0xff] }
 0x911   :  { %8531 = vmatpush1.bf16.msra.mxu1 %v21079_v55  ;;  %8644 = vmatpush1.bf16.msra.mxu0 %v21082_v34  ;;  %v21105_v55 = vld [vmem:[#allocation30 + $0x9c4] ss:$16 sps:$4 sm:$0xff]  }
 0x912   :  { %8532 = vmatprep.subr.bf16.mxu1 %v21087_v43  ;;  %8645 = vmatprep.subr.bf16.mxu0 %v21090_v33  ;;  %v7158_v34 = vld [vmem:[#allocation3 + $0x220] sm:$0xff]  ;;  %v7859_v33 = vld [vmem:[#allocation3 + $0x50] sm:$0x1] }
 0x913   :  { %7655 = vmatprep.mubr.bf16.mxu1 %v7175_v57  ;;  %7768 = vmatprep.mubr.bf16.mxu0 %v7175_v57  ;;  %v7857_v43 = vld [vmem:[#allocation3 + $0x40] sm:$0xfe]  ;;  %v7176_v53 = vpack.c.bf16 %v7160_v19, %v7158_v34  ;;  %v7867_v19 = vld [vmem:[#allocation3 + $0x90] sm:$0x1] }
 0x914   :  { %v21103_v57 = vld [vmem:[#allocation30 + $0x9c0] ss:$16 sps:$4 sm:$0xff]   ;;  %v7987_v29 = vrot.slane %v7857_v43, 1 }
 0x915   :  { %8533 = vmatpush1.bf16.msra.mxu1 %v21085_v23  ;;  %8646 = vmatpush1.bf16.msra.mxu0 %v21088_v6  ;;  %v21106_v23 = vld [vmem:[#allocation30 + $0x9c8] ss:$16 sps:$4 sm:$0xff]   ;;  %v7986_v6 = vsel %vm4880_vm3, %v7984_v20, %v7985_v39  ;;  %v21109_v39 = vld [vmem:[#allocation30 + $0x9e0] ss:$16 sps:$4 sm:$0xff]  }
 0x916   :  { %8534 = vmatprep.subr.bf16.mxu1 %v21093_v31  ;;  %8647 = vmatprep.subr.bf16.mxu0 %v21096_v54  ;;  %v7992_v31 = vsel %vm4880_vm3, %v7990_v0, %v7991_v48  ;;  %v7853_v54 = vld [vmem:[#allocation3 + $0x20] sm:$0xfe] }
 0x917   :  { %v8110_v60 = vpack.c.bf16 %v7992_v31, %v7986_v6  ;;  %v21112_v0 = vld [vmem:[#allocation30 + $0x9e8] ss:$16 sps:$4 sm:$0xff]   ;;  %v7981_v48 = vrot.slane %v7853_v54, 1  ;;  %v21115_v43 = vld [vmem:[#allocation30 + $0xa00] ss:$16 sps:$4 sm:$0xff]  }
 0x918   :  { %7656 = vmatmul.mubr.bf16.gmra.mrb[44].mxu1 %v7174_v17  ;;  %7769 = vmatmul.mubr.bf16.gmra.mrb[44].mxu0 %v7174_v17  ;;  %v7988_v17 = vrot.slane %v7859_v33, 1  ;;  %v7865_v34 = vld [vmem:[#allocation3 + $0x80] sm:$0xfe]  ;;  %v7870_v31 = vld [vmem:[#allocation3 + $0xa8] sm:$0xfe] }
 0x919   :  { %8535 = vmatpush1.bf16.msra.mxu1 %v21091_v27  ;;  %8648 = vmatpush1.bf16.msra.mxu0 %v21094_v41  ;;  %v7862_v27 = vld [vmem:[#allocation3 + $0x68] sm:$0xfe]  ;;  %v7868_v41 = vld [vmem:[#allocation3 + $0x98] sm:$0x1] }
 0x91a   :  { %8536 = vmatprep.subr.bf16.mxu1 %v21099_v22  ;;  %8649 = vmatprep.subr.bf16.mxu0 %v21102_v25  ;;  %v7996_v22 = vrot.slane %v7862_v27, 1  ;;  %v7997_v25 = vrot.slane %v7864_v35, 1  ;;  %v8003_v20 = vrot.slane %v7868_v41, 1  ;;  %v21118_v33 = vld [vmem:[#allocation30 + $0xa08] ss:$16 sps:$4 sm:$0xff]  }
 0x91b   :  { %7665 = vmatprep.mubr.bf16.mxu1 %v7177_v3  ;;  %7778 = vmatprep.mubr.bf16.mxu0 %v7177_v3  ;;  %v8002_v3 = vrot.slane %v7866_v59, 1  ;;  %v7872_v27 = vld [vmem:[#allocation3 + $0xb8] sm:$0x1]  ;;  %v7874_v35 = vld [vmem:[#allocation3 + $0xc8] sm:$0xfe] }
 0x91c   :  { %v7998_v6 = vsel %vm4880_vm3, %v7996_v22, %v7997_v25  ;;  %v7876_v59 = vld [vmem:[#allocation3 + $0xd8] sm:$0x1]  ;;  %v8009_v22 = vrot.slane %v7872_v27, 1  ;;  %v8014_v25 = vrot.slane %v7874_v35, 1  ;;  %v7882_v27 = vld [vmem:[#allocation3 + $0x108] sm:$0xfe] }
 0x91d   :  { %8537 = vmatpush1.bf16.msra.mxu1 %v21097_v26  ;;  %8650 = vmatpush1.bf16.msra.mxu0 %v21100_v30  ;;  %v7982_v26 = vrot.slane %v7855_v44, 1  ;;  %v21117_v30 = vld [vmem:[#allocation30 + $0xa04] ss:$16 sps:$4 sm:$0xff]   ;;  %v7884_v35 = vld [vmem:[#allocation3 + $0x118] sm:$0x1] }
 0x91e   :  { %8538 = vmatprep.subr.bf16.mxu1 %v21105_v55  ;;  %8651 = vmatprep.subr.bf16.mxu0 %v21108_v46  ;;  %v21120_v55 = vld [vmem:[#allocation30 + $0xa0c] ss:$16 sps:$4 sm:$0xff]   ;;  %v7989_v46 = vsel %vm4880_vm3, %v7987_v29, %v7988_v17  ;;  %v8000_v29 = vrot.slane %v7867_v19, 1  ;;  %v8008_v17 = vrot.slane %v7870_v31, 1  ;;  %v21127_v19 = vld [vmem:[#allocation30 + $0xa40] ss:$16 sps:$4 sm:$0xff]  }
 0x91f   :  { %v7983_v54 = vsel %vm4880_vm3, %v7981_v48, %v7982_v26  ;;  %v21129_v26 = vld [vmem:[#allocation30 + $0xa44] ss:$16 sps:$4 sm:$0xff]   ;;  %v7878_v31 = vld [vmem:[#allocation3 + $0xe8] sm:$0xfe] }
 0x920   :  { %7666 = vmatmul.mubr.bf16.gmra.mrb[48].mxu1 %v7176_v53  ;;  %7779 = vmatmul.mubr.bf16.gmra.mrb[48].mxu0 %v7176_v53  ;;  %v8109_v41 = vpack.c.bf16 %v7989_v46, %v7983_v54  ;;  %v21123_v53 = vld [vmem:[#allocation30 + $0xa24] ss:$16 sps:$4 sm:$0xff]   ;;  %v7880_v54 = vld [vmem:[#allocation3 + $0xf8] sm:$0x1] }
 0x921   :  { %8539 = vmatpush1.bf16.msra.mxu1 %v21103_v57  ;;  %8652 = vmatpush1.bf16.msra.mxu0 %v21106_v23  ;;  %v8004_v57 = vsel %vm4880_vm3, %v8002_v3, %v8003_v20  ;;  %v7861_v23 = vld [vmem:[#allocation3 + $0x60] sm:$0xfe]  ;;  %v8015_v3 = vrot.slane %v7876_v59, 1 }
 0x922   :  { %8540 = vmatprep.subr.bf16.mxu1 %v21111_v45  ;;  %8653 = vmatprep.subr.bf16.mxu0 %v21114_v47  ;;  %v21126_v45 = vld [vmem:[#allocation30 + $0xa2c] ss:$16 sps:$4 sm:$0xff]   ;;  %v7863_v47 = vld [vmem:[#allocation3 + $0x70] sm:$0x1]  ;;  %v8112_v44 = vpack.c.bf16 %v8004_v57, %v7998_v6  ;;  %v7873_v46 = vld [vmem:[#allocation3 + $0xc0] sm:$0xfe]  ;;  %v8010_v57 = vsel %vm4880_vm3, %v8008_v17, %v8009_v22 }
 0x923   :  { %8542 = vmatprep.mubr.bf16.mxu1 %v8110_v60  ;;  %8655 = vmatprep.mubr.bf16.mxu0 %v8110_v60  ;;  %v7999_v60 = vrot.slane %v7865_v34, 1  ;;  %v21121_v20 = vld [vmem:[#allocation30 + $0xa20] ss:$16 sps:$4 sm:$0xff]   ;;  %v7994_v48 = vrot.slane %v7863_v47, 1  ;;  %v21130_v6 = vld [vmem:[#allocation30 + $0xa48] ss:$16 sps:$4 sm:$0xff]  }
 0x924   :  { %v7875_v34 = vld [vmem:[#allocation3 + $0xd0] sm:$0x1]  ;;  %v8021_v17 = vrot.slane %v7880_v54, 1  ;;  %v8026_v22 = vrot.slane %v7882_v27, 1  ;;  %v7890_v54 = vld [vmem:[#allocation3 + $0x188] sm:$0xfe] }
 0x925   :  { %8541 = vmatpush1.bf16.msra.mxu1 %v21109_v39  ;;  %8654 = vmatpush1.bf16.msra.mxu0 %v21112_v0  ;;  %v21124_v39 = vld [vmem:[#allocation30 + $0xa28] ss:$16 sps:$4 sm:$0xff]   ;;  %v7993_v0 = vrot.slane %v7861_v23, 1 }
 0x926   :  { %9457 = vmatprep.subr.bf16.mxu1 %v21117_v30  ;;  %9570 = vmatprep.subr.bf16.mxu0 %v21120_v55  ;;  %v21132_v30 = vld [vmem:[#allocation30 + $0xa4c] ss:$16 sps:$4 sm:$0xff]   ;;  %v8001_v55 = vsel %vm4880_vm3, %v7999_v60, %v8000_v29  ;;  %v8012_v60 = vrot.slane %v7875_v34, 1  ;;  %v8020_v29 = vrot.slane %v7878_v31, 1  ;;  %v21139_v34 = vld [vmem:[#allocation30 + $0xa80] ss:$16 sps:$4 sm:$0xff]  }
 0x927   :  { %v7995_v23 = vsel %vm4880_vm3, %v7993_v0, %v7994_v48  ;;  %v21141_v48 = vld [vmem:[#allocation30 + $0xa84] ss:$16 sps:$4 sm:$0xff]   ;;  %v7886_v31 = vld [vmem:[#allocation3 + $0x168] sm:$0xfe]  ;;  %v7892_v27 = vld [vmem:[#allocation3 + $0x198] sm:$0x1] }
 0x928   :  { %8543 = vmatmul.mubr.bf16.vlgmr.msra.gmra.mrb[20].mxu1 %v8109_v41  ;;  %8656 = vmatmul.mubr.bf16.vlgmr.msra.gmra.mrb[20].mxu0 %v8109_v41  ;;  %v8111_v59 = vpack.c.bf16 %v8001_v55, %v7995_v23  ;;  %v21135_v41 = vld [vmem:[#allocation30 + $0xa64] ss:$16 sps:$4 sm:$0xff]   ;;  %v7888_v23 = vld [vmem:[#allocation3 + $0x178] sm:$0x1] }
 0x929   :  { %9458 = vmatpush1.bf16.msra.mxu1 %v21115_v43  ;;  %9571 = vmatpush1.bf16.msra.mxu0 %v21118_v33  ;;  %v8016_v43 = vsel %vm4880_vm3, %v8014_v25, %v8015_v3  ;;  %v7869_v33 = vld [vmem:[#allocation3 + $0xa0] sm:$0xfe]  ;;  %v8027_v25 = vrot.slane %v7884_v35, 1 }
 0x92a   :  { %9459 = vmatprep.subr.bf16.mxu1 %v21123_v53  ;;  %9572 = vmatprep.subr.bf16.mxu0 %v21126_v45  ;;  %v21138_v53 = vld [vmem:[#allocation30 + $0xa6c] ss:$16 sps:$4 sm:$0xff]   ;;  %v7871_v45 = vld [vmem:[#allocation3 + $0xb0] sm:$0x1]  ;;  %v8114_v47 = vpack.c.bf16 %v8016_v43, %v8010_v57  ;;  %v7881_v55 = vld [vmem:[#allocation3 + $0x100] sm:$0xfe]  ;;  %v8022_v43 = vsel %vm4880_vm3, %v8020_v29, %v8021_v17 }
 0x92b   :  { %8552 = vmatprep.mubr.bf16.mxu1 %v8112_v44  ;;  %8665 = vmatprep.mubr.bf16.mxu0 %v8112_v44  ;;  %v8011_v44 = vrot.slane %v7873_v46, 1  ;;  %v21133_v3 = vld [vmem:[#allocation30 + $0xa60] ss:$16 sps:$4 sm:$0xff]   ;;  %v8006_v0 = vrot.slane %v7871_v45, 1  ;;  %v21142_v57 = vld [vmem:[#allocation30 + $0xa88] ss:$16 sps:$4 sm:$0xff]  }
 0x92c   :  { %v7883_v46 = vld [vmem:[#allocation3 + $0x110] sm:$0x1]  ;;  %v8033_v29 = vrot.slane %v7888_v23, 1  ;;  %v8038_v17 = vrot.slane %v7890_v54, 1  ;;  %v7898_v23 = vld [vmem:[#allocation3 + $0x1c8] sm:$0xfe] }
 0x92d   :  { %9460 = vmatpush1.bf16.msra.mxu1 %v21121_v20  ;;  %9573 = vmatpush1.bf16.msra.mxu0 %v21124_v39  ;;  %v21136_v20 = vld [vmem:[#allocation30 + $0xa68] ss:$16 sps:$4 sm:$0xff]   ;;  %v8005_v39 = vrot.slane %v7869_v33, 1 }
 0x92e   :  { %9461 = vmatprep.subr.bf16.mxu1 %v21129_v26  ;;  %9574 = vmatprep.subr.bf16.mxu0 %v21132_v30  ;;  %v21144_v26 = vld [vmem:[#allocation30 + $0xa8c] ss:$16 sps:$4 sm:$0xff]   ;;  %v8013_v30 = vsel %vm4880_vm3, %v8011_v44, %v8012_v60  ;;  %v8024_v44 = vrot.slane %v7883_v46, 1  ;;  %v8032_v60 = vrot.slane %v7886_v31, 1  ;;  %v21151_v46 = vld [vmem:[#allocation30 + $0xac0] ss:$16 sps:$4 sm:$0xff]  }
 0x92f   :  { %v8007_v33 = vsel %vm4880_vm3, %v8005_v39, %v8006_v0  ;;  %v21153_v0 = vld [vmem:[#allocation30 + $0xac4] ss:$16 sps:$4 sm:$0xff]   ;;  %v7894_v31 = vld [vmem:[#allocation3 + $0x1a8] sm:$0xfe]  ;;  %v7900_v54 = vld [vmem:[#allocation3 + $0x1d8] sm:$0x1] }
 0x930   :  { %8553 = vmatmul.mubr.bf16.gmra.mrb[24].mxu1 %v8111_v59  ;;  %8666 = vmatmul.mubr.bf16.gmra.mrb[24].mxu0 %v8111_v59  ;;  %v8113_v35 = vpack.c.bf16 %v8013_v30, %v8007_v33  ;;  %v21147_v59 = vld [vmem:[#allocation30 + $0xaa4] ss:$16 sps:$4 sm:$0xff]   ;;  %v7896_v33 = vld [vmem:[#allocation3 + $0x1b8] sm:$0x1] }
 0x931   :  { %9462 = vmatpush1.bf16.msra.mxu1 %v21127_v19  ;;  %9575 = vmatpush1.bf16.msra.mxu0 %v21130_v6  ;;  %v8028_v19 = vsel %vm4880_vm3, %v8026_v22, %v8027_v25  ;;  %v7877_v6 = vld [vmem:[#allocation3 + $0xe0] sm:$0xfe]  ;;  %v8039_v22 = vrot.slane %v7892_v27, 1 }
 0x932   :  { %9463 = vmatprep.subr.bf16.mxu1 %v21135_v41  ;;  %9576 = vmatprep.subr.bf16.mxu0 %v21138_v53  ;;  %v21150_v41 = vld [vmem:[#allocation30 + $0xaac] ss:$16 sps:$4 sm:$0xff]   ;;  %v7879_v53 = vld [vmem:[#allocation3 + $0xf0] sm:$0x1]  ;;  %v8116_v45 = vpack.c.bf16 %v8028_v19, %v8022_v43  ;;  %v7889_v30 = vld [vmem:[#allocation3 + $0x180] sm:$0xfe]  ;;  %v8034_v19 = vsel %vm4880_vm3, %v8032_v60, %v8033_v29 }
 0x933   :  { %8562 = vmatprep.mubr.bf16.mxu1 %v8114_v47  ;;  %8675 = vmatprep.mubr.bf16.mxu0 %v8114_v47  ;;  %v8023_v47 = vrot.slane %v7881_v55, 1  ;;  %v21145_v25 = vld [vmem:[#allocation30 + $0xaa0] ss:$16 sps:$4 sm:$0xff]   ;;  %v8018_v39 = vrot.slane %v7879_v53, 1  ;;  %v21154_v43 = vld [vmem:[#allocation30 + $0xac8] ss:$16 sps:$4 sm:$0xff]  }
 0x934   :  { %v7891_v55 = vld [vmem:[#allocation3 + $0x190] sm:$0x1]  ;;  %v8045_v60 = vrot.slane %v7896_v33, 1  ;;  %v8050_v29 = vrot.slane %v7898_v23, 1  ;;  %v7906_v33 = vld [vmem:[#allocation3 + $0x208] sm:$0xfe] }
 0x935   :  { %9464 = vmatpush1.bf16.msra.mxu1 %v21133_v3  ;;  %9577 = vmatpush1.bf16.msra.mxu0 %v21136_v20  ;;  %v21148_v3 = vld [vmem:[#allocation30 + $0xaa8] ss:$16 sps:$4 sm:$0xff]   ;;  %v8017_v20 = vrot.slane %v7877_v6, 1 }
 0x936   :  { %9465 = vmatprep.subr.bf16.mxu1 %v21141_v48  ;;  %9578 = vmatprep.subr.bf16.mxu0 %v21144_v26  ;;  %v21156_v48 = vld [vmem:[#allocation30 + $0xacc] ss:$16 sps:$4 sm:$0xff]   ;;  %v8025_v26 = vsel %vm4880_vm3, %v8023_v47, %v8024_v44  ;;  %v8036_v47 = vrot.slane %v7891_v55, 1  ;;  %v8044_v44 = vrot.slane %v7894_v31, 1  ;;  %v21163_v55 = vld [vmem:[#allocation30 + $0xb00] ss:$16 sps:$4 sm:$0xff]  }
 0x937   :  { %v8019_v6 = vsel %vm4880_vm3, %v8017_v20, %v8018_v39  ;;  %v21165_v39 = vld [vmem:[#allocation30 + $0xb04] ss:$16 sps:$4 sm:$0xff]   ;;  %v7902_v31 = vld [vmem:[#allocation3 + $0x1e8] sm:$0xfe]  ;;  %v7908_v23 = vld [vmem:[#allocation3 + $0x218] sm:$0x1] }
 0x938   :  { %8563 = vmatmul.mubr.bf16.gmra.mrb[28].mxu1 %v8113_v35  ;;  %8676 = vmatmul.mubr.bf16.gmra.mrb[28].mxu0 %v8113_v35  ;;  %v8115_v27 = vpack.c.bf16 %v8025_v26, %v8019_v6  ;;  %v21159_v35 = vld [vmem:[#allocation30 + $0xae4] ss:$16 sps:$4 sm:$0xff]   ;;  %v7904_v6 = vld [vmem:[#allocation3 + $0x1f8] sm:$0x1] }
 0x939   :  { %9466 = vmatpush1.bf16.msra.mxu1 %v21139_v34  ;;  %9579 = vmatpush1.bf16.msra.mxu0 %v21142_v57  ;;  %v8040_v34 = vsel %vm4880_vm3, %v8038_v17, %v8039_v22  ;;  %v7885_v57 = vld [vmem:[#allocation3 + $0x160] sm:$0xfe]  ;;  %v8051_v17 = vrot.slane %v7900_v54, 1 }
 0x93a   :  { %9467 = vmatprep.subr.bf16.mxu1 %v21147_v59  ;;  %9580 = vmatprep.subr.bf16.mxu0 %v21150_v41  ;;  %v21162_v59 = vld [vmem:[#allocation30 + $0xaec] ss:$16 sps:$4 sm:$0xff]   ;;  %v7887_v41 = vld [vmem:[#allocation3 + $0x170] sm:$0x1]  ;;  %v8118_v53 = vpack.c.bf16 %v8040_v34, %v8034_v19  ;;  %v7897_v26 = vld [vmem:[#allocation3 + $0x1c0] sm:$0xfe]  ;;  %v8046_v34 = vsel %vm4880_vm3, %v8044_v44, %v8045_v60 }
 0x93b   :  { %8572 = vmatprep.mubr.bf16.mxu1 %v8116_v45  ;;  %8685 = vmatprep.mubr.bf16.mxu0 %v8116_v45  ;;  %v8035_v45 = vrot.slane %v7889_v30, 1  ;;  %v21157_v22 = vld [vmem:[#allocation30 + $0xae0] ss:$16 sps:$4 sm:$0xff]   ;;  %v8030_v20 = vrot.slane %v7887_v41, 1  ;;  %v21166_v19 = vld [vmem:[#allocation30 + $0xb08] ss:$16 sps:$4 sm:$0xff]  }
 0x93c   :  { %v7899_v30 = vld [vmem:[#allocation3 + $0x1d0] sm:$0x1]  ;;  %v8057_v44 = vrot.slane %v7904_v6, 1  ;;  %v8062_v60 = vrot.slane %v7906_v33, 1  ;;  %v7914_v6 = vld [vmem:[#allocation3 + $0x248] sm:$0xfe] }
 0x93d   :  { %9468 = vmatpush1.bf16.msra.mxu1 %v21145_v25  ;;  %9581 = vmatpush1.bf16.msra.mxu0 %v21148_v3  ;;  %v21160_v25 = vld [vmem:[#allocation30 + $0xae8] ss:$16 sps:$4 sm:$0xff]   ;;  %v8029_v3 = vrot.slane %v7885_v57, 1 }
 0x93e   :  { %9469 = vmatprep.subr.bf16.mxu1 %v21153_v0  ;;  %9582 = vmatprep.subr.bf16.mxu0 %v21156_v48  ;;  %v21168_v0 = vld [vmem:[#allocation30 + $0xb0c] ss:$16 sps:$4 sm:$0xff]   ;;  %v8037_v48 = vsel %vm4880_vm3, %v8035_v45, %v8036_v47  ;;  %v8048_v45 = vrot.slane %v7899_v30, 1  ;;  %v8056_v47 = vrot.slane %v7902_v31, 1  ;;  %v21175_v30 = vld [vmem:[#allocation30 + $0xb40] ss:$16 sps:$4 sm:$0xff]  }
 0x93f   :  { %v8031_v57 = vsel %vm4880_vm3, %v8029_v3, %v8030_v20  ;;  %v21177_v20 = vld [vmem:[#allocation30 + $0xb44] ss:$16 sps:$4 sm:$0xff]   ;;  %v7910_v31 = vld [vmem:[#allocation3 + $0x228] sm:$0xfe]  ;;  %v7916_v33 = vld [vmem:[#allocation3 + $0x258] sm:$0x1] }
 0x940   :  { %8573 = vmatmul.mubr.bf16.gmra.mrb[32].mxu1 %v8115_v27  ;;  %8686 = vmatmul.mubr.bf16.gmra.mrb[32].mxu0 %v8115_v27  ;;  %v8117_v54 = vpack.c.bf16 %v8037_v48, %v8031_v57  ;;  %v21171_v27 = vld [vmem:[#allocation30 + $0xb24] ss:$16 sps:$4 sm:$0xff]   ;;  %v7912_v57 = vld [vmem:[#allocation3 + $0x238] sm:$0x1] }
 0x941   :  { %9470 = vmatpush1.bf16.msra.mxu1 %v21151_v46  ;;  %9583 = vmatpush1.bf16.msra.mxu0 %v21154_v43  ;;  %v8052_v46 = vsel %vm4880_vm3, %v8050_v29, %v8051_v17  ;;  %v7893_v43 = vld [vmem:[#allocation3 + $0x1a0] sm:$0xfe]  ;;  %v8063_v29 = vrot.slane %v7908_v23, 1 }
 0x942   :  { %9471 = vmatprep.subr.bf16.mxu1 %v21159_v35  ;;  %9584 = vmatprep.subr.bf16.mxu0 %v21162_v59  ;;  %v21174_v35 = vld [vmem:[#allocation30 + $0xb2c] ss:$16 sps:$4 sm:$0xff]   ;;  %v7895_v59 = vld [vmem:[#allocation3 + $0x1b0] sm:$0x1]  ;;  %v8120_v41 = vpack.c.bf16 %v8052_v46, %v8046_v34  ;;  %v7905_v48 = vld [vmem:[#allocation3 + $0x200] sm:$0xfe]  ;;  %v8058_v46 = vsel %vm4880_vm3, %v8056_v47, %v8057_v44 }
 0x943   :  { %8582 = vmatprep.mubr.bf16.mxu1 %v8118_v53  ;;  %8695 = vmatprep.mubr.bf16.mxu0 %v8118_v53  ;;  %v8047_v53 = vrot.slane %v7897_v26, 1  ;;  %v21169_v17 = vld [vmem:[#allocation30 + $0xb20] ss:$16 sps:$4 sm:$0xff]   ;;  %v8042_v3 = vrot.slane %v7895_v59, 1  ;;  %v21178_v34 = vld [vmem:[#allocation30 + $0xb48] ss:$16 sps:$4 sm:$0xff]  }
 0x944   :  { %v7907_v26 = vld [vmem:[#allocation3 + $0x210] sm:$0x1]  ;;  %v8069_v47 = vrot.slane %v7912_v57, 1  ;;  %v8074_v44 = vrot.slane %v7914_v6, 1  ;;  %v8805_v57 = vld [vmem:[#allocation3 + $0x48] sm:$0xfc] }
 0x945   :  { %9472 = vmatpush1.bf16.msra.mxu1 %v21157_v22  ;;  %9585 = vmatpush1.bf16.msra.mxu0 %v21160_v25  ;;  %v21172_v22 = vld [vmem:[#allocation30 + $0xb28] ss:$16 sps:$4 sm:$0xff]   ;;  %v8041_v25 = vrot.slane %v7893_v43, 1 }
 0x946   :  { %9473 = vmatprep.subr.bf16.mxu1 %v21165_v39  ;;  %9586 = vmatprep.subr.bf16.mxu0 %v21168_v0  ;;  %v21180_v39 = vld [vmem:[#allocation30 + $0xb4c] ss:$16 sps:$4 sm:$0xff]   ;;  %v8049_v0 = vsel %vm4880_vm3, %v8047_v53, %v8048_v45  ;;  %v8060_v53 = vrot.slane %v7907_v26, 1  ;;  %v8068_v45 = vrot.slane %v7910_v31, 1  ;;  %v21187_v26 = vld [vmem:[#allocation30 + $0xb80] ss:$16 sps:$4 sm:$0xff]  }
 0x947   :  { %v8043_v43 = vsel %vm4880_vm3, %v8041_v25, %v8042_v3  ;;  %v21189_v3 = vld [vmem:[#allocation30 + $0xb84] ss:$16 sps:$4 sm:$0xff]   ;;  %v8801_v31 = vld [vmem:[#allocation3 + $0x28] sm:$0xfc]  ;;  %v8807_v6 = vld [vmem:[#allocation3 + $0x58] sm:$0x3] }
 0x948   :  { %8583 = vmatmul.mubr.bf16.gmra.mrb[36].mxu1 %v8117_v54  ;;  %8696 = vmatmul.mubr.bf16.gmra.mrb[36].mxu0 %v8117_v54  ;;  %v8119_v23 = vpack.c.bf16 %v8049_v0, %v8043_v43  ;;  %v21183_v54 = vld [vmem:[#allocation30 + $0xb64] ss:$16 sps:$4 sm:$0xff]   ;;  %v8803_v43 = vld [vmem:[#allocation3 + $0x38] sm:$0x3] }
 0x949   :  { %9474 = vmatpush1.bf16.msra.mxu1 %v21163_v55  ;;  %9587 = vmatpush1.bf16.msra.mxu0 %v21166_v19  ;;  %v8064_v55 = vsel %vm4880_vm3, %v8062_v60, %v8063_v29  ;;  %v7901_v19 = vld [vmem:[#allocation3 + $0x1e0] sm:$0xfe]  ;;  %v8075_v60 = vrot.slane %v7916_v33, 1 }
 0x94a   :  { %9475 = vmatprep.subr.bf16.mxu1 %v21171_v27  ;;  %9588 = vmatprep.subr.bf16.mxu0 %v21174_v35  ;;  %v21186_v27 = vld [vmem:[#allocation30 + $0xb6c] ss:$16 sps:$4 sm:$0xff]   ;;  %v7903_v35 = vld [vmem:[#allocation3 + $0x1f0] sm:$0x1]  ;;  %v8122_v59 = vpack.c.bf16 %v8064_v55, %v8058_v46  ;;  %v7913_v0 = vld [vmem:[#allocation3 + $0x240] sm:$0xfe]  ;;  %v8070_v55 = vsel %vm4880_vm3, %v8068_v45, %v8069_v47 }
 0x94b   :  { %8592 = vmatprep.mubr.bf16.mxu1 %v8120_v41  ;;  %8705 = vmatprep.mubr.bf16.mxu0 %v8120_v41  ;;  %v8059_v41 = vrot.slane %v7905_v48, 1  ;;  %v21181_v29 = vld [vmem:[#allocation30 + $0xb60] ss:$16 sps:$4 sm:$0xff]   ;;  %v8054_v25 = vrot.slane %v7903_v35, 1  ;;  %v21190_v46 = vld [vmem:[#allocation30 + $0xb88] ss:$16 sps:$4 sm:$0xff]  }
 0x94c   :  { %v7915_v48 = vld [vmem:[#allocation3 + $0x250] sm:$0x1]  ;;  %v8932_v45 = vrot.slane %v8803_v43, 2  ;;  %v8937_v47 = vrot.slane %v8805_v57, 2  ;;  %v8813_v43 = vld [vmem:[#allocation3 + $0x88] sm:$0xfc] }
 0x94d   :  { %9476 = vmatpush1.bf16.msra.mxu1 %v21169_v17  ;;  %9589 = vmatpush1.bf16.msra.mxu0 %v21172_v22  ;;  %v21184_v17 = vld [vmem:[#allocation30 + $0xb68] ss:$16 sps:$4 sm:$0xff]   ;;  %v8053_v22 = vrot.slane %v7901_v19, 1 }
 0x94e   :  { %9477 = vmatprep.subr.bf16.mxu1 %v21177_v20  ;;  %9590 = vmatprep.subr.bf16.mxu0 %v21180_v39  ;;  %v21192_v20 = vld [vmem:[#allocation30 + $0xb8c] ss:$16 sps:$4 sm:$0xff]   ;;  %v8061_v39 = vsel %vm4880_vm3, %v8059_v41, %v8060_v53  ;;  %v8072_v41 = vrot.slane %v7915_v48, 1  ;;  %v8931_v53 = vrot.slane %v8801_v31, 2  ;;  %v21199_v48 = vld [vmem:[#allocation30 + $0xbc0] ss:$16 sps:$4 sm:$0xff]  }
 0x94f   :  { %v8055_v19 = vsel %vm4880_vm3, %v8053_v22, %v8054_v25  ;;  %v21201_v25 = vld [vmem:[#allocation30 + $0xbc4] ss:$16 sps:$4 sm:$0xff]   ;;  %v8809_v31 = vld [vmem:[#allocation3 + $0x68] sm:$0xfc]  ;;  %v8815_v57 = vld [vmem:[#allocation3 + $0x98] sm:$0x3] }
 0x950   :  { %8593 = vmatmul.mubr.bf16.gmra.mrb[40].mxu1 %v8119_v23  ;;  %8706 = vmatmul.mubr.bf16.gmra.mrb[40].mxu0 %v8119_v23  ;;  %v8121_v33 = vpack.c.bf16 %v8061_v39, %v8055_v19  ;;  %v21195_v23 = vld [vmem:[#allocation30 + $0xba4] ss:$16 sps:$4 sm:$0xff]   ;;  %v8811_v19 = vld [vmem:[#allocation3 + $0x78] sm:$0x3] }
 0x951   :  { %9478 = vmatpush1.bf16.msra.mxu1 %v21175_v30  ;;  %9591 = vmatpush1.bf16.msra.mxu0 %v21178_v34  ;;  %v8076_v30 = vsel %vm4880_vm3, %v8074_v44, %v8075_v60  ;;  %v7909_v34 = vld [vmem:[#allocation3 + $0x220] sm:$0xfe]  ;;  %v8938_v44 = vrot.slane %v8807_v6, 2 }
 0x952   :  { %9479 = vmatprep.subr.bf16.mxu1 %v21183_v54  ;;  %9592 = vmatprep.subr.bf16.mxu0 %v21186_v27  ;;  %v21198_v54 = vld [vmem:[#allocation30 + $0xbac] ss:$16 sps:$4 sm:$0xff]   ;;  %v7911_v27 = vld [vmem:[#allocation3 + $0x230] sm:$0x1]  ;;  %v8124_v35 = vpack.c.bf16 %v8076_v30, %v8070_v55  ;;  %v8804_v39 = vld [vmem:[#allocation3 + $0x40] sm:$0xfc]  ;;  %v8933_v30 = vsel %vm6310_vm4, %v8931_v53, %v8932_v45 }
 0x953   :  { %8602 = vmatprep.mubr.bf16.mxu1 %v8122_v59  ;;  %8715 = vmatprep.mubr.bf16.mxu0 %v8122_v59  ;;  %v8071_v59 = vrot.slane %v7913_v0, 1  ;;  %v21193_v60 = vld [vmem:[#allocation30 + $0xba0] ss:$16 sps:$4 sm:$0xff]   ;;  %v8066_v22 = vrot.slane %v7911_v27, 1  ;;  %v21202_v55 = vld [vmem:[#allocation30 + $0xbc8] ss:$16 sps:$4 sm:$0xff]  }
 0x954   :  { %v8806_v0 = vld [vmem:[#allocation3 + $0x50] sm:$0x3]  ;;  %v8944_v53 = vrot.slane %v8811_v19, 2  ;;  %v8949_v45 = vrot.slane %v8813_v43, 2  ;;  %v8821_v19 = vld [vmem:[#allocation3 + $0xc8] sm:$0xfc] }
 0x955   :  { %9480 = vmatpush1.bf16.msra.mxu1 %v21181_v29  ;;  %9593 = vmatpush1.bf16.msra.mxu0 %v21184_v17  ;;  %v21196_v29 = vld [vmem:[#allocation30 + $0xba8] ss:$16 sps:$4 sm:$0xff]   ;;  %v8065_v17 = vrot.slane %v7909_v34, 1 }
 0x956   :  { %9481 = vmatprep.subr.bf16.mxu1 %v21189_v3  ;;  %9594 = vmatprep.subr.bf16.mxu0 %v21192_v20  ;;  %v21204_v3 = vld [vmem:[#allocation30 + $0xbcc] ss:$16 sps:$4 sm:$0xff]   ;;  %v8073_v20 = vsel %vm4880_vm3, %v8071_v59, %v8072_v41  ;;  %v8935_v59 = vrot.slane %v8806_v0, 2  ;;  %v8943_v41 = vrot.slane %v8809_v31, 2  ;;  %v21211_v0 = vld [vmem:[#allocation30 + $0xc00] ss:$16 sps:$4 sm:$0xff]  }
 0x957   :  { %v8067_v34 = vsel %vm4880_vm3, %v8065_v17, %v8066_v22  ;;  %v21213_v22 = vld [vmem:[#allocation30 + $0xc04] ss:$16 sps:$4 sm:$0xff]   ;;  %v8817_v31 = vld [vmem:[#allocation3 + $0xa8] sm:$0xfc]  ;;  %v8823_v43 = vld [vmem:[#allocation3 + $0xd8] sm:$0x3] }
 0x958   :  { %8603 = vmatmul.mubr.bf16.gmra.mrb[44].mxu1 %v8121_v33  ;;  %8716 = vmatmul.mubr.bf16.gmra.mrb[44].mxu0 %v8121_v33  ;;  %v8123_v6 = vpack.c.bf16 %v8073_v20, %v8067_v34  ;;  %v21207_v33 = vld [vmem:[#allocation30 + $0xbe4] ss:$16 sps:$4 sm:$0xff]   ;;  %v8819_v34 = vld [vmem:[#allocation3 + $0xb8] sm:$0x3] }
 0x959   :  { %9482 = vmatpush1.bf16.msra.mxu1 %v21187_v26  ;;  %9595 = vmatpush1.bf16.msra.mxu0 %v21190_v46  ;;  %v8939_v26 = vsel %vm6310_vm4, %v8937_v47, %v8938_v44  ;;  %v8800_v46 = vld [vmem:[#allocation3 + $0x20] sm:$0xfc]  ;;  %v8950_v47 = vrot.slane %v8815_v57, 2  ;;  %v21205_v44 = vld [vmem:[#allocation30 + $0xbe0] ss:$16 sps:$4 sm:$0xff]  }
 0x95a   :  { %9483 = vmatprep.subr.bf16.mxu1 %v21195_v23  ;;  %9596 = vmatprep.subr.bf16.mxu0 %v21198_v54  ;;  %v21210_v23 = vld [vmem:[#allocation30 + $0xbec] ss:$16 sps:$4 sm:$0xff]   ;;  %v8802_v54 = vld [vmem:[#allocation3 + $0x30] sm:$0x3]  ;;  %v9057_v27 = vpack.c.bf16 %v8939_v26, %v8933_v30  ;;  %v8812_v20 = vld [vmem:[#allocation3 + $0x80] sm:$0xfc]  ;;  %v8945_v26 = vsel %vm6310_vm4, %v8943_v41, %v8944_v53 }
 0x95b   :  { %8612 = vmatprep.mubr.bf16.mxu1 %v8124_v35  ;;  %8725 = vmatprep.mubr.bf16.mxu0 %v8124_v35  ;;  %v8934_v35 = vrot.slane %v8804_v39, 2  ;;  %v8929_v17 = vrot.slane %v8802_v54, 2  ;;  %v8814_v39 = vld [vmem:[#allocation3 + $0x90] sm:$0x3]  ;;  %v21214_v30 = vld [vmem:[#allocation30 + $0xc08] ss:$16 sps:$4 sm:$0xff]  }
 0x95c   :  { %v8956_v41 = vrot.slane %v8819_v34, 2  ;;  %v8961_v53 = vrot.slane %v8821_v19, 2  ;;  %v8829_v34 = vld [vmem:[#allocation3 + $0x108] sm:$0xfc]  ;;  %v8831_v19 = vld [vmem:[#allocation3 + $0x118] sm:$0x3] }
 0x95d   :  { %9484 = vmatpush1.bf16.msra.mxu1 %v21193_v60  ;;  %9597 = vmatpush1.bf16.msra.mxu0 %v21196_v29  ;;  %v21208_v60 = vld [vmem:[#allocation30 + $0xbe8] ss:$16 sps:$4 sm:$0xff]   ;;  %v8928_v29 = vrot.slane %v8800_v46, 2 }
 0x95e   :  { %9485 = vmatprep.subr.bf16.mxu1 %v21201_v25  ;;  %9598 = vmatprep.subr.bf16.mxu0 %v21204_v3  ;;  %v21216_v25 = vld [vmem:[#allocation30 + $0xc0c] ss:$16 sps:$4 sm:$0xff]   ;;  %v8936_v3 = vsel %vm6310_vm4, %v8934_v35, %v8935_v59  ;;  %v8947_v35 = vrot.slane %v8814_v39, 2  ;;  %v8955_v59 = vrot.slane %v8817_v31, 2  ;;  %v21223_v39 = vld [vmem:[#allocation30 + $0xc40] ss:$16 sps:$4 sm:$0xff]  }
 0x95f   :  { %v8930_v46 = vsel %vm6310_vm4, %v8928_v29, %v8929_v17  ;;  %v21225_v17 = vld [vmem:[#allocation30 + $0xc44] ss:$16 sps:$4 sm:$0xff]   ;;  %v8825_v31 = vld [vmem:[#allocation3 + $0xe8] sm:$0xfc] }
 0x960   :  { %8613 = vmatmul.mubr.bf16.gmra.mrb[48].mxu1 %v8123_v6  ;;  %8726 = vmatmul.mubr.bf16.gmra.mrb[48].mxu0 %v8123_v6  ;;  %v9056_v57 = vpack.c.bf16 %v8936_v3, %v8930_v46  ;;  %v21219_v6 = vld [vmem:[#allocation30 + $0xc24] ss:$16 sps:$4 sm:$0xff]   ;;  %v8827_v46 = vld [vmem:[#allocation3 + $0xf8] sm:$0x3] }
 0x961   :  { %9486 = vmatpush1.bf16.msra.mxu1 %v21199_v48  ;;  %9599 = vmatpush1.bf16.msra.mxu0 %v21202_v55  ;;  %v8951_v48 = vsel %vm6310_vm4, %v8949_v45, %v8950_v47  ;;  %v8808_v55 = vld [vmem:[#allocation3 + $0x60] sm:$0xfc]  ;;  %v8962_v45 = vrot.slane %v8823_v43, 2  ;;  %v21217_v47 = vld [vmem:[#allocation30 + $0xc20] ss:$16 sps:$4 sm:$0xff]  }
 0x962   :  { %9487 = vmatprep.subr.bf16.mxu1 %v21207_v33  ;;  %9600 = vmatprep.subr.bf16.mxu0 %v21210_v23  ;;  %v21222_v33 = vld [vmem:[#allocation30 + $0xc2c] ss:$16 sps:$4 sm:$0xff]   ;;  %v8810_v23 = vld [vmem:[#allocation3 + $0x70] sm:$0x3]  ;;  %v9059_v54 = vpack.c.bf16 %v8951_v48, %v8945_v26  ;;  %v8820_v3 = vld [vmem:[#allocation3 + $0xc0] sm:$0xfc]  ;;  %v8957_v48 = vsel %vm6310_vm4, %v8955_v59, %v8956_v41 }
 0x963   :  { %9489 = vmatprep.mubr.bf16.mxu1 %v9057_v27  ;;  %9602 = vmatprep.mubr.bf16.mxu0 %v9057_v27  ;;  %v8946_v27 = vrot.slane %v8812_v20, 2  ;;  %v8941_v29 = vrot.slane %v8810_v23, 2  ;;  %v8822_v20 = vld [vmem:[#allocation3 + $0xd0] sm:$0x3]  ;;  %v21226_v26 = vld [vmem:[#allocation30 + $0xc48] ss:$16 sps:$4 sm:$0xff]  }
 0x964   :  { %v8968_v59 = vrot.slane %v8827_v46, 2  ;;  %v8973_v41 = vrot.slane %v8829_v34, 2  ;;  %v8837_v46 = vld [vmem:[#allocation3 + $0x188] sm:$0xfc]  ;;  %v8839_v34 = vld [vmem:[#allocation3 + $0x198] sm:$0x3] }
 0x965   :  { %9488 = vmatpush1.bf16.msra.mxu1 %v21205_v44  ;;  %9601 = vmatpush1.bf16.msra.mxu0 %v21208_v60  ;;  %v21220_v44 = vld [vmem:[#allocation30 + $0xc28] ss:$16 sps:$4 sm:$0xff]   ;;  %v8940_v60 = vrot.slane %v8808_v55, 2 }
 0x966   :  { %10181 = vmatprep.subr.bf16.mxu1 %v21213_v22  ;;  %10294 = vmatprep.subr.bf16.mxu0 %v21216_v25  ;;  %v21228_v22 = vld [vmem:[#allocation30 + $0xc4c] ss:$16 sps:$4 sm:$0xff]   ;;  %v8948_v25 = vsel %vm6310_vm4, %v8946_v27, %v8947_v35  ;;  %v8959_v27 = vrot.slane %v8822_v20, 2  ;;  %v8967_v35 = vrot.slane %v8825_v31, 2  ;;  %v21235_v20 = vld [vmem:[#allocation30 + $0xc80] ss:$16 sps:$4 sm:$0xff]  }
 0x967   :  { %v8942_v55 = vsel %vm6310_vm4, %v8940_v60, %v8941_v29  ;;  %v21237_v29 = vld [vmem:[#allocation30 + $0xc84] ss:$16 sps:$4 sm:$0xff]   ;;  %v8833_v31 = vld [vmem:[#allocation3 + $0x168] sm:$0xfc] }
 0x968   :  { %9490 = vmatmul.mubr.bf16.vlgmr.msra.gmra.mrb[20].mxu1 %v9056_v57  ;;  %9603 = vmatmul.mubr.bf16.vlgmr.msra.gmra.mrb[20].mxu0 %v9056_v57  ;;  %v9058_v43 = vpack.c.bf16 %v8948_v25, %v8942_v55  ;;  %v21231_v57 = vld [vmem:[#allocation30 + $0xc64] ss:$16 sps:$4 sm:$0xff]   ;;  %v8835_v55 = vld [vmem:[#allocation3 + $0x178] sm:$0x3] }
 0x969   :  { %10182 = vmatpush1.bf16.msra.mxu1 %v21211_v0  ;;  %10295 = vmatpush1.bf16.msra.mxu0 %v21214_v30  ;;  %v8963_v0 = vsel %vm6310_vm4, %v8961_v53, %v8962_v45  ;;  %v8816_v30 = vld [vmem:[#allocation3 + $0xa0] sm:$0xfc]  ;;  %v8974_v53 = vrot.slane %v8831_v19, 2  ;;  %v21229_v45 = vld [vmem:[#allocation30 + $0xc60] ss:$16 sps:$4 sm:$0xff]  }
 0x96a   :  { %10183 = vmatprep.subr.bf16.mxu1 %v21219_v6  ;;  %10296 = vmatprep.subr.bf16.mxu0 %v21222_v33  ;;  %v21234_v6 = vld [vmem:[#allocation30 + $0xc6c] ss:$16 sps:$4 sm:$0xff]   ;;  %v8818_v33 = vld [vmem:[#allocation3 + $0xb0] sm:$0x3]  ;;  %v9061_v23 = vpack.c.bf16 %v8963_v0, %v8957_v48  ;;  %v8828_v25 = vld [vmem:[#allocation3 + $0x100] sm:$0xfc]  ;;  %v8969_v0 = vsel %vm6310_vm4, %v8967_v35, %v8968_v59 }
 0x96b   :  { %9499 = vmatprep.mubr.bf16.mxu1 %v9059_v54  ;;  %9612 = vmatprep.mubr.bf16.mxu0 %v9059_v54  ;;  %v8958_v54 = vrot.slane %v8820_v3, 2  ;;  %v8953_v60 = vrot.slane %v8818_v33, 2  ;;  %v8830_v3 = vld [vmem:[#allocation3 + $0x110] sm:$0x3]  ;;  %v21238_v48 = vld [vmem:[#allocation30 + $0xc88] ss:$16 sps:$4 sm:$0xff]  }
 0x96c   :  { %v8980_v35 = vrot.slane %v8835_v55, 2  ;;  %v8985_v59 = vrot.slane %v8837_v46, 2  ;;  %v8845_v55 = vld [vmem:[#allocation3 + $0x1c8] sm:$0xfc]  ;;  %v8847_v46 = vld [vmem:[#allocation3 + $0x1d8] sm:$0x3] }
 0x96d   :  { %10184 = vmatpush1.bf16.msra.mxu1 %v21217_v47  ;;  %10297 = vmatpush1.bf16.msra.mxu0 %v21220_v44  ;;  %v21232_v47 = vld [vmem:[#allocation30 + $0xc68] ss:$16 sps:$4 sm:$0xff]   ;;  %v8952_v44 = vrot.slane %v8816_v30, 2 }
 0x96e   :  { %10185 = vmatprep.subr.bf16.mxu1 %v21225_v17  ;;  %10298 = vmatprep.subr.bf16.mxu0 %v21228_v22  ;;  %v21240_v17 = vld [vmem:[#allocation30 + $0xc8c] ss:$16 sps:$4 sm:$0xff]   ;;  %v8960_v22 = vsel %vm6310_vm4, %v8958_v54, %v8959_v27  ;;  %v8971_v54 = vrot.slane %v8830_v3, 2  ;;  %v8979_v27 = vrot.slane %v8833_v31, 2  ;;  %v21247_v3 = vld [vmem:[#allocation30 + $0xcc0] ss:$16 sps:$4 sm:$0xff]  }
 0x96f   :  { %v8954_v30 = vsel %vm6310_vm4, %v8952_v44, %v8953_v60  ;;  %v21249_v60 = vld [vmem:[#allocation30 + $0xcc4] ss:$16 sps:$4 sm:$0xff]   ;;  %v8841_v31 = vld [vmem:[#allocation3 + $0x1a8] sm:$0xfc] }
 0x970   :  { %9500 = vmatmul.mubr.bf16.gmra.mrb[24].mxu1 %v9058_v43  ;;  %9613 = vmatmul.mubr.bf16.gmra.mrb[24].mxu0 %v9058_v43  ;;  %v9060_v19 = vpack.c.bf16 %v8960_v22, %v8954_v30  ;;  %v21243_v43 = vld [vmem:[#allocation30 + $0xca4] ss:$16 sps:$4 sm:$0xff]   ;;  %v8843_v30 = vld [vmem:[#allocation3 + $0x1b8] sm:$0x3] }
 0x971   :  { %10186 = vmatpush1.bf16.msra.mxu1 %v21223_v39  ;;  %10299 = vmatpush1.bf16.msra.mxu0 %v21226_v26  ;;  %v8975_v39 = vsel %vm6310_vm4, %v8973_v41, %v8974_v53  ;;  %v8824_v26 = vld [vmem:[#allocation3 + $0xe0] sm:$0xfc]  ;;  %v8986_v41 = vrot.slane %v8839_v34, 2  ;;  %v21241_v53 = vld [vmem:[#allocation30 + $0xca0] ss:$16 sps:$4 sm:$0xff]  }
 0x972   :  { %10187 = vmatprep.subr.bf16.mxu1 %v21231_v57  ;;  %10300 = vmatprep.subr.bf16.mxu0 %v21234_v6  ;;  %v21246_v57 = vld [vmem:[#allocation30 + $0xcac] ss:$16 sps:$4 sm:$0xff]   ;;  %v8826_v6 = vld [vmem:[#allocation3 + $0xf0] sm:$0x3]  ;;  %v9063_v33 = vpack.c.bf16 %v8975_v39, %v8969_v0  ;;  %v8836_v22 = vld [vmem:[#allocation3 + $0x180] sm:$0xfc]  ;;  %v8981_v39 = vsel %vm6310_vm4, %v8979_v27, %v8980_v35 }
 0x973   :  { %9509 = vmatprep.mubr.bf16.mxu1 %v9061_v23  ;;  %9622 = vmatprep.mubr.bf16.mxu0 %v9061_v23  ;;  %v8970_v23 = vrot.slane %v8828_v25, 2  ;;  %v8965_v44 = vrot.slane %v8826_v6, 2  ;;  %v8838_v25 = vld [vmem:[#allocation3 + $0x190] sm:$0x3]  ;;  %v21250_v0 = vld [vmem:[#allocation30 + $0xcc8] ss:$16 sps:$4 sm:$0xff]  }
 0x974   :  { %v8992_v27 = vrot.slane %v8843_v30, 2  ;;  %v8997_v35 = vrot.slane %v8845_v55, 2  ;;  %v8853_v30 = vld [vmem:[#allocation3 + $0x208] sm:$0xfc]  ;;  %v8855_v55 = vld [vmem:[#allocation3 + $0x218] sm:$0x3] }
 0x975   :  { %10188 = vmatpush1.bf16.msra.mxu1 %v21229_v45  ;;  %10301 = vmatpush1.bf16.msra.mxu0 %v21232_v47  ;;  %v21244_v45 = vld [vmem:[#allocation30 + $0xca8] ss:$16 sps:$4 sm:$0xff]   ;;  %v8964_v47 = vrot.slane %v8824_v26, 2 }
 0x976   :  { %10189 = vmatprep.subr.bf16.mxu1 %v21237_v29  ;;  %10302 = vmatprep.subr.bf16.mxu0 %v21240_v17  ;;  %v21252_v29 = vld [vmem:[#allocation30 + $0xccc] ss:$16 sps:$4 sm:$0xff]   ;;  %v8972_v17 = vsel %vm6310_vm4, %v8970_v23, %v8971_v54  ;;  %v8983_v23 = vrot.slane %v8838_v25, 2  ;;  %v8991_v54 = vrot.slane %v8841_v31, 2  ;;  %v21259_v25 = vld [vmem:[#allocation30 + $0xd00] ss:$16 sps:$4 sm:$0xff]  }
 0x977   :  { %v8966_v26 = vsel %vm6310_vm4, %v8964_v47, %v8965_v44  ;;  %v21261_v44 = vld [vmem:[#allocation30 + $0xd04] ss:$16 sps:$4 sm:$0xff]   ;;  %v8849_v31 = vld [vmem:[#allocation3 + $0x1e8] sm:$0xfc] }
 0x978   :  { %9510 = vmatmul.mubr.bf16.gmra.mrb[28].mxu1 %v9060_v19  ;;  %9623 = vmatmul.mubr.bf16.gmra.mrb[28].mxu0 %v9060_v19  ;;  %v9062_v34 = vpack.c.bf16 %v8972_v17, %v8966_v26  ;;  %v21255_v19 = vld [vmem:[#allocation30 + $0xce4] ss:$16 sps:$4 sm:$0xff]   ;;  %v8851_v26 = vld [vmem:[#allocation3 + $0x1f8] sm:$0x3] }
 0x979   :  { %10190 = vmatpush1.bf16.msra.mxu1 %v21235_v20  ;;  %10303 = vmatpush1.bf16.msra.mxu0 %v21238_v48  ;;  %v8987_v20 = vsel %vm6310_vm4, %v8985_v59, %v8986_v41  ;;  %v8832_v48 = vld [vmem:[#allocation3 + $0x160] sm:$0xfc]  ;;  %v8998_v59 = vrot.slane %v8847_v46, 2  ;;  %v21253_v41 = vld [vmem:[#allocation30 + $0xce0] ss:$16 sps:$4 sm:$0xff]  }
 0x97a   :  { %10191 = vmatprep.subr.bf16.mxu1 %v21243_v43  ;;  %10304 = vmatprep.subr.bf16.mxu0 %v21246_v57  ;;  %v21258_v43 = vld [vmem:[#allocation30 + $0xcec] ss:$16 sps:$4 sm:$0xff]   ;;  %v8834_v57 = vld [vmem:[#allocation3 + $0x170] sm:$0x3]  ;;  %v9065_v6 = vpack.c.bf16 %v8987_v20, %v8981_v39  ;;  %v8844_v17 = vld [vmem:[#allocation3 + $0x1c0] sm:$0xfc]  ;;  %v8993_v20 = vsel %vm6310_vm4, %v8991_v54, %v8992_v27 }
 0x97b   :  { %9519 = vmatprep.mubr.bf16.mxu1 %v9063_v33  ;;  %9632 = vmatprep.mubr.bf16.mxu0 %v9063_v33  ;;  %v8982_v33 = vrot.slane %v8836_v22, 2  ;;  %v8977_v47 = vrot.slane %v8834_v57, 2  ;;  %v8846_v22 = vld [vmem:[#allocation3 + $0x1d0] sm:$0x3]  ;;  %v21262_v39 = vld [vmem:[#allocation30 + $0xd08] ss:$16 sps:$4 sm:$0xff]  }
 0x97c   :  { %v9004_v54 = vrot.slane %v8851_v26, 2  ;;  %v9009_v27 = vrot.slane %v8853_v30, 2  ;;  %v8861_v26 = vld [vmem:[#allocation3 + $0x248] sm:$0xfc]  ;;  %v8863_v30 = vld [vmem:[#allocation3 + $0x258] sm:$0x3] }
 0x97d   :  { %10192 = vmatpush1.bf16.msra.mxu1 %v21241_v53  ;;  %10305 = vmatpush1.bf16.msra.mxu0 %v21244_v45  ;;  %v21256_v53 = vld [vmem:[#allocation30 + $0xce8] ss:$16 sps:$4 sm:$0xff]   ;;  %v8976_v45 = vrot.slane %v8832_v48, 2 }
 0x97e   :  { %10193 = vmatprep.subr.bf16.mxu1 %v21249_v60  ;;  %10306 = vmatprep.subr.bf16.mxu0 %v21252_v29  ;;  %v21264_v60 = vld [vmem:[#allocation30 + $0xd0c] ss:$16 sps:$4 sm:$0xff]   ;;  %v8984_v29 = vsel %vm6310_vm4, %v8982_v33, %v8983_v23  ;;  %v8995_v33 = vrot.slane %v8846_v22, 2  ;;  %v9003_v23 = vrot.slane %v8849_v31, 2  ;;  %v21271_v22 = vld [vmem:[#allocation30 + $0xd40] ss:$16 sps:$4 sm:$0xff]  }
 0x97f   :  { %v8978_v48 = vsel %vm6310_vm4, %v8976_v45, %v8977_v47  ;;  %v21273_v47 = vld [vmem:[#allocation30 + $0xd44] ss:$16 sps:$4 sm:$0xff]   ;;  %v8857_v31 = vld [vmem:[#allocation3 + $0x228] sm:$0xfc] }
 0x980   :  { %9520 = vmatmul.mubr.bf16.gmra.mrb[32].mxu1 %v9062_v34  ;;  %9633 = vmatmul.mubr.bf16.gmra.mrb[32].mxu0 %v9062_v34  ;;  %v9064_v46 = vpack.c.bf16 %v8984_v29, %v8978_v48  ;;  %v21267_v34 = vld [vmem:[#allocation30 + $0xd24] ss:$16 sps:$4 sm:$0xff]   ;;  %v8859_v48 = vld [vmem:[#allocation3 + $0x238] sm:$0x3] }
 0x981   :  { %10194 = vmatpush1.bf16.msra.mxu1 %v21247_v3  ;;  %10307 = vmatpush1.bf16.msra.mxu0 %v21250_v0  ;;  %v8999_v3 = vsel %vm6310_vm4, %v8997_v35, %v8998_v59  ;;  %v8840_v0 = vld [vmem:[#allocation3 + $0x1a0] sm:$0xfc]  ;;  %v9010_v35 = vrot.slane %v8855_v55, 2  ;;  %v21265_v59 = vld [vmem:[#allocation30 + $0xd20] ss:$16 sps:$4 sm:$0xff]  }
 0x982   :  { %10195 = vmatprep.subr.bf16.mxu1 %v21255_v19  ;;  %10308 = vmatprep.subr.bf16.mxu0 %v21258_v43  ;;  %v21270_v19 = vld [vmem:[#allocation30 + $0xd2c] ss:$16 sps:$4 sm:$0xff]   ;;  %v8842_v43 = vld [vmem:[#allocation3 + $0x1b0] sm:$0x3]  ;;  %v9067_v57 = vpack.c.bf16 %v8999_v3, %v8993_v20  ;;  %v8852_v29 = vld [vmem:[#allocation3 + $0x200] sm:$0xfc]  ;;  %v9005_v3 = vsel %vm6310_vm4, %v9003_v23, %v9004_v54 }
 0x983   :  { %9529 = vmatprep.mubr.bf16.mxu1 %v9065_v6  ;;  %9642 = vmatprep.mubr.bf16.mxu0 %v9065_v6  ;;  %v8994_v6 = vrot.slane %v8844_v17, 2  ;;  %v8989_v45 = vrot.slane %v8842_v43, 2  ;;  %v8854_v17 = vld [vmem:[#allocation3 + $0x210] sm:$0x3]  ;;  %v21274_v20 = vld [vmem:[#allocation30 + $0xd48] ss:$16 sps:$4 sm:$0xff]  }
 0x984   :  { %v9016_v23 = vrot.slane %v8859_v48, 2  ;;  %v9021_v54 = vrot.slane %v8861_v26, 2  ;;  %v21294_v48 = vld [vmem:[#allocation30 + $0xdac] ss:$16 sps:$4 sm:$0xff]   ;;  %v8858_v26 = vld [vmem:[#allocation3 + $0x230] sm:$0x3] }
 0x985   :  { %10196 = vmatpush1.bf16.msra.mxu1 %v21253_v41  ;;  %10309 = vmatpush1.bf16.msra.mxu0 %v21256_v53  ;;  %v21268_v41 = vld [vmem:[#allocation30 + $0xd28] ss:$16 sps:$4 sm:$0xff]   ;;  %v8988_v53 = vrot.slane %v8840_v0, 2 }
 0x986   :  { %10197 = vmatprep.subr.bf16.mxu1 %v21261_v44  ;;  %10310 = vmatprep.subr.bf16.mxu0 %v21264_v60  ;;  %v21276_v44 = vld [vmem:[#allocation30 + $0xd4c] ss:$16 sps:$4 sm:$0xff]   ;;  %v8996_v60 = vsel %vm6310_vm4, %v8994_v6, %v8995_v33  ;;  %v9007_v6 = vrot.slane %v8854_v17, 2  ;;  %v9015_v33 = vrot.slane %v8857_v31, 2  ;;  %v8860_v17 = vld [vmem:[#allocation3 + $0x240] sm:$0xfc] }
 0x987   :  { %v8990_v0 = vsel %vm6310_vm4, %v8988_v53, %v8989_v45  ;;  %v21285_v45 = vld [vmem:[#allocation30 + $0xd84] ss:$16 sps:$4 sm:$0xff]  }
 0x988   :  { %9530 = vmatmul.mubr.bf16.gmra.mrb[36].mxu1 %v9064_v46  ;;  %9643 = vmatmul.mubr.bf16.gmra.mrb[36].mxu0 %v9064_v46  ;;  %v9066_v55 = vpack.c.bf16 %v8996_v60, %v8990_v0  ;;  %v21279_v46 = vld [vmem:[#allocation30 + $0xd64] ss:$16 sps:$4 sm:$0xff]   ;;  %v9017_v60 = vsel %vm6310_vm4, %v9015_v33, %v9016_v23  ;;  %v21300_v33 = vld [vmem:[#allocation30 + $0xdcc] ss:$16 sps:$4 sm:$0xff]  }
 0x989   :  { %10198 = vmatpush1.bf16.msra.mxu1 %v21259_v25  ;;  %10311 = vmatpush1.bf16.msra.mxu0 %v21262_v39  ;;  %v9011_v25 = vsel %vm6310_vm4, %v9009_v27, %v9010_v35  ;;  %v8848_v39 = vld [vmem:[#allocation3 + $0x1e0] sm:$0xfc]  ;;  %v9022_v27 = vrot.slane %v8863_v30, 2  ;;  %v21277_v35 = vld [vmem:[#allocation30 + $0xd60] ss:$16 sps:$4 sm:$0xff]  }
 0x98a   :  { %10199 = vmatprep.subr.bf16.mxu1 %v21267_v34  ;;  %10312 = vmatprep.subr.bf16.mxu0 %v21270_v19  ;;  %v21282_v34 = vld [vmem:[#allocation30 + $0xd6c] ss:$16 sps:$4 sm:$0xff]   ;;  %v8850_v19 = vld [vmem:[#allocation3 + $0x1f0] sm:$0x3]  ;;  %v9069_v43 = vpack.c.bf16 %v9011_v25, %v9005_v3  ;;  %v21286_v25 = vld [vmem:[#allocation30 + $0xd88] ss:$16 sps:$4 sm:$0xff]  }
 0x98b   :  { %9539 = vmatprep.mubr.bf16.mxu1 %v9067_v57  ;;  %9652 = vmatprep.mubr.bf16.mxu0 %v9067_v57  ;;  %v9006_v57 = vrot.slane %v8852_v29, 2  ;;  %v9001_v53 = vrot.slane %v8850_v19, 2  ;;  %v9023_v29 = vsel %vm6310_vm4, %v9021_v54, %v9022_v27  ;;  %v8862_v3 = vld [vmem:[#allocation3 + $0x250] sm:$0x3]  ;;  %v21291_v0 = vld [vmem:[#allocation30 + $0xda4] ss:$16 sps:$4 sm:$0xff]  }
 0x98c   :  { %v9071_v30 = vpack.c.bf16 %v9023_v29, %v9017_v60  ;;  %v21292_v19 = vld [vmem:[#allocation30 + $0xda8] ss:$16 sps:$4 sm:$0xff]   ;;  %v21301_v60 = vld [vmem:[#allocation30 + $0xde0] ss:$16 sps:$4 sm:$0xff]  }
 0x98d   :  { %10200 = vmatpush1.bf16.msra.mxu1 %v21265_v59  ;;  %10313 = vmatpush1.bf16.msra.mxu0 %v21268_v41  ;;  %v21280_v59 = vld [vmem:[#allocation30 + $0xd68] ss:$16 sps:$4 sm:$0xff]   ;;  %v9000_v41 = vrot.slane %v8848_v39, 2 }
 0x98e   :  { %10201 = vmatprep.subr.bf16.mxu1 %v21273_v47  ;;  %10314 = vmatprep.subr.bf16.mxu0 %v21276_v44  ;;  %v21288_v47 = vld [vmem:[#allocation30 + $0xd8c] ss:$16 sps:$4 sm:$0xff]   ;;  %v9008_v44 = vsel %vm6310_vm4, %v9006_v57, %v9007_v6  ;;  %v8856_v39 = vld [vmem:[#allocation3 + $0x220] sm:$0xfc]  ;;  %v9013_v57 = vrot.slane %v8858_v26, 2 }
 0x98f   :  { %v21297_v6 = vld [vmem:[#allocation30 + $0xdc4] ss:$16 sps:$4 sm:$0xff]   ;;  %v9749_v54 = vld [vmem:[#allocation3 + $0x48] sm:$0xff] }
 0x990   :  { %9540 = vmatmul.mubr.bf16.gmra.mrb[40].mxu1 %v9066_v55  ;;  %9653 = vmatmul.mubr.bf16.gmra.mrb[40].mxu0 %v9066_v55  ;;  %v9018_v55 = vrot.slane %v8860_v17, 2  ;;  %v9751_v27 = vld [vmem:[#allocation3 + $0x68] sm:$0xff]  ;;  %v21309_v17 = vld [vmem:[#allocation30 + $0xe04] ss:$16 sps:$4 sm:$0xff]  }
 0x991   :  { %10202 = vmatpush1.bf16.msra.mxu1 %v21271_v22  ;;  %10315 = vmatpush1.bf16.msra.mxu0 %v21274_v20  ;;  %v21283_v22 = vld [vmem:[#allocation30 + $0xd80] ss:$16 sps:$4 sm:$0xff]   ;;  %v9002_v20 = vsel %vm6310_vm4, %v9000_v41, %v9001_v53  ;;  %v21298_v41 = vld [vmem:[#allocation30 + $0xdc8] ss:$16 sps:$4 sm:$0xff]   ;;  %v21315_v26 = vld [vmem:[#allocation30 + $0xe24] ss:$16 sps:$4 sm:$0xff]  }
 0x992   :  { %10203 = vmatprep.subr.bf16.mxu1 %v21279_v46  ;;  %10316 = vmatprep.subr.bf16.mxu0 %v21282_v34  ;;  %v9068_v31 = vpack.c.bf16 %v9008_v44, %v9002_v20  ;;  %v9019_v46 = vrot.slane %v8862_v3, 2  ;;  %v21289_v34 = vld [vmem:[#allocation30 + $0xda0] ss:$16 sps:$4 sm:$0xff]   ;;  %v9781_v44 = vpack.c.bf16 %v9751_v27, %v9749_v54  ;;  %v21304_v29 = vld [vmem:[#allocation30 + $0xde8] ss:$16 sps:$4 sm:$0xff]  }
 0x993   :  { %9549 = vmatprep.mubr.bf16.mxu1 %v9069_v43  ;;  %9662 = vmatprep.mubr.bf16.mxu0 %v9069_v43  ;;  %v9012_v43 = vrot.slane %v8856_v39, 2  ;;  %v21312_v3 = vld [vmem:[#allocation30 + $0xe0c] ss:$16 sps:$4 sm:$0xff]   ;;  %v21307_v39 = vld [vmem:[#allocation30 + $0xe00] ss:$16 sps:$4 sm:$0xff]  }
 0x994   :  { %v9020_v23 = vsel %vm6310_vm4, %v9018_v55, %v9019_v46  ;;  %v9753_v20 = vld [vmem:[#allocation3 + $0x88] sm:$0xff]  ;;  %v9752_v54 = vld [vmem:[#allocation3 + $0x80] sm:$0xff] }
 0x995   :  { %10204 = vmatpush1.bf16.msra.mxu1 %v21277_v35  ;;  %10317 = vmatpush1.bf16.msra.mxu0 %v21280_v59  ;;  %v21295_v35 = vld [vmem:[#allocation30 + $0xdc0] ss:$16 sps:$4 sm:$0xff]   ;;  %v9014_v59 = vsel %vm6310_vm4, %v9012_v43, %v9013_v57  ;;  %v21324_v43 = vld [vmem:[#allocation30 + $0xe4c] ss:$16 sps:$4 sm:$0xff]   ;;  %v21322_v27 = vld [vmem:[#allocation30 + $0xe48] ss:$16 sps:$4 sm:$0xff]  }
 0x996   :  { %10205 = vmatprep.subr.bf16.mxu1 %v21285_v45  ;;  %10318 = vmatprep.subr.bf16.mxu0 %v21288_v47  ;;  %v9070_v53 = vpack.c.bf16 %v9020_v23, %v9014_v59  ;;  %v21303_v45 = vld [vmem:[#allocation30 + $0xde4] ss:$16 sps:$4 sm:$0xff]   ;;  %v21306_v47 = vld [vmem:[#allocation30 + $0xdec] ss:$16 sps:$4 sm:$0xff]   ;;  %v21313_v46 = vld [vmem:[#allocation30 + $0xe20] ss:$16 sps:$4 sm:$0xff]  }
 0x997   :  { %v9754_v57 = vld [vmem:[#allocation3 + $0xa0] sm:$0xff] }
 0x998   :  { %9550 = vmatmul.mubr.bf16.gmra.mrb[44].mxu1 %v9068_v31  ;;  %9663 = vmatmul.mubr.bf16.gmra.mrb[44].mxu0 %v9068_v31  ;;  %v9750_v31 = vld [vmem:[#allocation3 + $0x60] sm:$0xff] }
 0x999   :  { %10206 = vmatpush1.bf16.msra.mxu1 %v21283_v22  ;;  %10319 = vmatpush1.bf16.msra.mxu0 %v21286_v25  ;;  %v9748_v22 = vld [vmem:[#allocation3 + $0x40] sm:$0xff]  ;;  %v9755_v25 = vld [vmem:[#allocation3 + $0xa8] sm:$0xff] }
 0x99a   :  { %10207 = vmatprep.subr.bf16.mxu1 %v21291_v0  ;;  %10320 = vmatprep.subr.bf16.mxu0 %v21294_v48  ;;  %v21310_v0 = vld [vmem:[#allocation30 + $0xe08] ss:$16 sps:$4 sm:$0xff]   ;;  %v9780_v48 = vpack.c.bf16 %v9750_v31, %v9748_v22  ;;  %v9783_v55 = vpack.c.bf16 %v9755_v25, %v9753_v20  ;;  %v21319_v23 = vld [vmem:[#allocation30 + $0xe40] ss:$16 sps:$4 sm:$0xff]   ;;  %v21327_v59 = vld [vmem:[#allocation30 + $0xe64] ss:$16 sps:$4 sm:$0xff]  }
 0x99b   :  { %9559 = vmatprep.mubr.bf16.mxu1 %v9071_v30  ;;  %9672 = vmatprep.mubr.bf16.mxu0 %v9071_v30  ;;  %v21318_v30 = vld [vmem:[#allocation30 + $0xe2c] ss:$16 sps:$4 sm:$0xff]   ;;  %v9758_v22 = vld [vmem:[#allocation3 + $0xe0] sm:$0xff] }
 0x99c   :  { %v21334_v20 = vld [vmem:[#allocation30 + $0xe88] ss:$16 sps:$4 sm:$0xff]   ;;  %v21342_v31 = vld [vmem:[#allocation30 + $0xeac] ss:$16 sps:$4 sm:$0xff]  }
 0x99d   :  { %10208 = vmatpush1.bf16.msra.mxu1 %v21289_v34  ;;  %10321 = vmatpush1.bf16.msra.mxu0 %v21292_v19  ;;  %v21316_v34 = vld [vmem:[#allocation30 + $0xe28] ss:$16 sps:$4 sm:$0xff]   ;;  %v21321_v19 = vld [vmem:[#allocation30 + $0xe44] ss:$16 sps:$4 sm:$0xff]  }
 0x99e   :  { %10209 = vmatprep.subr.bf16.mxu1 %v21297_v6  ;;  %10322 = vmatprep.subr.bf16.mxu0 %v21300_v33  ;;  %v9757_v6 = vld [vmem:[#allocation3 + $0xc8] sm:$0xff] }
 0x99f   :  { %v9759_v33 = vld [vmem:[#allocation3 + $0xe8] sm:$0xff] }
 0x9a0   :  { %9560 = vmatmul.mubr.bf16.gmra.mrb[48].mxu1 %v9070_v53  ;;  %9673 = vmatmul.mubr.bf16.gmra.mrb[48].mxu0 %v9070_v53  ;;  %v9785_v53 = vpack.c.bf16 %v9759_v33, %v9757_v6  ;;  %v21346_v6 = vld [vmem:[#allocation30 + $0xec8] ss:$16 sps:$4 sm:$0xff]  }
 0x9a1   :  { %10210 = vmatpush1.bf16.msra.mxu1 %v21295_v35  ;;  %10323 = vmatpush1.bf16.msra.mxu0 %v21298_v41  ;;  %v9782_v35 = vpack.c.bf16 %v9754_v57, %v9752_v54  ;;  %v21330_v41 = vld [vmem:[#allocation30 + $0xe6c] ss:$16 sps:$4 sm:$0xff]   ;;  %v21343_v57 = vld [vmem:[#allocation30 + $0xec0] ss:$16 sps:$4 sm:$0xff]  }
 0x9a2   :  { %10211 = vmatprep.subr.bf16.mxu1 %v21303_v45  ;;  %10324 = vmatprep.subr.bf16.mxu0 %v21306_v47  ;;  %v21325_v45 = vld [vmem:[#allocation30 + $0xe60] ss:$16 sps:$4 sm:$0xff]   ;;  %v21328_v47 = vld [vmem:[#allocation30 + $0xe68] ss:$16 sps:$4 sm:$0xff]   ;;  %v21354_v54 = vld [vmem:[#allocation30 + $0xeec] ss:$16 sps:$4 sm:$0xff]  }
 0x9a3   :  { %10213 = vmatprep.mubr.bf16.mxu1 %v9781_v44  ;;  %10326 = vmatprep.mubr.bf16.mxu0 %v9781_v44  ;;  %v21333_v44 = vld [vmem:[#allocation30 + $0xe84] ss:$16 sps:$4 sm:$0xff]  }
 0x9a5   :  { %10212 = vmatpush1.bf16.msra.mxu1 %v21301_v60  ;;  %10325 = vmatpush1.bf16.msra.mxu0 %v21304_v29  ;;  %v21336_v60 = vld [vmem:[#allocation30 + $0xe8c] ss:$16 sps:$4 sm:$0xff]   ;;  %v9756_v29 = vld [vmem:[#allocation3 + $0xc0] sm:$0xff] }
 0x9a6   :  { %11128 = vmatprep.subr.bf16.mxu1 %v21309_v17  ;;  %11241 = vmatprep.subr.bf16.mxu0 %v21312_v3  ;;  %v9761_v17 = vld [vmem:[#allocation3 + $0x108] sm:$0xff]  ;;  %v9784_v25 = vpack.c.bf16 %v9758_v22, %v9756_v29  ;;  %v9766_v29 = vld [vmem:[#allocation3 + $0x1a0] sm:$0xff] }
 0x9a7   :  { %v21331_v3 = vld [vmem:[#allocation30 + $0xe80] ss:$16 sps:$4 sm:$0xff]   ;;  %v21363_v22 = vld [vmem:[#allocation30 + $0xf24] ss:$16 sps:$4 sm:$0xff]  }
 0x9a8   :  { %10214 = vmatmul.mubr.bf16.vlgmr.msra.gmra.mrb[20].mxu1 %v9780_v48  ;;  %10327 = vmatmul.mubr.bf16.vlgmr.msra.gmra.mrb[20].mxu0 %v9780_v48 }
 0x9a9   :  { %11129 = vmatpush1.bf16.msra.mxu1 %v21307_v39  ;;  %11242 = vmatpush1.bf16.msra.mxu0 %v21310_v0  ;;  %v21339_v39 = vld [vmem:[#allocation30 + $0xea4] ss:$16 sps:$4 sm:$0xff]  }
 0x9aa   :  { %11130 = vmatprep.subr.bf16.mxu1 %v21315_v26  ;;  %11243 = vmatprep.subr.bf16.mxu0 %v21318_v30  ;;  %v23842_v0 = vld [vmem:[#allocation2] sm:$0xff] }
 0x9ab   :  { %10223 = vmatprep.mubr.bf16.mxu1 %v9783_v55  ;;  %10336 = vmatprep.mubr.bf16.mxu0 %v9783_v55  ;;  %v9787_v48 = vpack.c.bf16 %v23842_v0, %v9761_v17  ;;  %v21337_v26 = vld [vmem:[#allocation30 + $0xea0] ss:$16 sps:$4 sm:$0xff]   ;;  %v21340_v30 = vld [vmem:[#allocation30 + $0xea8] ss:$16 sps:$4 sm:$0xff]   ;;  %v21345_v55 = vld [vmem:[#allocation30 + $0xec4] ss:$16 sps:$4 sm:$0xff]  }
 0x9ac   :  { %v21358_v17 = vld [vmem:[#allocation30 + $0xf08] ss:$16 sps:$4 sm:$0xff]  }
 0x9ad   :  { %11131 = vmatpush1.bf16.msra.mxu1 %v21313_v46  ;;  %11244 = vmatpush1.bf16.msra.mxu0 %v21316_v34  ;;  %v21348_v46 = vld [vmem:[#allocation30 + $0xecc] ss:$16 sps:$4 sm:$0xff]   ;;  %v9760_v34 = vld [vmem:[#allocation3 + $0x100] sm:$0xff] }
 0x9ae   :  { %11132 = vmatprep.subr.bf16.mxu1 %v21321_v19  ;;  %11245 = vmatprep.subr.bf16.mxu0 %v21324_v43  ;;  %v9765_v19 = vld [vmem:[#allocation3 + $0x188] sm:$0xff]  ;;  %v9786_v33 = vpack.c.bf16 %v23842_v0, %v9760_v34 }
 0x9af   :  { %v9767_v43 = vld [vmem:[#allocation3 + $0x1a8] sm:$0xff] }
 0x9b0   :  { %10224 = vmatmul.mubr.bf16.gmra.mrb[24].mxu1 %v9782_v35  ;;  %10337 = vmatmul.mubr.bf16.gmra.mrb[24].mxu0 %v9782_v35  ;;  %v21349_v35 = vld [vmem:[#allocation30 + $0xee0] ss:$16 sps:$4 sm:$0xff]  }
 0x9b1   :  { %11133 = vmatpush1.bf16.msra.mxu1 %v21319_v23  ;;  %11246 = vmatpush1.bf16.msra.mxu0 %v21322_v27  ;;  %v21351_v23 = vld [vmem:[#allocation30 + $0xee4] ss:$16 sps:$4 sm:$0xff]   ;;  %v9789_v27 = vpack.c.bf16 %v9767_v43, %v9765_v19  ;;  %v21367_v34 = vld [vmem:[#allocation30 + $0xf40] ss:$16 sps:$4 sm:$0xff]   ;;  %v21370_v43 = vld [vmem:[#allocation30 + $0xf48] ss:$16 sps:$4 sm:$0xff]  }
 0x9b2   :  { %11134 = vmatprep.subr.bf16.mxu1 %v21327_v59  ;;  %11247 = vmatprep.subr.bf16.mxu0 %v21330_v41  ;;  %v21352_v59 = vld [vmem:[#allocation30 + $0xee8] ss:$16 sps:$4 sm:$0xff]   ;;  %v21357_v41 = vld [vmem:[#allocation30 + $0xf04] ss:$16 sps:$4 sm:$0xff]  }
 0x9b3   :  { %10233 = vmatprep.mubr.bf16.mxu1 %v9785_v53  ;;  %10346 = vmatprep.mubr.bf16.mxu0 %v9785_v53  ;;  %v21360_v53 = vld [vmem:[#allocation30 + $0xf0c] ss:$16 sps:$4 sm:$0xff]   ;;  %v9768_v19 = vld [vmem:[#allocation3 + $0x1c0] sm:$0xff] }
 0x9b5   :  { %11135 = vmatpush1.bf16.msra.mxu1 %v21325_v45  ;;  %11248 = vmatpush1.bf16.msra.mxu0 %v21328_v47  ;;  %v9764_v45 = vld [vmem:[#allocation3 + $0x180] sm:$0xff]  ;;  %v9769_v47 = vld [vmem:[#allocation3 + $0x1c8] sm:$0xff] }
 0x9b6   :  { %11136 = vmatprep.subr.bf16.mxu1 %v21333_v44  ;;  %11249 = vmatprep.subr.bf16.mxu0 %v21336_v60  ;;  %v9771_v44 = vld [vmem:[#allocation3 + $0x1e8] sm:$0xff] }
 0x9b7   :  { %v21355_v60 = vld [vmem:[#allocation30 + $0xf00] ss:$16 sps:$4 sm:$0xff]  }
 0x9b8   :  { %10234 = vmatmul.mubr.bf16.gmra.mrb[28].mxu1 %v9784_v25  ;;  %10347 = vmatmul.mubr.bf16.gmra.mrb[28].mxu0 %v9784_v25  ;;  %v9791_v25 = vpack.c.bf16 %v9771_v44, %v9769_v47  ;;  %v21382_v47 = vld [vmem:[#allocation30 + $0xf88] ss:$16 sps:$4 sm:$0xff]  }
 0x9b9   :  { %11137 = vmatpush1.bf16.msra.mxu1 %v21331_v3  ;;  %11250 = vmatpush1.bf16.msra.mxu0 %v21334_v20  ;;  %v9788_v3 = vpack.c.bf16 %v9766_v29, %v9764_v45  ;;  %v21366_v20 = vld [vmem:[#allocation30 + $0xf2c] ss:$16 sps:$4 sm:$0xff]   ;;  %v9774_v45 = vld [vmem:[#allocation3 + $0x220] sm:$0xff]  ;;  %v10474_v29 = vld [vmem:[#allocation3 + $0x58] sm:$0x1] }
 0x9ba   :  { %11138 = vmatprep.subr.bf16.mxu1 %v21339_v39  ;;  %11251 = vmatprep.subr.bf16.mxu0 %v21342_v31  ;;  %v21361_v39 = vld [vmem:[#allocation30 + $0xf20] ss:$16 sps:$4 sm:$0xff]   ;;  %v21364_v31 = vld [vmem:[#allocation30 + $0xf28] ss:$16 sps:$4 sm:$0xff]  }
 0x9bb   :  { %10243 = vmatprep.mubr.bf16.mxu1 %v9787_v48  ;;  %10356 = vmatprep.mubr.bf16.mxu0 %v9787_v48  ;;  %v21369_v48 = vld [vmem:[#allocation30 + $0xf44] ss:$16 sps:$4 sm:$0xff]   ;;  %v9777_v44 = vld [vmem:[#allocation3 + $0x248] sm:$0xff] }
 0x9bd   :  { %11139 = vmatpush1.bf16.msra.mxu1 %v21337_v26  ;;  %11252 = vmatpush1.bf16.msra.mxu0 %v21340_v30  ;;  %v21372_v26 = vld [vmem:[#allocation30 + $0xf4c] ss:$16 sps:$4 sm:$0xff]   ;;  %v9770_v30 = vld [vmem:[#allocation3 + $0x1e0] sm:$0xff] }
 0x9be   :  { %11140 = vmatprep.subr.bf16.mxu1 %v21345_v55  ;;  %11253 = vmatprep.subr.bf16.mxu0 %v21348_v46  ;;  %v9773_v55 = vld [vmem:[#allocation3 + $0x208] sm:$0xff] }
 0x9bf   :  { %v9775_v46 = vld [vmem:[#allocation3 + $0x228] sm:$0xff] }
 0x9c0   :  { %10244 = vmatmul.mubr.bf16.gmra.mrb[32].mxu1 %v9786_v33  ;;  %10357 = vmatmul.mubr.bf16.gmra.mrb[32].mxu0 %v9786_v33  ;;  %v21378_v33 = vld [vmem:[#allocation30 + $0xf6c] ss:$16 sps:$4 sm:$0xff]  }
 0x9c1   :  { %11141 = vmatpush1.bf16.msra.mxu1 %v21343_v57  ;;  %11254 = vmatpush1.bf16.msra.mxu0 %v21346_v6  ;;  %v9790_v57 = vpack.c.bf16 %v9770_v30, %v9768_v19  ;;  %v21375_v6 = vld [vmem:[#allocation30 + $0xf64] ss:$16 sps:$4 sm:$0xff]   ;;  %v21396_v19 = vld [vmem:[#allocation30 + $0xfcc] ss:$16 sps:$4 sm:$0xff]  }
 0x9c2   :  { %11142 = vmatprep.subr.bf16.mxu1 %v21351_v23  ;;  %11255 = vmatprep.subr.bf16.mxu0 %v21354_v54  ;;  %v9793_v23 = vpack.c.bf16 %v9775_v46, %v9773_v55  ;;  %v21373_v54 = vld [vmem:[#allocation30 + $0xf60] ss:$16 sps:$4 sm:$0xff]   ;;  %v21388_v46 = vld [vmem:[#allocation30 + $0xfa8] ss:$16 sps:$4 sm:$0xff]  }
 0x9c3   :  { %10253 = vmatprep.mubr.bf16.mxu1 %v9789_v27  ;;  %10366 = vmatprep.mubr.bf16.mxu0 %v9789_v27  ;;  %v21376_v27 = vld [vmem:[#allocation30 + $0xf68] ss:$16 sps:$4 sm:$0xff]   ;;  %v21385_v55 = vld [vmem:[#allocation30 + $0xfa0] ss:$16 sps:$4 sm:$0xff]  }
 0x9c5   :  { %11143 = vmatpush1.bf16.msra.mxu1 %v21349_v35  ;;  %11256 = vmatpush1.bf16.msra.mxu0 %v21352_v59  ;;  %v21381_v35 = vld [vmem:[#allocation30 + $0xf84] ss:$16 sps:$4 sm:$0xff]   ;;  %v21384_v59 = vld [vmem:[#allocation30 + $0xf8c] ss:$16 sps:$4 sm:$0xff]  }
 0x9c6   :  { %11144 = vmatprep.subr.bf16.mxu1 %v21357_v41  ;;  %11257 = vmatprep.subr.bf16.mxu0 %v21360_v53  ;;  %v21379_v41 = vld [vmem:[#allocation30 + $0xf80] ss:$16 sps:$4 sm:$0xff]  }
 0x9c7   :  { %v9772_v53 = vld [vmem:[#allocation3 + $0x200] sm:$0xff] }
 0x9c8   :  { %10254 = vmatmul.mubr.bf16.gmra.mrb[36].mxu1 %v9788_v3  ;;  %10367 = vmatmul.mubr.bf16.gmra.mrb[36].mxu0 %v9788_v3  ;;  %v10478_v3 = vld [vmem:[#allocation3 + $0x78] sm:$0x1] }
 0x9c9   :  { %11145 = vmatpush1.bf16.msra.mxu1 %v21355_v60  ;;  %11258 = vmatpush1.bf16.msra.mxu0 %v21358_v17  ;;  %v10472_v60 = vld [vmem:[#allocation3 + $0x48] sm:$0xfe]  ;;  %v10609_v30 = vrot.slane %v10478_v3, 1 }
 0x9ca   :  { %11146 = vmatprep.subr.bf16.mxu1 %v21363_v22  ;;  %11259 = vmatprep.subr.bf16.mxu0 %v21366_v20  ;;  %v10476_v17 = vld [vmem:[#allocation3 + $0x68] sm:$0xfe]  ;;  %v9792_v22 = vpack.c.bf16 %v9774_v45, %v9772_v53  ;;  %v21387_v20 = vld [vmem:[#allocation30 + $0xfa4] ss:$16 sps:$4 sm:$0xff]   ;;  %v10486_v45 = vld [vmem:[#allocation3 + $0xb8] sm:$0x1] }
 0x9cb   :  { %10263 = vmatprep.mubr.bf16.mxu1 %v9791_v25  ;;  %10376 = vmatprep.mubr.bf16.mxu0 %v9791_v25  ;;  %v21390_v25 = vld [vmem:[#allocation30 + $0xfac] ss:$16 sps:$4 sm:$0xff]  }
 0x9cc   :  { %v10484_v53 = vld [vmem:[#allocation3 + $0xa8] sm:$0xfe] }
 0x9cd   :  { %11147 = vmatpush1.bf16.msra.mxu1 %v21361_v39  ;;  %11260 = vmatpush1.bf16.msra.mxu0 %v21364_v31  ;;  %v9795_v39 = vpack.c.bf16 %v23842_v0, %v9777_v44  ;;  %v10602_v31 = vrot.slane %v10472_v60, 1  ;;  %v21399_v44 = vld [vmem:[#allocation30 + $0xfe4] ss:$16 sps:$4 sm:$0xff]   ;;  %v21402_v60 = vld [vmem:[#allocation30 + $0xfec] ss:$16 sps:$4 sm:$0xff]  }
 0x9ce   :  { %11148 = vmatprep.subr.bf16.mxu1 %v21369_v48  ;;  %11261 = vmatprep.subr.bf16.mxu0 %v21372_v26  ;;  %v10603_v48 = vrot.slane %v10474_v29, 1  ;;  %v10608_v26 = vrot.slane %v10476_v17, 1  ;;  %v10477_v29 = vld [vmem:[#allocation3 + $0x70] sm:$0x1] }
 0x9d0   :  { %10264 = vmatmul.mubr.bf16.gmra.mrb[40].mxu1 %v9790_v57  ;;  %10377 = vmatmul.mubr.bf16.gmra.mrb[40].mxu0 %v9790_v57  ;;  %v10471_v57 = vld [vmem:[#allocation3 + $0x40] sm:$0xfe] }
 0x9d1   :  { %11149 = vmatpush1.bf16.msra.mxu1 %v21367_v34  ;;  %11262 = vmatpush1.bf16.msra.mxu0 %v21370_v43  ;;  %v21393_v34 = vld [vmem:[#allocation30 + $0xfc4] ss:$16 sps:$4 sm:$0xff]   ;;  %v10599_v3 = vrot.slane %v10471_v57, 1  ;;  %v21403_v57 = vld [vmem:[#allocation30 + $0x1000] ss:$16 sps:$4 sm:$0xff]  }
 0x9d2   :  { %11150 = vmatprep.subr.bf16.mxu1 %v21375_v6  ;;  %11263 = vmatprep.subr.bf16.mxu0 %v21378_v33  ;;  %v9776_v43 = vld [vmem:[#allocation3 + $0x240] sm:$0xff]  ;;  %v10473_v6 = vld [vmem:[#allocation3 + $0x50] sm:$0x1] }
 0x9d3   :  { %10273 = vmatprep.mubr.bf16.mxu1 %v9793_v23  ;;  %10386 = vmatprep.mubr.bf16.mxu0 %v9793_v23  ;;  %v21391_v33 = vld [vmem:[#allocation30 + $0xfc0] ss:$16 sps:$4 sm:$0xff]   ;;  %v21394_v23 = vld [vmem:[#allocation30 + $0xfc8] ss:$16 sps:$4 sm:$0xff]  }
 0x9d5   :  { %11151 = vmatpush1.bf16.msra.mxu1 %v21373_v54  ;;  %11264 = vmatpush1.bf16.msra.mxu0 %v21376_v27  ;;  %v10604_v54 = vsel %vm4880_vm3, %v10602_v31, %v10603_v48  ;;  %v10610_v27 = vsel %vm4880_vm3, %v10608_v26, %v10609_v30  ;;  %v10621_v31 = vrot.slane %v10486_v45, 1  ;;  %v21397_v48 = vld [vmem:[#allocation30 + $0xfe0] ss:$16 sps:$4 sm:$0xff]   ;;  %v21400_v26 = vld [vmem:[#allocation30 + $0xfe8] ss:$16 sps:$4 sm:$0xff]  }
 0x9d6   :  { %11152 = vmatprep.subr.bf16.mxu1 %v21381_v35  ;;  %11265 = vmatprep.subr.bf16.mxu0 %v21384_v59  ;;  %v10475_v35 = vld [vmem:[#allocation3 + $0x60] sm:$0xfe]  ;;  %v10480_v59 = vld [vmem:[#allocation3 + $0x88] sm:$0xfe]  ;;  %v10728_v17 = vpack.c.bf16 %v10610_v27, %v10604_v54 }
 0x9d7   :  { %v10605_v30 = vrot.slane %v10475_v35, 1  ;;  %v10488_v27 = vld [vmem:[#allocation3 + $0xc8] sm:$0xfe] }
 0x9d8   :  { %10274 = vmatmul.mubr.bf16.gmra.mrb[44].mxu1 %v9792_v22  ;;  %10387 = vmatmul.mubr.bf16.gmra.mrb[44].mxu0 %v9792_v22  ;;  %v10600_v22 = vrot.slane %v10473_v6, 1  ;;  %v21406_v6 = vld [vmem:[#allocation30 + $0x1008] ss:$16 sps:$4 sm:$0xff]  }
 0x9d9   :  { %11153 = vmatpush1.bf16.msra.mxu1 %v21379_v41  ;;  %11266 = vmatpush1.bf16.msra.mxu0 %v21382_v47  ;;  %v10482_v41 = vld [vmem:[#allocation3 + $0x98] sm:$0x1]  ;;  %v9794_v47 = vpack.c.bf16 %v23842_v0, %v9776_v43  ;;  %v21405_v0 = vld [vmem:[#allocation30 + $0x1004] ss:$16 sps:$4 sm:$0xff]   ;;  %v10485_v43 = vld [vmem:[#allocation3 + $0xb0] sm:$0x1] }
 0x9da   :  { %11154 = vmatprep.subr.bf16.mxu1 %v21387_v20  ;;  %11267 = vmatprep.subr.bf16.mxu0 %v21390_v25  ;;  %v10614_v20 = vrot.slane %v10480_v59, 1  ;;  %v10615_v25 = vrot.slane %v10482_v41, 1  ;;  %v10490_v59 = vld [vmem:[#allocation3 + $0xd8] sm:$0x1]  ;;  %v10492_v41 = vld [vmem:[#allocation3 + $0xe8] sm:$0xfe] }
 0x9db   :  { %10283 = vmatprep.mubr.bf16.mxu1 %v9795_v39  ;;  %10396 = vmatprep.mubr.bf16.mxu0 %v9795_v39  ;;  %v10620_v39 = vrot.slane %v10484_v53, 1  ;;  %v10494_v53 = vld [vmem:[#allocation3 + $0xf8] sm:$0x1] }
 0x9dc   :  { %v10616_v54 = vsel %vm4880_vm3, %v10614_v20, %v10615_v25  ;;  %v10627_v20 = vrot.slane %v10490_v59, 1  ;;  %v10632_v25 = vrot.slane %v10492_v41, 1  ;;  %v10500_v59 = vld [vmem:[#allocation3 + $0x128] sm:$0xfe]  ;;  %v10502_v41 = vld [vmem:[#allocation3 + $0x138] sm:$0x1] }
 0x9dd   :  { %11155 = vmatpush1.bf16.msra.mxu1 %v21385_v55  ;;  %11268 = vmatpush1.bf16.msra.mxu0 %v21388_v46  ;;  %v10606_v55 = vrot.slane %v10477_v29, 1  ;;  %v21408_v46 = vld [vmem:[#allocation30 + $0x100c] ss:$16 sps:$4 sm:$0xff]  }
 0x9de   :  { %11156 = vmatprep.subr.bf16.mxu1 %v21393_v34  ;;  %11269 = vmatprep.subr.bf16.mxu0 %v21396_v19  ;;  %v10601_v34 = vsel %vm4880_vm3, %v10599_v3, %v10600_v22  ;;  %v10483_v19 = vld [vmem:[#allocation3 + $0xa0] sm:$0xfe]  ;;  %v10618_v3 = vrot.slane %v10485_v43, 1  ;;  %v10626_v22 = vrot.slane %v10488_v27, 1  ;;  %v10496_v27 = vld [vmem:[#allocation3 + $0x108] sm:$0xfe] }
 0x9df   :  { %v10607_v35 = vsel %vm4880_vm3, %v10605_v30, %v10606_v55  ;;  %v21417_v55 = vld [vmem:[#allocation30 + $0x1044] ss:$16 sps:$4 sm:$0xff]   ;;  %v21415_v43 = vld [vmem:[#allocation30 + $0x1040] ss:$16 sps:$4 sm:$0xff]  }
 0x9e0   :  { %10284 = vmatmul.mubr.bf16.gmra.mrb[48].mxu1 %v9794_v47  ;;  %10397 = vmatmul.mubr.bf16.gmra.mrb[48].mxu0 %v9794_v47  ;;  %v10727_v45 = vpack.c.bf16 %v10607_v35, %v10601_v34  ;;  %v21411_v47 = vld [vmem:[#allocation30 + $0x1024] ss:$16 sps:$4 sm:$0xff]   ;;  %v10498_v35 = vld [vmem:[#allocation3 + $0x118] sm:$0x1] }
 0x9e1   :  { %11157 = vmatpush1.bf16.msra.mxu1 %v21391_v33  ;;  %11270 = vmatpush1.bf16.msra.mxu0 %v21394_v23  ;;  %v10622_v33 = vsel %vm4880_vm3, %v10620_v39, %v10621_v31  ;;  %v10479_v23 = vld [vmem:[#allocation3 + $0x80] sm:$0xfe]  ;;  %v10633_v39 = vrot.slane %v10494_v53, 1 }
 0x9e2   :  { %11158 = vmatprep.subr.bf16.mxu1 %v21399_v44  ;;  %11271 = vmatprep.subr.bf16.mxu0 %v21402_v60  ;;  %v21414_v44 = vld [vmem:[#allocation30 + $0x102c] ss:$16 sps:$4 sm:$0xff]   ;;  %v10481_v60 = vld [vmem:[#allocation3 + $0x90] sm:$0x1]  ;;  %v10730_v29 = vpack.c.bf16 %v10622_v33, %v10616_v54  ;;  %v10487_v34 = vld [vmem:[#allocation3 + $0xc0] sm:$0xfe]  ;;  %v10628_v33 = vsel %vm4880_vm3, %v10626_v22, %v10627_v20 }
 0x9e3   :  { %11160 = vmatprep.mubr.bf16.mxu1 %v10728_v17  ;;  %11273 = vmatprep.mubr.bf16.mxu0 %v10728_v17  ;;  %v10617_v17 = vrot.slane %v10483_v19, 1  ;;  %v21409_v31 = vld [vmem:[#allocation30 + $0x1020] ss:$16 sps:$4 sm:$0xff]   ;;  %v10612_v30 = vrot.slane %v10481_v60, 1  ;;  %v21418_v54 = vld [vmem:[#allocation30 + $0x1048] ss:$16 sps:$4 sm:$0xff]  }
 0x9e4   :  { %v10489_v19 = vld [vmem:[#allocation3 + $0xd0] sm:$0x1]  ;;  %v10639_v22 = vrot.slane %v10498_v35, 1  ;;  %v10644_v20 = vrot.slane %v10500_v59, 1  ;;  %v10506_v35 = vld [vmem:[#allocation3 + $0x198] sm:$0x1] }
 0x9e5   :  { %11159 = vmatpush1.bf16.msra.mxu1 %v21397_v48  ;;  %11272 = vmatpush1.bf16.msra.mxu0 %v21400_v26  ;;  %v21412_v48 = vld [vmem:[#allocation30 + $0x1028] ss:$16 sps:$4 sm:$0xff]   ;;  %v10611_v26 = vrot.slane %v10479_v23, 1 }
 0x9e6   :  { %12075 = vmatprep.subr.bf16.mxu1 %v21405_v0  ;;  %12188 = vmatprep.subr.bf16.mxu0 %v21408_v46  ;;  %v21420_v0 = vld [vmem:[#allocation30 + $0x104c] ss:$16 sps:$4 sm:$0xff]   ;;  %v10619_v46 = vsel %vm4880_vm3, %v10617_v17, %v10618_v3  ;;  %v10624_v17 = vrot.slane %v10489_v19, 1  ;;  %v10638_v3 = vrot.slane %v10496_v27, 1  ;;  %v10499_v19 = vld [vmem:[#allocation3 + $0x120] sm:$0xfe] }
 0x9e7   :  { %v10613_v23 = vsel %vm4880_vm3, %v10611_v26, %v10612_v30  ;;  %v21429_v30 = vld [vmem:[#allocation30 + $0x1084] ss:$16 sps:$4 sm:$0xff]   ;;  %v21430_v27 = vld [vmem:[#allocation30 + $0x1088] ss:$16 sps:$4 sm:$0xff]  }
 0x9e8   :  { %11161 = vmatmul.mubr.bf16.vlgmr.msra.gmra.mrb[20].mxu1 %v10727_v45  ;;  %11274 = vmatmul.mubr.bf16.vlgmr.msra.gmra.mrb[20].mxu0 %v10727_v45  ;;  %v10729_v53 = vpack.c.bf16 %v10619_v46, %v10613_v23  ;;  %v21423_v45 = vld [vmem:[#allocation30 + $0x1064] ss:$16 sps:$4 sm:$0xff]   ;;  %v10508_v59 = vld [vmem:[#allocation3 + $0x1a8] sm:$0xfe] }
 0x9e9   :  { %12076 = vmatpush1.bf16.msra.mxu1 %v21403_v57  ;;  %12189 = vmatpush1.bf16.msra.mxu0 %v21406_v6  ;;  %v10634_v57 = vsel %vm4880_vm3, %v10632_v25, %v10633_v39  ;;  %v10491_v6 = vld [vmem:[#allocation3 + $0xe0] sm:$0xfe]  ;;  %v10645_v25 = vrot.slane %v10502_v41, 1  ;;  %v10510_v41 = vld [vmem:[#allocation3 + $0x1b8] sm:$0x1] }
 0x9ea   :  { %12077 = vmatprep.subr.bf16.mxu1 %v21411_v47  ;;  %12190 = vmatprep.subr.bf16.mxu0 %v21414_v44  ;;  %v21426_v47 = vld [vmem:[#allocation30 + $0x106c] ss:$16 sps:$4 sm:$0xff]   ;;  %v10493_v44 = vld [vmem:[#allocation3 + $0xf0] sm:$0x1]  ;;  %v10732_v60 = vpack.c.bf16 %v10634_v57, %v10628_v33 }
 0x9eb   :  { %11170 = vmatprep.mubr.bf16.mxu1 %v10730_v29  ;;  %11283 = vmatprep.mubr.bf16.mxu0 %v10730_v29  ;;  %v10623_v29 = vrot.slane %v10487_v34, 1  ;;  %v21421_v39 = vld [vmem:[#allocation30 + $0x1060] ss:$16 sps:$4 sm:$0xff]   ;;  %v10630_v26 = vrot.slane %v10493_v44, 1 }
 0x9ec   :  { %v10497_v34 = vld [vmem:[#allocation3 + $0x110] sm:$0x1] }
 0x9ed   :  { %12078 = vmatpush1.bf16.msra.mxu1 %v21409_v31  ;;  %12191 = vmatpush1.bf16.msra.mxu0 %v21412_v48  ;;  %v21424_v31 = vld [vmem:[#allocation30 + $0x1068] ss:$16 sps:$4 sm:$0xff]   ;;  %v10629_v48 = vrot.slane %v10491_v6, 1  ;;  %v10625_v46 = vsel %vm4880_vm3, %v10623_v29, %v10624_v17  ;;  %v10501_v33 = vld [vmem:[#allocation3 + $0x130] sm:$0x1]  ;;  %v10636_v29 = vrot.slane %v10497_v34, 1 }
 0x9ee   :  { %12079 = vmatprep.subr.bf16.mxu1 %v21417_v55  ;;  %12192 = vmatprep.subr.bf16.mxu0 %v21420_v0  ;;  %v21432_v55 = vld [vmem:[#allocation30 + $0x108c] ss:$16 sps:$4 sm:$0xff]   ;;  %v10495_v0 = vld [vmem:[#allocation3 + $0x100] sm:$0xfe]  ;;  %v10641_v17 = vrot.slane %v10499_v19, 1 }
 0x9ef   :  { %v21427_v57 = vld [vmem:[#allocation30 + $0x1080] ss:$16 sps:$4 sm:$0xff]   ;;  %v10631_v23 = vsel %vm4880_vm3, %v10629_v48, %v10630_v26  ;;  %v10635_v44 = vrot.slane %v10495_v0, 1  ;;  %v21436_v48 = vld [vmem:[#allocation30 + $0x10a8] ss:$16 sps:$4 sm:$0xff]  }
 0x9f0   :  { %11171 = vmatmul.mubr.bf16.gmra.mrb[24].mxu1 %v10729_v53  ;;  %11284 = vmatmul.mubr.bf16.gmra.mrb[24].mxu0 %v10729_v53  ;;  %v10504_v6 = vld [vmem:[#allocation3 + $0x188] sm:$0xfe]  ;;  %v10731_v53 = vpack.c.bf16 %v10631_v23, %v10625_v46  ;;  %v21441_v26 = vld [vmem:[#allocation30 + $0x10c4] ss:$16 sps:$4 sm:$0xff]   ;;  %v10505_v34 = vld [vmem:[#allocation3 + $0x190] sm:$0x1] }
 0x9f1   :  { %12080 = vmatpush1.bf16.msra.mxu1 %v21415_v43  ;;  %12193 = vmatpush1.bf16.msra.mxu0 %v21418_v54  ;;  %v10640_v43 = vsel %vm4880_vm3, %v10638_v3, %v10639_v22  ;;  %v10646_v54 = vsel %vm4880_vm3, %v10644_v20, %v10645_v25  ;;  %v10642_v3 = vrot.slane %v10501_v33, 1  ;;  %v10650_v22 = vrot.slane %v10504_v6, 1  ;;  %v10503_v46 = vld [vmem:[#allocation3 + $0x180] sm:$0xfe]  ;;  %v10514_v6 = vld [vmem:[#allocation3 + $0x1d8] sm:$0x1] }
 0x9f2   :  { %12081 = vmatprep.subr.bf16.mxu1 %v21423_v45  ;;  %12194 = vmatprep.subr.bf16.mxu0 %v21426_v47  ;;  %v21435_v45 = vld [vmem:[#allocation30 + $0x10a4] ss:$16 sps:$4 sm:$0xff]   ;;  %v21438_v47 = vld [vmem:[#allocation30 + $0x10ac] ss:$16 sps:$4 sm:$0xff]   ;;  %v10651_v20 = vrot.slane %v10506_v35, 1  ;;  %v10656_v25 = vrot.slane %v10508_v59, 1 }
 0x9f3   :  { %11180 = vmatprep.mubr.bf16.mxu1 %v10732_v60  ;;  %11293 = vmatprep.mubr.bf16.mxu0 %v10732_v60  ;;  %v10734_v60 = vpack.c.bf16 %v10646_v54, %v10640_v43  ;;  %v10643_v0 = vsel %vm4880_vm3, %v10641_v17, %v10642_v3  ;;  %v21439_v19 = vld [vmem:[#allocation30 + $0x10c0] ss:$16 sps:$4 sm:$0xff]   ;;  %v21442_v33 = vld [vmem:[#allocation30 + $0x10c8] ss:$16 sps:$4 sm:$0xff]   ;;  %v10663_v17 = vrot.slane %v10514_v6, 1 }
 0x9f4   :  { %v10652_v43 = vsel %vm4880_vm3, %v10650_v22, %v10651_v20  ;;  %v10512_v54 = vld [vmem:[#allocation3 + $0x1c8] sm:$0xfe]  ;;  %v10518_v35 = vld [vmem:[#allocation3 + $0x1f8] sm:$0x1] }
 0x9f5   :  { %12082 = vmatpush1.bf16.msra.mxu1 %v21421_v39  ;;  %12195 = vmatpush1.bf16.msra.mxu0 %v21424_v31  ;;  %v10657_v39 = vrot.slane %v10510_v41, 1  ;;  %v21433_v31 = vld [vmem:[#allocation30 + $0x10a0] ss:$16 sps:$4 sm:$0xff]   ;;  %v21447_v41 = vld [vmem:[#allocation30 + $0x10e4] ss:$16 sps:$4 sm:$0xff]   ;;  %v10669_v22 = vrot.slane %v10518_v35, 1 }
 0x9f6   :  { %12083 = vmatprep.subr.bf16.mxu1 %v21429_v30  ;;  %12196 = vmatprep.subr.bf16.mxu0 %v21432_v55  ;;  %v21444_v30 = vld [vmem:[#allocation30 + $0x10cc] ss:$16 sps:$4 sm:$0xff]   ;;  %v10637_v55 = vsel %vm4880_vm3, %v10635_v44, %v10636_v29  ;;  %v10647_v44 = vrot.slane %v10503_v46, 1  ;;  %v10662_v29 = vrot.slane %v10512_v54, 1  ;;  %v21445_v20 = vld [vmem:[#allocation30 + $0x10e0] ss:$16 sps:$4 sm:$0xff]  }
 0x9f7   :  { %v10516_v23 = vld [vmem:[#allocation3 + $0x1e8] sm:$0xfe]  ;;  %v10733_v59 = vpack.c.bf16 %v10643_v0, %v10637_v55  ;;  %v10515_v55 = vld [vmem:[#allocation3 + $0x1e0] sm:$0xfe]  ;;  %v10517_v0 = vld [vmem:[#allocation3 + $0x1f0] sm:$0x1] }
 0x9f8   :  { %11181 = vmatmul.mubr.bf16.gmra.mrb[28].mxu1 %v10731_v53  ;;  %11294 = vmatmul.mubr.bf16.gmra.mrb[28].mxu0 %v10731_v53  ;;  %v21450_v53 = vld [vmem:[#allocation30 + $0x10ec] ss:$16 sps:$4 sm:$0xff]   ;;  %v10668_v3 = vrot.slane %v10516_v23, 1  ;;  %v21451_v46 = vld [vmem:[#allocation30 + $0x1100] ss:$16 sps:$4 sm:$0xff]  }
 0x9f9   :  { %12084 = vmatpush1.bf16.msra.mxu1 %v21427_v57  ;;  %12197 = vmatpush1.bf16.msra.mxu0 %v21430_v27  ;;  %v10658_v57 = vsel %vm4880_vm3, %v10656_v25, %v10657_v39  ;;  %v10507_v27 = vld [vmem:[#allocation3 + $0x1a0] sm:$0xfe]  ;;  %v10522_v54 = vld [vmem:[#allocation3 + $0x218] sm:$0x1]  ;;  %v10524_v6 = vld [vmem:[#allocation3 + $0x228] sm:$0xfe] }
 0x9fa   :  { %12085 = vmatprep.subr.bf16.mxu1 %v21435_v45  ;;  %12198 = vmatprep.subr.bf16.mxu0 %v21438_v47  ;;  %v10509_v45 = vld [vmem:[#allocation3 + $0x1b0] sm:$0x1]  ;;  %v10736_v47 = vpack.c.bf16 %v10658_v57, %v10652_v43  ;;  %v21448_v25 = vld [vmem:[#allocation30 + $0x10e8] ss:$16 sps:$4 sm:$0xff]   ;;  %v10653_v39 = vrot.slane %v10507_v27, 1  ;;  %v10664_v43 = vsel %vm4880_vm3, %v10662_v29, %v10663_v17  ;;  %v10675_v29 = vrot.slane %v10522_v54, 1 }
 0x9fb   :  { %11190 = vmatprep.mubr.bf16.mxu1 %v10734_v60  ;;  %11303 = vmatprep.mubr.bf16.mxu0 %v10734_v60  ;;  %v10648_v60 = vrot.slane %v10505_v34, 1  ;;  %v21454_v34 = vld [vmem:[#allocation30 + $0x1108] ss:$16 sps:$4 sm:$0xff]   ;;  %v10680_v17 = vrot.slane %v10524_v6, 1 }
 0x9fc   :  { %v10520_v57 = vld [vmem:[#allocation3 + $0x208] sm:$0xfe]  ;;  %v10526_v23 = vld [vmem:[#allocation3 + $0x238] sm:$0x1] }
 0x9fd   :  { %12086 = vmatpush1.bf16.msra.mxu1 %v21433_v31  ;;  %12199 = vmatpush1.bf16.msra.mxu0 %v21436_v48  ;;  %v10654_v31 = vrot.slane %v10509_v45, 1  ;;  %v21453_v48 = vld [vmem:[#allocation30 + $0x1104] ss:$16 sps:$4 sm:$0xff]   ;;  %v10532_v54 = vld [vmem:[#allocation3 + $0x268] sm:$0xfe] }
 0x9fe   :  { %12087 = vmatprep.subr.bf16.mxu1 %v21441_v26  ;;  %12200 = vmatprep.subr.bf16.mxu0 %v21444_v30  ;;  %v21456_v26 = vld [vmem:[#allocation30 + $0x110c] ss:$16 sps:$4 sm:$0xff]   ;;  %v10649_v30 = vsel %vm4880_vm3, %v10647_v44, %v10648_v60  ;;  %v10666_v44 = vrot.slane %v10517_v0, 1  ;;  %v10674_v60 = vrot.slane %v10520_v57, 1  ;;  %v21463_v0 = vld [vmem:[#allocation30 + $0x1140] ss:$16 sps:$4 sm:$0xff]  }
 0x9ff   :  { %v10655_v27 = vsel %vm4880_vm3, %v10653_v39, %v10654_v31  ;;  %v21465_v31 = vld [vmem:[#allocation30 + $0x1144] ss:$16 sps:$4 sm:$0xff]   ;;  %v10528_v57 = vld [vmem:[#allocation3 + $0x248] sm:$0xfe]  ;;  %v10534_v6 = vld [vmem:[#allocation3 + $0x278] sm:$0x1] }
 0xa00   :  { %11191 = vmatmul.mubr.bf16.gmra.mrb[32].mxu1 %v10733_v59  ;;  %11304 = vmatmul.mubr.bf16.gmra.mrb[32].mxu0 %v10733_v59  ;;  %v10735_v35 = vpack.c.bf16 %v10655_v27, %v10649_v30  ;;  %v21459_v59 = vld [vmem:[#allocation30 + $0x1124] ss:$16 sps:$4 sm:$0xff]   ;;  %v10530_v27 = vld [vmem:[#allocation3 + $0x258] sm:$0x1] }
 0xa01   :  { %12088 = vmatpush1.bf16.msra.mxu1 %v21439_v19  ;;  %12201 = vmatpush1.bf16.msra.mxu0 %v21442_v33  ;;  %v10670_v19 = vsel %vm4880_vm3, %v10668_v3, %v10669_v22  ;;  %v10511_v33 = vld [vmem:[#allocation3 + $0x1c0] sm:$0xfe]  ;;  %v10681_v3 = vrot.slane %v10526_v23, 1 }
 0xa02   :  { %12089 = vmatprep.subr.bf16.mxu1 %v21447_v41  ;;  %12202 = vmatprep.subr.bf16.mxu0 %v21450_v53  ;;  %v21462_v41 = vld [vmem:[#allocation30 + $0x112c] ss:$16 sps:$4 sm:$0xff]   ;;  %v10513_v53 = vld [vmem:[#allocation3 + $0x1d0] sm:$0x1]  ;;  %v10738_v45 = vpack.c.bf16 %v10670_v19, %v10664_v43  ;;  %v10519_v30 = vld [vmem:[#allocation3 + $0x200] sm:$0xfe]  ;;  %v10676_v19 = vsel %vm4880_vm3, %v10674_v60, %v10675_v29 }
 0xa03   :  { %11200 = vmatprep.mubr.bf16.mxu1 %v10736_v47  ;;  %11313 = vmatprep.mubr.bf16.mxu0 %v10736_v47  ;;  %v10665_v47 = vrot.slane %v10515_v55, 1  ;;  %v21457_v22 = vld [vmem:[#allocation30 + $0x1120] ss:$16 sps:$4 sm:$0xff]   ;;  %v10660_v39 = vrot.slane %v10513_v53, 1  ;;  %v21466_v43 = vld [vmem:[#allocation30 + $0x1148] ss:$16 sps:$4 sm:$0xff]  }
 0xa04   :  { %v10521_v55 = vld [vmem:[#allocation3 + $0x210] sm:$0x1]  ;;  %v10686_v60 = vrot.slane %v10528_v57, 1  ;;  %v10687_v29 = vrot.slane %v10530_v27, 1  ;;  %v21478_v27 = vld [vmem:[#allocation30 + $0x1188] ss:$16 sps:$4 sm:$0xff]  }
 0xa05   :  { %12090 = vmatpush1.bf16.msra.mxu1 %v21445_v20  ;;  %12203 = vmatpush1.bf16.msra.mxu0 %v21448_v25  ;;  %v21460_v20 = vld [vmem:[#allocation30 + $0x1128] ss:$16 sps:$4 sm:$0xff]   ;;  %v10659_v25 = vrot.slane %v10511_v33, 1 }
 0xa06   :  { %12091 = vmatprep.subr.bf16.mxu1 %v21453_v48  ;;  %12204 = vmatprep.subr.bf16.mxu0 %v21456_v26  ;;  %v21468_v48 = vld [vmem:[#allocation30 + $0x114c] ss:$16 sps:$4 sm:$0xff]   ;;  %v10667_v26 = vsel %vm4880_vm3, %v10665_v47, %v10666_v44  ;;  %v10672_v47 = vrot.slane %v10521_v55, 1  ;;  %v10527_v44 = vld [vmem:[#allocation3 + $0x240] sm:$0xfe] }
 0xa07   :  { %v10661_v33 = vsel %vm4880_vm3, %v10659_v25, %v10660_v39  ;;  %v21472_v25 = vld [vmem:[#allocation30 + $0x1168] ss:$16 sps:$4 sm:$0xff]  }
 0xa08   :  { %11201 = vmatmul.mubr.bf16.gmra.mrb[36].mxu1 %v10735_v35  ;;  %11314 = vmatmul.mubr.bf16.gmra.mrb[36].mxu0 %v10735_v35  ;;  %v10737_v23 = vpack.c.bf16 %v10667_v26, %v10661_v33  ;;  %v21471_v35 = vld [vmem:[#allocation30 + $0x1164] ss:$16 sps:$4 sm:$0xff]   ;;  %v21480_v26 = vld [vmem:[#allocation30 + $0x118c] ss:$16 sps:$4 sm:$0xff]   ;;  %v21475_v33 = vld [vmem:[#allocation30 + $0x1180] ss:$16 sps:$4 sm:$0xff]  }
 0xa09   :  { %12092 = vmatpush1.bf16.msra.mxu1 %v21451_v46  ;;  %12205 = vmatpush1.bf16.msra.mxu0 %v21454_v34  ;;  %v10682_v46 = vsel %vm4880_vm3, %v10680_v17, %v10681_v3  ;;  %v10523_v34 = vld [vmem:[#allocation3 + $0x220] sm:$0xfe]  ;;  %v10692_v17 = vrot.slane %v10532_v54, 1  ;;  %v10693_v3 = vrot.slane %v10534_v6, 1  ;;  %v11421_v6 = vld [vmem:[#allocation3 + $0x58] sm:$0x3] }
 0xa0a   :  { %12093 = vmatprep.subr.bf16.mxu1 %v21459_v59  ;;  %12206 = vmatprep.subr.bf16.mxu0 %v21462_v41  ;;  %v21474_v59 = vld [vmem:[#allocation30 + $0x116c] ss:$16 sps:$4 sm:$0xff]   ;;  %v10525_v41 = vld [vmem:[#allocation3 + $0x230] sm:$0x1]  ;;  %v10740_v53 = vpack.c.bf16 %v10682_v46, %v10676_v19  ;;  %v10677_v39 = vrot.slane %v10523_v34, 1  ;;  %v10683_v46 = vrot.slane %v10527_v44, 1 }
 0xa0b   :  { %11210 = vmatprep.mubr.bf16.mxu1 %v10738_v45  ;;  %11323 = vmatprep.mubr.bf16.mxu0 %v10738_v45  ;;  %v10671_v45 = vrot.slane %v10519_v30, 1  ;;  %v10531_v55 = vld [vmem:[#allocation3 + $0x260] sm:$0xfe]  ;;  %v10533_v19 = vld [vmem:[#allocation3 + $0x270] sm:$0x1] }
 0xa0c   :  { %v11419_v34 = vld [vmem:[#allocation3 + $0x48] sm:$0xfc] }
 0xa0d   :  { %12094 = vmatpush1.bf16.msra.mxu1 %v21457_v22  ;;  %12207 = vmatpush1.bf16.msra.mxu0 %v21460_v20  ;;  %v10529_v22 = vld [vmem:[#allocation3 + $0x250] sm:$0x1]  ;;  %v10673_v30 = vsel %vm4880_vm3, %v10671_v45, %v10672_v47  ;;  %v10689_v45 = vrot.slane %v10531_v55, 1  ;;  %v10690_v47 = vrot.slane %v10533_v19, 1  ;;  %v11427_v55 = vld [vmem:[#allocation3 + $0x88] sm:$0xfc] }
 0xa0e   :  { %12095 = vmatprep.subr.bf16.mxu1 %v21465_v31  ;;  %12208 = vmatprep.subr.bf16.mxu0 %v21468_v48  ;;  %v21469_v20 = vld [vmem:[#allocation30 + $0x1160] ss:$16 sps:$4 sm:$0xff]   ;;  %v10678_v31 = vrot.slane %v10525_v41, 1  ;;  %v21477_v48 = vld [vmem:[#allocation30 + $0x1184] ss:$16 sps:$4 sm:$0xff]   ;;  %v10684_v57 = vrot.slane %v10529_v22, 1 }
 0xa0f   :  { %v21483_v41 = vld [vmem:[#allocation30 + $0x11a4] ss:$16 sps:$4 sm:$0xff]   ;;  %v11429_v19 = vld [vmem:[#allocation3 + $0x98] sm:$0x3] }
 0xa10   :  { %11211 = vmatmul.mubr.bf16.gmra.mrb[40].mxu1 %v10737_v23  ;;  %11324 = vmatmul.mubr.bf16.gmra.mrb[40].mxu0 %v10737_v23  ;;  %v10679_v54 = vsel %vm4880_vm3, %v10677_v39, %v10678_v31  ;;  %v11423_v23 = vld [vmem:[#allocation3 + $0x68] sm:$0xfc]  ;;  %v11418_v22 = vld [vmem:[#allocation3 + $0x40] sm:$0xfc]  ;;  %v11420_v39 = vld [vmem:[#allocation3 + $0x50] sm:$0x3] }
 0xa11   :  { %12096 = vmatpush1.bf16.msra.mxu1 %v21463_v0  ;;  %12209 = vmatpush1.bf16.msra.mxu0 %v21466_v43  ;;  %v10688_v0 = vsel %vm4880_vm3, %v10686_v60, %v10687_v29  ;;  %v10694_v43 = vsel %vm4880_vm3, %v10692_v17, %v10693_v3  ;;  %v11549_v60 = vrot.slane %v11419_v34, 2  ;;  %v11550_v29 = vrot.slane %v11421_v6, 2  ;;  %v21489_v31 = vld [vmem:[#allocation30 + $0x11c4] ss:$16 sps:$4 sm:$0xff]  }
 0xa12   :  { %12097 = vmatprep.subr.bf16.mxu1 %v21471_v35  ;;  %12210 = vmatprep.subr.bf16.mxu0 %v21474_v59  ;;  %v11425_v35 = vld [vmem:[#allocation3 + $0x78] sm:$0x3]  ;;  %v10739_v59 = vpack.c.bf16 %v10679_v54, %v10673_v30  ;;  %v10742_v44 = vpack.c.bf16 %v10694_v43, %v10688_v0  ;;  %v11555_v17 = vrot.slane %v11423_v23, 2  ;;  %v21492_v30 = vld [vmem:[#allocation30 + $0x11cc] ss:$16 sps:$4 sm:$0xff]   ;;  %v11546_v6 = vrot.slane %v11418_v22, 2 }
 0xa13   :  { %11220 = vmatprep.mubr.bf16.mxu1 %v10740_v53  ;;  %11333 = vmatprep.mubr.bf16.mxu0 %v10740_v53  ;;  %v21486_v53 = vld [vmem:[#allocation30 + $0x11ac] ss:$16 sps:$4 sm:$0xff]   ;;  %v11556_v3 = vrot.slane %v11425_v35, 2  ;;  %v11433_v43 = vld [vmem:[#allocation3 + $0xb8] sm:$0x3]  ;;  %v11547_v23 = vrot.slane %v11420_v39, 2 }
 0xa14   :  { %v11431_v0 = vld [vmem:[#allocation3 + $0xa8] sm:$0xfc]  ;;  %v11422_v34 = vld [vmem:[#allocation3 + $0x60] sm:$0xfc]  ;;  %v11424_v54 = vld [vmem:[#allocation3 + $0x70] sm:$0x3] }
 0xa15   :  { %12098 = vmatpush1.bf16.msra.mxu1 %v21469_v20  ;;  %12211 = vmatpush1.bf16.msra.mxu0 %v21472_v25  ;;  %v21481_v20 = vld [vmem:[#allocation30 + $0x11a0] ss:$16 sps:$4 sm:$0xff]   ;;  %v21484_v25 = vld [vmem:[#allocation30 + $0x11a8] ss:$16 sps:$4 sm:$0xff]  }
 0xa16   :  { %12099 = vmatprep.subr.bf16.mxu1 %v21477_v48  ;;  %12212 = vmatprep.subr.bf16.mxu0 %v21480_v26  ;;  %v10685_v48 = vsel %vm4880_vm3, %v10683_v46, %v10684_v57  ;;  %v10691_v26 = vsel %vm4880_vm3, %v10689_v45, %v10690_v47  ;;  %v21487_v46 = vld [vmem:[#allocation30 + $0x11c0] ss:$16 sps:$4 sm:$0xff]   ;;  %v21490_v35 = vld [vmem:[#allocation30 + $0x11c8] ss:$16 sps:$4 sm:$0xff]   ;;  %v11562_v45 = vrot.slane %v11429_v19, 2  ;;  %v11567_v47 = vrot.slane %v11431_v0, 2 }
 0xa17   :  { %v10741_v57 = vpack.c.bf16 %v10691_v26, %v10685_v48  ;;  %v21496_v22 = vld [vmem:[#allocation30 + $0x11e8] ss:$16 sps:$4 sm:$0xff]   ;;  %v11432_v48 = vld [vmem:[#allocation3 + $0xb0] sm:$0x3]  ;;  %v11435_v26 = vld [vmem:[#allocation3 + $0xc8] sm:$0xfc] }
 0xa18   :  { %11221 = vmatmul.mubr.bf16.gmra.mrb[44].mxu1 %v10739_v59  ;;  %11334 = vmatmul.mubr.bf16.gmra.mrb[44].mxu0 %v10739_v59  ;;  %v21495_v59 = vld [vmem:[#allocation30 + $0x11e4] ss:$16 sps:$4 sm:$0xff]   ;;  %v11441_v19 = vld [vmem:[#allocation3 + $0xf8] sm:$0x3] }
 0xa19   :  { %12100 = vmatpush1.bf16.msra.mxu1 %v21475_v33  ;;  %12213 = vmatpush1.bf16.msra.mxu0 %v21478_v27  ;;  %v11551_v33 = vsel %vm6310_vm4, %v11549_v60, %v11550_v29  ;;  %v11557_v27 = vsel %vm6310_vm4, %v11555_v17, %v11556_v3  ;;  %v11552_v29 = vrot.slane %v11422_v34, 2  ;;  %v11553_v17 = vrot.slane %v11424_v54, 2  ;;  %v21493_v3 = vld [vmem:[#allocation30 + $0x11e0] ss:$16 sps:$4 sm:$0xff]  }
 0xa1a   :  { %12101 = vmatprep.subr.bf16.mxu1 %v21483_v41  ;;  %12214 = vmatprep.subr.bf16.mxu0 %v21486_v53  ;;  %v21498_v41 = vld [vmem:[#allocation30 + $0x11ec] ss:$16 sps:$4 sm:$0xff]   ;;  %v11561_v53 = vrot.slane %v11427_v55, 2  ;;  %v11675_v60 = vpack.c.bf16 %v11557_v27, %v11551_v33  ;;  %v11426_v27 = vld [vmem:[#allocation3 + $0x80] sm:$0xfc] }
 0xa1b   :  { %11230 = vmatprep.mubr.bf16.mxu1 %v10742_v44  ;;  %11343 = vmatprep.mubr.bf16.mxu0 %v10742_v44  ;;  %v11568_v44 = vrot.slane %v11433_v43, 2  ;;  %v11439_v55 = vld [vmem:[#allocation3 + $0xe8] sm:$0xfc]  ;;  %v11554_v0 = vsel %vm6310_vm4, %v11552_v29, %v11553_v17  ;;  %v11428_v34 = vld [vmem:[#allocation3 + $0x90] sm:$0x3] }
 0xa1c   :  { %v11443_v29 = vld [vmem:[#allocation3 + $0x108] sm:$0xfc]  ;;  %v11445_v17 = vld [vmem:[#allocation3 + $0x118] sm:$0x3] }
 0xa1d   :  { %12102 = vmatpush1.bf16.msra.mxu1 %v21481_v20  ;;  %12215 = vmatpush1.bf16.msra.mxu0 %v21484_v25  ;;  %v11548_v20 = vsel %vm6310_vm4, %v11546_v6, %v11547_v23  ;;  %v11563_v25 = vsel %vm6310_vm4, %v11561_v53, %v11562_v45  ;;  %v11569_v39 = vsel %vm6310_vm4, %v11567_v47, %v11568_v44  ;;  %v11565_v6 = vrot.slane %v11432_v48, 2  ;;  %v11434_v44 = vld [vmem:[#allocation3 + $0xc0] sm:$0xfc]  ;;  %v11440_v48 = vld [vmem:[#allocation3 + $0xf0] sm:$0x3] }
 0xa1e   :  { %12103 = vmatprep.subr.bf16.mxu1 %v21489_v31  ;;  %12216 = vmatprep.subr.bf16.mxu0 %v21492_v30  ;;  %v11430_v31 = vld [vmem:[#allocation3 + $0xa0] sm:$0xfc]  ;;  %v11437_v30 = vld [vmem:[#allocation3 + $0xd8] sm:$0x3]  ;;  %v11674_v43 = vpack.c.bf16 %v11554_v0, %v11548_v20  ;;  %v11677_v33 = vpack.c.bf16 %v11569_v39, %v11563_v25  ;;  %v11573_v23 = vrot.slane %v11435_v26, 2  ;;  %v11570_v26 = vrot.slane %v11434_v44, 2 }
 0xa1f   :  { %v11564_v54 = vrot.slane %v11430_v31, 2  ;;  %v11438_v31 = vld [vmem:[#allocation3 + $0xe0] sm:$0xfc] }
 0xa20   :  { %11231 = vmatmul.mubr.bf16.gmra.mrb[48].mxu1 %v10741_v57  ;;  %11344 = vmatmul.mubr.bf16.gmra.mrb[48].mxu0 %v10741_v57  ;;  %v11579_v57 = vrot.slane %v11439_v55, 2  ;;  %v11585_v55 = vrot.slane %v11443_v29, 2 }
 0xa21   :  { %12104 = vmatpush1.bf16.msra.mxu1 %v21487_v46  ;;  %12217 = vmatpush1.bf16.msra.mxu0 %v21490_v35  ;;  %v11574_v46 = vrot.slane %v11437_v30, 2  ;;  %v11580_v35 = vrot.slane %v11441_v19, 2  ;;  %v11566_v53 = vsel %vm6310_vm4, %v11564_v54, %v11565_v6  ;;  %v11586_v19 = vrot.slane %v11445_v17, 2  ;;  %v11444_v54 = vld [vmem:[#allocation3 + $0x110] sm:$0x3] }
 0xa22   :  { %12105 = vmatprep.subr.bf16.mxu1 %v21495_v59  ;;  %12218 = vmatprep.subr.bf16.mxu0 %v21498_v41  ;;  %v11558_v59 = vrot.slane %v11426_v27, 2  ;;  %v11559_v41 = vrot.slane %v11428_v34, 2  ;;  %v11577_v27 = vrot.slane %v11440_v48, 2  ;;  %v11442_v34 = vld [vmem:[#allocation3 + $0x100] sm:$0xfc] }
 0xa23   :  { %12107 = vmatprep.mubr.bf16.mxu1 %v11675_v60  ;;  %12220 = vmatprep.mubr.bf16.mxu0 %v11675_v60  ;;  %v11575_v45 = vsel %vm6310_vm4, %v11573_v23, %v11574_v46  ;;  %v11581_v47 = vsel %vm6310_vm4, %v11579_v57, %v11580_v35  ;;  %v11436_v60 = vld [vmem:[#allocation3 + $0xd0] sm:$0x3]  ;;  %v11587_v23 = vsel %vm6310_vm4, %v11585_v55, %v11586_v19  ;;  %v11446_v57 = vld [vmem:[#allocation3 + $0x120] sm:$0xfc]  ;;  %v11582_v44 = vrot.slane %v11442_v34, 2 }
 0xa24   :  { %v11560_v20 = vsel %vm6310_vm4, %v11558_v59, %v11559_v41  ;;  %v11679_v39 = vpack.c.bf16 %v11581_v47, %v11575_v45  ;;  %v11571_v30 = vrot.slane %v11436_v60, 2  ;;  %v11448_v35 = vld [vmem:[#allocation3 + $0x130] sm:$0x3]  ;;  %v11451_v59 = vld [vmem:[#allocation3 + $0x188] sm:$0xfc]  ;;  %v11583_v60 = vrot.slane %v11444_v54, 2 }
 0xa25   :  { %12106 = vmatpush1.bf16.msra.mxu1 %v21493_v3  ;;  %12219 = vmatpush1.bf16.msra.mxu0 %v21496_v22  ;;  %v11447_v3 = vld [vmem:[#allocation3 + $0x128] sm:$0xfc]  ;;  %v11449_v22 = vld [vmem:[#allocation3 + $0x138] sm:$0x3]  ;;  %v11676_v25 = vpack.c.bf16 %v11566_v53, %v11560_v20  ;;  %v11597_v20 = vrot.slane %v11451_v59, 2 }
 0xa26   :  { %v11591_v0 = vrot.slane %v11447_v3, 2  ;;  %v11572_v6 = vsel %vm6310_vm4, %v11570_v26, %v11571_v30  ;;  %v11453_v41 = vld [vmem:[#allocation3 + $0x198] sm:$0x3]  ;;  %v11455_v53 = vld [vmem:[#allocation3 + $0x1a8] sm:$0xfc]  ;;  %v11588_v3 = vrot.slane %v11446_v57, 2  ;;  %v11584_v48 = vsel %vm6310_vm4, %v11582_v44, %v11583_v60 }
 0xa27   :  { %v11457_v45 = vld [vmem:[#allocation3 + $0x1b8] sm:$0x3]  ;;  %v11450_v19 = vld [vmem:[#allocation3 + $0x180] sm:$0xfc] }
 0xa28   :  { %12108 = vmatmul.mubr.bf16.vlgmr.msra.gmra.mrb[20].mxu1 %v11674_v43  ;;  %12221 = vmatmul.mubr.bf16.vlgmr.msra.gmra.mrb[20].mxu0 %v11674_v43  ;;  %v11592_v43 = vrot.slane %v11449_v22, 2  ;;  %v11589_v22 = vrot.slane %v11448_v35, 2  ;;  %v11465_v34 = vld [vmem:[#allocation3 + $0x1f8] sm:$0x3]  ;;  %v11594_v57 = vrot.slane %v11450_v19, 2 }
 0xa29   :  { %12117 = vmatprep.mubr.bf16.mxu1 %v11677_v33  ;;  %12230 = vmatprep.mubr.bf16.mxu0 %v11677_v33  ;;  %v11576_v33 = vrot.slane %v11438_v31, 2  ;;  %v11604_v31 = vrot.slane %v11457_v45, 2  ;;  %v11616_v45 = vrot.slane %v11465_v34, 2  ;;  %v11460_v19 = vld [vmem:[#allocation3 + $0x1d0] sm:$0x3] }
 0xa2a   :  { %v11593_v46 = vsel %vm6310_vm4, %v11591_v0, %v11592_v43  ;;  %v11590_v26 = vsel %vm6310_vm4, %v11588_v3, %v11589_v22  ;;  %v11452_v0 = vld [vmem:[#allocation3 + $0x190] sm:$0x3]  ;;  %v11459_v43 = vld [vmem:[#allocation3 + $0x1c8] sm:$0xfc]  ;;  %v11462_v3 = vld [vmem:[#allocation3 + $0x1e0] sm:$0xfc] }
 0xa2b   :  { %v11578_v47 = vsel %vm6310_vm4, %v11576_v33, %v11577_v27  ;;  %v11681_v17 = vpack.c.bf16 %v11593_v46, %v11587_v23  ;;  %v11461_v33 = vld [vmem:[#allocation3 + $0x1d8] sm:$0x3]  ;;  %v11463_v27 = vld [vmem:[#allocation3 + $0x1e8] sm:$0xfc]  ;;  %v11680_v54 = vpack.c.bf16 %v11590_v26, %v11584_v48  ;;  %v11454_v23 = vld [vmem:[#allocation3 + $0x1a0] sm:$0xfc] }
 0xa2c   :  { %v11678_v29 = vpack.c.bf16 %v11578_v47, %v11572_v6  ;;  %v11456_v46 = vld [vmem:[#allocation3 + $0x1b0] sm:$0x3]  ;;  %v11595_v35 = vrot.slane %v11452_v0, 2  ;;  %v11609_v59 = vrot.slane %v11459_v43, 2  ;;  %v11600_v47 = vrot.slane %v11454_v23, 2 }
 0xa2d   :  { %v11601_v44 = vrot.slane %v11456_v46, 2  ;;  %v11464_v22 = vld [vmem:[#allocation3 + $0x1f0] sm:$0x3]  ;;  %v11612_v0 = vrot.slane %v11462_v3, 2  ;;  %v11607_v23 = vrot.slane %v11460_v19, 2 }
 0xa2e   :  { %v11596_v60 = vsel %vm6310_vm4, %v11594_v57, %v11595_v35  ;;  %v11613_v43 = vrot.slane %v11464_v22, 2  ;;  %v11470_v3 = vld [vmem:[#allocation3 + $0x220] sm:$0xfc]  ;;  %v11472_v22 = vld [vmem:[#allocation3 + $0x230] sm:$0x3] }
 0xa2f   :  { %v11602_v48 = vsel %vm6310_vm4, %v11600_v47, %v11601_v44  ;;  %v11466_v44 = vld [vmem:[#allocation3 + $0x200] sm:$0xfc] }
 0xa30   :  { %12118 = vmatmul.mubr.bf16.gmra.mrb[24].mxu1 %v11676_v25  ;;  %12231 = vmatmul.mubr.bf16.gmra.mrb[24].mxu0 %v11676_v25  ;;  %v11598_v25 = vrot.slane %v11453_v41, 2  ;;  %v11610_v41 = vrot.slane %v11461_v33, 2  ;;  %v11682_v26 = vpack.c.bf16 %v11602_v48, %v11596_v60  ;;  %v11614_v46 = vsel %vm6310_vm4, %v11612_v0, %v11613_v43  ;;  %v11468_v60 = vld [vmem:[#allocation3 + $0x210] sm:$0x3] }
 0xa31   :  { %12127 = vmatprep.mubr.bf16.mxu1 %v11679_v39  ;;  %12240 = vmatprep.mubr.bf16.mxu0 %v11679_v39  ;;  %v11603_v39 = vrot.slane %v11455_v53, 2  ;;  %v11615_v53 = vrot.slane %v11463_v27, 2  ;;  %v11618_v48 = vrot.slane %v11466_v44, 2  ;;  %v21499_v44 = vld [vmem:[#allocation24 + $0x40] sm:$0xff]  }
 0xa32   :  { %v11599_v30 = vsel %vm6310_vm4, %v11597_v20, %v11598_v25  ;;  %v11467_v20 = vld [vmem:[#allocation3 + $0x208] sm:$0xfc]  ;;  %v11469_v25 = vld [vmem:[#allocation3 + $0x218] sm:$0x3]  ;;  %18814 = vmatprep.subr.bf16.mxu1 %v21499_v44 }
 0xa33   :  { %v11605_v55 = vsel %vm6310_vm4, %v11603_v39, %v11604_v31  ;;  %v11471_v39 = vld [vmem:[#allocation3 + $0x228] sm:$0xfc]  ;;  %v11473_v31 = vld [vmem:[#allocation3 + $0x238] sm:$0x3]  ;;  %v11621_v33 = vrot.slane %v11467_v20, 2  ;;  %v11622_v27 = vrot.slane %v11469_v25, 2  ;;  %18815 = vmatpush3.bf16.msra.mxu1 %v21499_v44 }
 0xa34   :  { %v11683_v6 = vpack.c.bf16 %v11605_v55, %v11599_v30  ;;  %v11458_v55 = vld [vmem:[#allocation3 + $0x1c0] sm:$0xfc]  ;;  %v11627_v34 = vrot.slane %v11471_v39, 2 }
 0xa35   :  { %v11623_v57 = vsel %vm6310_vm4, %v11621_v33, %v11622_v27  ;;  %v11474_v33 = vld [vmem:[#allocation3 + $0x240] sm:$0xfc]  ;;  %v11476_v27 = vld [vmem:[#allocation3 + $0x250] sm:$0x3] }
 0xa38   :  { %12128 = vmatmul.mubr.bf16.gmra.mrb[28].mxu1 %v11678_v29  ;;  %12241 = vmatmul.mubr.bf16.gmra.mrb[28].mxu0 %v11678_v29  ;;  %v11611_v29 = vsel %vm6310_vm4, %v11609_v59, %v11610_v41  ;;  %v11475_v59 = vld [vmem:[#allocation3 + $0x248] sm:$0xfc]  ;;  %v11477_v41 = vld [vmem:[#allocation3 + $0x258] sm:$0x3] }
 0xa39   :  { %12137 = vmatprep.mubr.bf16.mxu1 %v11681_v17  ;;  %12250 = vmatprep.mubr.bf16.mxu0 %v11681_v17  ;;  %v11617_v17 = vsel %vm6310_vm4, %v11615_v53, %v11616_v45  ;;  %v11479_v53 = vld [vmem:[#allocation3 + $0x268] sm:$0xfc]  ;;  %v11481_v45 = vld [vmem:[#allocation3 + $0x278] sm:$0x3]  ;;  %v11633_v20 = vrot.slane %v11475_v59, 2  ;;  %v11634_v25 = vrot.slane %v11477_v41, 2 }
 0xa3a   :  { %v11685_v30 = vpack.c.bf16 %v11617_v17, %v11611_v29  ;;  %v11639_v39 = vrot.slane %v11479_v53, 2 }
 0xa3b   :  { %v11635_v19 = vsel %vm6310_vm4, %v11633_v20, %v11634_v25  ;;  %v21501_v20 = vld [vmem:[#allocation24 + $0x50] sm:$0xff]  }
 0xa3c   :  { %v25027_v25 = vld [vmem:[#allocation50_spill] sm:$0xff] }
 0xa40   :  { %12138 = vmatmul.mubr.bf16.gmra.mrb[32].mxu1 %v11680_v54  ;;  %12251 = vmatmul.mubr.bf16.gmra.mrb[32].mxu0 %v11680_v54  ;;  %v11628_v54 = vrot.slane %v11473_v31, 2  ;;  %v11640_v31 = vrot.slane %v11481_v45, 2 }
 0xa41   :  { %12147 = vmatprep.mubr.bf16.mxu1 %v11683_v6  ;;  %12260 = vmatprep.mubr.bf16.mxu0 %v11683_v6  ;;  %v11606_v6 = vrot.slane %v11458_v55, 2  ;;  %v11625_v55 = vrot.slane %v11472_v22, 2 }
 0xa42   :  { %v11629_v35 = vsel %vm6310_vm4, %v11627_v34, %v11628_v54  ;;  %v11641_v0 = vsel %vm6310_vm4, %v11639_v39, %v11640_v31  ;;  %v11478_v34 = vld [vmem:[#allocation3 + $0x260] sm:$0xfc]  ;;  %v11480_v54 = vld [vmem:[#allocation3 + $0x270] sm:$0x3] }
 0xa43   :  { %v11608_v47 = vsel %vm6310_vm4, %v11606_v6, %v11607_v23  ;;  %v11687_v17 = vpack.c.bf16 %v11629_v35, %v11623_v57  ;;  %v11689_v23 = vpack.c.bf16 %v11641_v0, %v11635_v19  ;;  %v11630_v57 = vrot.slane %v11474_v33, 2 }
 0xa44   :  { %v11684_v29 = vpack.c.bf16 %v11614_v46, %v11608_v47  ;;  %v11631_v35 = vrot.slane %v11476_v27, 2  ;;  %v11636_v59 = vrot.slane %v11478_v34, 2  ;;  %v11637_v41 = vrot.slane %v11480_v54, 2 }
 0xa46   :  { %v11632_v53 = vsel %vm6310_vm4, %v11630_v57, %v11631_v35  ;;  %v11638_v45 = vsel %vm6310_vm4, %v11636_v59, %v11637_v41 }
 0xa47   :  { %v11688_v47 = vpack.c.bf16 %v11638_v45, %v11632_v53 }
 0xa48   :  { %12148 = vmatmul.mubr.bf16.gmra.mrb[36].mxu1 %v11682_v26  ;;  %12261 = vmatmul.mubr.bf16.gmra.mrb[36].mxu0 %v11682_v26  ;;  %v11619_v26 = vrot.slane %v11468_v60, 2  ;;  %v21500_v60 = vld [vmem:[#allocation24 + $0x48] sm:$0xff]  }
 0xa49   :  { %12157 = vmatprep.mubr.bf16.mxu1 %v11685_v30  ;;  %12270 = vmatprep.mubr.bf16.mxu0 %v11685_v30  ;;  %v11624_v30 = vrot.slane %v11470_v3, 2 }
 0xa4a   :  { %v11620_v43 = vsel %vm6310_vm4, %v11618_v48, %v11619_v26  ;;  %18816 = vmatprep.subr.bf16.mxu1 %v21500_v60 }
 0xa4b   :  { %v11626_v6 = vsel %vm6310_vm4, %v11624_v30, %v11625_v55  ;;  %18817 = vmatpush3.bf16.msra.mxu1 %v21500_v60 }
 0xa4c   :  { %v11686_v46 = vpack.c.bf16 %v11626_v6, %v11620_v43  ;;  %18818 = vmatprep.subr.bf16.mxu1 %v21501_v20 }
 0xa4f   :  { %18819 = vmatpush3.bf16.msra.mxu1 %v21501_v20 }
 0xa50   :  { %12158 = vmatmul.mubr.bf16.gmra.mrb[40].mxu1 %v11684_v29  ;;  %12271 = vmatmul.mubr.bf16.gmra.mrb[40].mxu0 %v11684_v29  ;;  %v12365_v29 = vld [vmem:[#allocation31] sm:$0xf] }
 0xa51   :  { %12167 = vmatprep.mubr.bf16.mxu1 %v11687_v17  ;;  %12280 = vmatprep.mubr.bf16.mxu0 %v11687_v17  ;;  %v25026_v17 = vld [vmem:[#allocation49_spill] sm:$0xff]  ;;  %v23915_v39 = vrot.slane %v12365_v29, %v25027_v25 }
 0xa52   :  { %v12373_v3 = vsub.s32 1, %v25026_v17  ;;  %v12381_v22 = vsub.s32 3, %v25026_v17  ;;  %v12377_v26 = vsub.s32 2, %v25026_v17 }
 0xa54   :  { %v23917_v31 = vrot.slane %v12365_v29, %v12373_v3  ;;  %v23919_v48 = vrot.slane %v12365_v29, %v12381_v22 }
 0xa58   :  { %12168 = vmatmul.mubr.bf16.gmra.mrb[44].mxu1 %v11686_v46  ;;  %12281 = vmatmul.mubr.bf16.gmra.mrb[44].mxu0 %v11686_v46 }
 0xa59   :  { %12177 = vmatprep.mubr.bf16.mxu1 %v11689_v23  ;;  %12290 = vmatprep.mubr.bf16.mxu0 %v11689_v23  ;;  %v23925_v23 = vrot.slane %v12365_v29, %v12377_v26 }
 0xa60   :  { %12178 = vmatmul.mubr.bf16.gmra.mrb[48].mxu1 %v11688_v47  ;;  %12291 = vmatmul.mubr.bf16.gmra.mrb[48].mxu0 %v11688_v47  ;;  %v21502_v47 = vld [vmem:[#allocation24 + $0x58] sm:$0xff]  }
 0xa61   :  { %18820 = vmatprep.subr.bf16.mxu1 %v21502_v47 }
 0xa62   :  { %18821 = vmatpush3.bf16.msra.mxu1 %v21502_v47 }
 0xafb   :  { %v12109_v30 = vpop.f32.mrb[20].mxu1  ;;  %v12222_v55 = vpop.f32.mrb[20].mxu0 }
 0xafc   :  { %v12387_v19 = vadd.f32 %v23915_v39, %v12109_v30  ;;  %v12111_v0 = vpop.f32.mrb[21].mxu1  ;;  %v12224_v43 = vpop.f32.mrb[21].mxu0  ;;  %v12389_v17 = vadd.f32 %v23925_v23, %v12222_v55 }
 0xafd   :  { %v12388_v33 = vadd.f32 %v23917_v31, %v12111_v0  ;;  %v12390_v27 = vadd.f32 %v23919_v48, %v12224_v43  ;;  %v12113_v34 = vpop.f32.mrb[22].mxu1  ;;  %v12226_v54 = vpop.f32.mrb[22].mxu0 }
 0xafe   :  { %v17396_v6 = vmul.f32 -1.442695, %v12387_v19  ;;  %v12391_v46 = vadd.f32 %v23915_v39, %v12113_v34  ;;  %v12115_v57 = vpop.f32.mrb[23].mxu1  ;;  %v12228_v35 = vpop.f32.mrb[23].mxu0 }
 0xaff   :  { %v17412_v59 = vmul.f32 -1.442695, %v12388_v33  ;;  %v17428_v41 = vmul.f32 -1.442695, %v12390_v27  ;;  %v12392_v53 = vadd.f32 %v23917_v31, %v12115_v57  ;;  %v12394_v45 = vadd.f32 %v23919_v48, %v12228_v35 }
 0xb00   :  { %21647 = vpow2.f32 %v17396_v6  ;;  %v17397_v44 = vmul.f32 -1.442695, %v12391_v46  ;;  %v12393_v57 = vadd.f32 %v23925_v23, %v12226_v54 }
 0xb01   :  { %21649 = vpow2.f32 %v17412_v59  ;;  %v17413_v60 = vmul.f32 -1.442695, %v12392_v53  ;;  %v17429_v29 = vmul.f32 -1.442695, %v12394_v45 }
 0xb02   :  { %21651 = vpow2.f32 %v17428_v41 }
 0xb03   :  { %21653 = vpow2.f32 %v17397_v44  ;;  %v12119_v3 = vpop.f32.mrb[24].mxu1  ;;  %v12232_v22 = vpop.f32.mrb[24].mxu0 }
 0xb04   :  { %v12395_v20 = vadd.f32 %v23915_v39, %v12119_v3  ;;  %v12121_v25 = vpop.f32.mrb[25].mxu1  ;;  %v12234_v26 = vpop.f32.mrb[25].mxu0  ;;  %21655 = vpow2.f32 %v17413_v60  ;;  %v12397_v47 = vadd.f32 %v23925_v23, %v12232_v22 }
 0xb05   :  { %v12396_v30 = vadd.f32 %v23917_v31, %v12121_v25  ;;  %v12398_v19 = vadd.f32 %v23919_v48, %v12234_v26  ;;  %v12123_v0 = vpop.f32.mrb[26].mxu1  ;;  %v12236_v43 = vpop.f32.mrb[26].mxu0  ;;  %21657 = vtanh.f32 %v12389_v17 }
 0xb06   :  { %v17398_v33 = vmul.f32 -1.442695, %v12395_v20  ;;  %v12399_v55 = vadd.f32 %v23915_v39, %v12123_v0  ;;  %v12125_v27 = vpop.f32.mrb[27].mxu1  ;;  %v12238_v34 = vpop.f32.mrb[27].mxu0  ;;  %21659 = vpow2.f32 %v17429_v29 }
 0xb07   :  { %v17414_v6 = vmul.f32 -1.442695, %v12396_v30  ;;  %v17430_v46 = vmul.f32 -1.442695, %v12398_v19  ;;  %v12400_v59 = vadd.f32 %v23917_v31, %v12125_v27  ;;  %v12402_v27 = vadd.f32 %v23919_v48, %v12238_v34 }
 0xb08   :  { %21661 = vpow2.f32 %v17398_v33  ;;  %v17399_v35 = vmul.f32 -1.442695, %v12399_v55  ;;  %v12401_v55 = vadd.f32 %v23925_v23, %v12236_v43 }
 0xb09   :  { %21663 = vpow2.f32 %v17414_v6  ;;  %v17415_v25 = vmul.f32 -1.442695, %v12400_v59  ;;  %v21503_v6 = vld [vmem:[#allocation24 + $0x60] sm:$0xff]   ;;  %v17431_v43 = vmul.f32 -1.442695, %v12402_v27  ;;  %v12755_v27 = vld [vmem:[#allocation9] sm:$0xff] }
 0xb0a   :  { %v21648_v41 = vpop.eup %21647  ;;  %21665 = vpow2.f32 %v17430_v46  ;;  %v21504_v46 = vld [vmem:[#allocation24 + $0x68] sm:$0xff]   ;;  %18822 = vmatprep.subr.bf16.mxu1 %v21503_v6 }
 0xb0b   :  { %v21650_v53 = vpop.eup %21649  ;;  %v12499_v45 = vadd.f32 1.0, %v21648_v41  ;;  %21667 = vpow2.f32 %v17399_v35  ;;  %v12129_v44 = vpop.f32.mrb[28].mxu1  ;;  %18823 = vmatpush3.bf16.msra.mxu1 %v21503_v6 }
 0xb0c   :  { %v23938_v60 = vpop.f32.mrb[28].mxu0  ;;  %v21652_v17 = vpop.eup %21651  ;;  %v12595_v29 = vadd.f32 1.0, %v21650_v53  ;;  %21669 = vtanh.f32 %v12393_v57  ;;  %v12403_v53 = vadd.f32 %v23915_v39, %v12129_v44  ;;  %18824 = vmatprep.subr.bf16.mxu1 %v21504_v46 }
 0xb0d   :  { %v12131_v3 = vpop.f32.mrb[29].mxu1  ;;  %v23940_v54 = vpop.f32.mrb[29].mxu0  ;;  %21671 = vrcp.f32 %v12499_v45  ;;  %v12707_v35 = vadd.f32 1.0, %v21652_v17 }
 0xb0e   :  { %v21654_v20 = vpop.eup %21653  ;;  %v12133_v26 = vpop.f32.mrb[30].mxu1  ;;  %21673 = vrcp.f32 %v12595_v29  ;;  %v12404_v34 = vadd.f32 %v23917_v31, %v12131_v3  ;;  %v17400_v6 = vmul.f32 -1.442695, %v12403_v53 }
 0xb0f   :  { %v23942_v30 = vpop.f32.mrb[30].mxu0  ;;  %v12500_v19 = vadd.f32 1.0, %v21654_v20  ;;  %v23944_v0 = vpop.f32.mrb[31].mxu1  ;;  %21675 = vtanh.f32 %v12397_v47  ;;  %v12407_v11 = vadd.f32 %v23915_v39, %v12133_v26  ;;  %18825 = vmatpush3.bf16.msra.mxu1 %v21504_v46  ;;  %v12756_v26 = vld [vmem:[#allocation9 + $0x8] sm:$0xff] }
 0xb10   :  { %v23946_v22 = vpop.f32.mrb[31].mxu0  ;;  %v21656_v33 = vpop.eup %21655 }
 0xb11   :  { %v21658_v57 = vpop.eup %21657  ;;  %21677 = vrcp.f32 %v12500_v19  ;;  %v12596_v59 = vadd.f32 1.0, %v21656_v33 }
 0xb12   :  { %v21660_v41 = vpop.eup %21659  ;;  %21679 = vpow2.f32 %v17415_v25 }
 0xb13   :  { %v21662_v45 = vpop.eup %21661  ;;  %21681 = vrcp.f32 %v12596_v59  ;;  %v23952_v20 = vpop.f32.mrb[32].mxu1 }
 0xb14   :  { %v21664_v29 = vpop.eup %21663  ;;  %v12501_v47 = vadd.f32 1.0, %v21662_v45  ;;  %21683 = vtanh.f32 %v12401_v55  ;;  %v23954_v61 = vpop.f32.mrb[32].mxu0  ;;  %v12708_v45 = vadd.f32 1.0, %v21660_v41  ;;  %v12406_v41 = vadd.f32 %v23919_v48, %v23940_v54 }
 0xb15   :  { %v21666_v17 = vpop.eup %21665  ;;  %21685 = vrcp.f32 %v12707_v35  ;;  %v12597_v25 = vadd.f32 1.0, %v21664_v29  ;;  %v23956_v19 = vpop.f32.mrb[33].mxu1  ;;  %v12405_v54 = vadd.f32 %v23925_v23, %v23938_v60 }
 0xb16   :  { %v23958_v44 = vpop.f32.mrb[33].mxu0  ;;  %v21668_v33 = vpop.eup %21667  ;;  %21687 = vrcp.f32 %v12501_v47  ;;  %v17416_v47 = vmul.f32 -1.442695, %v12404_v34  ;;  %v12709_v37 = vadd.f32 1.0, %v21666_v17 }
 0xb17   :  { %v23960_v59 = vpop.f32.mrb[34].mxu1  ;;  %v23962_v55 = vpop.f32.mrb[34].mxu0  ;;  %21689 = vrcp.f32 %v12597_v25  ;;  %v12502_v49 = vadd.f32 1.0, %v21668_v33  ;;  %v17401_v33 = vmul.f32 -1.442695, %v12407_v11 }
 0xb18   :  { %v21670_v3 = vpop.eup %21669  ;;  %v23965_v35 = vpop.f32.mrb[35].mxu1  ;;  %21691 = vpow2.f32 %v17431_v43  ;;  %v12408_v43 = vadd.f32 %v23917_v31, %v23944_v0  ;;  %v12415_v10 = vadd.f32 %v23915_v39, %v23960_v59 }
 0xb19   :  { %v23967_v29 = vpop.f32.mrb[35].mxu0  ;;  %v21672_v12 = vpop.eup %21671  ;;  %21693 = vrcp.f32 %v12502_v49 }
 0xb1a   :  { %v21674_v53 = vpop.eup %21673  ;;  %v12787_v1 = vmul.f32 %v21672_v12, %v21658_v57  ;;  %21695 = vpow2.f32 %v17400_v6  ;;  %v17432_v6 = vmul.f32 -1.442695, %v12406_v41  ;;  %v17417_v41 = vmul.f32 -1.442695, %v12408_v43 }
 0xb1b   :  { %v21676_v56 = vpop.eup %21675  ;;  %v12771_v36 = vmul.f32 %v21674_v53, %v12755_v27  ;;  %21697 = vrcp.f32 %v12708_v45  ;;  %v23973_v12 = vpop.f32.mrb[36].mxu1  ;;  %v12757_v45 = vld [vmem:[#allocation9 + $0x10] sm:$0xff]  ;;  %v17403_v62 = vmul.f32 -1.442695, %v12415_v10 }
 0xb1c   :  { %v21678_v25 = vpop.eup %21677  ;;  %21699 = vpow2.f32 %v17416_v47  ;;  %v23975_v49 = vpop.f32.mrb[36].mxu0 }
 0xb1d   :  { %v21680_v42 = vpop.eup %21679  ;;  %v12803_v8 = vadd.f32 %v12787_v1, %v12771_v36  ;;  %v12788_v46 = vmul.f32 %v21678_v25, %v21670_v3  ;;  %21701 = vrcp.f32 %v12709_v37  ;;  %v23979_v17 = vpop.f32.mrb[37].mxu1 }
 0xb1e   :  { %v21682_v57 = vpop.eup %21681  ;;  %v12598_v34 = vadd.f32 1.0, %v21680_v42  ;;  %v23981_v11 = vpop.f32.mrb[37].mxu0  ;;  %v12410_v42 = vadd.f32 %v23919_v48, %v23946_v22  ;;  %v12409_v22 = vadd.f32 %v23925_v23, %v23942_v30 }
 0xb1f   :  { %v21684_v36 = vpop.eup %21683  ;;  %21703 = vtanh.f32 %v12803_v8  ;;  %16595 = vst [vmem:[#allocation36] sm:$0xff] %v12803_v8  ;;  %v12772_v1 = vmul.f32 %v21682_v57, %v12756_v26  ;;  %v12153_v0 = vpop.f32.mrb[38].mxu1  ;;  %v12411_v26 = vadd.f32 %v23915_v39, %v23952_v20  ;;  %v21505_v57 = vld [vmem:[#allocation24 + $0x70] sm:$0xff]  }
 0xb20   :  { %v12266_v3 = vpop.f32.mrb[38].mxu0  ;;  %v23983_v27 = vpop.eup %21685  ;;  %21705 = vrcp.f32 %v12598_v34  ;;  %v23988_v37 = vadd.f32 %v23915_v39, %v12153_v0  ;;  %v21506_v34 = vld [vmem:[#allocation24 + $0x78] sm:$0xff]   ;;  %18826 = vmatprep.subr.bf16.mxu1 %v21505_v57 }
 0xb21   :  { %v23991_v60 = vadd.f32 %v23925_v23, %v12266_v3  ;;  %v12155_v47 = vpop.f32.mrb[39].mxu1  ;;  %v12268_v53 = vpop.f32.mrb[39].mxu0  ;;  %v12804_v25 = vadd.f32 %v12788_v46, %v12772_v1  ;;  %21707 = vpow2.f32 %v17401_v33  ;;  %v17433_v46 = vmul.f32 -1.442695, %v12410_v42  ;;  %18827 = vmatpush3.bf16.msra.mxu1 %v21505_v57 }
 0xb22   :  { %v21688_v8 = vpop.eup %21687  ;;  %21709 = vtanh.f32 %v12405_v54  ;;  %v23998_v28 = vadd.f32 %v23917_v31, %v12155_v47  ;;  %v24001_v33 = vadd.f32 %v23919_v48, %v12268_v53  ;;  %v17402_v1 = vmul.f32 -1.442695, %v12411_v26  ;;  %18828 = vmatprep.subr.bf16.mxu1 %v21506_v34  ;;  %v24005_v47 = vld [vmem:[#allocation24] sm:$0xff]  }
 0xb23   :  { %v21690_v63 = vpop.eup %21689  ;;  %v12789_v13 = vmul.f32 %v21688_v8, %v21676_v56  ;;  %21711 = vtanh.f32 %v12804_v25  ;;  %16596 = vst [vmem:[#allocation36 + $0x8] sm:$0xff] %v12804_v25  ;;  %v12412_v56 = vadd.f32 %v23917_v31, %v23956_v19 }
 0xb24   :  { %v21692_v0 = vpop.eup %21691  ;;  %v12773_v3 = vmul.f32 %v21690_v63, %v12757_v45  ;;  %21713 = vpow2.f32 %v17432_v6  ;;  %v12159_v63 = vpop.f32.mrb[40].mxu1 }
 0xb25   :  { %v21694_v20 = vpop.eup %21693  ;;  %21715 = vpow2.f32 %v17417_v41  ;;  %v12272_v45 = vpop.f32.mrb[40].mxu0  ;;  %v12710_v8 = vadd.f32 1.0, %v21692_v0  ;;  %v24008_v6 = vadd.f32 %v23915_v39, %v12159_v63  ;;  %18829 = vmatpush3.bf16.msra.mxu1 %v21506_v34 }
 0xb26   :  { %v21696_v43 = vpop.eup %21695  ;;  %v12805_v30 = vadd.f32 %v12789_v13, %v12773_v3  ;;  %v12790_v54 = vmul.f32 %v21694_v20, %v21684_v36  ;;  %21717 = vtanh.f32 %v12409_v22  ;;  %v12161_v42 = vpop.f32.mrb[41].mxu1  ;;  %v24011_v13 = vadd.f32 %v23925_v23, %v12272_v45  ;;  %v12758_v3 = vld [vmem:[#allocation9 + $0x18] sm:$0xff]  ;;  %18846 = vmatprep.subr.bf16.mxu1 %v24005_v47 }
 0xb27   :  { %v21698_v53 = vpop.eup %21697  ;;  %v12503_v25 = vadd.f32 1.0, %v21696_v43  ;;  %v12274_v19 = vpop.f32.mrb[41].mxu0  ;;  %v24014_v36 = vadd.f32 %v23917_v31, %v12161_v42  ;;  %v12414_v43 = vadd.f32 %v23919_v48, %v23958_v44  ;;  %v12413_v44 = vadd.f32 %v23925_v23, %v23954_v61  ;;  %v12923_v61 = vld [vmem:[#allocation2 + $0x1] sm:$0xff] }
 0xb28   :  { %v21700_v57 = vpop.eup %21699  ;;  %21719 = vtanh.f32 %v12805_v30  ;;  %16597 = vst [vmem:[#allocation36 + $0x10] sm:$0xff] %v12805_v30  ;;  %v24017_v41 = vadd.f32 %v23919_v48, %v12274_v19  ;;  %v12163_v26 = vpop.f32.mrb[42].mxu1  ;;  %v17418_v19 = vmul.f32 -1.442695, %v12412_v56 }
 0xb29   :  { %v12276_v0 = vpop.f32.mrb[42].mxu0  ;;  %v24019_v22 = vpop.eup %21701  ;;  %21721 = vrcp.f32 %v12503_v25  ;;  %v12599_v20 = vadd.f32 1.0, %v21700_v57  ;;  %v24024_v30 = vadd.f32 %v23915_v39, %v12163_v26 }
 0xb2a   :  { %v12165_v63 = vpop.f32.mrb[43].mxu1  ;;  %v12278_v45 = vpop.f32.mrb[43].mxu0  ;;  %21723 = vpow2.f32 %v17402_v1  ;;  %v24033_v57 = vadd.f32 %v23925_v23, %v12276_v0 }
 0xb2b   :  { %v21704_v42 = vpop.eup %21703  ;;  %21725 = vrcp.f32 %v12599_v20  ;;  %v24036_v56 = vadd.f32 %v23917_v31, %v12165_v63  ;;  %v24039_v59 = vadd.f32 %v23919_v48, %v12278_v45 }
 0xb2c   :  { %v21706_v2 = vpop.eup %21705  ;;  %v12835_v25 = vmul.f32 %v21704_v42, %v23983_v27  ;;  %21727 = vrcp.f32 %v12710_v8  ;;  %v17434_v42 = vmul.f32 -1.442695, %v12414_v43  ;;  %v12169_v8 = vpop.f32.mrb[44].mxu1 }
 0xb2d   :  { %v21708_v26 = vpop.eup %21707  ;;  %v12774_v34 = vmul.f32 %v21706_v2, %v12758_v3  ;;  %21729 = vpow2.f32 %v17433_v46  ;;  %v12416_v2 = vadd.f32 %v23917_v31, %v23965_v35  ;;  %v12282_v3 = vpop.f32.mrb[44].mxu0 }
 0xb2e   :  { %v21710_v1 = vpop.eup %21709  ;;  %v12851_v27 = vadd.f32 %v12835_v25, %v25028_v24  ;;  %v12504_v20 = vadd.f32 1.0, %v21708_v26  ;;  %21731 = vpow2.f32 %v17418_v19  ;;  %v24046_v24 = vadd.f32 %v23915_v39, %v12169_v8  ;;  %v12171_v46 = vpop.f32.mrb[45].mxu1 }
 0xb2f   :  { %v21712_v40 = vpop.eup %21711  ;;  %v12806_v0 = vadd.f32 %v12790_v54, %v12774_v34  ;;  %v24049_v4 = vadd.f32 %v23925_v23, %v12282_v3  ;;  %v12284_v54 = vpop.f32.mrb[45].mxu0  ;;  %v24052_v10 = vadd.f32 %v23917_v31, %v12171_v46  ;;  %v25029_v26 = vmax.f32 %v23605_v18, 0.0 }
 0xb30   :  { %v21714_v63 = vpop.eup %21713  ;;  %16579 = vst [vmem:[#allocation34] sm:$0xff] %v12851_v27  ;;  %12867 = vst [vmem:[#allocation2 + $0x11] sm:$0xff] %v12851_v27  ;;  %v12836_v45 = vmul.f32 %v21712_v40, %v21698_v53  ;;  %21733 = vrcp.f32 %v12504_v20  ;;  %v24055_v35 = vadd.f32 %v23919_v48, %v12284_v54  ;;  %v12173_v19 = vpop.f32.mrb[46].mxu1  ;;  %v12939_v53 = vpack.c.bf16 %v12851_v27, %v12923_v61 }
 0xb31   :  { %v21716_v43 = vpop.eup %21715  ;;  %21735 = vtanh.f32 %v12806_v0  ;;  %16598 = vst [vmem:[#allocation36 + $0x18] sm:$0xff] %v12806_v0  ;;  %v12286_v40 = vpop.f32.mrb[46].mxu0  ;;  %v12418_v8 = vadd.f32 %v23919_v48, %v23967_v29  ;;  %v12419_v0 = vadd.f32 %v23915_v39, %v23973_v12  ;;  %v12711_v54 = vadd.f32 1.0, %v21714_v63 }
 0xb32   :  { %v24057_v25 = vpop.eup %21717  ;;  %v12852_v34 = vadd.f32 %v12836_v45, %v25029_v26  ;;  %v12600_v20 = vadd.f32 1.0, %v21716_v43  ;;  %v12175_v3 = vpop.f32.mrb[47].mxu1  ;;  %21737 = vpow2.f32 %v17403_v62  ;;  %v17419_v58 = vmul.f32 -1.442695, %v12416_v2  ;;  %18830 = vmatprep.mubr.bf16.mxu1 %v12939_v53  ;;  %v12759_v45 = vld [vmem:[#allocation9 + $0x20] sm:$0xff] }
 0xb33   :  { %v12288_v46 = vpop.f32.mrb[47].mxu0  ;;  %v21720_v5 = vpop.eup %21719  ;;  %v12420_v27 = vadd.f32 %v23917_v31, %v23979_v17  ;;  %v24069_v29 = vadd.f32 %v23915_v39, %v12173_v19  ;;  %v24072_v12 = vadd.f32 %v23925_v23, %v12286_v40  ;;  %v24075_v2 = vadd.f32 %v23917_v31, %v12175_v3 }
 0xb34   :  { %v21722_v61 = vpop.eup %21721  ;;  %16580 = vst [vmem:[#allocation34 + $0x8] sm:$0xff] %v12852_v34  ;;  %12868 = vst [vmem:[#allocation2 + $0x21] sm:$0xff] %v12852_v34  ;;  %v12837_v18 = vmul.f32 %v21720_v5, %v24019_v22  ;;  %21739 = vrcp.f32 %v12600_v20  ;;  %v24078_v17 = vadd.f32 %v23919_v48, %v12288_v46  ;;  %v25030_v5 = vmax.f32 %v23594_v38, 0.0  ;;  %v12179_v21 = vpop.f32.mrb[48].mxu1 }
 0xb35   :  { %v21724_v63 = vpop.eup %21723  ;;  %v12791_v62 = vmul.f32 %v21722_v61, %v21710_v1  ;;  %21741 = vtanh.f32 %v12413_v44  ;;  %v17404_v19 = vmul.f32 -1.442695, %v12419_v0  ;;  %v17435_v40 = vmul.f32 -1.442695, %v12418_v8  ;;  %v12292_v1 = vpop.f32.mrb[48].mxu0  ;;  %v21508_v0 = vld [vmem:[#allocation24 + $0x8] sm:$0xff]  }
 0xb36   :  { %v21726_v43 = vpop.eup %21725  ;;  %v12853_v22 = vadd.f32 %v12837_v18, %v25030_v5  ;;  %v12505_v53 = vadd.f32 1.0, %v21724_v63  ;;  %21743 = vpow2.f32 %v17434_v42  ;;  %v24083_v3 = vadd.f32 %v23915_v39, %v12179_v21  ;;  %v12181_v38 = vpop.f32.mrb[49].mxu1 }
 0xb37   :  { %v21728_v26 = vpop.eup %21727  ;;  %v12775_v20 = vmul.f32 %v21726_v43, %v12759_v45  ;;  %21745 = vpow2.f32 %v17419_v58  ;;  %v24086_v46 = vadd.f32 %v23925_v23, %v12292_v1  ;;  %v12294_v61 = vpop.f32.mrb[49].mxu0  ;;  %v24089_v58 = vadd.f32 %v23917_v31, %v12181_v38 }
 0xb38   :  { %v21730_v44 = vpop.eup %21729  ;;  %16581 = vst [vmem:[#allocation34 + $0x10] sm:$0xff] %v12853_v22  ;;  %12869 = vst [vmem:[#allocation2 + $0x31] sm:$0xff] %v12853_v22  ;;  %21747 = vrcp.f32 %v12505_v53  ;;  %v12940_v42 = vpack.c.bf16 %v12853_v22, %v12852_v34  ;;  %v24092_v8 = vadd.f32 %v23919_v48, %v12294_v61  ;;  %v12183_v63 = vpop.f32.mrb[50].mxu1  ;;  %v17420_v53 = vmul.f32 -1.442695, %v12420_v27  ;;  %v12760_v61 = vld [vmem:[#allocation9 + $0x28] sm:$0xff] }
 0xb39   :  { %v21732_v18 = vpop.eup %21731  ;;  %v12807_v45 = vadd.f32 %v12791_v62, %v12775_v20  ;;  %21749 = vrcp.f32 %v12711_v54  ;;  %v12296_v43 = vpop.f32.mrb[50].mxu0  ;;  %v24095_v1 = vadd.f32 %v23915_v39, %v12183_v63  ;;  %v12417_v20 = vadd.f32 %v23925_v23, %v23962_v55 }
 0xb3a   :  { %v21734_v21 = vpop.eup %21733  ;;  %v12601_v5 = vadd.f32 1.0, %v21732_v18  ;;  %21751 = vpow2.f32 %v17404_v19  ;;  %v12185_v34 = vpop.f32.mrb[51].mxu1  ;;  %18831 = vmatmul.mubr.bf16.vlgmr.msra.gmra.mrb[52].mxu1 %v12940_v42  ;;  %v12422_v39 = vadd.f32 %v23919_v48, %v23981_v11  ;;  %v24104_v27 = vadd.f32 %v23925_v23, %v12296_v43  ;;  %v21509_v19 = vld [vmem:[#allocation24 + $0x10] sm:$0xff]  }
 0xb3b   :  { %v12298_v22 = vpop.f32.mrb[51].mxu0  ;;  %v21736_v62 = vpop.eup %21735  ;;  %21753 = vtanh.f32 %v12807_v45  ;;  %16599 = vst [vmem:[#allocation36 + $0x20] sm:$0xff] %v12807_v45  ;;  %v12792_v54 = vmul.f32 %v21734_v21, %v24057_v25  ;;  %18847 = vmatpush3.bf16.msra.mxu1 %v24005_v47  ;;  %v12712_v18 = vadd.f32 1.0, %v21730_v44  ;;  %v24107_v25 = vadd.f32 %v23917_v31, %v12185_v34  ;;  %v21510_v31 = vld [vmem:[#allocation24 + $0x18] sm:$0xff]  }
 0xb3c   :  { %v12838_v38 = vmul.f32 %v21736_v62, %v21728_v26  ;;  %21755 = vrcp.f32 %v12601_v5  ;;  %18848 = vmatprep.subr.bf16.mxu1 %v21508_v0  ;;  %v21738_v42 = vpop.eup %21737  ;;  %v24110_v55 = vadd.f32 %v23919_v48, %v12298_v22  ;;  %v25031_v26 = vmax.f32 %v23601_v51, 0.0  ;;  %v12761_v62 = vld [vmem:[#allocation9 + $0x30] sm:$0xff] }
 0xb3d   :  { %21757 = vpow2.f32 %v17435_v40  ;;  %v12506_v11 = vadd.f32 1.0, %v21738_v42  ;;  %v17405_v63 = vmul.f32 -1.442695, %v23988_v37  ;;  %v17436_v44 = vmul.f32 -1.442695, %v12422_v39 }
 0xb3e   :  { %v21740_v47 = vpop.eup %21739  ;;  %v24114_v45 = vadd.f32 %v12838_v38, %v25031_v26  ;;  %21759 = vpow2.f32 %v17420_v53  ;;  %v12421_v37 = vadd.f32 %v23925_v23, %v23975_v49  ;;  %v17406_v23 = vmul.f32 -1.442695, %v24008_v6 }
 0xb3f   :  { %v21742_v43 = vpop.eup %21741  ;;  %v12776_v21 = vmul.f32 %v21740_v47, %v12760_v61  ;;  %21761 = vtanh.f32 %v12417_v20  ;;  %18849 = vmatpush3.bf16.msra.mxu1 %v21508_v0  ;;  %v17421_v20 = vmul.f32 -1.442695, %v23998_v28  ;;  %v25032_v26 = vmax.f32 %v23621_v15, 0.0  ;;  %v21512_v28 = vld [vmem:[#allocation24 + $0x28] sm:$0xff]  }
 0xb40   :  { %v21744_v40 = vpop.eup %21743  ;;  %16582 = vst [vmem:[#allocation34 + $0x18] sm:$0xff] %v24114_v45  ;;  %12870 = vst [vmem:[#allocation2 + $0x41] sm:$0xff] %v24114_v45  ;;  %21763 = vrcp.f32 %v12506_v11  ;;  %18850 = vmatprep.subr.bf16.mxu1 %v21509_v19 }
 0xb41   :  { %v21746_v48 = vpop.eup %21745  ;;  %v12808_v51 = vadd.f32 %v12792_v54, %v12776_v21  ;;  %21765 = vrcp.f32 %v12712_v18  ;;  %v21511_v54 = vld [vmem:[#allocation24 + $0x20] sm:$0xff]   ;;  %v12713_v61 = vadd.f32 1.0, %v21744_v40 }
 0xb42   :  { %v21748_v5 = vpop.eup %21747  ;;  %v12602_v53 = vadd.f32 1.0, %v21746_v48  ;;  %21767 = vpow2.f32 %v17405_v63 }
 0xb43   :  { %v21750_v34 = vpop.eup %21749  ;;  %21769 = vtanh.f32 %v12808_v51  ;;  %16600 = vst [vmem:[#allocation36 + $0x28] sm:$0xff] %v12808_v51  ;;  %v12793_v0 = vmul.f32 %v21748_v5, %v21742_v43  ;;  %18851 = vmatpush3.bf16.msra.mxu1 %v21509_v19  ;;  %v17422_v5 = vmul.f32 -1.442695, %v24014_v36  ;;  %v25033_v36 = vmax.f32 %v23629_v52, 0.0  ;;  %v12763_v52 = vld [vmem:[#allocation9 + $0x40] sm:$0xff] }
 0xb44   :  { %v21752_v22 = vpop.eup %21751  ;;  %21771 = vrcp.f32 %v12602_v53  ;;  %18852 = vmatprep.subr.bf16.mxu1 %v21510_v31  ;;  %v21513_v53 = vld [vmem:[#allocation24 + $0x30] sm:$0xff]  }
 0xb45   :  { %v21754_v38 = vpop.eup %21753  ;;  %v12507_v39 = vadd.f32 1.0, %v21752_v22  ;;  %21773 = vpow2.f32 %v17436_v44  ;;  %v12762_v44 = vld [vmem:[#allocation9 + $0x38] sm:$0xff] }
 0xb46   :  { %v21756_v42 = vpop.eup %21755  ;;  %v12839_v18 = vmul.f32 %v21754_v38, %v21750_v34  ;;  %21775 = vtanh.f32 %v12421_v37 }
 0xb47   :  { %v21758_v49 = vpop.eup %21757  ;;  %v12777_v47 = vmul.f32 %v21756_v42, %v12761_v62  ;;  %21777 = vrcp.f32 %v12507_v39  ;;  %18853 = vmatpush3.bf16.msra.mxu1 %v21510_v31  ;;  %v17407_v62 = vmul.f32 -1.442695, %v24024_v30  ;;  %v21514_v39 = vld [vmem:[#allocation24 + $0x38] sm:$0xff]  }
 0xb48   :  { %v21760_v19 = vpop.eup %21759  ;;  %v12855_v11 = vadd.f32 %v12839_v18, %v25032_v26  ;;  %21779 = vpow2.f32 %v17421_v20  ;;  %18854 = vmatprep.subr.bf16.mxu1 %v21511_v54  ;;  %v12714_v48 = vadd.f32 1.0, %v21758_v49  ;;  %v24134_v26 = vld [vmem:[#allocation24 + $0x80] sm:$0xff]  }
 0xb49   :  { %v21762_v63 = vpop.eup %21761  ;;  %v12809_v43 = vadd.f32 %v12793_v0, %v12777_v47  ;;  %21781 = vrcp.f32 %v12713_v61  ;;  %v12603_v21 = vadd.f32 1.0, %v21760_v19  ;;  %v17437_v0 = vmul.f32 -1.442695, %v24001_v33 }
 0xb4a   :  { %v21764_v40 = vpop.eup %21763  ;;  %16583 = vst [vmem:[#allocation34 + $0x20] sm:$0xff] %v12855_v11  ;;  %12871 = vst [vmem:[#allocation2 + $0x51] sm:$0xff] %v12855_v11  ;;  %21783 = vpow2.f32 %v17406_v23  ;;  %v12941_v6 = vpack.c.bf16 %v12855_v11, %v24114_v45  ;;  %v17423_v19 = vmul.f32 -1.442695, %v24036_v56  ;;  %v25034_v56 = vmax.f32 %v23618_v32, 0.0 }
 0xb4b   :  { %v21766_v51 = vpop.eup %21765  ;;  %21785 = vtanh.f32 %v12809_v43  ;;  %16601 = vst [vmem:[#allocation36 + $0x30] sm:$0xff] %v12809_v43  ;;  %v12794_v31 = vmul.f32 %v21764_v40, %v21762_v63  ;;  %18855 = vmatpush3.bf16.msra.mxu1 %v21511_v54  ;;  %v17438_v63 = vmul.f32 -1.442695, %v24017_v41  ;;  %v17408_v40 = vmul.f32 -1.442695, %v24046_v24 }
 0xb4c   :  { %v21768_v15 = vpop.eup %21767  ;;  %21787 = vrcp.f32 %v12603_v21  ;;  %18834 = vmatprep.mubr.bf16.mxu1 %v12941_v6  ;;  %18856 = vmatprep.subr.bf16.mxu1 %v21512_v28  ;;  %v17424_v32 = vmul.f32 -1.442695, %v24052_v10 }
 0xb4d   :  { %v21770_v37 = vpop.eup %21769  ;;  %v12508_v34 = vadd.f32 1.0, %v21768_v15  ;;  %21789 = vtanh.f32 %v23991_v60 }
 0xb4e   :  { %v21772_v45 = vpop.eup %21771  ;;  %v12840_v22 = vmul.f32 %v21770_v37, %v21766_v51  ;;  %21791 = vrcp.f32 %v12714_v48 }
 0xb4f   :  { %v21774_v20 = vpop.eup %21773  ;;  %v12778_v54 = vmul.f32 %v21772_v45, %v12762_v44  ;;  %21793 = vrcp.f32 %v12508_v34  ;;  %18857 = vmatpush3.bf16.msra.mxu1 %v21512_v28 }
 0xb50   :  { %v21776_v38 = vpop.eup %21775  ;;  %v12856_v61 = vadd.f32 %v12840_v22, %v25033_v36  ;;  %21795 = vpow2.f32 %v17422_v5  ;;  %18858 = vmatprep.subr.bf16.mxu1 %v21513_v53  ;;  %v12715_v23 = vadd.f32 1.0, %v21774_v20  ;;  %v17439_v22 = vmul.f32 -1.442695, %v24039_v59 }
 0xb51   :  { %v21778_v42 = vpop.eup %21777  ;;  %v12810_v60 = vadd.f32 %v12794_v31, %v12778_v54  ;;  %21797 = vpow2.f32 %v17437_v0  ;;  %v12764_v0 = vld [vmem:[#allocation9 + $0x48] sm:$0xff]  ;;  %v17409_v54 = vmul.f32 -1.442695, %v24069_v29 }
 0xb52   :  { %v21780_v33 = vpop.eup %21779  ;;  %16584 = vst [vmem:[#allocation34 + $0x28] sm:$0xff] %v12856_v61  ;;  %12872 = vst [vmem:[#allocation2 + $0x61] sm:$0xff] %v12856_v61  ;;  %v12795_v18 = vmul.f32 %v21778_v42, %v21776_v38  ;;  %21799 = vpow2.f32 %v17407_v62 }
 0xb53   :  { %v21782_v30 = vpop.eup %21781  ;;  %21801 = vtanh.f32 %v12810_v60  ;;  %16602 = vst [vmem:[#allocation36 + $0x38] sm:$0xff] %v12810_v60  ;;  %v12604_v49 = vadd.f32 1.0, %v21780_v33  ;;  %18859 = vmatpush3.bf16.msra.mxu1 %v21513_v53 }
 0xb54   :  { %v21784_v47 = vpop.eup %21783  ;;  %21803 = vtanh.f32 %v24011_v13  ;;  %18860 = vmatprep.subr.bf16.mxu1 %v21514_v39 }
 0xb55   :  { %v21786_v11 = vpop.eup %21785  ;;  %21805 = vrcp.f32 %v12604_v49  ;;  %v12509_v28 = vadd.f32 1.0, %v21784_v47  ;;  %v12765_v49 = vld [vmem:[#allocation9 + $0x50] sm:$0xff] }
 0xb56   :  { %v21788_v43 = vpop.eup %21787  ;;  %v12841_v21 = vmul.f32 %v21786_v11, %v21782_v30  ;;  %21807 = vrcp.f32 %v12715_v23  ;;  %v17425_v30 = vmul.f32 -1.442695, %v24075_v2  ;;  %v17410_v11 = vmul.f32 -1.442695, %v24083_v3 }
 0xb57   :  { %v21790_v48 = vpop.eup %21789  ;;  %v12779_v6 = vmul.f32 %v21788_v43, %v12763_v52  ;;  %21809 = vrcp.f32 %v12509_v28  ;;  %18861 = vmatpush3.bf16.msra.mxu1 %v21514_v39  ;;  %v25035_v39 = vmax.f32 %v23625_v50, 0.0  ;;  %v17440_v52 = vmul.f32 -1.442695, %v24055_v35  ;;  %v12931_v43 = vld [vmem:[#allocation2 + $0xa1] sm:$0xff] }
 0xb58   :  { %v21792_v13 = vpop.eup %21791  ;;  %v12857_v51 = vadd.f32 %v12841_v21, %v25034_v56  ;;  %21811 = vpow2.f32 %v17423_v19  ;;  %18878 = vmatprep.subr.bf16.mxu1 %v24134_v26 }
 0xb59   :  { %v21794_v31 = vpop.eup %21793  ;;  %v12811_v15 = vadd.f32 %v12795_v18, %v12779_v6  ;;  %21813 = vpow2.f32 %v17438_v63 }
 0xb5a   :  { %v21796_v41 = vpop.eup %21795  ;;  %16585 = vst [vmem:[#allocation34 + $0x30] sm:$0xff] %v12857_v51  ;;  %12873 = vst [vmem:[#allocation2 + $0x71] sm:$0xff] %v12857_v51  ;;  %v12796_v44 = vmul.f32 %v21794_v31, %v21790_v48  ;;  %21815 = vpow2.f32 %v17408_v40  ;;  %v12942_v24 = vpack.c.bf16 %v12857_v51, %v12856_v61  ;;  %v25036_v40 = vmax.f32 %v23658_v7, 0.0 }
 0xb5b   :  { %v21798_v5 = vpop.eup %21797  ;;  %21817 = vtanh.f32 %v12811_v15  ;;  %16603 = vst [vmem:[#allocation36 + $0x40] sm:$0xff] %v12811_v15  ;;  %v12605_v53 = vadd.f32 1.0, %v21796_v41  ;;  %v17426_v7 = vmul.f32 -1.442695, %v24089_v58  ;;  %v12766_v41 = vld [vmem:[#allocation9 + $0x58] sm:$0xff] }
 0xb5c   :  { %v21800_v37 = vpop.eup %21799  ;;  %18835 = vmatmul.mubr.bf16.gmra.mrb[56].mxu1 %v12942_v24  ;;  %v12716_v36 = vadd.f32 1.0, %v21798_v5  ;;  %v17441_v24 = vmul.f32 -1.442695, %v24078_v17 }
 0xb5d   :  { %v21802_v34 = vpop.eup %21801  ;;  %21819 = vrcp.f32 %v12605_v53  ;;  %v12510_v45 = vadd.f32 1.0, %v21800_v37  ;;  %v17411_v53 = vmul.f32 -1.442695, %v24095_v1 }
 0xb5e   :  { %v21804_v62 = vpop.eup %21803  ;;  %v12842_v20 = vmul.f32 %v21802_v34, %v21792_v13  ;;  %21821 = vtanh.f32 %v24033_v57 }
 0xb5f   :  { %v21806_v38 = vpop.eup %21805  ;;  %21823 = vrcp.f32 %v12510_v45 }
 0xb60   :  { %v21808_v61 = vpop.eup %21807  ;;  %v12858_v10 = vadd.f32 %v12842_v20, %v25035_v39  ;;  %v12780_v42 = vmul.f32 %v21806_v38, %v12764_v0  ;;  %21825 = vpow2.f32 %v17424_v32  ;;  %v12767_v39 = vld [vmem:[#allocation9 + $0x60] sm:$0xff] }
 0xb61   :  { %v21810_v60 = vpop.eup %21809  ;;  %21827 = vpow2.f32 %v17439_v22  ;;  %v25037_v22 = vmax.f32 %v23669_v16, 0.0 }
 0xb62   :  { %v21812_v33 = vpop.eup %21811  ;;  %16586 = vst [vmem:[#allocation34 + $0x38] sm:$0xff] %v12858_v10  ;;  %12874 = vst [vmem:[#allocation2 + $0x81] sm:$0xff] %v12858_v10  ;;  %v12812_v59 = vadd.f32 %v12796_v44, %v12780_v42  ;;  %v12797_v18 = vmul.f32 %v21810_v60, %v21804_v62  ;;  %21829 = vpow2.f32 %v17409_v54  ;;  %v17442_v42 = vmul.f32 -1.442695, %v24092_v8 }
 0xb63   :  { %v21814_v57 = vpop.eup %21813  ;;  %21831 = vrcp.f32 %v12716_v36  ;;  %v12606_v29 = vadd.f32 1.0, %v21812_v33  ;;  %v17427_v36 = vmul.f32 -1.442695, %v24107_v25 }
 0xb64   :  { %v21816_v23 = vpop.eup %21815  ;;  %21833 = vtanh.f32 %v12812_v59  ;;  %16604 = vst [vmem:[#allocation36 + $0x48] sm:$0xff] %v12812_v59  ;;  %v12717_v63 = vadd.f32 1.0, %v21814_v57 }
 0xb65   :  { %v21818_v50 = vpop.eup %21817  ;;  %21835 = vrcp.f32 %v12606_v29  ;;  %v12511_v47 = vadd.f32 1.0, %v21816_v23  ;;  %v25038_v23 = vmax.f32 %v23654_v14, 0.0 }
 0xb66   :  { %v12843_v19 = vmul.f32 %v21818_v50, %v21808_v61  ;;  %21837 = vtanh.f32 %v24049_v4 }
 0xb67   :  { %v21820_v28 = vpop.eup %21819  ;;  %21839 = vrcp.f32 %v12511_v47 }
 0xb68   :  { %v21822_v21 = vpop.eup %21821  ;;  %v12859_v48 = vadd.f32 %v12843_v19, %v25036_v40  ;;  %v12781_v2 = vmul.f32 %v21820_v28, %v12765_v49  ;;  %21841 = vpow2.f32 %v17425_v30 }
 0xb69   :  { %v21824_v6 = vpop.eup %21823  ;;  %21843 = vpow2.f32 %v17440_v52 }
 0xb6a   :  { %v21826_v13 = vpop.eup %21825  ;;  %16587 = vst [vmem:[#allocation34 + $0x40] sm:$0xff] %v12859_v48  ;;  %12875 = vst [vmem:[#allocation2 + $0xb1] sm:$0xff] %v12859_v48  ;;  %v12813_v35 = vadd.f32 %v12797_v18, %v12781_v2  ;;  %v12798_v56 = vmul.f32 %v21824_v6, %v21822_v21  ;;  %21845 = vpow2.f32 %v17410_v11  ;;  %v12943_v4 = vpack.c.bf16 %v12859_v48, %v12931_v43  ;;  %v12768_v11 = vld [vmem:[#allocation9 + $0x68] sm:$0xff] }
 0xb6b   :  { %v21828_v3 = vpop.eup %21827  ;;  %21847 = vrcp.f32 %v12717_v63  ;;  %v12607_v51 = vadd.f32 1.0, %v21826_v13  ;;  %v17443_v63 = vmul.f32 -1.442695, %v24110_v55  ;;  %v25039_v13 = vmax.f32 %v23665_v9, 0.0 }
 0xb6c   :  { %v21830_v31 = vpop.eup %21829  ;;  %21849 = vtanh.f32 %v12813_v35  ;;  %16605 = vst [vmem:[#allocation36 + $0x50] sm:$0xff] %v12813_v35  ;;  %18838 = vmatprep.mubr.bf16.mxu1 %v12943_v4  ;;  %v12718_v34 = vadd.f32 1.0, %v21828_v3 }
 0xb6d   :  { %v21832_v15 = vpop.eup %21831  ;;  %21851 = vrcp.f32 %v12607_v51  ;;  %v12512_v44 = vadd.f32 1.0, %v21830_v31  ;;  %v12769_v31 = vld [vmem:[#allocation9 + $0x70] sm:$0xff] }
 0xb6e   :  { %v21834_v5 = vpop.eup %21833  ;;  %21853 = vtanh.f32 %v24072_v12 }
 0xb6f   :  { %v21836_v37 = vpop.eup %21835  ;;  %v12844_v32 = vmul.f32 %v21834_v5, %v21832_v15  ;;  %21855 = vrcp.f32 %v12512_v44 }
 0xb70   :  { %v21838_v0 = vpop.eup %21837  ;;  %v12782_v45 = vmul.f32 %v21836_v37, %v12766_v41  ;;  %21857 = vpow2.f32 %v17426_v7 }
 0xb71   :  { %v21840_v58 = vpop.eup %21839  ;;  %v12860_v62 = vadd.f32 %v12844_v32, %v25037_v22  ;;  %21859 = vpow2.f32 %v17441_v24 }
 0xb72   :  { %v21842_v20 = vpop.eup %21841  ;;  %v12814_v54 = vadd.f32 %v12798_v56, %v12782_v45  ;;  %v12799_v17 = vmul.f32 %v21840_v58, %v21838_v0  ;;  %21861 = vpow2.f32 %v17411_v53  ;;  %v25040_v53 = vld [vmem:[#allocation68_spill] sm:$0xff] }
 0xb73   :  { %v21844_v38 = vpop.eup %21843  ;;  %16588 = vst [vmem:[#allocation34 + $0x48] sm:$0xff] %v12860_v62  ;;  %12876 = vst [vmem:[#allocation2 + $0xc1] sm:$0xff] %v12860_v62  ;;  %21863 = vrcp.f32 %v12718_v34  ;;  %v12608_v12 = vadd.f32 1.0, %v21842_v20  ;;  %v25041_v37 = vmax.f32 %v25040_v53, 0.0 }
 0xb74   :  { %v21846_v1 = vpop.eup %21845  ;;  %21865 = vtanh.f32 %v12814_v54  ;;  %16606 = vst [vmem:[#allocation36 + $0x58] sm:$0xff] %v12814_v54  ;;  %v12719_v59 = vadd.f32 1.0, %v21844_v38 }
 0xb75   :  { %v21848_v61 = vpop.eup %21847  ;;  %21867 = vrcp.f32 %v12608_v12  ;;  %v12513_v16 = vadd.f32 1.0, %v21846_v1  ;;  %v25042_v1 = vld [vmem:[#allocation70_spill] sm:$0xff] }
 0xb76   :  { %v21850_v10 = vpop.eup %21849  ;;  %21869 = vtanh.f32 %v24086_v46 }
 0xb77   :  { %v21852_v60 = vpop.eup %21851  ;;  %v12845_v33 = vmul.f32 %v21850_v10, %v21848_v61  ;;  %21871 = vrcp.f32 %v12513_v16 }
 0xb78   :  { %v21854_v18 = vpop.eup %21853  ;;  %v12783_v57 = vmul.f32 %v21852_v60, %v12767_v39  ;;  %21873 = vpow2.f32 %v17427_v36  ;;  %v25043_v36 = vmax.f32 %v25042_v1, 0.0  ;;  %v13262_v1 = vld [vmem:[#allocation2 + $0xa2] sm:$0xff] }
 0xb79   :  { %v21856_v29 = vpop.eup %21855  ;;  %v12861_v25 = vadd.f32 %v12845_v33, %v25038_v23  ;;  %21875 = vpow2.f32 %v17442_v42  ;;  %v25044_v33 = vld [vmem:[#allocation67_spill] sm:$0xff] }
 0xb7a   :  { %v21858_v30 = vpop.eup %21857  ;;  %v12815_v50 = vadd.f32 %v12799_v17, %v12783_v57  ;;  %v12800_v49 = vmul.f32 %v21856_v29, %v21854_v18  ;;  %21877 = vrcp.f32 %v12719_v59  ;;  %v25045_v59 = vmax.f32 %v25044_v33, 0.0  ;;  %v24192_v57 = vld [vmem:[#allocation2 + $0x10] sm:$0xff]  ;;  %v24198_v23 = vld [vmem:[#allocation2] sm:$0xff] }
 0xb7b   :  { %v21860_v47 = vpop.eup %21859  ;;  %16589 = vst [vmem:[#allocation34 + $0x50] sm:$0xff] %v12861_v25  ;;  %12877 = vst [vmem:[#allocation2 + $0xd1] sm:$0xff] %v12861_v25  ;;  %v12609_v46 = vadd.f32 1.0, %v21858_v30  ;;  %v12944_v8 = vpack.c.bf16 %v12861_v25, %v12860_v62  ;;  %v12770_v62 = vld [vmem:[#allocation9 + $0x78] sm:$0xff]  ;;  %v12899_v25 = vpack.c.bf16 %v24192_v57, %v24198_v23  ;;  %v21527_v33 = vld [vmem:[#allocation24 + $0xe0] sm:$0xff]  }
 0xb7c   :  { %v21862_v52 = vpop.eup %21861  ;;  %21879 = vtanh.f32 %v12815_v50  ;;  %16607 = vst [vmem:[#allocation36 + $0x60] sm:$0xff] %v12815_v50  ;;  %v12720_v40 = vadd.f32 1.0, %v21860_v47  ;;  %v24202_v47 = vld [vmem:[#allocation2 + $0x30] sm:$0xff] }
 0xb7d   :  { %v21864_v19 = vpop.eup %21863  ;;  %21881 = vrcp.f32 %v12609_v46  ;;  %v12514_v28 = vadd.f32 1.0, %v21862_v52  ;;  %18839 = vmatmul.mubr.bf16.gmra.mrb[60].mxu1 %v12944_v8  ;;  %v25046_v46 = vld [vmem:[#allocation69_spill] sm:$0xff] }
 0xb7e   :  { %v21866_v14 = vpop.eup %21865  ;;  %21883 = vtanh.f32 %v24104_v27  ;;  %v25047_v8 = vmax.f32 %v25046_v46, 0.0 }
 0xb7f   :  { %v21868_v43 = vpop.eup %21867  ;;  %v12846_v21 = vmul.f32 %v21866_v14, %v21864_v19  ;;  %21885 = vrcp.f32 %v12514_v28  ;;  %v24208_v19 = vld [vmem:[#allocation2 + $0x50] sm:$0xff]  ;;  %v24218_v14 = vld [vmem:[#allocation2 + $0x40] sm:$0xff] }
 0xb80   :  { %v21870_v48 = vpop.eup %21869  ;;  %v12784_v2 = vmul.f32 %v21868_v43, %v12768_v11  ;;  %21887 = vpow2.f32 %v17443_v63  ;;  %v24210_v11 = vld [vmem:[#allocation2 + $0x20] sm:$0xff]  ;;  %v21516_v63 = vld [vmem:[#allocation24 + $0x88] sm:$0xff]  }
 0xb81   :  { %v21872_v6 = vpop.eup %21871  ;;  %v24168_v35 = vadd.f32 %v12846_v21, %v25039_v13  ;;  %21889 = vrcp.f32 %v12720_v40  ;;  %v24216_v28 = vpack.c.bf16 %v24202_v47, %v24210_v11  ;;  %v24224_v21 = vpack.c.bf16 %v24208_v19, %v24218_v14  ;;  %v21517_v40 = vld [vmem:[#allocation24 + $0x90] sm:$0xff]  }
 0xb82   :  { %v21874_v56 = vpop.eup %21873  ;;  %v12816_v4 = vadd.f32 %v12800_v49, %v12784_v2  ;;  %v12801_v3 = vmul.f32 %v21872_v6, %v21870_v48  ;;  %v24229_v48 = vld [vmem:[#allocation2 + $0x70] sm:$0xff]  ;;  %v24233_v6 = vld [vmem:[#allocation2 + $0x60] sm:$0xff] }
 0xb83   :  { %16590 = vst [vmem:[#allocation34 + $0x58] sm:$0xff] %v24168_v35  ;;  %12878 = vst [vmem:[#allocation2 + $0xe1] sm:$0xff] %v24168_v35  ;;  %v12610_v27 = vadd.f32 1.0, %v21874_v56  ;;  %v21876_v55 = vpop.eup %21875  ;;  %v24231_v2 = vld [vmem:[#allocation2 + $0xb0] sm:$0xff]  ;;  %v24237_v13 = vpack.c.bf16 %v24229_v48, %v24233_v6  ;;  %v21518_v56 = vld [vmem:[#allocation24 + $0x98] sm:$0xff]  }
 0xb84   :  { %21891 = vtanh.f32 %v12816_v4  ;;  %16608 = vst [vmem:[#allocation36 + $0x68] sm:$0xff] %v12816_v4  ;;  %v21878_v51 = vpop.eup %21877  ;;  %v12721_v41 = vadd.f32 1.0, %v21876_v55  ;;  %v21519_v4 = vld [vmem:[#allocation24 + $0xa0] sm:$0xff]   ;;  %v24246_v55 = vld [vmem:[#allocation2 + $0xc0] sm:$0xff] }
 0xb85   :  { %21893 = vrcp.f32 %v12610_v27 }
 0xb86   :  { %v21880_v7 = vpop.eup %21879  ;;  %21895 = vrcp.f32 %v12721_v41 }
 0xb87   :  { %v21882_v9 = vpop.eup %21881  ;;  %v12847_v15 = vmul.f32 %v21880_v7, %v21878_v51  ;;  %v21520_v7 = vld [vmem:[#allocation24 + $0xa8] sm:$0xff]  }
 0xb88   :  { %v21884_v44 = vpop.eup %21883  ;;  %v12785_v24 = vmul.f32 %v21882_v9, %v12769_v31 }
 0xb89   :  { %v21886_v5 = vpop.eup %21885  ;;  %v24174_v32 = vadd.f32 %v12847_v15, %v25041_v37  ;;  %v21521_v15 = vld [vmem:[#allocation24 + $0xb0] sm:$0xff]   ;;  %v21522_v37 = vld [vmem:[#allocation24 + $0xb8] sm:$0xff]  }
 0xb8a   :  { %v12817_v34 = vadd.f32 %v12801_v3, %v12785_v24  ;;  %v12802_v0 = vmul.f32 %v21886_v5, %v21884_v44  ;;  %v21888_v58 = vpop.eup %21887  ;;  %v24242_v3 = vld [vmem:[#allocation2 + $0xd0] sm:$0xff]  ;;  %v24252_v31 = vld [vmem:[#allocation2 + $0xe0] sm:$0xff] }
 0xb8b   :  { %16591 = vst [vmem:[#allocation34 + $0x60] sm:$0xff] %v24174_v32  ;;  %12879 = vst [vmem:[#allocation2 + $0xf1] sm:$0xff] %v24174_v32  ;;  %v12945_v45 = vpack.c.bf16 %v24174_v32, %v24168_v35  ;;  %v21890_v22 = vpop.eup %21889  ;;  %v12722_v38 = vadd.f32 1.0, %v21888_v58  ;;  %v24250_v51 = vpack.c.bf16 %v24242_v3, %v24246_v55  ;;  %v13254_v44 = vld [vmem:[#allocation2 + $0x2] sm:$0xff]  ;;  %v24262_v24 = vld [vmem:[#allocation2 + $0x12] sm:$0xff] }
 0xb8c   :  { %21897 = vtanh.f32 %v12817_v34  ;;  %16609 = vst [vmem:[#allocation36 + $0x70] sm:$0xff] %v12817_v34  ;;  %v13270_v34 = vpack.c.bf16 %v24262_v24, %v13254_v44  ;;  %v24274_v58 = vld [vmem:[#allocation2 + $0x52] sm:$0xff] }
 0xb8d   :  { %18842 = vmatprep.mubr.bf16.mxu1 %v12945_v45  ;;  %21899 = vrcp.f32 %v12722_v38  ;;  %v24272_v45 = vld [vmem:[#allocation2 + $0x32] sm:$0xff]  ;;  %v21525_v38 = vld [vmem:[#allocation24 + $0xd0] sm:$0xff]  }
 0xb8e   :  { %v21892_v20 = vpop.eup %21891  ;;  %v21532_v44 = vld [vmem:[#allocation24 + $0x108] sm:$0xff]  }
 0xb8f   :  { %v21894_v54 = vpop.eup %21893  ;;  %v12848_v17 = vmul.f32 %v21892_v20, %v21890_v22  ;;  %v24276_v22 = vld [vmem:[#allocation2 + $0x22] sm:$0xff] }
 0xb90   :  { %v12786_v12 = vmul.f32 %v21894_v54, %v12770_v62  ;;  %v21896_v16 = vpop.eup %21895  ;;  %v24280_v62 = vpack.c.bf16 %v24272_v45, %v24276_v22  ;;  %v24282_v20 = vld [vmem:[#allocation2 + $0x42] sm:$0xff]  ;;  %v21524_v54 = vld [vmem:[#allocation24 + $0xc8] sm:$0xff]  }
 0xb91   :  { %v24182_v61 = vadd.f32 %v12848_v17, %v25043_v36  ;;  %v24286_v17 = vpack.c.bf16 %v24274_v58, %v24282_v20  ;;  %v24292_v36 = vld [vmem:[#allocation2 + $0xb2] sm:$0xff] }
 0xb92   :  { %v12818_v39 = vadd.f32 %v12802_v0, %v12786_v12  ;;  %v24244_v27 = vld [vmem:[#allocation2 + $0xf0] sm:$0xff] }
 0xb93   :  { %16592 = vst [vmem:[#allocation34 + $0x68] sm:$0xff] %v24182_v61  ;;  %12880 = vst [vmem:[#allocation2 + $0x101] sm:$0xff] %v24182_v61  ;;  %v13680_v42 = vpack.c.bf16 %v24182_v61, %v24174_v32  ;;  %v24256_v9 = vpack.c.bf16 %v24244_v27, %v24252_v31  ;;  %v21523_v0 = vld [vmem:[#allocation24 + $0xc0] sm:$0xff]   ;;  %v24290_v12 = vld [vmem:[#allocation2 + $0x72] sm:$0xff] }
 0xb94   :  { %21901 = vtanh.f32 %v12818_v39  ;;  %16610 = vst [vmem:[#allocation36 + $0x78] sm:$0xff] %v12818_v39  ;;  %v24294_v39 = vld [vmem:[#allocation2 + $0x62] sm:$0xff] }
 0xb95   :  { %v21573_v32 = vld [vmem:[#allocation27 + $0x50] sm:$0xff]  }
 0xb96   :  { %v21898_v10 = vpop.eup %21897 }
 0xb97   :  { %v12849_v60 = vmul.f32 %v21898_v10, %v21896_v16  ;;  %v21900_v30 = vpop.eup %21899  ;;  %v24298_v16 = vpack.c.bf16 %v24290_v12, %v24294_v39  ;;  %v21526_v10 = vld [vmem:[#allocation24 + $0xd8] sm:$0xff]  }
 0xb99   :  { %v24190_v18 = vadd.f32 %v12849_v60, %v25045_v59  ;;  %v13274_v60 = vpack.c.bf16 %v24292_v36, %v13262_v1  ;;  %v24302_v59 = vld [vmem:[#allocation2 + $0xd2] sm:$0xff] }
 0xb9a   :  { %v24264_v5 = vld [vmem:[#allocation2 + $0x100] sm:$0xff]  ;;  %v13658_v1 = vld [vmem:[#allocation2 + $0x11] sm:$0xff] }
 0xb9b   :  { %16593 = vst [vmem:[#allocation34 + $0x70] sm:$0xff] %v24190_v18  ;;  %12881 = vst [vmem:[#allocation2 + $0x111] sm:$0xff] %v24190_v18  ;;  %v12946_v29 = vpack.c.bf16 %v24190_v18, %v24182_v61  ;;  %v13877_v61 = vpack.c.bf16 %v24282_v20, %v24272_v45  ;;  %v21550_v20 = vld [vmem:[#allocation24 + $0x198] sm:$0xff]  }
 0xb9d   :  { %18843 = vmatmul.mubr.bf16.gmra.mrb[64].mxu1 %v12946_v29  ;;  %v24304_v29 = vld [vmem:[#allocation2 + $0xf2] sm:$0xff] }
 0xb9e   :  { %v21902_v50 = vpop.eup %21901  ;;  %18862 = vmatprep.mubr.bf16.mxu1 %v12899_v25  ;;  %v24306_v25 = vld [vmem:[#allocation2 + $0xc2] sm:$0xff] }
 0xb9f   :  { %v12850_v49 = vmul.f32 %v21902_v50, %v21900_v30  ;;  %v24310_v30 = vpack.c.bf16 %v24302_v59, %v24306_v25  ;;  %v24312_v50 = vld [vmem:[#allocation2 + $0xe2] sm:$0xff] }
 0xba0   :  { %v24316_v46 = vpack.c.bf16 %v24304_v29, %v24312_v50 }
 0xba1   :  { %v24206_v52 = vadd.f32 %v12850_v49, %v25047_v8  ;;  %v21528_v49 = vld [vmem:[#allocation24 + $0xe8] sm:$0xff]   ;;  %v21529_v8 = vld [vmem:[#allocation24 + $0xf0] sm:$0xff]  }
 0xba2   :  { %v24260_v41 = vld [vmem:[#allocation2 + $0x110] sm:$0xff] }
 0xba3   :  { %16594 = vst [vmem:[#allocation34 + $0x78] sm:$0xff] %v24206_v52  ;;  %12882 = vst [vmem:[#allocation2 + $0x121] sm:$0xff] %v24206_v52  ;;  %v13681_v43 = vpack.c.bf16 %v24206_v52, %v24190_v18  ;;  %v24268_v53 = vpack.c.bf16 %v24260_v41, %v24264_v5  ;;  %v13878_v18 = vpack.c.bf16 %v24294_v39, %v24274_v58  ;;  %v21574_v52 = vld [vmem:[#allocation27 + $0x58] sm:$0xff]   ;;  %v21576_v39 = vld [vmem:[#allocation27 + $0x68] sm:$0xff]  }
 0xba4   :  { %v13880_v58 = vpack.c.bf16 %v24306_v25, %v24292_v36  ;;  %v21553_v36 = vld [vmem:[#allocation24 + $0x1b0] sm:$0xff]  }
 0xba5   :  { %18863 = vmatmul.mubr.bf16.vlgmr.msra.gmra.mrb[52].mxu1 %v24216_v28 }
 0xba6   :  { %18879 = vmatpush3.bf16.msra.mxu1 %v24134_v26  ;;  %18866 = vmatprep.mubr.bf16.mxu1 %v24224_v21  ;;  %v12903_v26 = vpack.c.bf16 %v24231_v2, %v24198_v23 }
 0xba7   :  { %18880 = vmatprep.subr.bf16.mxu1 %v21516_v63 }
 0xbaa   :  { %18881 = vmatpush3.bf16.msra.mxu1 %v21516_v63  ;;  %v24320_v63 = vld [vmem:[#allocation2 + $0x112] sm:$0xff]  ;;  %v24399_v25 = vld [vmem:[#allocation2 + $0x122] sm:$0xff] }
 0xbab   :  { %18882 = vmatprep.subr.bf16.mxu1 %v21517_v40 }
 0xbad   :  { %18867 = vmatmul.mubr.bf16.gmra.mrb[56].mxu1 %v24237_v13 }
 0xbae   :  { %18883 = vmatpush3.bf16.msra.mxu1 %v21517_v40  ;;  %18870 = vmatprep.mubr.bf16.mxu1 %v12903_v26  ;;  %v24322_v40 = vld [vmem:[#allocation2 + $0x102] sm:$0xff] }
 0xbaf   :  { %18884 = vmatprep.subr.bf16.mxu1 %v21518_v56  ;;  %v21530_v26 = vld [vmem:[#allocation24 + $0xf8] sm:$0xff]  }
 0xbb2   :  { %18885 = vmatpush3.bf16.msra.mxu1 %v21518_v56  ;;  %v24326_v56 = vpack.c.bf16 %v24320_v63, %v24322_v40 }
 0xbb3   :  { %18886 = vmatprep.subr.bf16.mxu1 %v21519_v4 }
 0xbb5   :  { %18871 = vmatmul.mubr.bf16.gmra.mrb[60].mxu1 %v24250_v51 }
 0xbb6   :  { %18887 = vmatpush3.bf16.msra.mxu1 %v21519_v4  ;;  %18874 = vmatprep.mubr.bf16.mxu1 %v24256_v9  ;;  %v13472_v4 = vpack.c.bf16 %v24210_v11, %v24192_v57  ;;  %v21533_v57 = vld [vmem:[#allocation24 + $0x110] sm:$0xff]  }
 0xbb7   :  { %18888 = vmatprep.subr.bf16.mxu1 %v21520_v7  ;;  %v24335_v11 = vld [vmem:[#allocation2 + $0x80] sm:$0xff] }
 0xbba   :  { %18889 = vmatpush3.bf16.msra.mxu1 %v21520_v7  ;;  %v21531_v7 = vld [vmem:[#allocation24 + $0x100] sm:$0xff]  }
 0xbbb   :  { %18890 = vmatprep.subr.bf16.mxu1 %v21521_v15 }
 0xbbd   :  { %18875 = vmatmul.mubr.bf16.gmra.mrb[64].mxu1 %v24268_v53 }
 0xbbe   :  { %18891 = vmatpush3.bf16.msra.mxu1 %v21521_v15  ;;  %18894 = vmatprep.mubr.bf16.mxu1 %v13270_v34  ;;  %v13473_v15 = vpack.c.bf16 %v24218_v14, %v24202_v47  ;;  %v13475_v34 = vpack.c.bf16 %v24335_v11, %v24229_v48  ;;  %v13476_v47 = vpack.c.bf16 %v24246_v55, %v24231_v2  ;;  %v21537_v48 = vld [vmem:[#allocation24 + $0x130] sm:$0xff]  }
 0xbbf   :  { %18892 = vmatprep.subr.bf16.mxu1 %v21522_v37  ;;  %v13477_v14 = vpack.c.bf16 %v24252_v31, %v24242_v3  ;;  %v24345_v2 = vld [vmem:[#allocation2 + $0x120] sm:$0xff] }
 0xbc0   :  { %v24347_v55 = vld [vmem:[#allocation2 + $0x21] sm:$0xff] }
 0xbc1   :  { %v21538_v3 = vld [vmem:[#allocation24 + $0x138] sm:$0xff]   ;;  %v13674_v31 = vpack.c.bf16 %v24347_v55, %v13658_v1  ;;  %v21547_v1 = vld [vmem:[#allocation24 + $0x180] sm:$0xff]  }
 0xbc2   :  { %18893 = vmatpush3.bf16.msra.mxu1 %v21522_v37  ;;  %v13474_v37 = vpack.c.bf16 %v24233_v6, %v24208_v19  ;;  %v21535_v19 = vld [vmem:[#allocation24 + $0x120] sm:$0xff]   ;;  %v21536_v6 = vld [vmem:[#allocation24 + $0x128] sm:$0xff]  }
 0xbc3   :  { %18910 = vmatprep.subr.bf16.mxu1 %v21523_v0 }
 0xbc5   :  { %18895 = vmatmul.mubr.bf16.vlgmr.msra.gmra.mrb[52].mxu1 %v24280_v62 }
 0xbc6   :  { %18911 = vmatpush3.bf16.msra.mxu1 %v21523_v0  ;;  %18898 = vmatprep.mubr.bf16.mxu1 %v24286_v17  ;;  %v21534_v0 = vld [vmem:[#allocation24 + $0x118] sm:$0xff]  }
 0xbc7   :  { %18912 = vmatprep.subr.bf16.mxu1 %v21524_v54 }
 0xbca   :  { %18913 = vmatpush3.bf16.msra.mxu1 %v21524_v54  ;;  %v13478_v54 = vpack.c.bf16 %v24264_v5, %v24244_v27  ;;  %v21539_v27 = vld [vmem:[#allocation24 + $0x140] sm:$0xff]   ;;  %v24352_v5 = vld [vmem:[#allocation2 + $0x41] sm:$0xff] }
 0xbcb   :  { %18914 = vmatprep.subr.bf16.mxu1 %v21525_v38 }
 0xbcd   :  { %18899 = vmatmul.mubr.bf16.gmra.mrb[56].mxu1 %v24298_v16 }
 0xbce   :  { %18915 = vmatpush3.bf16.msra.mxu1 %v21525_v38  ;;  %18902 = vmatprep.mubr.bf16.mxu1 %v13274_v60  ;;  %v13479_v38 = vpack.c.bf16 %v24345_v2, %v24260_v41  ;;  %v24356_v60 = vld [vmem:[#allocation2 + $0x31] sm:$0xff] }
 0xbcf   :  { %18916 = vmatprep.subr.bf16.mxu1 %v21526_v10  ;;  %v13675_v41 = vpack.c.bf16 %v24352_v5, %v24356_v60 }
 0xbd2   :  { %18917 = vmatpush3.bf16.msra.mxu1 %v21526_v10  ;;  %v24354_v10 = vld [vmem:[#allocation2 + $0x61] sm:$0xff] }
 0xbd3   :  { %18918 = vmatprep.subr.bf16.mxu1 %v21527_v33 }
 0xbd5   :  { %18903 = vmatmul.mubr.bf16.gmra.mrb[60].mxu1 %v24310_v30 }
 0xbd6   :  { %18919 = vmatpush3.bf16.msra.mxu1 %v21527_v33  ;;  %18906 = vmatprep.mubr.bf16.mxu1 %v24316_v46  ;;  %v24360_v33 = vld [vmem:[#allocation2 + $0x51] sm:$0xff] }
 0xbd7   :  { %18920 = vmatprep.subr.bf16.mxu1 %v21528_v49 }
 0xbda   :  { %18921 = vmatpush3.bf16.msra.mxu1 %v21528_v49  ;;  %v21540_v49 = vld [vmem:[#allocation24 + $0x148] sm:$0xff]  }
 0xbdb   :  { %18922 = vmatprep.subr.bf16.mxu1 %v21529_v8 }
 0xbdd   :  { %18907 = vmatmul.mubr.bf16.gmra.mrb[64].mxu1 %v24326_v56 }
 0xbde   :  { %18923 = vmatpush3.bf16.msra.mxu1 %v21529_v8  ;;  %18926 = vmatprep.mubr.bf16.mxu1 %v13472_v4  ;;  %v13676_v8 = vpack.c.bf16 %v24354_v10, %v24360_v33  ;;  %v24364_v4 = vld [vmem:[#allocation2 + $0x81] sm:$0xff] }
 0xbdf   :  { %18924 = vmatprep.subr.bf16.mxu1 %v21530_v26 }
 0xbe2   :  { %18925 = vmatpush3.bf16.msra.mxu1 %v21530_v26  ;;  %v21541_v26 = vld [vmem:[#allocation24 + $0x150] sm:$0xff]  }
 0xbe3   :  { %18942 = vmatprep.subr.bf16.mxu1 %v21531_v7 }
 0xbe5   :  { %18927 = vmatmul.mubr.bf16.vlgmr.msra.gmra.mrb[52].mxu1 %v13473_v15  ;;  %v24368_v15 = vld [vmem:[#allocation2 + $0x71] sm:$0xff] }
 0xbe6   :  { %18943 = vmatpush3.bf16.msra.mxu1 %v21531_v7  ;;  %18930 = vmatprep.mubr.bf16.mxu1 %v13474_v37  ;;  %v24366_v7 = vld [vmem:[#allocation2 + $0xc1] sm:$0xff]  ;;  %v13666_v37 = vld [vmem:[#allocation2 + $0xb1] sm:$0xff] }
 0xbe7   :  { %18944 = vmatprep.subr.bf16.mxu1 %v21532_v44 }
 0xbea   :  { %18945 = vmatpush3.bf16.msra.mxu1 %v21532_v44  ;;  %v13677_v44 = vpack.c.bf16 %v24364_v4, %v24368_v15 }
 0xbeb   :  { %18946 = vmatprep.subr.bf16.mxu1 %v21533_v57 }
 0xbed   :  { %18931 = vmatmul.mubr.bf16.gmra.mrb[56].mxu1 %v13475_v34  ;;  %v13678_v34 = vpack.c.bf16 %v24366_v7, %v13666_v37 }
 0xbee   :  { %18947 = vmatpush3.bf16.msra.mxu1 %v21533_v57  ;;  %18934 = vmatprep.mubr.bf16.mxu1 %v13476_v47  ;;  %v21542_v57 = vld [vmem:[#allocation24 + $0x158] sm:$0xff]   ;;  %v24373_v47 = vld [vmem:[#allocation2 + $0xd1] sm:$0xff] }
 0xbef   :  { %18948 = vmatprep.subr.bf16.mxu1 %v21534_v0  ;;  %v14284_v37 = vpack.c.bf16 %v24373_v47, %v24366_v7  ;;  %v14278_v7 = vld [vmem:[#allocation2 + $0x121] sm:$0xff] }
 0xbf2   :  { %18949 = vmatpush3.bf16.msra.mxu1 %v21534_v0  ;;  %v21543_v0 = vld [vmem:[#allocation24 + $0x160] sm:$0xff]  }
 0xbf3   :  { %18950 = vmatprep.subr.bf16.mxu1 %v21535_v19 }
 0xbf5   :  { %18935 = vmatmul.mubr.bf16.gmra.mrb[60].mxu1 %v13477_v14  ;;  %v21544_v14 = vld [vmem:[#allocation24 + $0x168] sm:$0xff]  }
 0xbf6   :  { %18951 = vmatpush3.bf16.msra.mxu1 %v21535_v19  ;;  %18938 = vmatprep.mubr.bf16.mxu1 %v13478_v54  ;;  %v13679_v19 = vpack.c.bf16 %v24168_v35, %v24373_v47  ;;  %v21546_v54 = vld [vmem:[#allocation24 + $0x178] sm:$0xff]   ;;  %v21571_v35 = vld [vmem:[#allocation27 + $0x40] sm:$0xff]  }
 0xbf7   :  { %18952 = vmatprep.subr.bf16.mxu1 %v21536_v6  ;;  %19102 = vmatprep.subr.bf16.mxu0 %v21571_v35  ;;  %v14279_v47 = vld [vmem:[#allocation2 + $0x131] sm:$0xff] }
 0xbf8   :  { %19103 = vmatpush3.bf16.msra.mxu0 %v21571_v35  ;;  %v24429_v35 = vld [vmem:[#allocation2 + $0x132] sm:$0xff] }
 0xbfa   :  { %18953 = vmatpush3.bf16.msra.mxu1 %v21536_v6  ;;  %v21545_v6 = vld [vmem:[#allocation24 + $0x170] sm:$0xff]  }
 0xbfb   :  { %18954 = vmatprep.subr.bf16.mxu1 %v21537_v48 }
 0xbfd   :  { %18939 = vmatmul.mubr.bf16.gmra.mrb[64].mxu1 %v13479_v38  ;;  %v21572_v38 = vld [vmem:[#allocation27 + $0x48] sm:$0xff]  }
 0xbfe   :  { %18955 = vmatpush3.bf16.msra.mxu1 %v21537_v48  ;;  %18958 = vmatprep.mubr.bf16.mxu1 %v13674_v31  ;;  %v13876_v48 = vpack.c.bf16 %v24276_v22, %v24262_v24  ;;  %v24389_v24 = vld [vmem:[#allocation2 + $0x82] sm:$0xff]  ;;  %v21575_v22 = vld [vmem:[#allocation27 + $0x60] sm:$0xff]   ;;  %v13881_v31 = vpack.c.bf16 %v24312_v50, %v24302_v59  ;;  %v21557_v50 = vld [vmem:[#allocation24 + $0x1d0] sm:$0xff]  }
 0xbff   :  { %18956 = vmatprep.subr.bf16.mxu1 %v21538_v3  ;;  %19104 = vmatprep.subr.bf16.mxu0 %v21572_v38  ;;  %v13879_v45 = vpack.c.bf16 %v24389_v24, %v24290_v12  ;;  %v21552_v12 = vld [vmem:[#allocation24 + $0x1a8] sm:$0xff]   ;;  %v21555_v59 = vld [vmem:[#allocation24 + $0x1c0] sm:$0xff]  }
 0xc00   :  { %19105 = vmatpush3.bf16.msra.mxu0 %v21572_v38  ;;  %v21577_v38 = vld [vmem:[#allocation27 + $0x70] sm:$0xff]  }
 0xc01   :  { %19106 = vmatprep.subr.bf16.mxu0 %v21573_v32 }
 0xc02   :  { %18957 = vmatpush3.bf16.msra.mxu1 %v21538_v3  ;;  %v21551_v3 = vld [vmem:[#allocation24 + $0x1a0] sm:$0xff]  }
 0xc03   :  { %18974 = vmatprep.subr.bf16.mxu1 %v21539_v27 }
 0xc04   :  { %19107 = vmatpush3.bf16.msra.mxu0 %v21573_v32  ;;  %v24448_v32 = vld [vmem:[#allocation27 + $0x220] sm:$0xff]  }
 0xc05   :  { %18959 = vmatmul.mubr.bf16.vlgmr.msra.gmra.mrb[52].mxu1 %v13675_v41  ;;  %19108 = vmatprep.subr.bf16.mxu0 %v21574_v52  ;;  %v13883_v41 = vpack.c.bf16 %v24399_v25, %v24320_v63  ;;  %v14081_v63 = vpack.c.bf16 %v24198_v23, %v24335_v11  ;;  %v14085_v11 = vpack.c.bf16 %v24198_v23, %v24345_v2  ;;  %v21565_v23 = vld [vmem:[#allocation24 + $0x210] sm:$0xff]   ;;  %v14271_v2 = vld [vmem:[#allocation2 + $0x91] sm:$0xff] }
 0xc06   :  { %18975 = vmatpush3.bf16.msra.mxu1 %v21539_v27  ;;  %18962 = vmatprep.mubr.bf16.mxu1 %v13676_v8  ;;  %v13882_v27 = vpack.c.bf16 %v24322_v40, %v24304_v29  ;;  %v21556_v29 = vld [vmem:[#allocation24 + $0x1c8] sm:$0xff]   ;;  %v21558_v40 = vld [vmem:[#allocation24 + $0x1d8] sm:$0xff]   ;;  %25050 = vst [vmem:[#allocation68_spill] sm:$0xff] %v24448_v32 }
 0xc07   :  { %18976 = vmatprep.subr.bf16.mxu1 %v21540_v49  ;;  %v21562_v8 = vld [vmem:[#allocation24 + $0x1f8] sm:$0xff]  }
 0xc08   :  { %19109 = vmatpush3.bf16.msra.mxu0 %v21574_v52  ;;  %v24465_v52 = vld [vmem:[#allocation25] ss:$0 sm:$0xff] }
 0xc09   :  { %19110 = vmatprep.subr.bf16.mxu0 %v21575_v22 }
 0xc0a   :  { %18977 = vmatpush3.bf16.msra.mxu1 %v21540_v49  ;;  %v21554_v49 = vld [vmem:[#allocation24 + $0x1b8] sm:$0xff]  }
 0xc0b   :  { %18978 = vmatprep.subr.bf16.mxu1 %v21541_v26 }
 0xc0c   :  { %19111 = vmatpush3.bf16.msra.mxu0 %v21575_v22 }
 0xc0d   :  { %18963 = vmatmul.mubr.bf16.gmra.mrb[56].mxu1 %v13677_v44  ;;  %19112 = vmatprep.subr.bf16.mxu0 %v21576_v39  ;;  %v14282_v44 = vpack.c.bf16 %v24368_v15, %v24354_v10  ;;  %v14275_v10 = vld [vmem:[#allocation2 + $0xf1] sm:$0xff]  ;;  %v14274_v15 = vld [vmem:[#allocation2 + $0xe1] sm:$0xff] }
 0xc0e   :  { %18979 = vmatpush3.bf16.msra.mxu1 %v21541_v26  ;;  %18966 = vmatprep.mubr.bf16.mxu1 %v13678_v34  ;;  %v21563_v26 = vld [vmem:[#allocation24 + $0x200] sm:$0xff]   ;;  %v14276_v34 = vld [vmem:[#allocation2 + $0x101] sm:$0xff] }
 0xc0f   :  { %18980 = vmatprep.subr.bf16.mxu1 %v21542_v57 }
 0xc10   :  { %19113 = vmatpush3.bf16.msra.mxu0 %v21576_v39 }
 0xc11   :  { %19114 = vmatprep.subr.bf16.mxu0 %v21577_v38 }
 0xc12   :  { %18981 = vmatpush3.bf16.msra.mxu1 %v21542_v57  ;;  %v14285_v57 = vpack.c.bf16 %v14275_v10, %v14274_v15  ;;  %v25058_v10 = vld [vmem:[#allocation55_spill] sm:$0xff] }
 0xc13   :  { %18982 = vmatprep.subr.bf16.mxu1 %v21543_v0 }
 0xc14   :  { %19115 = vmatpush3.bf16.msra.mxu0 %v21577_v38 }
 0xc15   :  { %18967 = vmatmul.mubr.bf16.gmra.mrb[60].mxu1 %v13679_v19 }
 0xc16   :  { %18983 = vmatpush3.bf16.msra.mxu1 %v21543_v0  ;;  %18970 = vmatprep.mubr.bf16.mxu1 %v13680_v42  ;;  %v21548_v42 = vld [vmem:[#allocation24 + $0x188] sm:$0xff]  }
 0xc17   :  { %18984 = vmatprep.subr.bf16.mxu1 %v21544_v14  ;;  %v21568_v0 = vld [vmem:[#allocation24 + $0x228] sm:$0xff]  }
 0xc1a   :  { %18985 = vmatpush3.bf16.msra.mxu1 %v21544_v14  ;;  %v14287_v14 = vpack.c.bf16 %v14279_v47, %v14278_v7  ;;  %v25061_v47 = vld [vmem:[#allocation58_spill] sm:$0xff] }
 0xc1b   :  { %18986 = vmatprep.subr.bf16.mxu1 %v21545_v6 }
 0xc1d   :  { %18971 = vmatmul.mubr.bf16.gmra.mrb[64].mxu1 %v13681_v43  ;;  %v21549_v43 = vld [vmem:[#allocation24 + $0x190] sm:$0xff]  }
 0xc1e   :  { %18987 = vmatpush3.bf16.msra.mxu1 %v21545_v6  ;;  %18990 = vmatprep.mubr.bf16.mxu1 %v13876_v48  ;;  %v21570_v6 = vld [vmem:[#allocation24 + $0x238] sm:$0xff]  }
 0xc1f   :  { %18988 = vmatprep.subr.bf16.mxu1 %v21546_v54 }
 0xc22   :  { %18989 = vmatpush3.bf16.msra.mxu1 %v21546_v54  ;;  %v14473_v54 = vld [vmem:[#allocation2 + $0x92] sm:$0xff] }
 0xc23   :  { %19006 = vmatprep.subr.bf16.mxu1 %v21547_v1  ;;  %v14485_v48 = vpack.c.bf16 %v14473_v54, %v24389_v24 }
 0xc25   :  { %18991 = vmatmul.mubr.bf16.vlgmr.msra.gmra.mrb[52].mxu1 %v13877_v61  ;;  %v24452_v61 = vld [vmem:[#allocation27 + $0x228] sm:$0xff]  }
 0xc26   :  { %19007 = vmatpush3.bf16.msra.mxu1 %v21547_v1  ;;  %18994 = vmatprep.mubr.bf16.mxu1 %v13878_v18  ;;  %v24445_v1 = vld [vmem:[#allocation27 + $0x218] sm:$0xff]   ;;  %25051 = vst [vmem:[#allocation70_spill] sm:$0xff] %v24452_v61 }
 0xc27   :  { %19008 = vmatprep.subr.bf16.mxu1 %v21548_v42  ;;  %25049 = vst [vmem:[#allocation50_spill] sm:$0xff] %v24445_v1  ;;  %v24460_v18 = vld [vmem:[#allocation27 + $0x238] sm:$0xff]  }
 0xc28   :  { %25053 = vst [vmem:[#allocation69_spill] sm:$0xff] %v24460_v18 }
 0xc2a   :  { %19009 = vmatpush3.bf16.msra.mxu1 %v21548_v42  ;;  %v24456_v42 = vld [vmem:[#allocation27 + $0x230] sm:$0xff]  }
 0xc2b   :  { %19010 = vmatprep.subr.bf16.mxu1 %v21549_v43  ;;  %25052 = vst [vmem:[#allocation67_spill] sm:$0xff] %v24456_v42 }
 0xc2d   :  { %18995 = vmatmul.mubr.bf16.gmra.mrb[56].mxu1 %v13879_v45 }
 0xc2e   :  { %19011 = vmatpush3.bf16.msra.mxu1 %v21549_v43  ;;  %18998 = vmatprep.mubr.bf16.mxu1 %v13880_v58 }
 0xc2f   :  { %19012 = vmatprep.subr.bf16.mxu1 %v21550_v20 }
 0xc32   :  { %19013 = vmatpush3.bf16.msra.mxu1 %v21550_v20 }
 0xc33   :  { %19014 = vmatprep.subr.bf16.mxu1 %v21551_v3 }
 0xc35   :  { %18999 = vmatmul.mubr.bf16.gmra.mrb[60].mxu1 %v13881_v31 }
 0xc36   :  { %19015 = vmatpush3.bf16.msra.mxu1 %v21551_v3  ;;  %19002 = vmatprep.mubr.bf16.mxu1 %v13882_v27  ;;  %v25054_v27 = vld [vmem:[#allocation51_spill] sm:$0xff] }
 0xc37   :  { %19016 = vmatprep.subr.bf16.mxu1 %v21552_v12 }
 0xc3a   :  { %19017 = vmatpush3.bf16.msra.mxu1 %v21552_v12 }
 0xc3b   :  { %19018 = vmatprep.subr.bf16.mxu1 %v21553_v36 }
 0xc3d   :  { %19003 = vmatmul.mubr.bf16.gmra.mrb[64].mxu1 %v13883_v41  ;;  %v14779_v41 = vld [vmem:[#allocation2 + $0x1] sm:$0xff] }
 0xc3e   :  { %19019 = vmatpush3.bf16.msra.mxu1 %v21553_v36  ;;  %19022 = vmatprep.mubr.bf16.mxu1 %v24216_v28  ;;  %v21559_v28 = vld [vmem:[#allocation24 + $0x1e0] sm:$0xff]  }
 0xc3f   :  { %19020 = vmatprep.subr.bf16.mxu1 %v21554_v49 }
 0xc42   :  { %19021 = vmatpush3.bf16.msra.mxu1 %v21554_v49  ;;  %v25055_v49 = vld [vmem:[#allocation52_spill] sm:$0xff] }
 0xc43   :  { %19038 = vmatprep.subr.bf16.mxu1 %v21555_v59 }
 0xc45   :  { %19023 = vmatmul.mubr.bf16.vlgmr.msra.gmra.mrb[52].mxu1 %v24224_v21  ;;  %v21560_v21 = vld [vmem:[#allocation24 + $0x1e8] sm:$0xff]  }
 0xc46   :  { %19039 = vmatpush3.bf16.msra.mxu1 %v21555_v59  ;;  %19026 = vmatprep.mubr.bf16.mxu1 %v24237_v13  ;;  %v21561_v13 = vld [vmem:[#allocation24 + $0x1f0] sm:$0xff]  }
 0xc47   :  { %19040 = vmatprep.subr.bf16.mxu1 %v21556_v29 }
 0xc4a   :  { %19041 = vmatpush3.bf16.msra.mxu1 %v21556_v29 }
 0xc4b   :  { %19042 = vmatprep.subr.bf16.mxu1 %v21557_v50 }
 0xc4d   :  { %19027 = vmatmul.mubr.bf16.gmra.mrb[56].mxu1 %v14081_v63 }
 0xc4e   :  { %19043 = vmatpush3.bf16.msra.mxu1 %v21557_v50  ;;  %19030 = vmatprep.mubr.bf16.mxu1 %v24250_v51  ;;  %v14280_v51 = vpack.c.bf16 %v24356_v60, %v24347_v55  ;;  %v14283_v55 = vpack.c.bf16 %v14271_v2, %v24364_v4  ;;  %v21566_v60 = vld [vmem:[#allocation24 + $0x218] sm:$0xff]   ;;  %v21569_v4 = vld [vmem:[#allocation24 + $0x230] sm:$0xff]   ;;  %v25056_v50 = vld [vmem:[#allocation53_spill] sm:$0xff] }
 0xc4f   :  { %19044 = vmatprep.subr.bf16.mxu1 %v21558_v40 }
 0xc52   :  { %19045 = vmatpush3.bf16.msra.mxu1 %v21558_v40  ;;  %v25057_v40 = vld [vmem:[#allocation54_spill] sm:$0xff] }
 0xc53   :  { %19046 = vmatprep.subr.bf16.mxu1 %v21559_v28 }
 0xc55   :  { %19031 = vmatmul.mubr.bf16.gmra.mrb[60].mxu1 %v24256_v9  ;;  %v14281_v9 = vpack.c.bf16 %v24360_v33, %v24352_v5  ;;  %v21567_v5 = vld [vmem:[#allocation24 + $0x220] sm:$0xff]  }
 0xc56   :  { %19047 = vmatpush3.bf16.msra.mxu1 %v21559_v28  ;;  %19034 = vmatprep.mubr.bf16.mxu1 %v24268_v53  ;;  %v21564_v53 = vld [vmem:[#allocation24 + $0x208] sm:$0xff]  }
 0xc57   :  { %19048 = vmatprep.subr.bf16.mxu1 %v21560_v21  ;;  %v14277_v33 = vld [vmem:[#allocation2 + $0x111] sm:$0xff] }
 0xc58   :  { %v14286_v19 = vpack.c.bf16 %v14277_v33, %v14276_v34 }
 0xc5a   :  { %19049 = vmatpush3.bf16.msra.mxu1 %v21560_v21 }
 0xc5b   :  { %19050 = vmatprep.subr.bf16.mxu1 %v21561_v13 }
 0xc5d   :  { %19035 = vmatmul.mubr.bf16.gmra.mrb[64].mxu1 %v14085_v11 }
 0xc5e   :  { %19051 = vmatpush3.bf16.msra.mxu1 %v21561_v13  ;;  %19054 = vmatprep.mubr.bf16.mxu1 %v14280_v51 }
 0xc5f   :  { %19052 = vmatprep.subr.bf16.mxu1 %v21562_v8 }
 0xc62   :  { %19053 = vmatpush3.bf16.msra.mxu1 %v21562_v8 }
 0xc63   :  { %19070 = vmatprep.subr.bf16.mxu1 %v21563_v26 }
 0xc65   :  { %19055 = vmatmul.mubr.bf16.vlgmr.msra.gmra.mrb[52].mxu1 %v14281_v9 }
 0xc66   :  { %19071 = vmatpush3.bf16.msra.mxu1 %v21563_v26  ;;  %19058 = vmatprep.mubr.bf16.mxu1 %v14282_v44  ;;  %v15110_v44 = vld [vmem:[#allocation2 + $0x2] sm:$0xff] }
 0xc67   :  { %19072 = vmatprep.subr.bf16.mxu1 %v21564_v53 }
 0xc6a   :  { %19073 = vmatpush3.bf16.msra.mxu1 %v21564_v53  ;;  %v21583_v53 = vld [vmem:[#allocation27 + $0x8] sm:$0xff]  }
 0xc6b   :  { %19074 = vmatprep.subr.bf16.mxu1 %v21565_v23 }
 0xc6d   :  { %19059 = vmatmul.mubr.bf16.gmra.mrb[56].mxu1 %v14283_v55 }
 0xc6e   :  { %19075 = vmatpush3.bf16.msra.mxu1 %v21565_v23  ;;  %19062 = vmatprep.mubr.bf16.mxu1 %v14284_v37  ;;  %v21604_v23 = vld [vmem:[#allocation27 + $0xc8] sm:$0xff]  }
 0xc6f   :  { %19076 = vmatprep.subr.bf16.mxu1 %v21566_v60 }
 0xc72   :  { %19077 = vmatpush3.bf16.msra.mxu1 %v21566_v60 }
 0xc73   :  { %19078 = vmatprep.subr.bf16.mxu1 %v21567_v5 }
 0xc75   :  { %19063 = vmatmul.mubr.bf16.gmra.mrb[60].mxu1 %v14285_v57  ;;  %v25059_v57 = vld [vmem:[#allocation56_spill] sm:$0xff] }
 0xc76   :  { %19079 = vmatpush3.bf16.msra.mxu1 %v21567_v5  ;;  %19066 = vmatprep.mubr.bf16.mxu1 %v14286_v19  ;;  %v21585_v19 = vld [vmem:[#allocation27 + $0x10] sm:$0xff]  }
 0xc77   :  { %19080 = vmatprep.subr.bf16.mxu1 %v21568_v0 }
 0xc7a   :  { %19081 = vmatpush3.bf16.msra.mxu1 %v21568_v0 }
 0xc7b   :  { %19082 = vmatprep.subr.bf16.mxu1 %v21569_v4 }
 0xc7d   :  { %19067 = vmatmul.mubr.bf16.gmra.mrb[64].mxu1 %v14287_v14 }
 0xc7e   :  { %19083 = vmatpush3.bf16.msra.mxu1 %v21569_v4  ;;  %19086 = vmatprep.mubr.bf16.mxu1 %v24280_v62  ;;  %v14489_v62 = vpack.c.bf16 %v24429_v35, %v24399_v25  ;;  %v25060_v4 = vld [vmem:[#allocation57_spill] sm:$0xff] }
 0xc7f   :  { %19084 = vmatprep.subr.bf16.mxu1 %v21570_v6 }
 0xc82   :  { %19085 = vmatpush3.bf16.msra.mxu1 %v21570_v6 }
 0xc85   :  { %19087 = vmatmul.mubr.bf16.vlgmr.msra.gmra.mrb[52].mxu1 %v24286_v17  ;;  %v21578_v17 = vld [vmem:[#allocation27 + $0x78] sm:$0xff]  }
 0xc86   :  { %19090 = vmatprep.mubr.bf16.mxu1 %v24298_v16  ;;  %v24433_v16 = vld [vmem:[#allocation27 + $0x200] sm:$0xff]   ;;  %19116 = vmatprep.subr.bf16.mxu0 %v21578_v17 }
 0xc87   :  { %19420 = vmatprep.subr.bf16.mxu1 %v24433_v16  ;;  %19117 = vmatpush3.bf16.msra.mxu0 %v21578_v17 }
 0xc88   :  { %19428 = vmatpush3.bf16.msra.mxu1 %v24433_v16 }
 0xc8d   :  { %19091 = vmatmul.mubr.bf16.gmra.mrb[56].mxu1 %v14485_v48 }
 0xc8e   :  { %19094 = vmatprep.mubr.bf16.mxu1 %v24310_v30  ;;  %v24437_v30 = vld [vmem:[#allocation27 + $0x208] sm:$0xff]  }
 0xc8f   :  { %19421 = vmatprep.subr.bf16.mxu1 %v24437_v30 }
 0xc90   :  { %19429 = vmatpush3.bf16.msra.mxu1 %v24437_v30 }
 0xc95   :  { %19095 = vmatmul.mubr.bf16.gmra.mrb[60].mxu1 %v24316_v46  ;;  %v21581_v46 = vld [vmem:[#allocation27] sm:$0xff]  }
 0xc96   :  { %19098 = vmatprep.mubr.bf16.mxu1 %v24326_v56  ;;  %v24440_v56 = vld [vmem:[#allocation27 + $0x210] sm:$0xff]   ;;  %19134 = vmatprep.subr.bf16.mxu0 %v21581_v46 }
 0xc97   :  { %25048 = vst [vmem:[#allocation49_spill] sm:$0xff] %v24440_v56  ;;  %19422 = vmatprep.subr.bf16.mxu1 %v24440_v56 }
 0xc98   :  { %19430 = vmatpush3.bf16.msra.mxu1 %v24440_v56 }
 0xc99   :  { %19423 = vmatprep.subr.bf16.mxu1 %v24445_v1 }
 0xc9c   :  { %19431 = vmatpush3.bf16.msra.mxu1 %v24445_v1  ;;  %v21606_v1 = vld [vmem:[#allocation27 + $0xd8] sm:$0xff]  }
 0xc9d   :  { %19099 = vmatmul.mubr.bf16.gmra.mrb[64].mxu1 %v14489_v62  ;;  %19424 = vmatprep.subr.bf16.mxu1 %v24448_v32 }
 0xca0   :  { %19432 = vmatpush3.bf16.msra.mxu1 %v24448_v32 }
 0xca1   :  { %19425 = vmatprep.subr.bf16.mxu1 %v24452_v61 }
 0xca4   :  { %19433 = vmatpush3.bf16.msra.mxu1 %v24452_v61 }
 0xca5   :  { %19426 = vmatprep.subr.bf16.mxu1 %v24456_v42 }
 0xca8   :  { %19434 = vmatpush3.bf16.msra.mxu1 %v24456_v42  ;;  %v21602_v42 = vld [vmem:[#allocation27 + $0xb8] sm:$0xff]  }
 0xca9   :  { %19427 = vmatprep.subr.bf16.mxu1 %v24460_v18 }
 0xcac   :  { %19435 = vmatpush3.bf16.msra.mxu1 %v24460_v18 }
 0xd58   :  { %v19088_v43 = vpop.f32.mrb[52].mxu1 }
 0xd59   :  { %v14677_v24 = vadd.f32 %v19088_v43, %v24465_v52  ;;  %v14589_v22 = vpop.f32.mrb[53].mxu1  ;;  %v21587_v43 = vld [vmem:[#allocation27 + $0x18] sm:$0xff]  }
 0xd5a   :  { %v14675_v45 = vadd.f32 %v24465_v52, %v14589_v22  ;;  %v19089_v20 = vpop.f32.mrb[54].mxu1 }
 0xd5b   :  { %v14693_v58 = vmax.f32 %v14677_v24, 0.0  ;;  %v14678_v39 = vadd.f32 %v19089_v20, %v24465_v52  ;;  %v14592_v3 = vpop.f32.mrb[55].mxu1 }
 0xd5c   :  { %v14691_v31 = vmax.f32 %v14675_v45, 0.0  ;;  %v14676_v12 = vadd.f32 %v24465_v52, %v14592_v3  ;;  %v21601_v3 = vld [vmem:[#allocation27 + $0xb0] sm:$0xff]  }
 0xd5d   :  { %v24472_v36 = vadd.f32 %v14693_v58, %v25054_v27  ;;  %v14694_v25 = vmax.f32 %v14678_v39, 0.0 }
 0xd5e   :  { %v24475_v59 = vadd.f32 %v14691_v31, %v25055_v49  ;;  %v14692_v29 = vmax.f32 %v14676_v12, 0.0  ;;  %v25062_v31 = vld [vmem:[#allocation59_spill] sm:$0xff] }
 0xd5f   :  { %14725 = vst [vmem:[#allocation2 + $0x31] sm:$0xff] %v24472_v36  ;;  %v24479_v63 = vadd.f32 %v14694_v25, %v25056_v50  ;;  %v14787_v25 = vld [vmem:[#allocation2 + $0xa1] sm:$0xff]  ;;  %v21589_v50 = vld [vmem:[#allocation27 + $0x20] sm:$0xff]  }
 0xd60   :  { %14723 = vst [vmem:[#allocation2 + $0x11] sm:$0xff] %v24475_v59  ;;  %v24483_v28 = vadd.f32 %v14692_v29, %v25057_v40  ;;  %v19092_v21 = vpop.f32.mrb[56].mxu1  ;;  %v14795_v13 = vpack.c.bf16 %v24475_v59, %v14779_v41  ;;  %v25063_v41 = vld [vmem:[#allocation60_spill] sm:$0xff]  ;;  %v25064_v40 = vld [vmem:[#allocation61_spill] sm:$0xff] }
 0xd61   :  { %14726 = vst [vmem:[#allocation2 + $0x41] sm:$0xff] %v24479_v63  ;;  %v14681_v11 = vadd.f32 %v19092_v21, %v24465_v52  ;;  %v14605_v8 = vpop.f32.mrb[57].mxu1 }
 0xd62   :  { %14724 = vst [vmem:[#allocation2 + $0x21] sm:$0xff] %v24483_v28  ;;  %v14679_v51 = vadd.f32 %v24465_v52, %v14605_v8  ;;  %v19093_v26 = vpop.f32.mrb[58].mxu1  ;;  %19118 = vmatprep.mubr.bf16.mxu0 %v14795_v13  ;;  %v14796_v9 = vpack.c.bf16 %v24472_v36, %v24483_v28  ;;  %v25065_v13 = vld [vmem:[#allocation62_spill] sm:$0xff] }
 0xd63   :  { %v14697_v2 = vmax.f32 %v14681_v11, 0.0  ;;  %v14682_v55 = vadd.f32 %v19093_v26, %v24465_v52  ;;  %v14608_v60 = vpop.f32.mrb[59].mxu1 }
 0xd64   :  { %v14695_v37 = vmax.f32 %v14679_v51, 0.0  ;;  %v14680_v5 = vadd.f32 %v24465_v52, %v14608_v60  ;;  %19119 = vmatmul.mubr.bf16.vlgmr.msra.gmra.mrb[52].mxu0 %v14796_v9  ;;  %v21591_v60 = vld [vmem:[#allocation27 + $0x28] sm:$0xff]  }
 0xd65   :  { %v24499_v33 = vadd.f32 %v14697_v2, %v25058_v10  ;;  %v14698_v15 = vmax.f32 %v14682_v55, 0.0  ;;  %19135 = vmatpush3.bf16.msra.mxu0 %v21581_v46 }
 0xd66   :  { %v24502_v34 = vadd.f32 %v14695_v37, %v25059_v57  ;;  %v14696_v0 = vmax.f32 %v14680_v5, 0.0  ;;  %19136 = vmatprep.subr.bf16.mxu0 %v21583_v53 }
 0xd67   :  { %14729 = vst [vmem:[#allocation2 + $0x71] sm:$0xff] %v24499_v33  ;;  %v24506_v7 = vadd.f32 %v14698_v15, %v25060_v4  ;;  %v25066_v4 = vld [vmem:[#allocation63_spill] sm:$0xff] }
 0xd68   :  { %14727 = vst [vmem:[#allocation2 + $0x51] sm:$0xff] %v24502_v34  ;;  %v24510_v14 = vadd.f32 %v14696_v0, %v25061_v47  ;;  %v19096_v6 = vpop.f32.mrb[60].mxu1  ;;  %v14797_v54 = vpack.c.bf16 %v24502_v34, %v24479_v63 }
 0xd69   :  { %14730 = vst [vmem:[#allocation2 + $0x81] sm:$0xff] %v24506_v7  ;;  %v14685_v48 = vadd.f32 %v19096_v6, %v24465_v52  ;;  %v14621_v62 = vpop.f32.mrb[61].mxu1  ;;  %19137 = vmatpush3.bf16.msra.mxu0 %v21583_v53 }
 0xd6a   :  { %14728 = vst [vmem:[#allocation2 + $0x61] sm:$0xff] %v24510_v14  ;;  %v14683_v38 = vadd.f32 %v24465_v52, %v14621_v62  ;;  %v19097_v17 = vpop.f32.mrb[62].mxu1  ;;  %19122 = vmatprep.mubr.bf16.mxu0 %v14797_v54  ;;  %19138 = vmatprep.subr.bf16.mxu0 %v21585_v19  ;;  %v14798_v46 = vpack.c.bf16 %v24499_v33, %v24510_v14  ;;  %v25067_v54 = vld [vmem:[#allocation64_spill] sm:$0xff] }
 0xd6b   :  { %v14701_v24 = vmax.f32 %v14685_v48, 0.0  ;;  %v14686_v22 = vadd.f32 %v19097_v17, %v24465_v52  ;;  %v14624_v45 = vpop.f32.mrb[63].mxu1 }
 0xd6c   :  { %v14699_v20 = vmax.f32 %v14683_v38, 0.0  ;;  %v14684_v58 = vadd.f32 %v24465_v52, %v14624_v45  ;;  %19123 = vmatmul.mubr.bf16.gmra.mrb[56].mxu0 %v14798_v46  ;;  %v21593_v38 = vld [vmem:[#allocation27 + $0x30] sm:$0xff]  }
 0xd6d   :  { %v24527_v12 = vadd.f32 %v14701_v24, %v25062_v31  ;;  %v14702_v27 = vmax.f32 %v14686_v22, 0.0  ;;  %19139 = vmatpush3.bf16.msra.mxu0 %v21585_v19  ;;  %v25069_v46 = vld [vmem:[#allocation66_spill] sm:$0xff]  ;;  %v24569_v22 = vld [vmem:[#allocation2 + $0x10] sm:$0xff] }
 0xd6e   :  { %v24530_v49 = vadd.f32 %v14699_v20, %v25063_v41  ;;  %v14700_v29 = vmax.f32 %v14684_v58, 0.0  ;;  %19140 = vmatprep.subr.bf16.mxu0 %v21587_v43  ;;  %v21594_v20 = vld [vmem:[#allocation27 + $0x38] sm:$0xff]  }
 0xd6f   :  { %14733 = vst [vmem:[#allocation2 + $0xd1] sm:$0xff] %v24527_v12  ;;  %v24534_v21 = vadd.f32 %v14702_v27, %v25064_v40  ;;  %v24575_v58 = vld [vmem:[#allocation2 + $0x22] sm:$0xff] }
 0xd70   :  { %14731 = vst [vmem:[#allocation2 + $0xb1] sm:$0xff] %v24530_v49  ;;  %v24538_v11 = vadd.f32 %v14700_v29, %v25065_v13  ;;  %v19100_v8 = vpop.f32.mrb[64].mxu1  ;;  %v14799_v51 = vpack.c.bf16 %v24530_v49, %v14787_v25  ;;  %v24577_v31 = vld [vmem:[#allocation2] sm:$0xff]  ;;  %v24585_v29 = vld [vmem:[#allocation2 + $0x12] sm:$0xff] }
 0xd71   :  { %14734 = vst [vmem:[#allocation2 + $0xe1] sm:$0xff] %v24534_v21  ;;  %v14689_v26 = vadd.f32 %v19100_v8, %v24465_v52  ;;  %v14637_v9 = vpop.f32.mrb[65].mxu1  ;;  %19141 = vmatpush3.bf16.msra.mxu0 %v21587_v43  ;;  %v14755_v27 = vpack.c.bf16 %v24569_v22, %v24577_v31  ;;  %v21595_v13 = vld [vmem:[#allocation27 + $0x80] sm:$0xff]   ;;  %v15126_v61 = vpack.c.bf16 %v24585_v29, %v15110_v44  ;;  %v15118_v44 = vld [vmem:[#allocation2 + $0xa2] sm:$0xff] }
 0xd72   :  { %14732 = vst [vmem:[#allocation2 + $0xc1] sm:$0xff] %v24538_v11  ;;  %v14687_v53 = vadd.f32 %v24465_v52, %v14637_v9  ;;  %v19101_v2 = vpop.f32.mrb[66].mxu1  ;;  %19126 = vmatprep.mubr.bf16.mxu0 %v14799_v51  ;;  %19142 = vmatprep.subr.bf16.mxu0 %v21589_v50  ;;  %v14800_v55 = vpack.c.bf16 %v24527_v12, %v24538_v11  ;;  %v24591_v8 = vld [vmem:[#allocation2 + $0x32] sm:$0xff]  ;;  %v24593_v51 = vld [vmem:[#allocation2 + $0x20] sm:$0xff] }
 0xd73   :  { %v14705_v37 = vmax.f32 %v14689_v26, 0.0  ;;  %v14690_v5 = vadd.f32 %v19101_v2, %v24465_v52  ;;  %v14640_v10 = vpop.f32.mrb[67].mxu1 }
 0xd74   :  { %v14703_v15 = vmax.f32 %v14687_v53, 0.0  ;;  %v14688_v57 = vadd.f32 %v24465_v52, %v14640_v10  ;;  %19127 = vmatmul.mubr.bf16.gmra.mrb[60].mxu0 %v14800_v55  ;;  %v25068_v52 = vld [vmem:[#allocation65_spill] sm:$0xff] }
 0xd75   :  { %v24554_v47 = vadd.f32 %v14705_v37, %v25066_v4  ;;  %v14706_v6 = vmax.f32 %v14690_v5, 0.0  ;;  %19143 = vmatpush3.bf16.msra.mxu0 %v21589_v50  ;;  %v24587_v50 = vld [vmem:[#allocation2 + $0x42] sm:$0xff]  ;;  %v24599_v53 = vld [vmem:[#allocation2 + $0x30] sm:$0xff] }
 0xd76   :  { %v24557_v48 = vadd.f32 %v14703_v15, %v25067_v54  ;;  %v14704_v62 = vmax.f32 %v14688_v57, 0.0  ;;  %19144 = vmatprep.subr.bf16.mxu0 %v21591_v60  ;;  %v24613_v5 = vpack.c.bf16 %v24599_v53, %v24593_v51  ;;  %v21596_v10 = vld [vmem:[#allocation27 + $0x88] sm:$0xff]   ;;  %v24615_v15 = vld [vmem:[#allocation2 + $0x62] sm:$0xff] }
 0xd77   :  { %14737 = vst [vmem:[#allocation2 + $0x111] sm:$0xff] %v24554_v47  ;;  %v24561_v17 = vadd.f32 %v14706_v6, %v25068_v52  ;;  %v24619_v4 = vld [vmem:[#allocation2 + $0x40] sm:$0xff]  ;;  %v24627_v54 = vld [vmem:[#allocation2 + $0x52] sm:$0xff] }
 0xd78   :  { %14735 = vst [vmem:[#allocation2 + $0xf1] sm:$0xff] %v24557_v48  ;;  %v24565_v43 = vadd.f32 %v14704_v62, %v25069_v46  ;;  %v14801_v24 = vpack.c.bf16 %v24557_v48, %v24534_v21  ;;  %v24634_v52 = vld [vmem:[#allocation2 + $0xb0] sm:$0xff]  ;;  %v24697_v32 = vpack.c.bf16 %v24627_v54, %v24587_v50 }
 0xd79   :  { %14738 = vst [vmem:[#allocation2 + $0x121] sm:$0xff] %v24561_v17  ;;  %19145 = vmatpush3.bf16.msra.mxu0 %v21591_v60  ;;  %v24605_v60 = vld [vmem:[#allocation2 + $0x50] sm:$0xff]  ;;  %v24655_v40 = vld [vmem:[#allocation2 + $0xc0] sm:$0xff] }
 0xd7a   :  { %14736 = vst [vmem:[#allocation2 + $0x101] sm:$0xff] %v24565_v43  ;;  %19130 = vmatprep.mubr.bf16.mxu0 %v14801_v24  ;;  %19146 = vmatprep.subr.bf16.mxu0 %v21593_v38  ;;  %v14802_v45 = vpack.c.bf16 %v24554_v47, %v24565_v43  ;;  %v24625_v6 = vpack.c.bf16 %v24605_v60, %v24619_v4  ;;  %v24636_v46 = vld [vmem:[#allocation2 + $0x70] sm:$0xff]  ;;  %25071 = vst [vmem:[#allocation52_spill] sm:$0xff] %v24697_v32 }
 0xd7b   :  { %v21599_v62 = vld [vmem:[#allocation27 + $0xa0] sm:$0xff]  }
 0xd7c   :  { %19131 = vmatmul.mubr.bf16.gmra.mrb[64].mxu0 %v14802_v45  ;;  %v21598_v45 = vld [vmem:[#allocation27 + $0x98] sm:$0xff]   ;;  %v24653_v26 = vld [vmem:[#allocation2 + $0xd2] sm:$0xff] }
 0xd7d   :  { %19147 = vmatpush3.bf16.msra.mxu0 %v21593_v38  ;;  %19150 = vmatprep.mubr.bf16.mxu0 %v14755_v27  ;;  %v24632_v38 = vld [vmem:[#allocation2 + $0x60] sm:$0xff]  ;;  %v14759_v27 = vpack.c.bf16 %v24634_v52, %v24577_v31  ;;  %v24661_v19 = vld [vmem:[#allocation2 + $0xd0] sm:$0xff] }
 0xd7e   :  { %19148 = vmatprep.subr.bf16.mxu0 %v21594_v20  ;;  %v24603_v55 = vld [vmem:[#allocation2 + $0x112] sm:$0xff]  ;;  %v24640_v24 = vpack.c.bf16 %v24636_v46, %v24632_v38 }
 0xd7f   :  { %v24659_v25 = vld [vmem:[#allocation2 + $0xf0] sm:$0xff] }
 0xd80   :  { %v24597_v9 = vld [vmem:[#allocation2 + $0x122] sm:$0xff]  ;;  %v24674_v41 = vld [vmem:[#allocation2 + $0xf2] sm:$0xff] }
 0xd81   :  { %v24601_v2 = vld [vmem:[#allocation2 + $0x102] sm:$0xff]  ;;  %19149 = vmatpush3.bf16.msra.mxu0 %v21594_v20  ;;  %v16345_v57 = vpack.c.bf16 %v24429_v35, %v24597_v9  ;;  %v24683_v18 = vld [vmem:[#allocation2 + $0x110] sm:$0xff] }
 0xd82   :  { %v24609_v37 = vpack.c.bf16 %v24603_v55, %v24601_v2  ;;  %19166 = vmatprep.subr.bf16.mxu0 %v21595_v13  ;;  %v21597_v35 = vld [vmem:[#allocation27 + $0x90] sm:$0xff]  }
 0xd83   :  { %v24642_v20 = vld [vmem:[#allocation2 + $0xc2] sm:$0xff] }
 0xd84   :  { %19386 = vmatprep.mubr.bf16.mxu1 %v24609_v37  ;;  %19151 = vmatmul.mubr.bf16.vlgmr.msra.gmra.mrb[52].mxu0 %v24613_v5  ;;  %v24679_v39 = vld [vmem:[#allocation2 + $0x100] sm:$0xff] }
 0xd85   :  { %19387 = vmatmul.mubr.bf16.vlgmr.msra.gmra.mrb[68].mxu1 %v16345_v57  ;;  %19167 = vmatpush3.bf16.msra.mxu0 %v21595_v13  ;;  %v24647_v13 = vld [vmem:[#allocation2 + $0xb2] sm:$0xff]  ;;  %v24649_v57 = vld [vmem:[#allocation2 + $0xe2] sm:$0xff] }
 0xd86   :  { %19154 = vmatprep.mubr.bf16.mxu0 %v24625_v6  ;;  %19168 = vmatprep.subr.bf16.mxu0 %v21596_v10  ;;  %v15130_v56 = vpack.c.bf16 %v24647_v13, %v15118_v44  ;;  %v21611_v44 = vld [vmem:[#allocation27 + $0x100] sm:$0xff]  }
 0xd89   :  { %19169 = vmatpush3.bf16.msra.mxu0 %v21596_v10  ;;  %v21600_v10 = vld [vmem:[#allocation27 + $0xa8] sm:$0xff]  }
 0xd8a   :  { %19170 = vmatprep.subr.bf16.mxu0 %v21597_v35 }
 0xd8c   :  { %19155 = vmatmul.mubr.bf16.gmra.mrb[56].mxu0 %v24640_v24 }
 0xd8d   :  { %19171 = vmatpush3.bf16.msra.mxu0 %v21597_v35  ;;  %19158 = vmatprep.mubr.bf16.mxu0 %v14759_v27  ;;  %v24665_v35 = vpack.c.bf16 %v24661_v19, %v24655_v40  ;;  %v24667_v27 = vld [vmem:[#allocation2 + $0xe0] sm:$0xff] }
 0xd8e   :  { %19172 = vmatprep.subr.bf16.mxu0 %v21598_v45  ;;  %v24671_v0 = vpack.c.bf16 %v24659_v25, %v24667_v27 }
 0xd91   :  { %19173 = vmatpush3.bf16.msra.mxu0 %v21598_v45  ;;  %v21603_v45 = vld [vmem:[#allocation27 + $0xc0] sm:$0xff]  }
 0xd92   :  { %19174 = vmatprep.subr.bf16.mxu0 %v21599_v62 }
 0xd94   :  { %19159 = vmatmul.mubr.bf16.gmra.mrb[60].mxu0 %v24665_v35 }
 0xd95   :  { %19175 = vmatpush3.bf16.msra.mxu0 %v21599_v62  ;;  %19162 = vmatprep.mubr.bf16.mxu0 %v24671_v0  ;;  %v24687_v62 = vpack.c.bf16 %v24683_v18, %v24679_v39 }
 0xd96   :  { %19176 = vmatprep.subr.bf16.mxu0 %v21600_v10 }
 0xd99   :  { %19177 = vmatpush3.bf16.msra.mxu0 %v21600_v10  ;;  %v24693_v10 = vpack.c.bf16 %v24591_v8, %v24575_v58 }
 0xd9a   :  { %19178 = vmatprep.subr.bf16.mxu0 %v21601_v3 }
 0xd9b   :  { %25070 = vst [vmem:[#allocation51_spill] sm:$0xff] %v24693_v10 }
 0xd9c   :  { %19163 = vmatmul.mubr.bf16.gmra.mrb[64].mxu0 %v24687_v62 }
 0xd9d   :  { %19179 = vmatpush3.bf16.msra.mxu0 %v21601_v3  ;;  %19182 = vmatprep.mubr.bf16.mxu0 %v15126_v61  ;;  %v21605_v61 = vld [vmem:[#allocation27 + $0xd0] sm:$0xff]  }
 0xd9e   :  { %19180 = vmatprep.subr.bf16.mxu0 %v21602_v42 }
 0xda1   :  { %19181 = vmatpush3.bf16.msra.mxu0 %v21602_v42  ;;  %v24701_v42 = vld [vmem:[#allocation2 + $0x72] sm:$0xff] }
 0xda2   :  { %19198 = vmatprep.subr.bf16.mxu0 %v21603_v45  ;;  %v24705_v3 = vpack.c.bf16 %v24701_v42, %v24615_v15 }
 0xda4   :  { %19183 = vmatmul.mubr.bf16.vlgmr.msra.gmra.mrb[52].mxu0 %v24693_v10  ;;  %v24715_v10 = vpack.c.bf16 %v24674_v41, %v24649_v57 }
 0xda5   :  { %19199 = vmatpush3.bf16.msra.mxu0 %v21603_v45  ;;  %19186 = vmatprep.mubr.bf16.mxu0 %v24697_v32  ;;  %v21607_v45 = vld [vmem:[#allocation27 + $0xe0] sm:$0xff]   ;;  %v21608_v32 = vld [vmem:[#allocation27 + $0xe8] sm:$0xff]  }
 0xda6   :  { %19200 = vmatprep.subr.bf16.mxu0 %v21604_v23  ;;  %25072 = vst [vmem:[#allocation53_spill] sm:$0xff] %v24715_v10 }
 0xda9   :  { %19201 = vmatpush3.bf16.msra.mxu0 %v21604_v23  ;;  %v24711_v23 = vpack.c.bf16 %v24653_v26, %v24642_v20 }
 0xdaa   :  { %19202 = vmatprep.subr.bf16.mxu0 %v21605_v61 }
 0xdac   :  { %19187 = vmatmul.mubr.bf16.gmra.mrb[56].mxu0 %v24705_v3 }
 0xdad   :  { %19203 = vmatpush3.bf16.msra.mxu0 %v21605_v61  ;;  %19190 = vmatprep.mubr.bf16.mxu0 %v15130_v56  ;;  %v21609_v56 = vld [vmem:[#allocation27 + $0xf0] sm:$0xff]   ;;  %v15328_v61 = vpack.c.bf16 %v24593_v51, %v24569_v22 }
 0xdae   :  { %19204 = vmatprep.subr.bf16.mxu0 %v21606_v1  ;;  %v21613_v22 = vld [vmem:[#allocation27 + $0x110] sm:$0xff]  }
 0xdaf   :  { %v24726_v51 = vld [vmem:[#allocation2 + $0x80] sm:$0xff] }
 0xdb1   :  { %19205 = vmatpush3.bf16.msra.mxu0 %v21606_v1  ;;  %v21610_v1 = vld [vmem:[#allocation27 + $0xf8] sm:$0xff]  }
 0xdb2   :  { %19206 = vmatprep.subr.bf16.mxu0 %v21607_v45 }
 0xdb4   :  { %19191 = vmatmul.mubr.bf16.gmra.mrb[60].mxu0 %v24711_v23 }
 0xdb5   :  { %19207 = vmatpush3.bf16.msra.mxu0 %v21607_v45  ;;  %19194 = vmatprep.mubr.bf16.mxu0 %v24715_v10  ;;  %v15329_v45 = vpack.c.bf16 %v24619_v4, %v24599_v53  ;;  %v21612_v10 = vld [vmem:[#allocation27 + $0x108] sm:$0xff]   ;;  %v15332_v53 = vpack.c.bf16 %v24655_v40, %v24634_v52  ;;  %v15333_v4 = vpack.c.bf16 %v24667_v27, %v24661_v19  ;;  %v24736_v40 = vld [vmem:[#allocation2 + $0x120] sm:$0xff] }
 0xdb6   :  { %19208 = vmatprep.subr.bf16.mxu0 %v21608_v32  ;;  %v15335_v52 = vpack.c.bf16 %v24736_v40, %v24683_v18  ;;  %v25073_v19 = vpack.c.bf16 %v24483_v28, %v24475_v59  ;;  %v25074_v27 = vpack.c.bf16 %v24479_v63, %v24472_v36  ;;  %v25075_v18 = vpack.c.bf16 %v24510_v14, %v24502_v34  ;;  %v21622_v59 = vld [vmem:[#allocation27 + $0x158] sm:$0xff]   ;;  %v21623_v36 = vld [vmem:[#allocation27 + $0x160] sm:$0xff]   ;;  %v21624_v63 = vld [vmem:[#allocation27 + $0x168] sm:$0xff]  }
 0xdb7   :  { %v25076_v28 = vpack.c.bf16 %v24506_v7, %v24499_v33  ;;  %v25078_v34 = vpack.c.bf16 %v24534_v21, %v24527_v12  ;;  %v25079_v14 = vpack.c.bf16 %v24565_v43, %v24557_v48  ;;  %v21625_v33 = vld [vmem:[#allocation27 + $0x170] sm:$0xff]   ;;  %v21626_v7 = vld [vmem:[#allocation27 + $0x178] sm:$0xff]   ;;  %v21627_v12 = vld [vmem:[#allocation27 + $0x180] sm:$0xff]   ;;  %v25082_v48 = vpack.c.bf16 %v24587_v50, %v24591_v8 }
 0xdb8   :  { %v21628_v21 = vld [vmem:[#allocation27 + $0x188] sm:$0xff]   ;;  %v25083_v43 = vpack.c.bf16 %v24615_v15, %v24627_v54  ;;  %v25084_v50 = vpack.c.bf16 %v24642_v20, %v24647_v13  ;;  %v21631_v8 = vld [vmem:[#allocation27 + $0x1a0] sm:$0xff]   ;;  %v25085_v54 = vpack.c.bf16 %v24649_v57, %v24653_v26  ;;  %v21634_v20 = vld [vmem:[#allocation27 + $0x1b8] sm:$0xff]   ;;  %v25087_v13 = vpack.c.bf16 %v24597_v9, %v24603_v55 }
 0xdb9   :  { %19209 = vmatpush3.bf16.msra.mxu0 %v21608_v32  ;;  %v15330_v32 = vpack.c.bf16 %v24632_v38, %v24605_v60  ;;  %v21615_v60 = vld [vmem:[#allocation27 + $0x120] sm:$0xff]   ;;  %v21616_v38 = vld [vmem:[#allocation27 + $0x128] sm:$0xff]   ;;  %v15937_v9 = vpack.c.bf16 %v24577_v31, %v24726_v51 }
 0xdba   :  { %19210 = vmatprep.subr.bf16.mxu0 %v21609_v56  ;;  %v21632_v15 = vld [vmem:[#allocation27 + $0x1a8] sm:$0xff]   ;;  %v21635_v26 = vld [vmem:[#allocation27 + $0x1c0] sm:$0xff]  }
 0xdbb   :  { %v21636_v57 = vld [vmem:[#allocation27 + $0x1c8] sm:$0xff]   ;;  %v21639_v55 = vld [vmem:[#allocation27 + $0x1e0] sm:$0xff]  }
 0xdbc   :  { %19195 = vmatmul.mubr.bf16.gmra.mrb[64].mxu0 %v24609_v37  ;;  %v15331_v37 = vpack.c.bf16 %v24726_v51, %v24636_v46  ;;  %v21617_v46 = vld [vmem:[#allocation27 + $0x130] sm:$0xff]  }
 0xdbd   :  { %19211 = vmatpush3.bf16.msra.mxu0 %v21609_v56  ;;  %19214 = vmatprep.mubr.bf16.mxu0 %v15328_v61  ;;  %v21614_v56 = vld [vmem:[#allocation27 + $0x118] sm:$0xff]   ;;  %v21621_v61 = vld [vmem:[#allocation27 + $0x150] sm:$0xff]  }
 0xdbe   :  { %19212 = vmatprep.subr.bf16.mxu0 %v21610_v1 }
 0xdc1   :  { %19213 = vmatpush3.bf16.msra.mxu0 %v21610_v1  ;;  %v21618_v1 = vld [vmem:[#allocation27 + $0x138] sm:$0xff]  }
 0xdc2   :  { %19230 = vmatprep.subr.bf16.mxu0 %v21611_v44 }
 0xdc4   :  { %19215 = vmatmul.mubr.bf16.vlgmr.msra.gmra.mrb[52].mxu0 %v15329_v45  ;;  %v21633_v45 = vld [vmem:[#allocation27 + $0x1b0] sm:$0xff]  }
 0xdc5   :  { %19231 = vmatpush3.bf16.msra.mxu0 %v21611_v44  ;;  %19218 = vmatprep.mubr.bf16.mxu0 %v15330_v32  ;;  %v25077_v44 = vpack.c.bf16 %v24538_v11, %v24530_v49  ;;  %v25080_v49 = vpack.c.bf16 %v24561_v17, %v24554_v47  ;;  %v25081_v11 = vpack.c.bf16 %v24575_v58, %v24585_v29  ;;  %v21629_v47 = vld [vmem:[#allocation27 + $0x190] sm:$0xff]   ;;  %v21630_v29 = vld [vmem:[#allocation27 + $0x198] sm:$0xff]  }
 0xdc6   :  { %19232 = vmatprep.subr.bf16.mxu0 %v21612_v10  ;;  %v24773_v17 = vld [vmem:[#allocation2 + $0x82] sm:$0xff]  ;;  %v15941_v32 = vpack.c.bf16 %v24577_v31, %v24736_v40  ;;  %v16129_v40 = vld [vmem:[#allocation2 + $0xd1] sm:$0xff] }
 0xdc7   :  { %v15735_v58 = vpack.c.bf16 %v24773_v17, %v24701_v42  ;;  %v25086_v42 = vpack.c.bf16 %v24601_v2, %v24674_v41  ;;  %v21637_v41 = vld [vmem:[#allocation27 + $0x1d0] sm:$0xff]   ;;  %v21638_v2 = vld [vmem:[#allocation27 + $0x1d8] sm:$0xff]  }
 0xdc8   :  { %v16126_v31 = vld [vmem:[#allocation2 + $0x81] sm:$0xff] }
 0xdc9   :  { %19233 = vmatpush3.bf16.msra.mxu0 %v21612_v10  ;;  %v15334_v10 = vpack.c.bf16 %v24679_v39, %v24659_v25  ;;  %v21619_v39 = vld [vmem:[#allocation27 + $0x140] sm:$0xff]   ;;  %v21620_v25 = vld [vmem:[#allocation27 + $0x148] sm:$0xff]  }
 0xdca   :  { %19234 = vmatprep.subr.bf16.mxu0 %v21613_v22 }
 0xdcc   :  { %19219 = vmatmul.mubr.bf16.gmra.mrb[56].mxu0 %v15331_v37  ;;  %v16123_v37 = vld [vmem:[#allocation2 + $0x51] sm:$0xff] }
 0xdcd   :  { %19235 = vmatpush3.bf16.msra.mxu0 %v21613_v22  ;;  %19222 = vmatprep.mubr.bf16.mxu0 %v15332_v53  ;;  %v16121_v22 = vld [vmem:[#allocation2 + $0x31] sm:$0xff] }
 0xdce   :  { %19236 = vmatprep.subr.bf16.mxu0 %v21614_v56  ;;  %v16125_v53 = vld [vmem:[#allocation2 + $0x71] sm:$0xff] }
 0xdd1   :  { %19237 = vmatpush3.bf16.msra.mxu0 %v21614_v56  ;;  %v16122_v56 = vld [vmem:[#allocation2 + $0x41] sm:$0xff] }
 0xdd2   :  { %19238 = vmatprep.subr.bf16.mxu0 %v21615_v60 }
 0xdd4   :  { %19223 = vmatmul.mubr.bf16.gmra.mrb[60].mxu0 %v15333_v4  ;;  %v16127_v4 = vld [vmem:[#allocation2 + $0x91] sm:$0xff] }
 0xdd5   :  { %19239 = vmatpush3.bf16.msra.mxu0 %v21615_v60  ;;  %19226 = vmatprep.mubr.bf16.mxu0 %v15334_v10  ;;  %v25088_v10 = vld [vmem:[#allocation49_spill] sm:$0xff] }
 0xdd6   :  { %19240 = vmatprep.subr.bf16.mxu0 %v21616_v38 }
 0xdd9   :  { %19241 = vmatpush3.bf16.msra.mxu0 %v21616_v38  ;;  %v16128_v38 = vld [vmem:[#allocation2 + $0xc1] sm:$0xff] }
 0xdda   :  { %19242 = vmatprep.subr.bf16.mxu0 %v21617_v46 }
 0xddc   :  { %19227 = vmatmul.mubr.bf16.gmra.mrb[64].mxu0 %v15335_v52  ;;  %v16140_v52 = vpack.c.bf16 %v16129_v40, %v16128_v38 }
 0xddd   :  { %19243 = vmatpush3.bf16.msra.mxu0 %v21617_v46  ;;  %19246 = vmatprep.mubr.bf16.mxu0 %v25073_v19  ;;  %v16139_v46 = vpack.c.bf16 %v16127_v4, %v16126_v31  ;;  %v16132_v19 = vld [vmem:[#allocation2 + $0x101] sm:$0xff] }
 0xdde   :  { %19244 = vmatprep.subr.bf16.mxu0 %v21618_v1 }
 0xde1   :  { %19245 = vmatpush3.bf16.msra.mxu0 %v21618_v1  ;;  %v25089_v1 = vld [vmem:[#allocation50_spill] sm:$0xff] }
 0xde2   :  { %19262 = vmatprep.subr.bf16.mxu0 %v21619_v39 }
 0xde4   :  { %19247 = vmatmul.mubr.bf16.vlgmr.msra.gmra.mrb[52].mxu0 %v25074_v27 }
 0xde5   :  { %19263 = vmatpush3.bf16.msra.mxu0 %v21619_v39  ;;  %19250 = vmatprep.mubr.bf16.mxu0 %v25075_v18  ;;  %v16130_v39 = vld [vmem:[#allocation2 + $0xe1] sm:$0xff] }
 0xde6   :  { %19264 = vmatprep.subr.bf16.mxu0 %v21620_v25 }
 0xde9   :  { %19265 = vmatpush3.bf16.msra.mxu0 %v21620_v25  ;;  %v25090_v25 = vld [vmem:[#allocation68_spill] sm:$0xff] }
 0xdea   :  { %19266 = vmatprep.subr.bf16.mxu0 %v21621_v61 }
 0xdec   :  { %19251 = vmatmul.mubr.bf16.gmra.mrb[56].mxu0 %v25076_v28  ;;  %v16135_v28 = vld [vmem:[#allocation2 + $0x131] sm:$0xff] }
 0xded   :  { %19267 = vmatpush3.bf16.msra.mxu0 %v21621_v61  ;;  %19254 = vmatprep.mubr.bf16.mxu0 %v25077_v44  ;;  %v25091_v61 = vld [vmem:[#allocation70_spill] sm:$0xff] }
 0xdee   :  { %19268 = vmatprep.subr.bf16.mxu0 %v21622_v59 }
 0xdf1   :  { %19269 = vmatpush3.bf16.msra.mxu0 %v21622_v59  ;;  %v16134_v59 = vld [vmem:[#allocation2 + $0x121] sm:$0xff] }
 0xdf2   :  { %19270 = vmatprep.subr.bf16.mxu0 %v21623_v36 }
 0xdf4   :  { %19255 = vmatmul.mubr.bf16.gmra.mrb[60].mxu0 %v25078_v34  ;;  %v25092_v34 = vld [vmem:[#allocation67_spill] sm:$0xff] }
 0xdf5   :  { %19271 = vmatpush3.bf16.msra.mxu0 %v21623_v36  ;;  %19258 = vmatprep.mubr.bf16.mxu0 %v25079_v14  ;;  %v16143_v14 = vpack.c.bf16 %v16135_v28, %v16134_v59 }
 0xdf6   :  { %19272 = vmatprep.subr.bf16.mxu0 %v21624_v63 }
 0xdf9   :  { %19273 = vmatpush3.bf16.msra.mxu0 %v21624_v63 }
 0xdfa   :  { %19274 = vmatprep.subr.bf16.mxu0 %v21625_v33 }
 0xdfc   :  { %19259 = vmatmul.mubr.bf16.gmra.mrb[64].mxu0 %v25080_v49  ;;  %v25094_v49 = vld [vmem:[#allocation69_spill] sm:$0xff] }
 0xdfd   :  { %19275 = vmatpush3.bf16.msra.mxu0 %v21625_v33  ;;  %19278 = vmatprep.mubr.bf16.mxu0 %v25081_v11  ;;  %v25095_v11 = vld [vmem:[#allocation52_spill] sm:$0xff] }
 0xdfe   :  { %19276 = vmatprep.subr.bf16.mxu0 %v21626_v7 }
 0xe01   :  { %19277 = vmatpush3.bf16.msra.mxu0 %v21626_v7  ;;  %v25093_v7 = vld [vmem:[#allocation51_spill] sm:$0xff] }
 0xe02   :  { %19294 = vmatprep.subr.bf16.mxu0 %v21627_v12 }
 0xe04   :  { %19279 = vmatmul.mubr.bf16.vlgmr.msra.gmra.mrb[52].mxu0 %v25082_v48  ;;  %v25096_v48 = vld [vmem:[#allocation53_spill] sm:$0xff] }
 0xe05   :  { %19295 = vmatpush3.bf16.msra.mxu0 %v21627_v12  ;;  %19282 = vmatprep.mubr.bf16.mxu0 %v25083_v43  ;;  %v16329_v12 = vld [vmem:[#allocation2 + $0x92] sm:$0xff] }
 0xe06   :  { %19296 = vmatprep.subr.bf16.mxu0 %v21628_v21 }
 0xe09   :  { %19297 = vmatpush3.bf16.msra.mxu0 %v21628_v21  ;;  %v16341_v21 = vpack.c.bf16 %v16329_v12, %v24773_v17 }
 0xe0a   :  { %19298 = vmatprep.subr.bf16.mxu0 %v21629_v47 }
 0xe0c   :  { %19283 = vmatmul.mubr.bf16.gmra.mrb[56].mxu0 %v15735_v58 }
 0xe0d   :  { %19299 = vmatpush3.bf16.msra.mxu0 %v21629_v47  ;;  %19286 = vmatprep.mubr.bf16.mxu0 %v25084_v50 }
 0xe0e   :  { %19300 = vmatprep.subr.bf16.mxu0 %v21630_v29 }
 0xe11   :  { %19301 = vmatpush3.bf16.msra.mxu0 %v21630_v29 }
 0xe12   :  { %19302 = vmatprep.subr.bf16.mxu0 %v21631_v8 }
 0xe14   :  { %19287 = vmatmul.mubr.bf16.gmra.mrb[60].mxu0 %v25085_v54 }
 0xe15   :  { %19303 = vmatpush3.bf16.msra.mxu0 %v21631_v8  ;;  %19290 = vmatprep.mubr.bf16.mxu0 %v25086_v42 }
 0xe16   :  { %19304 = vmatprep.subr.bf16.mxu0 %v21632_v15 }
 0xe19   :  { %19305 = vmatpush3.bf16.msra.mxu0 %v21632_v15 }
 0xe1a   :  { %19306 = vmatprep.subr.bf16.mxu0 %v21633_v45 }
 0xe1c   :  { %19291 = vmatmul.mubr.bf16.gmra.mrb[64].mxu0 %v25087_v13 }
 0xe1d   :  { %19307 = vmatpush3.bf16.msra.mxu0 %v21633_v45  ;;  %19310 = vmatprep.mubr.bf16.mxu0 %v24613_v5  ;;  %v21640_v5 = vld [vmem:[#allocation27 + $0x1e8] sm:$0xff]  }
 0xe1e   :  { %19308 = vmatprep.subr.bf16.mxu0 %v21634_v20 }
 0xe21   :  { %19309 = vmatpush3.bf16.msra.mxu0 %v21634_v20 }
 0xe22   :  { %19326 = vmatprep.subr.bf16.mxu0 %v21635_v26 }
 0xe24   :  { %19311 = vmatmul.mubr.bf16.vlgmr.msra.gmra.mrb[52].mxu0 %v24625_v6  ;;  %v21641_v6 = vld [vmem:[#allocation27 + $0x1f0] sm:$0xff]  }
 0xe25   :  { %19327 = vmatpush3.bf16.msra.mxu0 %v21635_v26  ;;  %19314 = vmatprep.mubr.bf16.mxu0 %v24640_v24  ;;  %v16120_v24 = vld [vmem:[#allocation2 + $0x21] sm:$0xff] }
 0xe26   :  { %19328 = vmatprep.subr.bf16.mxu0 %v21636_v57  ;;  %v16136_v51 = vpack.c.bf16 %v16121_v22, %v16120_v24 }
 0xe29   :  { %19329 = vmatpush3.bf16.msra.mxu0 %v21636_v57 }
 0xe2a   :  { %19330 = vmatprep.subr.bf16.mxu0 %v21637_v41 }
 0xe2c   :  { %19315 = vmatmul.mubr.bf16.gmra.mrb[56].mxu0 %v15937_v9 }
 0xe2d   :  { %19331 = vmatpush3.bf16.msra.mxu0 %v21637_v41  ;;  %19318 = vmatprep.mubr.bf16.mxu0 %v24665_v35  ;;  %v21642_v35 = vld [vmem:[#allocation27 + $0x1f8] sm:$0xff]  }
 0xe2e   :  { %19332 = vmatprep.subr.bf16.mxu0 %v21638_v2 }
 0xe31   :  { %19333 = vmatpush3.bf16.msra.mxu0 %v21638_v2 }
 0xe32   :  { %19334 = vmatprep.subr.bf16.mxu0 %v21639_v55 }
 0xe34   :  { %19319 = vmatmul.mubr.bf16.gmra.mrb[60].mxu0 %v24671_v0  ;;  %v16124_v0 = vld [vmem:[#allocation2 + $0x61] sm:$0xff] }
 0xe35   :  { %19335 = vmatpush3.bf16.msra.mxu0 %v21639_v55  ;;  %19322 = vmatprep.mubr.bf16.mxu0 %v24687_v62  ;;  %v16137_v62 = vpack.c.bf16 %v16123_v37, %v16122_v56  ;;  %v16138_v60 = vpack.c.bf16 %v16125_v53, %v16124_v0 }
 0xe36   :  { %19336 = vmatprep.subr.bf16.mxu0 %v21640_v5 }
 0xe39   :  { %19337 = vmatpush3.bf16.msra.mxu0 %v21640_v5 }
 0xe3a   :  { %19338 = vmatprep.subr.bf16.mxu0 %v21641_v6 }
 0xe3c   :  { %19323 = vmatmul.mubr.bf16.gmra.mrb[64].mxu0 %v15941_v32 }
 0xe3d   :  { %19339 = vmatpush3.bf16.msra.mxu0 %v21641_v6  ;;  %19342 = vmatprep.mubr.bf16.mxu0 %v16136_v51 }
 0xe3e   :  { %19340 = vmatprep.subr.bf16.mxu0 %v21642_v35 }
 0xe41   :  { %19341 = vmatpush3.bf16.msra.mxu0 %v21642_v35 }
 0xe42   :  { %19358 = vmatprep.subr.bf16.mxu0 %v24433_v16 }
 0xe44   :  { %19343 = vmatmul.mubr.bf16.vlgmr.msra.gmra.mrb[52].mxu0 %v16137_v62 }
 0xe45   :  { %19359 = vmatpush3.bf16.msra.mxu0 %v24433_v16  ;;  %19346 = vmatprep.mubr.bf16.mxu0 %v16138_v60  ;;  %v16131_v16 = vld [vmem:[#allocation2 + $0xf1] sm:$0xff] }
 0xe46   :  { %19360 = vmatprep.subr.bf16.mxu0 %v24437_v30  ;;  %v16141_v27 = vpack.c.bf16 %v16131_v16, %v16130_v39 }
 0xe49   :  { %19361 = vmatpush3.bf16.msra.mxu0 %v24437_v30  ;;  %v16133_v30 = vld [vmem:[#allocation2 + $0x111] sm:$0xff] }
 0xe4a   :  { %19362 = vmatprep.subr.bf16.mxu0 %v25088_v10  ;;  %v16142_v18 = vpack.c.bf16 %v16133_v30, %v16132_v19 }
 0xe4c   :  { %19347 = vmatmul.mubr.bf16.gmra.mrb[56].mxu0 %v16139_v46 }
 0xe4d   :  { %19363 = vmatpush3.bf16.msra.mxu0 %v25088_v10  ;;  %19350 = vmatprep.mubr.bf16.mxu0 %v16140_v52 }
 0xe4e   :  { %19364 = vmatprep.subr.bf16.mxu0 %v25089_v1 }
 0xe51   :  { %19365 = vmatpush3.bf16.msra.mxu0 %v25089_v1 }
 0xe52   :  { %19366 = vmatprep.subr.bf16.mxu0 %v25090_v25 }
 0xe54   :  { %19351 = vmatmul.mubr.bf16.gmra.mrb[60].mxu0 %v16141_v27 }
 0xe55   :  { %19367 = vmatpush3.bf16.msra.mxu0 %v25090_v25  ;;  %19354 = vmatprep.mubr.bf16.mxu0 %v16142_v18 }
 0xe56   :  { %19368 = vmatprep.subr.bf16.mxu0 %v25091_v61 }
 0xe58   :  { %v19388_v44 = vpop.f32.mrb[68].mxu1 }
 0xe59   :  { %v16493_v36 = vpop.f32.mrb[69].mxu1  ;;  %19369 = vmatpush3.bf16.msra.mxu0 %v25091_v61 }
 0xe5a   :  { %v19389_v63 = vpop.f32.mrb[70].mxu1  ;;  %19370 = vmatprep.subr.bf16.mxu0 %v25092_v34 }
 0xe5b   :  { %v16496_v33 = vpop.f32.mrb[71].mxu1 }
 0xe5c   :  { %19355 = vmatmul.mubr.bf16.gmra.mrb[64].mxu0 %v16143_v14 }
 0xe5d   :  { %19371 = vmatpush3.bf16.msra.mxu0 %v25092_v34  ;;  %19374 = vmatprep.mubr.bf16.mxu0 %v25093_v7 }
 0xe5e   :  { %19372 = vmatprep.subr.bf16.mxu0 %v25094_v49 }
 0xe61   :  { %19373 = vmatpush3.bf16.msra.mxu0 %v25094_v49 }
 0xe64   :  { %19375 = vmatmul.mubr.bf16.vlgmr.msra.gmra.mrb[52].mxu0 %v25095_v11 }
 0xe65   :  { %19378 = vmatprep.mubr.bf16.mxu0 %v24705_v3 }
 0xe6c   :  { %19379 = vmatmul.mubr.bf16.gmra.mrb[56].mxu0 %v16341_v21 }
 0xe6d   :  { %19382 = vmatprep.mubr.bf16.mxu0 %v24711_v23 }
 0xe74   :  { %19383 = vmatmul.mubr.bf16.gmra.mrb[60].mxu0 %v25096_v48 }
 0xe75   :  { %22333 = shalt.err (!%p22330_p8)
}
 0xe76   :  { %s22334_s0 = scalar_lea.hbm %s24904_s20, 2048 }
 0xe77   :  { %p22335_p9 = scmp.ne.s32.totalorder %s24904_s20, %s22334_s0  ;;  %p22338_p10 = scmp.lt.u32.totalorder %s22334_s0, %s24904_s20 }
 0xe79   :  { %p22340_p11 = pnand %p22338_p10, %p22335_p9 }
 0xe7b   :  { %22343 = shalt.err (!%p22340_p11)
}
 0xe7c   :  { %16634 = dma.vmem_to_hbm [thread:$0]  %s16629_s10, 2048, %s24904_s20, [#allocation35], %s24984_s22, %s24984_s22, %s24983_s30  }
 0xe7d   :  { %s22441_s14 = smov [#allocation36]  }
 0xe7e   :  { %s16640_s12 = sshll.u32 %s22441_s14, 4  ;;  %s16641_s12 = int_to_ptr.vmem [resolvable:$true] %s16640_s12 }
 0xe7f   :  { %s22344_s26 = scalar_lea.vmem %s16641_s12, 2048  ;;  %p22349_p13 = scmp.lt.s32.totalorder %s16641_s12, %s16641_s12 }
 0xe80   :  { %p22345_p12 = scmp.ne.s32.totalorder %s16641_s12, %s22344_s26  ;;  %p22350_p0 = scmp.lt.s32.totalorder %s22344_s26, %s22344_s26 }
 0xe82   :  { %p22351_p1 = por %p22350_p0, %p22349_p13 }
 0xe84   :  { %p22352_p2 = pnand %p22351_p1, %p22345_p12 }
 0xe86   :  { %22355 = shalt.err (!%p22352_p2)
}
 0xe87   :  { %s22356_s17 = scalar_lea.hbm %s24905_s21, 2048 }
 0xe88   :  { %p22357_p3 = scmp.ne.s32.totalorder %s24905_s21, %s22356_s17  ;;  %p22360_p4 = scmp.lt.u32.totalorder %s22356_s17, %s24905_s21 }
 0xe8a   :  { %p22362_p5 = pnand %p22360_p4, %p22357_p3 }
 0xe8c   :  { %22365 = shalt.err (!%p22362_p5)
}
 0xe8d   :  { %16646 = dma.vmem_to_hbm [thread:$0]  %s16641_s12, 2048, %s24905_s21, [#allocation35], %s24984_s22, %s24984_s22, %s24983_s30   ;;  %v24851_v23 = vld [vmem:[#allocation28] ss:$0 sm:$0xff] }
 0xe8e   :  { %s22442_s21 = smov [#allocation33]  }
 0xe8f   :  { %s16616_s16 = sshll.u32 %s22442_s21, 4  ;;  %s16617_s16 = int_to_ptr.vmem [resolvable:$true] %s16616_s16 }
 0xe90   :  { %s22366_s5 = scalar_lea.vmem %s16617_s16, 2048  ;;  %p22371_p7 = scmp.lt.s32.totalorder %s16617_s16, %s16617_s16 }
 0xe91   :  { %p22367_p6 = scmp.ne.s32.totalorder %s16617_s16, %s22366_s5  ;;  %p22372_p8 = scmp.lt.s32.totalorder %s22366_s5, %s22366_s5 }
 0xe93   :  { %p22373_p9 = por %p22372_p8, %p22371_p7 }
 0xe95   :  { %p22374_p10 = pnand %p22373_p9, %p22367_p6 }
 0xf2f   :  { %v19356_v3 = vpop.f32.mrb[64].mxu0 }
 0xf30   :  { %v19436_v43 = vadd.f32 %v19388_v44, %v19356_v3  ;;  %v16291_v47 = vpop.f32.mrb[65].mxu0 }
 0xf31   :  { %v19437_v17 = vadd.f32 %v16493_v36, %v16291_v47  ;;  %v19357_v58 = vpop.f32.mrb[66].mxu0 }
 0xf32   :  { %v16545_v29 = vadd.f32 %v19436_v43, %v24851_v23  ;;  %v19438_v50 = vadd.f32 %v19389_v63, %v19357_v58  ;;  %v16294_v8 = vpop.f32.mrb[67].mxu0 }
 0xf33   :  { %v16543_v15 = vadd.f32 %v19437_v17, %v24851_v23  ;;  %v19439_v54 = vadd.f32 %v16496_v33, %v16294_v8 }
 0xf34   :  { %v16561_v42 = vmax.f32 %v16545_v29, 0.0  ;;  %v16546_v45 = vadd.f32 %v19438_v50, %v24851_v23 }
 0xf35   :  { %v16559_v20 = vmax.f32 %v16543_v15, 0.0  ;;  %v16544_v13 = vadd.f32 %v19439_v54, %v24851_v23 }
 0xf36   :  { %16577 = vst [vmem:[#allocation33 + $0x70] sm:$0xff] %v16561_v42  ;;  %v16562_v26 = vmax.f32 %v16546_v45, 0.0 }
 0xf37   :  { %16575 = vst [vmem:[#allocation33 + $0x60] sm:$0xff] %v16559_v20  ;;  %v16560_v57 = vmax.f32 %v16544_v13, 0.0  ;;  %v19376_v41 = vpop.f32.mrb[52].mxu0 }
 0xf38   :  { %16578 = vst [vmem:[#allocation33 + $0x78] sm:$0xff] %v16562_v26  ;;  %v16533_v9 = vadd.f32 %v19376_v41, %v24851_v23  ;;  %v16445_v2 = vpop.f32.mrb[53].mxu0 }
 0xf39   :  { %16576 = vst [vmem:[#allocation33 + $0x68] sm:$0xff] %v16560_v57  ;;  %v16531_v55 = vadd.f32 %v24851_v23, %v16445_v2  ;;  %v19377_v5 = vpop.f32.mrb[54].mxu0 }
 0xf3a   :  { %v16549_v6 = vmax.f32 %v16533_v9, 0.0  ;;  %v16534_v24 = vadd.f32 %v19377_v5, %v24851_v23  ;;  %v16448_v32 = vpop.f32.mrb[55].mxu0 }
 0xf3b   :  { %v16547_v22 = vmax.f32 %v16531_v55, 0.0  ;;  %v16532_v35 = vadd.f32 %v24851_v23, %v16448_v32 }
 0xf3c   :  { %16565 = vst [vmem:[#allocation33 + $0x10] sm:$0xff] %v16549_v6  ;;  %v16550_v51 = vmax.f32 %v16534_v24, 0.0 }
 0xf3d   :  { %16563 = vst [vmem:[#allocation33] sm:$0xff] %v16547_v22  ;;  %v16548_v37 = vmax.f32 %v16532_v35, 0.0 }
 0xf3e   :  { %16566 = vst [vmem:[#allocation33 + $0x18] sm:$0xff] %v16550_v51 }
 0xf3f   :  { %16564 = vst [vmem:[#allocation33 + $0x8] sm:$0xff] %v16548_v37  ;;  %v19380_v0 = vpop.f32.mrb[56].mxu0 }
 0xf40   :  { %v16537_v56 = vadd.f32 %v19380_v0, %v24851_v23  ;;  %v16461_v62 = vpop.f32.mrb[57].mxu0 }
 0xf41   :  { %v16535_v53 = vadd.f32 %v24851_v23, %v16461_v62  ;;  %v19381_v60 = vpop.f32.mrb[58].mxu0 }
 0xf42   :  { %v16553_v31 = vmax.f32 %v16537_v56, 0.0  ;;  %v16538_v4 = vadd.f32 %v19381_v60, %v24851_v23  ;;  %v16464_v38 = vpop.f32.mrb[59].mxu0 }
 0xf43   :  { %v16551_v10 = vmax.f32 %v16535_v53, 0.0  ;;  %v16536_v46 = vadd.f32 %v24851_v23, %v16464_v38 }
 0xf44   :  { %16569 = vst [vmem:[#allocation33 + $0x30] sm:$0xff] %v16553_v31  ;;  %v16554_v40 = vmax.f32 %v16538_v4, 0.0 }
 0xf45   :  { %16567 = vst [vmem:[#allocation33 + $0x20] sm:$0xff] %v16551_v10  ;;  %v16552_v52 = vmax.f32 %v16536_v46, 0.0 }
 0xf46   :  { %16570 = vst [vmem:[#allocation33 + $0x38] sm:$0xff] %v16554_v40 }
 0xf47   :  { %16568 = vst [vmem:[#allocation33 + $0x28] sm:$0xff] %v16552_v52  ;;  %v19384_v1 = vpop.f32.mrb[60].mxu0 }
 0xf48   :  { %v16541_v16 = vadd.f32 %v19384_v1, %v24851_v23  ;;  %v16477_v19 = vpop.f32.mrb[61].mxu0 }
 0xf49   :  { %v16539_v39 = vadd.f32 %v24851_v23, %v16477_v19  ;;  %v19385_v25 = vpop.f32.mrb[62].mxu0 }
 0xf4a   :  { %v16557_v27 = vmax.f32 %v16541_v16, 0.0  ;;  %v16542_v30 = vadd.f32 %v19385_v25, %v24851_v23  ;;  %v16480_v18 = vpop.f32.mrb[63].mxu0 }
 0xf4b   :  { %v16555_v61 = vmax.f32 %v16539_v39, 0.0  ;;  %v16540_v59 = vadd.f32 %v24851_v23, %v16480_v18 }
 0xf4c   :  { %16573 = vst [vmem:[#allocation33 + $0x50] sm:$0xff] %v16557_v27  ;;  %v16558_v28 = vmax.f32 %v16542_v30, 0.0 }
 0xf4d   :  { %16571 = vst [vmem:[#allocation33 + $0x40] sm:$0xff] %v16555_v61  ;;  %v16556_v44 = vmax.f32 %v16540_v59, 0.0 }
 0xf4e   :  { %16574 = vst [vmem:[#allocation33 + $0x58] sm:$0xff] %v16558_v28 }
 0xf4f   :  { %16572 = vst [vmem:[#allocation33 + $0x48] sm:$0xff] %v16556_v44 }
 0xf50   :  { %22377 = shalt.err (!%p22374_p10)
}
 0xf51   :  { %s22378_s10 = scalar_lea.hbm %s24903_s19, 2048 }
 0xf52   :  { %p22379_p11 = scmp.ne.s32.totalorder %s24903_s19, %s22378_s10  ;;  %p22382_p12 = scmp.lt.u32.totalorder %s22378_s10, %s24903_s19 }
 0xf54   :  { %p22384_p13 = pnand %p22382_p12, %p22379_p11 }
 0xf56   :  { %22387 = shalt.err (!%p22384_p13)
}
 0xf57   :  { %16622 = dma.vmem_to_hbm [thread:$0]  %s16617_s16, 2048, %s24903_s19, [#allocation6], %s24984_s22, %s24984_s22, %s24983_s30  }
 0xf58   :  { %22408 = dma.done.wait [#allocation6], 2048  }
 0xf59   :  { %22409 = vsyncadd [#allocation6], 4294965248 }
 0xf5a   :  { %22410 = dma.done.wait [#allocation35], 4096  }
 0xf5b   :  { %22411 = vsyncadd [#allocation35], 4294963200 }
 0xf5c   :  { %16656 = vsyncpa [#allocation5], 1 }
 0xf5d   :  { %16657 = vsyncpa [#allocation8], 1 }
 0xf5e   :  { %16658 = vsyncpa [#allocation11], 1 }
 0xf5f   :  { %16659 = vsyncpa [#allocation14], 1 }
 0xf60   :  { %16660 = vsyncpa [#allocation17], 1 }
 0xf61   :  { %16661 = vsyncpa [#allocation20], 1 }
 0xf62   :  { %16662 = vsyncpa [#allocation23], 1 }
 0xf63   :  { %16663 = vsyncpa [#allocation26], 1 }
 0xf64   :  { %16664 = vsyncpa [#allocation29], 1 }
 0xf65   :  { %16665 = vsyncpa [#allocation32], 1 }
 0xf66   :  { %16666 = vsyncpa [#allocation6], 1 }
 0xf67   :  { %16667 = vsyncpa [#allocation35], 1 }

</bundles_post_ra>
